<compile_context>
chip_gen: v7x
topology: tpu7x:2x2x1
jax: 0.10.0
libtpu: 0.0.40
codegen_flags: <defaults>
</compile_context>

<pallas_src>
import functools

import jax
import jax.numpy as jnp
from jax.experimental import pallas as pl
from jax.experimental.pallas import tpu as pltpu

C_IN = 512
C_HID = 256
C_G = 64          # channel_list entries
C_OUT = 512
C_STACK = 3 * C_HID + C_OUT   # 1280 rows in the stacked x-path weight


def _dense_block_kernel(
    x_ref,
    wx_ref, w2cz_ref, w3cz_ref, w4cz_ref,
    w1d_ref, w2d_ref, w3d_ref,
    b1c_ref, b1d_ref, b2c_ref, b2d_ref, b3c_ref, b3d_ref, b4c_ref,
    o_ref,
    z_scr,
):
    dot = lambda a, b: jnp.dot(a, b, preferred_element_type=jnp.float32)
    relu = lambda v: jnp.maximum(v, 0.0)
    bf16 = lambda v: v.astype(jnp.bfloat16)

    x = bf16(x_ref[...])                                   # (512, TS) bf16

    # ---- All K=512 (x-path) contributions as ONE dependency-free matmul ----
    hx = dot(wx_ref[...], x)                               # (1280, TS) f32
    h1x = hx[0:C_HID]                                      # cconv1 x-part
    h2x = hx[C_HID:2 * C_HID]                              # cconv2 x-part
    h3x = hx[2 * C_HID:3 * C_HID]                          # cconv3 x-part
    z4x = hx[3 * C_HID:]                                   # cconv4 x-part

    # ---- cconv1 -> dconv1 ----
    h1 = relu(h1x + b1c_ref[...])                          # (256, TS) f32
    z1 = relu(dot(w1d_ref[...], bf16(h1)) + b1d_ref[...])  # (64, TS) f32
    z_scr[0:C_G, :] = bf16(z1)

    # ---- cat(x, z1) -> cconv2 -> dconv2  (z-part: one K=64 matmul) ----
    h2 = relu(h2x + dot(w2cz_ref[...], z_scr[0:C_G, :]) + b2c_ref[...])
    z2 = relu(dot(w2d_ref[...], bf16(h2)) + b2d_ref[...])  # (64, TS) f32
    z_scr[C_G:2 * C_G, :] = bf16(z2)

    # ---- cat(x, z1, z2) -> cconv3 -> dconv3  (z-part: one K=128 matmul) ----
    h3 = relu(h3x + dot(w3cz_ref[...], z_scr[0:2 * C_G, :]) + b3c_ref[...])
    z3 = relu(dot(w3d_ref[...], bf16(h3)) + b3d_ref[...])  # (64, TS) f32
    z_scr[2 * C_G:3 * C_G, :] = bf16(z3)

    # ---- cat(x, z1, z2, z3) -> cconv4  (z-part: one K=192 matmul) ----
    z4 = relu(z4x + dot(w4cz_ref[...], z_scr[...]) + b4c_ref[...])  # (512, TS)

    o_ref[...] = z4.astype(o_ref.dtype)


def prepare_params(params):
    """One-time weight prep (hoisted out of the per-call path).

    * Stacks the K=512 x-parts of all four cconv weights into one
      (1280, 512) bf16 matrix (single dependency-free MXU matmul in-kernel).
    * Pre-splits the lane-aligned z-parts ((256,64)/(256,128)/(512,192)).
    * Casts dconv weights to bf16 and biases to (C, 1) f32 columns
      (broadcast along the lane/spatial axis inside the kernel).
    """
    (w1c, b1c, w1d, b1d,
     w2c, b2c, w2d, b2d,
     w3c, b3c, w3d, b3d,
     w4c, b4c) = params
    bf = lambda w: w.astype(jnp.bfloat16)
    col = lambda b: b.astype(jnp.float32)[:, None]

    wx_stack = jnp.concatenate(
        [w1c, w2c[:, :C_IN], w3c[:, :C_IN], w4c[:, :C_IN]], axis=0
    ).astype(jnp.bfloat16)                                  # (1280, 512)
    w2cz = bf(w2c[:, C_IN:])                                # (256, 64)
    w3cz = bf(w3c[:, C_IN:])                                # (256, 128)
    w4cz = bf(w4c[:, C_IN:])                                # (512, 192)

    return (wx_stack, w2cz, w3cz, w4cz,
            bf(w1d), bf(w2d), bf(w3d),
            col(b1c), col(b1d), col(b2c), col(b2d),
            col(b3c), col(b3d), col(b4c))


@functools.partial(jax.jit,
                   static_argnames=("ts", "out_dtype", "vmem_limit_bytes"))
def dense_temporal_block(x_ncdhw, prepped_params, *, ts=512, out_dtype=None,
                         vmem_limit_bytes=32 * 1024 * 1024):
    """x_ncdhw: (N, 512, D, H, W) float32.  Returns (N, 512, D, H, W).

    ts: spatial (lane) tile; keep a multiple of 256.  512/1024 on v6e/v7x,
        256-512 on v5e.  out_dtype=jnp.bfloat16 halves writeback (v6e win).
    """
    N, C, D, H, W = x_ncdhw.shape
    assert C == C_IN
    S = D * H * W
    out_dtype = x_ncdhw.dtype if out_dtype is None else out_dtype

    # Channels stay where PyTorch put them (dim 1); reshape only -- no HBM
    # transpose, no pre-cast, no pre-pad (ragged tail handled by Pallas
    # partial-block masking).
    x = x_ncdhw.reshape(N, C_IN, S)

    mats = prepped_params

    def full_spec(shape):
        # whole-array block, constant index map -> resident, fetched once
        return pl.BlockSpec(shape, lambda n, s: (0,) * len(shape))

    in_specs = [pl.BlockSpec((None, C_IN, ts), lambda n, s: (n, 0, s))]
    in_specs += [full_spec(m.shape) for m in mats]

    flops = 2 * N * S * (C_HID * C_IN + C_G * C_HID
                         + C_HID * (C_IN + C_G) + C_G * C_HID
                         + C_HID * (C_IN + 2 * C_G) + C_G * C_HID
                         + C_OUT * (C_IN + 3 * C_G))
    bytes_accessed = (N * C_IN * S * x.dtype.itemsize
                      + N * C_OUT * S * jnp.dtype(out_dtype).itemsize
                      + sum(int(m.size) * m.dtype.itemsize for m in mats))

    out = pl.pallas_call(
        _dense_block_kernel,
        out_shape=jax.ShapeDtypeStruct((N, C_OUT, S), out_dtype),
        grid=(N, pl.cdiv(S, ts)),
        in_specs=in_specs,
        out_specs=pl.BlockSpec((None, C_OUT, ts), lambda n, s: (n, 0, s)),
        scratch_shapes=[pltpu.VMEM((3 * C_G, ts), jnp.bfloat16)],
        compiler_params=pltpu.CompilerParams(
            dimension_semantics=("parallel", "parallel"),
            vmem_limit_bytes=vmem_limit_bytes),
        cost_estimate=pl.CostEstimate(
            flops=flops, transcendentals=0, bytes_accessed=bytes_accessed),
    )(x, *mats)

    return out.reshape(N, C_OUT, D, H, W)


def _reference(x_ncdhw, params, *, cast_bf16=True):
    """Pure-JAX reference mirroring the PyTorch forward (with real concats).
    With cast_bf16=True the matmul operands are cast to bf16 (f32 accumulate)
    to match the kernel's precision choice."""
    (w1c, b1c, w1d, b1d,
     w2c, b2c, w2d, b2d,
     w3c, b3c, w3d, b3d,
     w4c, b4c) = params
    N, C, D, H, W = x_ncdhw.shape
    x = x_ncdhw.reshape(N, C, -1)                         # (N, C, S)

    def conv(v, w, b):
        if cast_bf16:
            v = v.astype(jnp.bfloat16)
            w = w.astype(jnp.bfloat16)
        y = jnp.einsum("oc,ncs->nos", w, v, preferred_element_type=jnp.float32)
        return jnp.maximum(y + b.astype(jnp.float32)[None, :, None], 0.0)

    z1 = conv(conv(x, w1c, b1c), w1d, b1d)
    z2 = conv(conv(jnp.concatenate([x, z1], 1), w2c, b2c), w2d, b2d)
    z3 = conv(conv(jnp.concatenate([x, z1, z2], 1), w3c, b3c), w3d, b3d)
    z4 = conv(jnp.concatenate([x, z1, z2, z3], 1), w4c, b4c)
    return z4.reshape(N, C_OUT, D, H, W)


def _init_params(key):
    """Deterministic synthetic params with the same shapes as the PyTorch module."""
    shapes = [
        ((C_HID, C_IN), (C_HID,)),                      # cconv1: 512 -> 256
        ((C_G, C_HID), (C_G,)),                         # dconv1: 256 -> 64
        ((C_HID, C_IN + C_G), (C_HID,)),                # cconv2: 576 -> 256
        ((C_G, C_HID), (C_G,)),                         # dconv2
        ((C_HID, C_IN + 2 * C_G), (C_HID,)),            # cconv3: 640 -> 256
        ((C_G, C_HID), (C_G,)),                         # dconv3
        ((C_OUT, C_IN + 3 * C_G), (C_OUT,)),            # cconv4: 704 -> 512
    ]
    params = []
    for (ws, bs) in shapes:
        key, kw, kb = jax.random.split(key, 3)
        fan_in = ws[1]
        scale = 1.0 / jnp.sqrt(fan_in)
        params.append(jax.random.uniform(kw, ws, jnp.float32, -scale, scale))
        params.append(jax.random.uniform(kb, bs, jnp.float32, -scale, scale))
    return tuple(params)


if __name__ == "__main__":
    key = jax.random.PRNGKey(0)
    kx, kp = jax.random.split(key)

    # Small synthetic input: N=2, C=512 (fixed by module), D=2, H=8, W=8
    # (D*H*W = 128 < ts=512, so the masked ragged-tail path is exercised;
    # grid = 2 -> even split across the 2 v7x TensorCores).
    x = jax.random.normal(kx, (2, C_IN, 2, 8, 8), jnp.float32)
    params = _init_params(kp)
    prepped = prepare_params(params)

    out = dense_temporal_block(x, prepped, ts=512)
    out = jax.block_until_ready(out)

    ref = _reference(x, params, cast_bf16=True)
    assert out.shape == (2, C_OUT, 2, 8, 8), out.shape
    assert jnp.allclose(out, ref, atol=2e-2, rtol=2e-2), float(
        jnp.max(jnp.abs(out - ref)))

    print("KERNEL_OK")
</pallas_src>

<mosaic_0001>
module attributes {stable_mosaic.version = 11 : i64} {
  func.func @_dense_block_kernel(%arg0: i32, %arg1: i32, %arg2: memref<1x512x512xf32, #tpu.memory_space<vmem>>, %arg3: memref<1280x512xbf16, #tpu.memory_space<vmem>>, %arg4: memref<256x64xbf16, #tpu.memory_space<vmem>>, %arg5: memref<256x128xbf16, #tpu.memory_space<vmem>>, %arg6: memref<512x192xbf16, #tpu.memory_space<vmem>>, %arg7: memref<64x256xbf16, #tpu.memory_space<vmem>>, %arg8: memref<64x256xbf16, #tpu.memory_space<vmem>>, %arg9: memref<64x256xbf16, #tpu.memory_space<vmem>>, %arg10: memref<256x1xf32, #tpu.memory_space<vmem>>, %arg11: memref<64x1xf32, #tpu.memory_space<vmem>>, %arg12: memref<256x1xf32, #tpu.memory_space<vmem>>, %arg13: memref<64x1xf32, #tpu.memory_space<vmem>>, %arg14: memref<256x1xf32, #tpu.memory_space<vmem>>, %arg15: memref<64x1xf32, #tpu.memory_space<vmem>>, %arg16: memref<512x1xf32, #tpu.memory_space<vmem>>, %arg17: memref<1x512x512xf32, #tpu.memory_space<vmem>>, %arg18: memref<192x512xbf16, #tpu.memory_space<vmem>>) attributes {dimension_semantics = [#tpu.dimension_semantics<parallel>, #tpu.dimension_semantics<parallel>], iteration_bounds = array<i64: 2, 1>, scalar_prefetch = 0 : i64, scratch_operands = 1 : i64, tpu.core_type = #tpu.core_type<tc>, window_params = [{transform_indices = @transform_0, window_bounds = array<i64: 1, 512, 512>}, {pipeline_mode = #tpu.pipeline_mode<synchronous>, transform_indices = @transform_1, window_bounds = array<i64: 1280, 512>}, {pipeline_mode = #tpu.pipeline_mode<synchronous>, transform_indices = @transform_2, window_bounds = array<i64: 256, 64>}, {pipeline_mode = #tpu.pipeline_mode<synchronous>, transform_indices = @transform_3, window_bounds = array<i64: 256, 128>}, {pipeline_mode = #tpu.pipeline_mode<synchronous>, transform_indices = @transform_4, window_bounds = array<i64: 512, 192>}, {pipeline_mode = #tpu.pipeline_mode<synchronous>, transform_indices = @transform_5, window_bounds = array<i64: 64, 256>}, {pipeline_mode = #tpu.pipeline_mode<synchronous>, transform_indices = @transform_6, window_bounds = array<i64: 64, 256>}, {pipeline_mode = #tpu.pipeline_mode<synchronous>, transform_indices = @transform_7, window_bounds = array<i64: 64, 256>}, {pipeline_mode = #tpu.pipeline_mode<synchronous>, transform_indices = @transform_8, window_bounds = array<i64: 256, 1>}, {pipeline_mode = #tpu.pipeline_mode<synchronous>, transform_indices = @transform_9, window_bounds = array<i64: 64, 1>}, {pipeline_mode = #tpu.pipeline_mode<synchronous>, transform_indices = @transform_10, window_bounds = array<i64: 256, 1>}, {pipeline_mode = #tpu.pipeline_mode<synchronous>, transform_indices = @transform_11, window_bounds = array<i64: 64, 1>}, {pipeline_mode = #tpu.pipeline_mode<synchronous>, transform_indices = @transform_12, window_bounds = array<i64: 256, 1>}, {pipeline_mode = #tpu.pipeline_mode<synchronous>, transform_indices = @transform_13, window_bounds = array<i64: 64, 1>}, {pipeline_mode = #tpu.pipeline_mode<synchronous>, transform_indices = @transform_14, window_bounds = array<i64: 512, 1>}, {transform_indices = @transform_15, window_bounds = array<i64: 1, 512, 512>}]} {
    %c0 = arith.constant 0 : index
    %c0_0 = arith.constant 0 : index
    %c0_1 = arith.constant 0 : index
    %0 = vector.load %arg2[%c0, %c0_0, %c0_1] : memref<1x512x512xf32, #tpu.memory_space<vmem>>, vector<1x512x512xf32>
    %1 = vector.shape_cast %0 : vector<1x512x512xf32> to vector<512x512xf32>
    %2 = arith.truncf %1 : vector<512x512xf32> to vector<512x512xbf16>
    %c0_2 = arith.constant 0 : index
    %c0_3 = arith.constant 0 : index
    %3 = vector.load %arg3[%c0_2, %c0_3] : memref<1280x512xbf16, #tpu.memory_space<vmem>>, vector<1280x512xbf16>
    %cst = arith.constant dense<0.000000e+00> : vector<1280x512xf32>
    %4 = tpu.matmul %3, %2, %cst {dimension_numbers = #tpu.dot_dimension_numbers<[1], [0], [0], [1], [0, 0, 1, 1], [], []>} : vector<1280x512xbf16>, vector<512x512xbf16>, vector<1280x512xf32> -> vector<1280x512xf32>
    %5 = vector.extract_strided_slice %4 {offsets = [0, 0], sizes = [256, 512], strides = [1, 1]} : vector<1280x512xf32> to vector<256x512xf32>
    %6 = vector.extract_strided_slice %4 {offsets = [256, 0], sizes = [256, 512], strides = [1, 1]} : vector<1280x512xf32> to vector<256x512xf32>
    %7 = vector.extract_strided_slice %4 {offsets = [512, 0], sizes = [256, 512], strides = [1, 1]} : vector<1280x512xf32> to vector<256x512xf32>
    %8 = vector.extract_strided_slice %4 {offsets = [768, 0], sizes = [512, 512], strides = [1, 1]} : vector<1280x512xf32> to vector<512x512xf32>
    %c0_4 = arith.constant 0 : index
    %c0_5 = arith.constant 0 : index
    %9 = vector.load %arg10[%c0_4, %c0_5] : memref<256x1xf32, #tpu.memory_space<vmem>>, vector<256x1xf32>
    %10 = vector.broadcast %9 : vector<256x1xf32> to vector<256x512xf32>
    %11 = arith.addf %5, %10 : vector<256x512xf32>
    %cst_6 = arith.constant 0.000000e+00 : f32
    %12 = vector.broadcast %cst_6 : f32 to vector<256x512xf32>
    %13 = arith.maximumf %11, %12 : vector<256x512xf32>
    %c0_7 = arith.constant 0 : index
    %c0_8 = arith.constant 0 : index
    %14 = vector.load %arg7[%c0_7, %c0_8] : memref<64x256xbf16, #tpu.memory_space<vmem>>, vector<64x256xbf16>
    %15 = arith.truncf %13 : vector<256x512xf32> to vector<256x512xbf16>
    %cst_9 = arith.constant dense<0.000000e+00> : vector<64x512xf32>
    %16 = tpu.matmul %14, %15, %cst_9 {dimension_numbers = #tpu.dot_dimension_numbers<[1], [0], [0], [1], [0, 0, 1, 1], [], []>} : vector<64x256xbf16>, vector<256x512xbf16>, vector<64x512xf32> -> vector<64x512xf32>
    %c0_10 = arith.constant 0 : index
    %c0_11 = arith.constant 0 : index
    %17 = vector.load %arg11[%c0_10, %c0_11] : memref<64x1xf32, #tpu.memory_space<vmem>>, vector<64x1xf32>
    %18 = vector.broadcast %17 : vector<64x1xf32> to vector<64x512xf32>
    %19 = arith.addf %16, %18 : vector<64x512xf32>
    %cst_12 = arith.constant 0.000000e+00 : f32
    %20 = vector.broadcast %cst_12 : f32 to vector<64x512xf32>
    %21 = arith.maximumf %19, %20 : vector<64x512xf32>
    %22 = arith.truncf %21 : vector<64x512xf32> to vector<64x512xbf16>
    %c0_13 = arith.constant 0 : index
    %c0_14 = arith.constant 0 : index
    %23 = vector.load %arg18[%c0_13, %c0_14] : memref<192x512xbf16, #tpu.memory_space<vmem>>, vector<64x512xbf16>
    tpu.vector_store %arg18[%c0_13, %c0_14], %22 {strides = array<i32>} : memref<192x512xbf16, #tpu.memory_space<vmem>>, vector<64x512xbf16>,
    %c0_15 = arith.constant 0 : index
    %c0_16 = arith.constant 0 : index
    %24 = vector.load %arg4[%c0_15, %c0_16] : memref<256x64xbf16, #tpu.memory_space<vmem>>, vector<256x64xbf16>
    %c0_17 = arith.constant 0 : index
    %c0_18 = arith.constant 0 : index
    %25 = vector.load %arg18[%c0_17, %c0_18] : memref<192x512xbf16, #tpu.memory_space<vmem>>, vector<64x512xbf16>
    %cst_19 = arith.constant dense<0.000000e+00> : vector<256x512xf32>
    %26 = tpu.matmul %24, %25, %cst_19 {dimension_numbers = #tpu.dot_dimension_numbers<[1], [0], [0], [1], [0, 0, 1, 1], [], []>} : vector<256x64xbf16>, vector<64x512xbf16>, vector<256x512xf32> -> vector<256x512xf32>
    %27 = arith.addf %6, %26 : vector<256x512xf32>
    %c0_20 = arith.constant 0 : index
    %c0_21 = arith.constant 0 : index
    %28 = vector.load %arg12[%c0_20, %c0_21] : memref<256x1xf32, #tpu.memory_space<vmem>>, vector<256x1xf32>
    %29 = vector.broadcast %28 : vector<256x1xf32> to vector<256x512xf32>
    %30 = arith.addf %27, %29 : vector<256x512xf32>
    %cst_22 = arith.constant 0.000000e+00 : f32
    %31 = vector.broadcast %cst_22 : f32 to vector<256x512xf32>
    %32 = arith.maximumf %30, %31 : vector<256x512xf32>
    %c0_23 = arith.constant 0 : index
    %c0_24 = arith.constant 0 : index
    %33 = vector.load %arg8[%c0_23, %c0_24] : memref<64x256xbf16, #tpu.memory_space<vmem>>, vector<64x256xbf16>
    %34 = arith.truncf %32 : vector<256x512xf32> to vector<256x512xbf16>
    %cst_25 = arith.constant dense<0.000000e+00> : vector<64x512xf32>
    %35 = tpu.matmul %33, %34, %cst_25 {dimension_numbers = #tpu.dot_dimension_numbers<[1], [0], [0], [1], [0, 0, 1, 1], [], []>} : vector<64x256xbf16>, vector<256x512xbf16>, vector<64x512xf32> -> vector<64x512xf32>
    %c0_26 = arith.constant 0 : index
    %c0_27 = arith.constant 0 : index
    %36 = vector.load %arg13[%c0_26, %c0_27] : memref<64x1xf32, #tpu.memory_space<vmem>>, vector<64x1xf32>
    %37 = vector.broadcast %36 : vector<64x1xf32> to vector<64x512xf32>
    %38 = arith.addf %35, %37 : vector<64x512xf32>
    %cst_28 = arith.constant 0.000000e+00 : f32
    %39 = vector.broadcast %cst_28 : f32 to vector<64x512xf32>
    %40 = arith.maximumf %38, %39 : vector<64x512xf32>
    %41 = arith.truncf %40 : vector<64x512xf32> to vector<64x512xbf16>
    %c64 = arith.constant 64 : index
    %c0_29 = arith.constant 0 : index
    %42 = vector.load %arg18[%c64, %c0_29] : memref<192x512xbf16, #tpu.memory_space<vmem>>, vector<64x512xbf16>
    tpu.vector_store %arg18[%c64, %c0_29], %41 {strides = array<i32>} : memref<192x512xbf16, #tpu.memory_space<vmem>>, vector<64x512xbf16>,
    %c0_30 = arith.constant 0 : index
    %c0_31 = arith.constant 0 : index
    %43 = vector.load %arg5[%c0_30, %c0_31] : memref<256x128xbf16, #tpu.memory_space<vmem>>, vector<256x128xbf16>
    %c0_32 = arith.constant 0 : index
    %c0_33 = arith.constant 0 : index
    %44 = vector.load %arg18[%c0_32, %c0_33] : memref<192x512xbf16, #tpu.memory_space<vmem>>, vector<128x512xbf16>
    %cst_34 = arith.constant dense<0.000000e+00> : vector<256x512xf32>
    %45 = tpu.matmul %43, %44, %cst_34 {dimension_numbers = #tpu.dot_dimension_numbers<[1], [0], [0], [1], [0, 0, 1, 1], [], []>} : vector<256x128xbf16>, vector<128x512xbf16>, vector<256x512xf32> -> vector<256x512xf32>
    %46 = arith.addf %7, %45 : vector<256x512xf32>
    %c0_35 = arith.constant 0 : index
    %c0_36 = arith.constant 0 : index
    %47 = vector.load %arg14[%c0_35, %c0_36] : memref<256x1xf32, #tpu.memory_space<vmem>>, vector<256x1xf32>
    %48 = vector.broadcast %47 : vector<256x1xf32> to vector<256x512xf32>
    %49 = arith.addf %46, %48 : vector<256x512xf32>
    %cst_37 = arith.constant 0.000000e+00 : f32
    %50 = vector.broadcast %cst_37 : f32 to vector<256x512xf32>
    %51 = arith.maximumf %49, %50 : vector<256x512xf32>
    %c0_38 = arith.constant 0 : index
    %c0_39 = arith.constant 0 : index
    %52 = vector.load %arg9[%c0_38, %c0_39] : memref<64x256xbf16, #tpu.memory_space<vmem>>, vector<64x256xbf16>
    %53 = arith.truncf %51 : vector<256x512xf32> to vector<256x512xbf16>
    %cst_40 = arith.constant dense<0.000000e+00> : vector<64x512xf32>
    %54 = tpu.matmul %52, %53, %cst_40 {dimension_numbers = #tpu.dot_dimension_numbers<[1], [0], [0], [1], [0, 0, 1, 1], [], []>} : vector<64x256xbf16>, vector<256x512xbf16>, vector<64x512xf32> -> vector<64x512xf32>
    %c0_41 = arith.constant 0 : index
    %c0_42 = arith.constant 0 : index
    %55 = vector.load %arg15[%c0_41, %c0_42] : memref<64x1xf32, #tpu.memory_space<vmem>>, vector<64x1xf32>
    %56 = vector.broadcast %55 : vector<64x1xf32> to vector<64x512xf32>
    %57 = arith.addf %54, %56 : vector<64x512xf32>
    %cst_43 = arith.constant 0.000000e+00 : f32
    %58 = vector.broadcast %cst_43 : f32 to vector<64x512xf32>
    %59 = arith.maximumf %57, %58 : vector<64x512xf32>
    %60 = arith.truncf %59 : vector<64x512xf32> to vector<64x512xbf16>
    %c128 = arith.constant 128 : index
    %c0_44 = arith.constant 0 : index
    %61 = vector.load %arg18[%c128, %c0_44] : memref<192x512xbf16, #tpu.memory_space<vmem>>, vector<64x512xbf16>
    tpu.vector_store %arg18[%c128, %c0_44], %60 {strides = array<i32>} : memref<192x512xbf16, #tpu.memory_space<vmem>>, vector<64x512xbf16>,
    %c0_45 = arith.constant 0 : index
    %c0_46 = arith.constant 0 : index
    %62 = vector.load %arg6[%c0_45, %c0_46] : memref<512x192xbf16, #tpu.memory_space<vmem>>, vector<512x192xbf16>
    %c0_47 = arith.constant 0 : index
    %c0_48 = arith.constant 0 : index
    %63 = vector.load %arg18[%c0_47, %c0_48] : memref<192x512xbf16, #tpu.memory_space<vmem>>, vector<192x512xbf16>
    %cst_49 = arith.constant dense<0.000000e+00> : vector<512x512xf32>
    %64 = tpu.matmul %62, %63, %cst_49 {dimension_numbers = #tpu.dot_dimension_numbers<[1], [0], [0], [1], [0, 0, 1, 1], [], []>} : vector<512x192xbf16>, vector<192x512xbf16>, vector<512x512xf32> -> vector<512x512xf32>
    %65 = arith.addf %8, %64 : vector<512x512xf32>
    %c0_50 = arith.constant 0 : index
    %c0_51 = arith.constant 0 : index
    %66 = vector.load %arg16[%c0_50, %c0_51] : memref<512x1xf32, #tpu.memory_space<vmem>>, vector<512x1xf32>
    %67 = vector.broadcast %66 : vector<512x1xf32> to vector<512x512xf32>
    %68 = arith.addf %65, %67 : vector<512x512xf32>
    %cst_52 = arith.constant 0.000000e+00 : f32
    %69 = vector.broadcast %cst_52 : f32 to vector<512x512xf32>
    %70 = arith.maximumf %68, %69 : vector<512x512xf32>
    %c0_53 = arith.constant 0 : index
    %c0_54 = arith.constant 0 : index
    %c0_55 = arith.constant 0 : index
    %71 = vector.load %arg17[%c0_53, %c0_54, %c0_55] : memref<1x512x512xf32, #tpu.memory_space<vmem>>, vector<1x512x512xf32>
    %72 = vector.shape_cast %71 : vector<1x512x512xf32> to vector<512x512xf32>
    %73 = vector.shape_cast %70 : vector<512x512xf32> to vector<1x512x512xf32>
    tpu.vector_store %arg17[%c0_53, %c0_54, %c0_55], %73 {strides = array<i32>} : memref<1x512x512xf32, #tpu.memory_space<vmem>>, vector<1x512x512xf32>,
    return
  }
  func.func @transform_0(%arg0: i32, %arg1: i32) -> (i32, i32, i32) {
    %c0_i32 = arith.constant 0 : i32
    %c0_i32_0 = arith.constant 0 : i32
    return %arg0, %c0_i32, %arg1 : i32, i32, i32
  }
  func.func @transform_1(%arg0: i32, %arg1: i32) -> (i32, i32) {
    %c0_i32 = arith.constant 0 : i32
    %c0_i32_0 = arith.constant 0 : i32
    %c0_i32_1 = arith.constant 0 : i32
    return %c0_i32, %c0_i32_0 : i32, i32
  }
  func.func @transform_2(%arg0: i32, %arg1: i32) -> (i32, i32) {
    %c0_i32 = arith.constant 0 : i32
    %c0_i32_0 = arith.constant 0 : i32
    %c0_i32_1 = arith.constant 0 : i32
    return %c0_i32, %c0_i32_0 : i32, i32
  }
  func.func @transform_3(%arg0: i32, %arg1: i32) -> (i32, i32) {
    %c0_i32 = arith.constant 0 : i32
    %c0_i32_0 = arith.constant 0 : i32
    %c0_i32_1 = arith.constant 0 : i32
    return %c0_i32, %c0_i32_0 : i32, i32
  }
  func.func @transform_4(%arg0: i32, %arg1: i32) -> (i32, i32) {
    %c0_i32 = arith.constant 0 : i32
    %c0_i32_0 = arith.constant 0 : i32
    %c0_i32_1 = arith.constant 0 : i32
    return %c0_i32, %c0_i32_0 : i32, i32
  }
  func.func @transform_5(%arg0: i32, %arg1: i32) -> (i32, i32) {
    %c0_i32 = arith.constant 0 : i32
    %c0_i32_0 = arith.constant 0 : i32
    %c0_i32_1 = arith.constant 0 : i32
    return %c0_i32, %c0_i32_0 : i32, i32
  }
  func.func @transform_6(%arg0: i32, %arg1: i32) -> (i32, i32) {
    %c0_i32 = arith.constant 0 : i32
    %c0_i32_0 = arith.constant 0 : i32
    %c0_i32_1 = arith.constant 0 : i32
    return %c0_i32, %c0_i32_0 : i32, i32
  }
  func.func @transform_7(%arg0: i32, %arg1: i32) -> (i32, i32) {
    %c0_i32 = arith.constant 0 : i32
    %c0_i32_0 = arith.constant 0 : i32
    %c0_i32_1 = arith.constant 0 : i32
    return %c0_i32, %c0_i32_0 : i32, i32
  }
  func.func @transform_8(%arg0: i32, %arg1: i32) -> (i32, i32) {
    %c0_i32 = arith.constant 0 : i32
    %c0_i32_0 = arith.constant 0 : i32
    %c0_i32_1 = arith.constant 0 : i32
    return %c0_i32, %c0_i32_0 : i32, i32
  }
  func.func @transform_9(%arg0: i32, %arg1: i32) -> (i32, i32) {
    %c0_i32 = arith.constant 0 : i32
    %c0_i32_0 = arith.constant 0 : i32
    %c0_i32_1 = arith.constant 0 : i32
    return %c0_i32, %c0_i32_0 : i32, i32
  }
  func.func @transform_10(%arg0: i32, %arg1: i32) -> (i32, i32) {
    %c0_i32 = arith.constant 0 : i32
    %c0_i32_0 = arith.constant 0 : i32
    %c0_i32_1 = arith.constant 0 : i32
    return %c0_i32, %c0_i32_0 : i32, i32
  }
  func.func @transform_11(%arg0: i32, %arg1: i32) -> (i32, i32) {
    %c0_i32 = arith.constant 0 : i32
    %c0_i32_0 = arith.constant 0 : i32
    %c0_i32_1 = arith.constant 0 : i32
    return %c0_i32, %c0_i32_0 : i32, i32
  }
  func.func @transform_12(%arg0: i32, %arg1: i32) -> (i32, i32) {
    %c0_i32 = arith.constant 0 : i32
    %c0_i32_0 = arith.constant 0 : i32
    %c0_i32_1 = arith.constant 0 : i32
    return %c0_i32, %c0_i32_0 : i32, i32
  }
  func.func @transform_13(%arg0: i32, %arg1: i32) -> (i32, i32) {
    %c0_i32 = arith.constant 0 : i32
    %c0_i32_0 = arith.constant 0 : i32
    %c0_i32_1 = arith.constant 0 : i32
    return %c0_i32, %c0_i32_0 : i32, i32
  }
  func.func @transform_14(%arg0: i32, %arg1: i32) -> (i32, i32) {
    %c0_i32 = arith.constant 0 : i32
    %c0_i32_0 = arith.constant 0 : i32
    %c0_i32_1 = arith.constant 0 : i32
    return %c0_i32, %c0_i32_0 : i32, i32
  }
  func.func @transform_15(%arg0: i32, %arg1: i32) -> (i32, i32, i32) {
    %c0_i32 = arith.constant 0 : i32
    %c0_i32_0 = arith.constant 0 : i32
    return %arg0, %c0_i32, %arg1 : i32, i32, i32
  }
}

</mosaic_0001>

<bundles_post_ra>
// kernel: dense_temporal_block.1
= control target key start
LH: loop header
LB: loop body
LE: loop exit
PB: predicated region body
PF: predicated region fallthrough
CT: control target
= control target key end

     0   :  { %s20408_s0 = inlined_call_operand.vmem [shape: f32[2,512,128], index: 0, kind: input, shape index: {}]   ;;  %s20409_s1 = inlined_call_operand.vmem [shape: bf16[1280,512], index: 1, kind: input, shape index: {}]   ;;  %s20410_s2 = inlined_call_operand.vmem [shape: bf16[256,64], index: 2, kind: input, shape index: {}]   ;;  %s20411_s3 = inlined_call_operand.vmem [shape: bf16[256,128], index: 3, kind: input, shape index: {}]   ;;  %s20412_s4 = inlined_call_operand.vmem [shape: bf16[512,192], index: 4, kind: input, shape index: {}]   ;;  %s20413_s5 = inlined_call_operand.vmem [shape: bf16[64,256], index: 5, kind: input, shape index: {}]   ;;  %s20414_s6 = inlined_call_operand.vmem [shape: bf16[64,256], index: 6, kind: input, shape index: {}]   ;;  %s20415_s7 = inlined_call_operand.vmem [shape: bf16[64,256], index: 7, kind: input, shape index: {}]   ;;  %s20416_s8 = inlined_call_operand.vmem [shape: f32[256,1], index: 8, kind: input, shape index: {}]   ;;  %s20417_s9 = inlined_call_operand.vmem [shape: f32[64,1], index: 9, kind: input, shape index: {}]   ;;  %s20418_s10 = inlined_call_operand.vmem [shape: f32[256,1], index: 10, kind: input, shape index: {}]   ;;  %s20419_s11 = inlined_call_operand.vmem [shape: f32[64,1], index: 11, kind: input, shape index: {}]   ;;  %s20420_s12 = inlined_call_operand.vmem [shape: f32[256,1], index: 12, kind: input, shape index: {}]   ;;  %s20421_s13 = inlined_call_operand.vmem [shape: f32[64,1], index: 13, kind: input, shape index: {}]   ;;  %s20422_s14 = inlined_call_operand.vmem [shape: f32[512,1], index: 14, kind: input, shape index: {}]   ;;  %s20423_s15 = inlined_call_operand.vmem [shape: f32[2,512,128], index: 15, kind: output, shape index: {}]  }
   0x1   :  { %20474 = sst [smem:[#allocation166_spill]] %s20408_s0 }
   0x2   :  { %20475 = sst [smem:[#allocation167_spill]] %s20423_s15 }
   0x3   :  { %s16694_s18 = smov 0   ;;  %s16696_s19 = smov 0  }
   0x4   :  { %s16698_s20 = smov 0   ;;  %s16700_s21 = smov 0  }
   0x5   :  { %s16702_s22 = smov 0  }
   0x6 LB: > { %20476 = sst [smem:[#allocation5_spill]] %s16599_s21  ;;  %s37_s23 = sadd.s32 1, %s16599_s21  ;;  %s16603_s22 = sphi %s16702_s22, %s25_s22   ;;  %s16599_s21 = sphi %s16700_s21, %s20801_s21   ;;  %s16595_s20 = sphi %s16698_s20, %s20800_s20   ;;  %s16591_s19 = sphi %s16696_s19, %s20803_s19   ;;  %s16587_s18 = sphi %s16694_s18, %s20802_s18  }
   0x7   : > { %s13941_s24 = sadd.s32 4294967295, %s16603_s22   ;;  %p39_p0 = scmp.ge.s32.totalorder %s37_s23, 2 }
   0x8   : > { %p53_p1 = scmp.ne.s32.totalorder %s16591_s19, %s16587_s18  ;;  %p54_p2 = scmp.eq.s32.totalorder %s16603_s22, 0 }
   0x9   : > { %s20805_s23 = smov (%p39_p0, %s37_s23), 0  ;;  %p379_p4 = scmp.eq.s32.totalorder %s13941_s24, 1 }
   0xa   : > { %20477 = sst [smem:[#allocation6_spill]] %s20805_s23  ;;  %p55_p3 = por %p54_p2, %p53_p1 }
   0xb   : > { %s41_s25 = ssub.s32 %s16599_s21, %s20805_s23  ;;  %s46_s26 = sadd.s32 1, %s16591_s19 }
   0xc   : > { %p44_p5 = scmp.eq.s32.totalorder %s41_s25, 0  ;;  %p16729_p6 = por %p379_p4, %p53_p1 }
   0xd   : > { %p13944_p7 = scmp.ge.s32.totalorder %s16603_s22, 2 }
   0xe   : > { %s16734_s28 = scalar_select %p44_p5, %s16591_s19, %s46_s26  }
   0xf   : > { %443 = sbr.rel (%p13944_p7) target bundleno = 64 (0x40), region = 72 }
  0x16   : > { %446 = sbr.rel (!%p55_p3) target bundleno = 64 (0x40), region = 76  ;;  %s448_s29 = sand.u32 (%p55_p3), 1, %s16591_s19  }
  0x17   : > { %s14628_s30 = sshll.u32 (%p55_p3), %s16599_s21, 9  ;;  %s13945_s16 = sshll.u32 (%p55_p3), %s448_s29, 11 }
  0x18   : > { %s20479_s0 = sld [smem:[#allocation166_spill]] (%p55_p3)  ;;  %s16744_s25 = scalar_lea.vmem (%p55_p3), [#allocation3], %s13945_s16  }
  0x19   : > { %s16746_s15 = smov (%p55_p3), 0  }
  0x1e   : > { %s16742_s23 = scalar_lea.vmem %s20479_s0, %s14628_s30  }
  0x1f LB: >> { %v624_v0 = vld [vmem:[%s16742_s23] sm:$0xff]  ;;  %v626_v1 = vld [vmem:[%s16742_s23 + $0x8] sm:$0xff]  ;;  %v628_v2 = vld [vmem:[%s16742_s23 + $0x10] sm:$0xff]  ;;  %s618_s15 = sadd.s32 1, %s16607_s15   ;;  %s16607_s15 = sphi %s16746_s15, %s618_s15  }
  0x20   : >> { %625 = vst [vmem:[%s16744_s25] sm:$0xff] %v624_v0  ;;  %627 = vst [vmem:[%s16744_s25 + $0x20] sm:$0xff] %v626_v1  ;;  %v630_v3 = vld [vmem:[%s16742_s23 + $0x18] sm:$0xff]  ;;  %v632_v4 = vld [vmem:[%s16742_s23 + $0x20] sm:$0xff]  ;;  %p617_p8 = scmp.ge.s32.totalorder %s618_s15, 1 }
  0x21   : >> { %629 = vst [vmem:[%s16744_s25 + $0x40] sm:$0xff] %v628_v2  ;;  %v634_v5 = vld [vmem:[%s16742_s23 + $0x28] sm:$0xff]  ;;  %631 = vst [vmem:[%s16744_s25 + $0x60] sm:$0xff] %v630_v3  ;;  %v636_v6 = vld [vmem:[%s16742_s23 + $0x30] sm:$0xff] }
  0x22   : >> { %633 = vst [vmem:[%s16744_s25 + $0x80] sm:$0xff] %v632_v4  ;;  %635 = vst [vmem:[%s16744_s25 + $0xa0] sm:$0xff] %v634_v5  ;;  %v638_v7 = vld [vmem:[%s16742_s23 + $0x38] sm:$0xff]  ;;  %v640_v8 = vld [vmem:[%s16742_s23 + $0x40] sm:$0xff] }
  0x23   : >> { %637 = vst [vmem:[%s16744_s25 + $0xc0] sm:$0xff] %v636_v6  ;;  %639 = vst [vmem:[%s16744_s25 + $0xe0] sm:$0xff] %v638_v7  ;;  %v642_v9 = vld [vmem:[%s16742_s23 + $0x48] sm:$0xff]  ;;  %v644_v10 = vld [vmem:[%s16742_s23 + $0x50] sm:$0xff] }
  0x24   : >> { %641 = vst [vmem:[%s16744_s25 + $0x100] sm:$0xff] %v640_v8  ;;  %v646_v11 = vld [vmem:[%s16742_s23 + $0x58] sm:$0xff]  ;;  %643 = vst [vmem:[%s16744_s25 + $0x120] sm:$0xff] %v642_v9  ;;  %v648_v12 = vld [vmem:[%s16742_s23 + $0x60] sm:$0xff] }
  0x25   : >> { %645 = vst [vmem:[%s16744_s25 + $0x140] sm:$0xff] %v644_v10  ;;  %647 = vst [vmem:[%s16744_s25 + $0x160] sm:$0xff] %v646_v11  ;;  %v650_v13 = vld [vmem:[%s16742_s23 + $0x68] sm:$0xff]  ;;  %v652_v14 = vld [vmem:[%s16742_s23 + $0x70] sm:$0xff] }
  0x26   : >> { %649 = vst [vmem:[%s16744_s25 + $0x180] sm:$0xff] %v648_v12  ;;  %651 = vst [vmem:[%s16744_s25 + $0x1a0] sm:$0xff] %v650_v13  ;;  %v654_v15 = vld [vmem:[%s16742_s23 + $0x78] sm:$0xff]  ;;  %v656_v16 = vld [vmem:[%s16742_s23 + $0x80] sm:$0xff] }
  0x27   : >> { %653 = vst [vmem:[%s16744_s25 + $0x1c0] sm:$0xff] %v652_v14  ;;  %v658_v17 = vld [vmem:[%s16742_s23 + $0x88] sm:$0xff]  ;;  %655 = vst [vmem:[%s16744_s25 + $0x1e0] sm:$0xff] %v654_v15  ;;  %v660_v18 = vld [vmem:[%s16742_s23 + $0x90] sm:$0xff] }
  0x28   : >> { %657 = vst [vmem:[%s16744_s25 + $0x200] sm:$0xff] %v656_v16  ;;  %659 = vst [vmem:[%s16744_s25 + $0x220] sm:$0xff] %v658_v17  ;;  %v662_v19 = vld [vmem:[%s16742_s23 + $0x98] sm:$0xff]  ;;  %v664_v20 = vld [vmem:[%s16742_s23 + $0xa0] sm:$0xff] }
  0x29   : >> { %661 = vst [vmem:[%s16744_s25 + $0x240] sm:$0xff] %v660_v18  ;;  %663 = vst [vmem:[%s16744_s25 + $0x260] sm:$0xff] %v662_v19  ;;  %v666_v21 = vld [vmem:[%s16742_s23 + $0xa8] sm:$0xff]  ;;  %v668_v22 = vld [vmem:[%s16742_s23 + $0xb0] sm:$0xff] }
  0x2a   : >> { %665 = vst [vmem:[%s16744_s25 + $0x280] sm:$0xff] %v664_v20  ;;  %v670_v23 = vld [vmem:[%s16742_s23 + $0xb8] sm:$0xff]  ;;  %667 = vst [vmem:[%s16744_s25 + $0x2a0] sm:$0xff] %v666_v21  ;;  %v672_v24 = vld [vmem:[%s16742_s23 + $0xc0] sm:$0xff] }
  0x2b   : >> { %669 = vst [vmem:[%s16744_s25 + $0x2c0] sm:$0xff] %v668_v22  ;;  %671 = vst [vmem:[%s16744_s25 + $0x2e0] sm:$0xff] %v670_v23  ;;  %v674_v25 = vld [vmem:[%s16742_s23 + $0xc8] sm:$0xff]  ;;  %v676_v26 = vld [vmem:[%s16742_s23 + $0xd0] sm:$0xff] }
  0x2c   : >> { %673 = vst [vmem:[%s16744_s25 + $0x300] sm:$0xff] %v672_v24  ;;  %675 = vst [vmem:[%s16744_s25 + $0x320] sm:$0xff] %v674_v25  ;;  %v678_v27 = vld [vmem:[%s16742_s23 + $0xd8] sm:$0xff]  ;;  %v680_v28 = vld [vmem:[%s16742_s23 + $0xe0] sm:$0xff] }
  0x2d   : >> { %677 = vst [vmem:[%s16744_s25 + $0x340] sm:$0xff] %v676_v26  ;;  %v682_v29 = vld [vmem:[%s16742_s23 + $0xe8] sm:$0xff]  ;;  %679 = vst [vmem:[%s16744_s25 + $0x360] sm:$0xff] %v678_v27  ;;  %v684_v30 = vld [vmem:[%s16742_s23 + $0xf0] sm:$0xff] }
  0x2e   : >> { %681 = vst [vmem:[%s16744_s25 + $0x380] sm:$0xff] %v680_v28  ;;  %683 = vst [vmem:[%s16744_s25 + $0x3a0] sm:$0xff] %v682_v29  ;;  %v686_v31 = vld [vmem:[%s16742_s23 + $0xf8] sm:$0xff]  ;;  %v688_v32 = vld [vmem:[%s16742_s23 + $0x100] sm:$0xff] }
  0x2f   : >> { %685 = vst [vmem:[%s16744_s25 + $0x3c0] sm:$0xff] %v684_v30  ;;  %687 = vst [vmem:[%s16744_s25 + $0x3e0] sm:$0xff] %v686_v31  ;;  %v690_v33 = vld [vmem:[%s16742_s23 + $0x108] sm:$0xff]  ;;  %v692_v34 = vld [vmem:[%s16742_s23 + $0x110] sm:$0xff] }
  0x30   : >> { %689 = vst [vmem:[%s16744_s25 + $0x400] sm:$0xff] %v688_v32  ;;  %v694_v35 = vld [vmem:[%s16742_s23 + $0x118] sm:$0xff]  ;;  %691 = vst [vmem:[%s16744_s25 + $0x420] sm:$0xff] %v690_v33  ;;  %v696_v36 = vld [vmem:[%s16742_s23 + $0x120] sm:$0xff] }
  0x31   : >> { %693 = vst [vmem:[%s16744_s25 + $0x440] sm:$0xff] %v692_v34  ;;  %695 = vst [vmem:[%s16744_s25 + $0x460] sm:$0xff] %v694_v35  ;;  %v698_v37 = vld [vmem:[%s16742_s23 + $0x128] sm:$0xff]  ;;  %v700_v38 = vld [vmem:[%s16742_s23 + $0x130] sm:$0xff] }
  0x32   : >> { %697 = vst [vmem:[%s16744_s25 + $0x480] sm:$0xff] %v696_v36  ;;  %699 = vst [vmem:[%s16744_s25 + $0x4a0] sm:$0xff] %v698_v37  ;;  %v702_v39 = vld [vmem:[%s16742_s23 + $0x138] sm:$0xff]  ;;  %v704_v40 = vld [vmem:[%s16742_s23 + $0x140] sm:$0xff] }
  0x33   : >> { %701 = vst [vmem:[%s16744_s25 + $0x4c0] sm:$0xff] %v700_v38  ;;  %v706_v41 = vld [vmem:[%s16742_s23 + $0x148] sm:$0xff]  ;;  %703 = vst [vmem:[%s16744_s25 + $0x4e0] sm:$0xff] %v702_v39  ;;  %v708_v42 = vld [vmem:[%s16742_s23 + $0x150] sm:$0xff] }
  0x34   : >> { %705 = vst [vmem:[%s16744_s25 + $0x500] sm:$0xff] %v704_v40  ;;  %707 = vst [vmem:[%s16744_s25 + $0x520] sm:$0xff] %v706_v41  ;;  %v710_v43 = vld [vmem:[%s16742_s23 + $0x158] sm:$0xff]  ;;  %v712_v44 = vld [vmem:[%s16742_s23 + $0x160] sm:$0xff] }
  0x35   : >> { %709 = vst [vmem:[%s16744_s25 + $0x540] sm:$0xff] %v708_v42  ;;  %711 = vst [vmem:[%s16744_s25 + $0x560] sm:$0xff] %v710_v43  ;;  %v714_v45 = vld [vmem:[%s16742_s23 + $0x168] sm:$0xff]  ;;  %v716_v46 = vld [vmem:[%s16742_s23 + $0x170] sm:$0xff] }
  0x36   : >> { %713 = vst [vmem:[%s16744_s25 + $0x580] sm:$0xff] %v712_v44  ;;  %v718_v47 = vld [vmem:[%s16742_s23 + $0x178] sm:$0xff]  ;;  %715 = vst [vmem:[%s16744_s25 + $0x5a0] sm:$0xff] %v714_v45  ;;  %v720_v48 = vld [vmem:[%s16742_s23 + $0x180] sm:$0xff] }
  0x37   : >> { %717 = vst [vmem:[%s16744_s25 + $0x5c0] sm:$0xff] %v716_v46  ;;  %719 = vst [vmem:[%s16744_s25 + $0x5e0] sm:$0xff] %v718_v47  ;;  %v722_v49 = vld [vmem:[%s16742_s23 + $0x188] sm:$0xff]  ;;  %v724_v50 = vld [vmem:[%s16742_s23 + $0x190] sm:$0xff] }
  0x38   : >> { %721 = vst [vmem:[%s16744_s25 + $0x600] sm:$0xff] %v720_v48  ;;  %723 = vst [vmem:[%s16744_s25 + $0x620] sm:$0xff] %v722_v49  ;;  %v726_v51 = vld [vmem:[%s16742_s23 + $0x198] sm:$0xff]  ;;  %v728_v52 = vld [vmem:[%s16742_s23 + $0x1a0] sm:$0xff] }
  0x39   : >> { %725 = vst [vmem:[%s16744_s25 + $0x640] sm:$0xff] %v724_v50  ;;  %v730_v53 = vld [vmem:[%s16742_s23 + $0x1a8] sm:$0xff]  ;;  %727 = vst [vmem:[%s16744_s25 + $0x660] sm:$0xff] %v726_v51  ;;  %v732_v54 = vld [vmem:[%s16742_s23 + $0x1b0] sm:$0xff]  ;;  %620 = sbr.rel (!%p617_p8) target bundleno = 31 (0x1f), region = 239 }
  0x3a   : >> { %729 = vst [vmem:[%s16744_s25 + $0x680] sm:$0xff] %v728_v52  ;;  %731 = vst [vmem:[%s16744_s25 + $0x6a0] sm:$0xff] %v730_v53  ;;  %v734_v55 = vld [vmem:[%s16742_s23 + $0x1b8] sm:$0xff]  ;;  %v736_v56 = vld [vmem:[%s16742_s23 + $0x1c0] sm:$0xff] }
  0x3b   : >> { %733 = vst [vmem:[%s16744_s25 + $0x6c0] sm:$0xff] %v732_v54  ;;  %735 = vst [vmem:[%s16744_s25 + $0x6e0] sm:$0xff] %v734_v55  ;;  %v738_v57 = vld [vmem:[%s16742_s23 + $0x1c8] sm:$0xff]  ;;  %v740_v58 = vld [vmem:[%s16742_s23 + $0x1d0] sm:$0xff] }
  0x3c   : >> { %737 = vst [vmem:[%s16744_s25 + $0x700] sm:$0xff] %v736_v56  ;;  %v742_v59 = vld [vmem:[%s16742_s23 + $0x1d8] sm:$0xff]  ;;  %739 = vst [vmem:[%s16744_s25 + $0x720] sm:$0xff] %v738_v57  ;;  %v744_v60 = vld [vmem:[%s16742_s23 + $0x1e0] sm:$0xff] }
  0x3d   : >> { %741 = vst [vmem:[%s16744_s25 + $0x740] sm:$0xff] %v740_v58  ;;  %743 = vst [vmem:[%s16744_s25 + $0x760] sm:$0xff] %v742_v59  ;;  %v746_v61 = vld [vmem:[%s16742_s23 + $0x1e8] sm:$0xff]  ;;  %v748_v62 = vld [vmem:[%s16742_s23 + $0x1f0] sm:$0xff] }
  0x3e   : >> { %745 = vst [vmem:[%s16744_s25 + $0x780] sm:$0xff] %v744_v60  ;;  %747 = vst [vmem:[%s16744_s25 + $0x7a0] sm:$0xff] %v746_v61  ;;  %v750_v63 = vld [vmem:[%s16742_s23 + $0x1f8] sm:$0xff] }
  0x3f   : >> { %749 = vst [vmem:[%s16744_s25 + $0x7c0] sm:$0xff] %v748_v62  ;;  %751 = vst [vmem:[%s16744_s25 + $0x7e0] sm:$0xff] %v750_v63 }
  0x40 PF: > { %p14016_p9 = scmp.ge.s32.totalorder %s16603_s22, 1  ;;  %p1053_p10 = scmp.lt.s32.totalorder %s16603_s22, 3 }
  0x42   : > { %p1054_p11 = pnand %p14016_p9, %p1053_p10 }
  0x44   : > { %1057 = sbr.rel (%p1054_p11) target bundleno = 3397 (0xd45), region = 128 }
  0x4b   : > { %s1060_s26 = sand.u32 1, %s16587_s18   ;;  %v15891_v0 = vld [vmem:[%s20409_s1 + $0x4] ss:$16 sps:$4 sm:$0xff]   ;;  %vm7695_vm0 = vcmask 523264   ;;  %s20799_s25 = sld [smem:[#allocation167_spill]] (%p16729_p6) }
  0x4c   : > { %s16885_s29 = sshll.u32 %s1060_s26, 11  ;;  %3449 = vmatprep.mubr.bf16.mxu0 %v15891_v0  ;;  %5115 = vmatprep.mubr.bf16.mxu1 %v15891_v0  ;;  %s20257_s21 = smov (%p16729_p6), 0  }
  0x4d   : > { %s16891_s17 = scalar_lea.vmem [#allocation3], %s16885_s29  ;;  %s20131_s15 = scalar_lea.vmem [#allocation4], %s16885_s29  }
  0x4e   : > { %v1114_v1 = vld [vmem:[%s16891_s17 + $0x8] sm:$0xff]  ;;  %v1116_v3 = vld [vmem:[%s16891_s17 + $0x18] sm:$0xff]  ;;  %v1113_v6 = vld [vmem:[%s16891_s17] sm:$0xff] }
  0x4f   : > { %v1118_v2 = vld [vmem:[%s16891_s17 + $0x28] sm:$0xff]  ;;  %v1120_v5 = vld [vmem:[%s16891_s17 + $0x38] sm:$0xff]  ;;  %v1117_v7 = vld [vmem:[%s16891_s17 + $0x20] sm:$0xff] }
  0x50   : > { %v1370_v4 = vpack.c.bf16 %v1118_v2, %v1114_v1  ;;  %v1372_v8 = vpack.c.bf16 %v1120_v5, %v1116_v3  ;;  %v1369_v9 = vpack.c.bf16 %v1117_v7, %v1113_v6  ;;  %v1115_v10 = vld [vmem:[%s16891_s17 + $0x10] sm:$0xff]  ;;  %v1122_v12 = vld [vmem:[%s16891_s17 + $0x48] sm:$0xff]  ;;  %v1124_v15 = vld [vmem:[%s16891_s17 + $0x58] sm:$0xff] }
  0x51   : > { %v1119_v11 = vld [vmem:[%s16891_s17 + $0x30] sm:$0xff]  ;;  %v1126_v14 = vld [vmem:[%s16891_s17 + $0x68] sm:$0xff]  ;;  %v1128_v16 = vld [vmem:[%s16891_s17 + $0x78] sm:$0xff] }
  0x52   : > { %3417 = vmatprep.subr.bf16.mxu0 %v1370_v4  ;;  %v1371_v13 = vpack.c.bf16 %v1119_v11, %v1115_v10  ;;  %5083 = vmatprep.subr.bf16.mxu1 %v1372_v8  ;;  %v1374_v17 = vpack.c.bf16 %v1126_v14, %v1122_v12  ;;  %v1376_v18 = vpack.c.bf16 %v1128_v16, %v1124_v15  ;;  %v1121_v19 = vld [vmem:[%s16891_s17 + $0x40] sm:$0xff]  ;;  %v1123_v21 = vld [vmem:[%s16891_s17 + $0x50] sm:$0xff]  ;;  %v1130_v24 = vld [vmem:[%s16891_s17 + $0x88] sm:$0xff] }
  0x53   : > { %3418 = vmatpush1.bf16.msra.mxu0 %v1369_v9  ;;  %v1125_v20 = vld [vmem:[%s16891_s17 + $0x60] sm:$0xff]  ;;  %v1127_v23 = vld [vmem:[%s16891_s17 + $0x70] sm:$0xff]  ;;  %v1134_v25 = vld [vmem:[%s16891_s17 + $0xa8] sm:$0xff] }
  0x54   : > { %5084 = vmatpush1.bf16.msra.mxu1 %v1371_v13  ;;  %v1373_v22 = vpack.c.bf16 %v1125_v20, %v1121_v19  ;;  %3419 = vmatprep.subr.bf16.mxu0 %v1374_v17  ;;  %v1375_v26 = vpack.c.bf16 %v1127_v23, %v1123_v21  ;;  %v1378_v27 = vpack.c.bf16 %v1134_v25, %v1130_v24  ;;  %v1132_v28 = vld [vmem:[%s16891_s17 + $0x98] sm:$0xff]  ;;  %v1129_v30 = vld [vmem:[%s16891_s17 + $0x80] sm:$0xff]  ;;  %v1131_v33 = vld [vmem:[%s16891_s17 + $0x90] sm:$0xff] }
  0x55   : > { %5085 = vmatprep.subr.bf16.mxu1 %v1376_v18  ;;  %v1136_v29 = vld [vmem:[%s16891_s17 + $0xb8] sm:$0xff]  ;;  %v1133_v32 = vld [vmem:[%s16891_s17 + $0xa0] sm:$0xff]  ;;  %v1135_v34 = vld [vmem:[%s16891_s17 + $0xb0] sm:$0xff] }
  0x56   : > { %v1380_v31 = vpack.c.bf16 %v1136_v29, %v1132_v28  ;;  %v1377_v35 = vpack.c.bf16 %v1133_v32, %v1129_v30  ;;  %v1138_v36 = vld [vmem:[%s16891_s17 + $0xc8] sm:$0xff]  ;;  %v1140_v38 = vld [vmem:[%s16891_s17 + $0xd8] sm:$0xff]  ;;  %v1379_v39 = vpack.c.bf16 %v1135_v34, %v1131_v33  ;;  %v1137_v42 = vld [vmem:[%s16891_s17 + $0xc0] sm:$0xff] }
  0x57   : > { %3420 = vmatpush1.bf16.msra.mxu0 %v1373_v22  ;;  %v1142_v37 = vld [vmem:[%s16891_s17 + $0xe8] sm:$0xff]  ;;  %v1144_v41 = vld [vmem:[%s16891_s17 + $0xf8] sm:$0xff]  ;;  %v1141_v43 = vld [vmem:[%s16891_s17 + $0xe0] sm:$0xff] }
  0x58   : > { %5086 = vmatpush1.bf16.msra.mxu1 %v1375_v26  ;;  %3421 = vmatprep.subr.bf16.mxu0 %v1378_v27  ;;  %v1382_v40 = vpack.c.bf16 %v1142_v37, %v1138_v36  ;;  %v1384_v44 = vpack.c.bf16 %v1144_v41, %v1140_v38  ;;  %v1139_v45 = vld [vmem:[%s16891_s17 + $0xd0] sm:$0xff]  ;;  %v1146_v47 = vld [vmem:[%s16891_s17 + $0x108] sm:$0xff]  ;;  %v1148_v49 = vld [vmem:[%s16891_s17 + $0x118] sm:$0xff]  ;;  %v1381_v51 = vpack.c.bf16 %v1141_v43, %v1137_v42 }
  0x59   : > { %5087 = vmatprep.subr.bf16.mxu1 %v1380_v31  ;;  %v1143_v46 = vld [vmem:[%s16891_s17 + $0xf0] sm:$0xff]  ;;  %v1150_v48 = vld [vmem:[%s16891_s17 + $0x128] sm:$0xff]  ;;  %v1152_v50 = vld [vmem:[%s16891_s17 + $0x138] sm:$0xff] }
  0x5a   : > { %v1383_v52 = vpack.c.bf16 %v1143_v46, %v1139_v45  ;;  %v1386_v53 = vpack.c.bf16 %v1150_v48, %v1146_v47  ;;  %v1145_v54 = vld [vmem:[%s16891_s17 + $0x100] sm:$0xff]  ;;  %v1147_v56 = vld [vmem:[%s16891_s17 + $0x110] sm:$0xff]  ;;  %v1388_v57 = vpack.c.bf16 %v1152_v50, %v1148_v49  ;;  %v1154_v59 = vld [vmem:[%s16891_s17 + $0x148] sm:$0xff] }
  0x5b   : > { %3422 = vmatpush1.bf16.msra.mxu0 %v1377_v35  ;;  %v1149_v55 = vld [vmem:[%s16891_s17 + $0x120] sm:$0xff]  ;;  %v1151_v58 = vld [vmem:[%s16891_s17 + $0x130] sm:$0xff]  ;;  %v1158_v60 = vld [vmem:[%s16891_s17 + $0x168] sm:$0xff] }
  0x5c   : > { %5088 = vmatpush1.bf16.msra.mxu1 %v1379_v39  ;;  %3423 = vmatprep.subr.bf16.mxu0 %v1382_v40  ;;  %v1156_v61 = vld [vmem:[%s16891_s17 + $0x158] sm:$0xff]  ;;  %v1385_v63 = vpack.c.bf16 %v1149_v55, %v1145_v54  ;;  %v1387_v0 = vpack.c.bf16 %v1151_v58, %v1147_v56  ;;  %v1390_v1 = vpack.c.bf16 %v1158_v60, %v1154_v59  ;;  %v1153_v2 = vld [vmem:[%s16891_s17 + $0x140] sm:$0xff]  ;;  %v1155_v4 = vld [vmem:[%s16891_s17 + $0x150] sm:$0xff] }
  0x5d   : > { %5089 = vmatprep.subr.bf16.mxu1 %v1384_v44  ;;  %v1160_v62 = vld [vmem:[%s16891_s17 + $0x178] sm:$0xff]  ;;  %v1157_v3 = vld [vmem:[%s16891_s17 + $0x160] sm:$0xff]  ;;  %v1159_v6 = vld [vmem:[%s16891_s17 + $0x170] sm:$0xff] }
  0x5e   : > { %v1392_v5 = vpack.c.bf16 %v1160_v62, %v1156_v61  ;;  %v1162_v7 = vld [vmem:[%s16891_s17 + $0x188] sm:$0xff]  ;;  %v1164_v9 = vld [vmem:[%s16891_s17 + $0x198] sm:$0xff]  ;;  %v1389_v11 = vpack.c.bf16 %v1157_v3, %v1153_v2  ;;  %v1391_v12 = vpack.c.bf16 %v1159_v6, %v1155_v4  ;;  %v1161_v14 = vld [vmem:[%s16891_s17 + $0x180] sm:$0xff] }
  0x5f   : > { %3424 = vmatpush1.bf16.msra.mxu0 %v1381_v51  ;;  %v1166_v8 = vld [vmem:[%s16891_s17 + $0x1a8] sm:$0xff]  ;;  %v1168_v10 = vld [vmem:[%s16891_s17 + $0x1b8] sm:$0xff]  ;;  %v1165_v15 = vld [vmem:[%s16891_s17 + $0x1a0] sm:$0xff] }
  0x60   : > { %5090 = vmatpush1.bf16.msra.mxu1 %v1383_v52  ;;  %3425 = vmatprep.subr.bf16.mxu0 %v1386_v53  ;;  %v1394_v13 = vpack.c.bf16 %v1166_v8, %v1162_v7  ;;  %v1163_v16 = vld [vmem:[%s16891_s17 + $0x190] sm:$0xff]  ;;  %v1396_v17 = vpack.c.bf16 %v1168_v10, %v1164_v9  ;;  %v1170_v19 = vld [vmem:[%s16891_s17 + $0x1c8] sm:$0xff]  ;;  %v1172_v21 = vld [vmem:[%s16891_s17 + $0x1d8] sm:$0xff]  ;;  %v1393_v23 = vpack.c.bf16 %v1165_v15, %v1161_v14 }
  0x61   : > { %5091 = vmatprep.subr.bf16.mxu1 %v1388_v57  ;;  %v1167_v18 = vld [vmem:[%s16891_s17 + $0x1b0] sm:$0xff]  ;;  %v1174_v20 = vld [vmem:[%s16891_s17 + $0x1e8] sm:$0xff]  ;;  %v1176_v22 = vld [vmem:[%s16891_s17 + $0x1f8] sm:$0xff] }
  0x62   : > { %v1395_v24 = vpack.c.bf16 %v1167_v18, %v1163_v16  ;;  %v1398_v25 = vpack.c.bf16 %v1174_v20, %v1170_v19  ;;  %v1169_v26 = vld [vmem:[%s16891_s17 + $0x1c0] sm:$0xff]  ;;  %v1171_v28 = vld [vmem:[%s16891_s17 + $0x1d0] sm:$0xff]  ;;  %v1400_v29 = vpack.c.bf16 %v1176_v22, %v1172_v21  ;;  %v1178_v31 = vld [vmem:[%s16891_s17 + $0x208] sm:$0xff] }
  0x63   : > { %3426 = vmatpush1.bf16.msra.mxu0 %v1385_v63  ;;  %v1173_v27 = vld [vmem:[%s16891_s17 + $0x1e0] sm:$0xff]  ;;  %v1175_v30 = vld [vmem:[%s16891_s17 + $0x1f0] sm:$0xff]  ;;  %v1182_v32 = vld [vmem:[%s16891_s17 + $0x228] sm:$0xff] }
  0x64   : > { %5092 = vmatpush1.bf16.msra.mxu1 %v1387_v0  ;;  %3427 = vmatprep.subr.bf16.mxu0 %v1390_v1  ;;  %v1180_v33 = vld [vmem:[%s16891_s17 + $0x218] sm:$0xff]  ;;  %v1397_v35 = vpack.c.bf16 %v1173_v27, %v1169_v26  ;;  %v1399_v36 = vpack.c.bf16 %v1175_v30, %v1171_v28  ;;  %v1402_v37 = vpack.c.bf16 %v1182_v32, %v1178_v31  ;;  %v1177_v38 = vld [vmem:[%s16891_s17 + $0x200] sm:$0xff]  ;;  %v1179_v40 = vld [vmem:[%s16891_s17 + $0x210] sm:$0xff] }
  0x65   : > { %5093 = vmatprep.subr.bf16.mxu1 %v1392_v5  ;;  %v1184_v34 = vld [vmem:[%s16891_s17 + $0x238] sm:$0xff]  ;;  %v1181_v39 = vld [vmem:[%s16891_s17 + $0x220] sm:$0xff]  ;;  %v1183_v42 = vld [vmem:[%s16891_s17 + $0x230] sm:$0xff] }
  0x66   : > { %v1404_v41 = vpack.c.bf16 %v1184_v34, %v1180_v33  ;;  %v1186_v43 = vld [vmem:[%s16891_s17 + $0x248] sm:$0xff]  ;;  %v1188_v45 = vld [vmem:[%s16891_s17 + $0x258] sm:$0xff]  ;;  %v1401_v47 = vpack.c.bf16 %v1181_v39, %v1177_v38  ;;  %v1403_v48 = vpack.c.bf16 %v1183_v42, %v1179_v40  ;;  %v1185_v50 = vld [vmem:[%s16891_s17 + $0x240] sm:$0xff] }
  0x67   : > { %3428 = vmatpush1.bf16.msra.mxu0 %v1389_v11  ;;  %v1190_v44 = vld [vmem:[%s16891_s17 + $0x268] sm:$0xff]  ;;  %v1192_v46 = vld [vmem:[%s16891_s17 + $0x278] sm:$0xff]  ;;  %v1189_v51 = vld [vmem:[%s16891_s17 + $0x260] sm:$0xff] }
  0x68   : > { %5094 = vmatpush1.bf16.msra.mxu1 %v1391_v12  ;;  %3429 = vmatprep.subr.bf16.mxu0 %v1394_v13  ;;  %v1406_v49 = vpack.c.bf16 %v1190_v44, %v1186_v43  ;;  %v1187_v52 = vld [vmem:[%s16891_s17 + $0x250] sm:$0xff]  ;;  %v1408_v53 = vpack.c.bf16 %v1192_v46, %v1188_v45  ;;  %v1194_v55 = vld [vmem:[%s16891_s17 + $0x288] sm:$0xff]  ;;  %v1196_v57 = vld [vmem:[%s16891_s17 + $0x298] sm:$0xff]  ;;  %v1405_v59 = vpack.c.bf16 %v1189_v51, %v1185_v50 }
  0x69   : > { %5095 = vmatprep.subr.bf16.mxu1 %v1396_v17  ;;  %v1191_v54 = vld [vmem:[%s16891_s17 + $0x270] sm:$0xff]  ;;  %v1198_v56 = vld [vmem:[%s16891_s17 + $0x2a8] sm:$0xff]  ;;  %v1200_v58 = vld [vmem:[%s16891_s17 + $0x2b8] sm:$0xff] }
  0x6a   : > { %v1407_v60 = vpack.c.bf16 %v1191_v54, %v1187_v52  ;;  %v1410_v61 = vpack.c.bf16 %v1198_v56, %v1194_v55  ;;  %v1193_v62 = vld [vmem:[%s16891_s17 + $0x280] sm:$0xff]  ;;  %v1195_v0 = vld [vmem:[%s16891_s17 + $0x290] sm:$0xff]  ;;  %v1412_v1 = vpack.c.bf16 %v1200_v58, %v1196_v57  ;;  %v1202_v3 = vld [vmem:[%s16891_s17 + $0x2c8] sm:$0xff] }
  0x6b   : > { %3430 = vmatpush1.bf16.msra.mxu0 %v1393_v23  ;;  %v1197_v63 = vld [vmem:[%s16891_s17 + $0x2a0] sm:$0xff]  ;;  %v1199_v2 = vld [vmem:[%s16891_s17 + $0x2b0] sm:$0xff]  ;;  %v1206_v4 = vld [vmem:[%s16891_s17 + $0x2e8] sm:$0xff] }
  0x6c   : > { %5096 = vmatpush1.bf16.msra.mxu1 %v1395_v24  ;;  %3431 = vmatprep.subr.bf16.mxu0 %v1398_v25  ;;  %v1204_v5 = vld [vmem:[%s16891_s17 + $0x2d8] sm:$0xff]  ;;  %v1409_v7 = vpack.c.bf16 %v1197_v63, %v1193_v62  ;;  %v1201_v8 = vld [vmem:[%s16891_s17 + $0x2c0] sm:$0xff]  ;;  %v1203_v10 = vld [vmem:[%s16891_s17 + $0x2d0] sm:$0xff]  ;;  %v1411_v11 = vpack.c.bf16 %v1199_v2, %v1195_v0  ;;  %v1414_v12 = vpack.c.bf16 %v1206_v4, %v1202_v3 }
  0x6d   : > { %5097 = vmatprep.subr.bf16.mxu1 %v1400_v29  ;;  %v1208_v6 = vld [vmem:[%s16891_s17 + $0x2f8] sm:$0xff]  ;;  %v1205_v9 = vld [vmem:[%s16891_s17 + $0x2e0] sm:$0xff]  ;;  %v1207_v13 = vld [vmem:[%s16891_s17 + $0x2f0] sm:$0xff] }
  0x6e   : > { %v1210_v14 = vld [vmem:[%s16891_s17 + $0x308] sm:$0xff]  ;;  %v1416_v16 = vpack.c.bf16 %v1208_v6, %v1204_v5  ;;  %v1212_v17 = vld [vmem:[%s16891_s17 + $0x318] sm:$0xff]  ;;  %v1209_v19 = vld [vmem:[%s16891_s17 + $0x300] sm:$0xff]  ;;  %v1413_v21 = vpack.c.bf16 %v1205_v9, %v1201_v8  ;;  %v1415_v25 = vpack.c.bf16 %v1207_v13, %v1203_v10 }
  0x6f   : > { %3432 = vmatpush1.bf16.msra.mxu0 %v1397_v35  ;;  %v1214_v15 = vld [vmem:[%s16891_s17 + $0x328] sm:$0xff]  ;;  %v1216_v18 = vld [vmem:[%s16891_s17 + $0x338] sm:$0xff]  ;;  %v1213_v20 = vld [vmem:[%s16891_s17 + $0x320] sm:$0xff] }
  0x70   : > { %5098 = vmatpush1.bf16.msra.mxu1 %v1399_v36  ;;  %3433 = vmatprep.subr.bf16.mxu0 %v1402_v37  ;;  %v1211_v22 = vld [vmem:[%s16891_s17 + $0x310] sm:$0xff]  ;;  %v1218_v24 = vld [vmem:[%s16891_s17 + $0x348] sm:$0xff]  ;;  %v1418_v26 = vpack.c.bf16 %v1214_v15, %v1210_v14  ;;  %v1420_v28 = vpack.c.bf16 %v1216_v18, %v1212_v17  ;;  %v1220_v29 = vld [vmem:[%s16891_s17 + $0x358] sm:$0xff]  ;;  %v1417_v33 = vpack.c.bf16 %v1213_v20, %v1209_v19 }
  0x71   : > { %5099 = vmatprep.subr.bf16.mxu1 %v1404_v41  ;;  %v1215_v23 = vld [vmem:[%s16891_s17 + $0x330] sm:$0xff]  ;;  %v1222_v27 = vld [vmem:[%s16891_s17 + $0x368] sm:$0xff]  ;;  %v1224_v30 = vld [vmem:[%s16891_s17 + $0x378] sm:$0xff] }
  0x72   : > { %v1217_v31 = vld [vmem:[%s16891_s17 + $0x340] sm:$0xff]  ;;  %v1219_v34 = vld [vmem:[%s16891_s17 + $0x350] sm:$0xff]  ;;  %v1226_v36 = vld [vmem:[%s16891_s17 + $0x388] sm:$0xff]  ;;  %v1419_v37 = vpack.c.bf16 %v1215_v23, %v1211_v22  ;;  %v1422_v38 = vpack.c.bf16 %v1222_v27, %v1218_v24  ;;  %v1424_v40 = vpack.c.bf16 %v1224_v30, %v1220_v29 }
  0x73   : > { %3434 = vmatpush1.bf16.msra.mxu0 %v1401_v47  ;;  %v1221_v32 = vld [vmem:[%s16891_s17 + $0x360] sm:$0xff]  ;;  %v1223_v35 = vld [vmem:[%s16891_s17 + $0x370] sm:$0xff]  ;;  %v1230_v39 = vld [vmem:[%s16891_s17 + $0x3a8] sm:$0xff] }
  0x74   : > { %5100 = vmatpush1.bf16.msra.mxu1 %v1403_v48  ;;  %3435 = vmatprep.subr.bf16.mxu0 %v1406_v49  ;;  %v1228_v41 = vld [vmem:[%s16891_s17 + $0x398] sm:$0xff]  ;;  %v1225_v43 = vld [vmem:[%s16891_s17 + $0x380] sm:$0xff]  ;;  %v1421_v45 = vpack.c.bf16 %v1221_v32, %v1217_v31  ;;  %v1227_v46 = vld [vmem:[%s16891_s17 + $0x390] sm:$0xff]  ;;  %v1423_v47 = vpack.c.bf16 %v1223_v35, %v1219_v34  ;;  %v1426_v48 = vpack.c.bf16 %v1230_v39, %v1226_v36 }
  0x75   : > { %5101 = vmatprep.subr.bf16.mxu1 %v1408_v53  ;;  %v1232_v42 = vld [vmem:[%s16891_s17 + $0x3b8] sm:$0xff]  ;;  %v1229_v44 = vld [vmem:[%s16891_s17 + $0x3a0] sm:$0xff]  ;;  %v1231_v49 = vld [vmem:[%s16891_s17 + $0x3b0] sm:$0xff] }
  0x76   : > { %v1428_v50 = vpack.c.bf16 %v1232_v42, %v1228_v41  ;;  %v1234_v51 = vld [vmem:[%s16891_s17 + $0x3c8] sm:$0xff]  ;;  %v1236_v53 = vld [vmem:[%s16891_s17 + $0x3d8] sm:$0xff]  ;;  %v1425_v55 = vpack.c.bf16 %v1229_v44, %v1225_v43  ;;  %v1233_v56 = vld [vmem:[%s16891_s17 + $0x3c0] sm:$0xff]  ;;  %v1427_v57 = vpack.c.bf16 %v1231_v49, %v1227_v46 }
  0x77   : > { %3436 = vmatpush1.bf16.msra.mxu0 %v1405_v59  ;;  %v1238_v52 = vld [vmem:[%s16891_s17 + $0x3e8] sm:$0xff]  ;;  %v1240_v54 = vld [vmem:[%s16891_s17 + $0x3f8] sm:$0xff]  ;;  %v1237_v59 = vld [vmem:[%s16891_s17 + $0x3e0] sm:$0xff] }
  0x78   : > { %5102 = vmatpush1.bf16.msra.mxu1 %v1407_v60  ;;  %3437 = vmatprep.subr.bf16.mxu0 %v1410_v61  ;;  %v1430_v58 = vpack.c.bf16 %v1238_v52, %v1234_v51  ;;  %v1432_v60 = vpack.c.bf16 %v1240_v54, %v1236_v53  ;;  %v1235_v61 = vld [vmem:[%s16891_s17 + $0x3d0] sm:$0xff]  ;;  %v1429_v63 = vpack.c.bf16 %v1237_v59, %v1233_v56  ;;  %v1244_v27 = vld [vmem:[%s16891_s17 + $0x418] sm:$0xff]  ;;  %v1241_v30 = vld [vmem:[%s16891_s17 + $0x400] sm:$0xff] }
  0x79   : > { %5103 = vmatprep.subr.bf16.mxu1 %v1412_v1  ;;  %v1239_v62 = vld [vmem:[%s16891_s17 + $0x3f0] sm:$0xff]  ;;  %v1248_v29 = vld [vmem:[%s16891_s17 + $0x438] sm:$0xff]  ;;  %v1245_v31 = vld [vmem:[%s16891_s17 + $0x420] sm:$0xff] }
  0x7a   : > { %v1431_v0 = vpack.c.bf16 %v1239_v62, %v1235_v61  ;;  %v15889_v1 = vld [vmem:[%s20409_s1] ss:$16 sps:$4 sm:$0xff]   ;;  %v15892_v2 = vld [vmem:[%s20409_s1 + $0x24] ss:$16 sps:$4 sm:$0xff]   ;;  %v1433_v34 = vpack.c.bf16 %v1245_v31, %v1241_v30  ;;  %v1252_v49 = vld [vmem:[%s16891_s17 + $0x458] sm:$0xff] }
  0x7b   : > { %3438 = vmatpush1.bf16.msra.mxu0 %v1409_v7  ;;  %v15894_v3 = vld [vmem:[%s20409_s1 + $0x20] ss:$16 sps:$4 sm:$0xff]   ;;  %v15895_v4 = vld [vmem:[%s20409_s1 + $0x44] ss:$16 sps:$4 sm:$0xff]   ;;  %v1256_v51 = vld [vmem:[%s16891_s17 + $0x478] sm:$0xff] }
  0x7c   : > { %5104 = vmatpush1.bf16.msra.mxu1 %v1411_v11  ;;  %3439 = vmatprep.subr.bf16.mxu0 %v1414_v12  ;;  %v15897_v5 = vld [vmem:[%s20409_s1 + $0x40] ss:$16 sps:$4 sm:$0xff]   ;;  %v15898_v6 = vld [vmem:[%s20409_s1 + $0x64] ss:$16 sps:$4 sm:$0xff]   ;;  %v1272_v31 = vld [vmem:[%s16891_s17 + $0x4f8] sm:$0xff] }
  0x7d   : > { %5105 = vmatprep.subr.bf16.mxu1 %v1416_v16  ;;  %v15900_v7 = vld [vmem:[%s20409_s1 + $0x60] ss:$16 sps:$4 sm:$0xff]   ;;  %v15901_v8 = vld [vmem:[%s20409_s1 + $0x84] ss:$16 sps:$4 sm:$0xff]  }
  0x7e   : > { %v15903_v9 = vld [vmem:[%s20409_s1 + $0x80] ss:$16 sps:$4 sm:$0xff]   ;;  %v15904_v10 = vld [vmem:[%s20409_s1 + $0xa4] ss:$16 sps:$4 sm:$0xff]  }
  0x7f   : > { %3440 = vmatpush1.bf16.msra.mxu0 %v1413_v21  ;;  %v15906_v11 = vld [vmem:[%s20409_s1 + $0xa0] ss:$16 sps:$4 sm:$0xff]   ;;  %v15907_v12 = vld [vmem:[%s20409_s1 + $0xc4] ss:$16 sps:$4 sm:$0xff]  }
  0x80   : > { %5106 = vmatpush1.bf16.msra.mxu1 %v1415_v25  ;;  %3441 = vmatprep.subr.bf16.mxu0 %v1418_v26  ;;  %v15909_v13 = vld [vmem:[%s20409_s1 + $0xc0] ss:$16 sps:$4 sm:$0xff]   ;;  %v15910_v14 = vld [vmem:[%s20409_s1 + $0xe4] ss:$16 sps:$4 sm:$0xff]   ;;  %v1242_v25 = vld [vmem:[%s16891_s17 + $0x408] sm:$0xff] }
  0x81   : > { %5107 = vmatprep.subr.bf16.mxu1 %v1420_v28  ;;  %v15912_v15 = vld [vmem:[%s20409_s1 + $0xe0] ss:$16 sps:$4 sm:$0xff]   ;;  %v15913_v16 = vld [vmem:[%s20409_s1 + $0x104] ss:$16 sps:$4 sm:$0xff]   ;;  %v1246_v26 = vld [vmem:[%s16891_s17 + $0x428] sm:$0xff] }
  0x82   : > { %v15915_v17 = vld [vmem:[%s20409_s1 + $0x100] ss:$16 sps:$4 sm:$0xff]   ;;  %v15916_v18 = vld [vmem:[%s20409_s1 + $0x124] ss:$16 sps:$4 sm:$0xff]   ;;  %v1434_v28 = vpack.c.bf16 %v1246_v26, %v1242_v25 }
  0x83   : > { %3442 = vmatpush1.bf16.msra.mxu0 %v1417_v33  ;;  %v15918_v19 = vld [vmem:[%s20409_s1 + $0x120] ss:$16 sps:$4 sm:$0xff]   ;;  %v15919_v20 = vld [vmem:[%s20409_s1 + $0x144] ss:$16 sps:$4 sm:$0xff]   ;;  %v1436_v33 = vpack.c.bf16 %v1248_v29, %v1244_v27  ;;  %v1266_v27 = vld [vmem:[%s16891_s17 + $0x4c8] sm:$0xff] }
  0x84   : > { %5108 = vmatpush1.bf16.msra.mxu1 %v1419_v37  ;;  %3443 = vmatprep.subr.bf16.mxu0 %v1422_v38  ;;  %v15921_v21 = vld [vmem:[%s20409_s1 + $0x140] ss:$16 sps:$4 sm:$0xff]   ;;  %v15922_v22 = vld [vmem:[%s20409_s1 + $0x164] ss:$16 sps:$4 sm:$0xff]   ;;  %v1268_v29 = vld [vmem:[%s16891_s17 + $0x4d8] sm:$0xff] }
  0x85   : > { %5109 = vmatprep.subr.bf16.mxu1 %v1424_v40  ;;  %v15924_v23 = vld [vmem:[%s20409_s1 + $0x160] ss:$16 sps:$4 sm:$0xff]   ;;  %v15925_v24 = vld [vmem:[%s20409_s1 + $0x184] ss:$16 sps:$4 sm:$0xff]  }
  0x86   : > { %v15927_v32 = vld [vmem:[%s20409_s1 + $0x180] ss:$16 sps:$4 sm:$0xff]   ;;  %v15928_v37 = vld [vmem:[%s20409_s1 + $0x1a4] ss:$16 sps:$4 sm:$0xff]  }
  0x87   : > { %3444 = vmatpush1.bf16.msra.mxu0 %v1421_v45  ;;  %v1243_v35 = vld [vmem:[%s16891_s17 + $0x410] sm:$0xff]  ;;  %v1249_v52 = vld [vmem:[%s16891_s17 + $0x440] sm:$0xff] }
  0x88   : > { %5110 = vmatpush1.bf16.msra.mxu1 %v1423_v47  ;;  %3445 = vmatprep.subr.bf16.mxu0 %v1426_v48  ;;  %v1247_v36 = vld [vmem:[%s16891_s17 + $0x430] sm:$0xff]  ;;  %v1250_v47 = vld [vmem:[%s16891_s17 + $0x448] sm:$0xff]  ;;  %v1253_v53 = vld [vmem:[%s16891_s17 + $0x460] sm:$0xff] }
  0x89   : > { %5111 = vmatprep.subr.bf16.mxu1 %v1428_v50  ;;  %v1435_v38 = vpack.c.bf16 %v1247_v36, %v1243_v35  ;;  %v15930_v39 = vld [vmem:[%s20409_s1 + $0x1a0] ss:$16 sps:$4 sm:$0xff]   ;;  %v15931_v40 = vld [vmem:[%s20409_s1 + $0x1c4] ss:$16 sps:$4 sm:$0xff]   ;;  %v1254_v48 = vld [vmem:[%s16891_s17 + $0x468] sm:$0xff]  ;;  %v1437_v56 = vpack.c.bf16 %v1253_v53, %v1249_v52 }
  0x8a   : > { %v15933_v41 = vld [vmem:[%s20409_s1 + $0x1c0] ss:$16 sps:$4 sm:$0xff]   ;;  %v15934_v42 = vld [vmem:[%s20409_s1 + $0x1e4] ss:$16 sps:$4 sm:$0xff]   ;;  %v1438_v50 = vpack.c.bf16 %v1254_v48, %v1250_v47  ;;  %v6750_v47 = vld [vmem:[%s20416_s8 + $0x8] sm:$0xff] }
  0x8b   : > { %3446 = vmatpush1.bf16.msra.mxu0 %v1425_v55  ;;  %v15936_v43 = vld [vmem:[%s20409_s1 + $0x1e0] ss:$16 sps:$4 sm:$0xff]   ;;  %v15937_v44 = vld [vmem:[%s20409_s1 + $0x204] ss:$16 sps:$4 sm:$0xff]   ;;  %v1440_v55 = vpack.c.bf16 %v1256_v51, %v1252_v49 }
  0x8c   : > { %5112 = vmatpush1.bf16.msra.mxu1 %v1427_v57  ;;  %3447 = vmatprep.subr.bf16.mxu0 %v1430_v58  ;;  %v15939_v45 = vld [vmem:[%s20409_s1 + $0x200] ss:$16 sps:$4 sm:$0xff]   ;;  %v15940_v46 = vld [vmem:[%s20409_s1 + $0x224] ss:$16 sps:$4 sm:$0xff]  }
  0x8d   : > { %5113 = vmatprep.subr.bf16.mxu1 %v1432_v60  ;;  %v15942_v54 = vld [vmem:[%s20409_s1 + $0x220] ss:$16 sps:$4 sm:$0xff]   ;;  %v15943_v59 = vld [vmem:[%s20409_s1 + $0x244] ss:$16 sps:$4 sm:$0xff]  }
  0x8e   : > { %v1251_v57 = vld [vmem:[%s16891_s17 + $0x450] sm:$0xff]  ;;  %v6753_v48 = vld [vmem:[%s20416_s8 + $0x20] sm:$0xff] }
  0x8f   : > { %3448 = vmatpush1.bf16.msra.mxu0 %v1429_v63  ;;  %v1255_v58 = vld [vmem:[%s16891_s17 + $0x470] sm:$0xff]  ;;  %v6757_v52 = vld [vmem:[%s20416_s8 + $0x40] sm:$0xff] }
  0x90   : > { %5114 = vmatpush1.bf16.msra.mxu1 %v1431_v0  ;;  %4250 = vmatprep.subr.bf16.mxu0 %v1434_v28  ;;  %v1439_v60 = vpack.c.bf16 %v1255_v58, %v1251_v57  ;;  %v15945_v61 = vld [vmem:[%s20409_s1 + $0x240] ss:$16 sps:$4 sm:$0xff]   ;;  %v15946_v62 = vld [vmem:[%s20409_s1 + $0x264] ss:$16 sps:$4 sm:$0xff]   ;;  %v1270_v28 = vld [vmem:[%s16891_s17 + $0x4e8] sm:$0xff] }
  0x91   : > { %5916 = vmatprep.subr.bf16.mxu1 %v1436_v33  ;;  %v15948_v63 = vld [vmem:[%s20409_s1 + $0x260] ss:$16 sps:$4 sm:$0xff]   ;;  %v15949_v0 = vld [vmem:[%s20409_s1 + $0x284] ss:$16 sps:$4 sm:$0xff]   ;;  %v1446_v30 = vpack.c.bf16 %v1270_v28, %v1266_v27  ;;  %v1278_v57 = vld [vmem:[%s16891_s17 + $0x528] sm:$0xff] }
  0x92   : > { %3450 = vmatmul.mubr.bf16.vlgmr.msra.gmra.mrb[0].mxu0 %v15889_v1  ;;  %v15969_v25 = vld [vmem:[%s20409_s1 + $0x340] ss:$16 sps:$4 sm:$0xff]   ;;  %v15970_v26 = vld [vmem:[%s20409_s1 + $0x364] ss:$16 sps:$4 sm:$0xff]   ;;  %v6760_v28 = vld [vmem:[%s20416_s8 + $0x58] sm:$0xff] }
  0x93   : > { %5116 = vmatmul.mubr.bf16.vlgmr.msra.gmra.mrb[0].mxu1 %v15889_v1  ;;  %3459 = vmatprep.mubr.bf16.mxu0 %v15892_v2  ;;  %v15951_v1 = vld [vmem:[%s20409_s1 + $0x280] ss:$16 sps:$4 sm:$0xff]   ;;  %v16000_v27 = vld [vmem:[%s20409_s1 + $0x4a4] ss:$16 sps:$4 sm:$0xff]  }
  0x94   : > { %5125 = vmatprep.mubr.bf16.mxu1 %v15892_v2  ;;  %4251 = vmatpush1.bf16.msra.mxu0 %v1433_v34  ;;  %v15952_v2 = vld [vmem:[%s20409_s1 + $0x2a4] ss:$16 sps:$4 sm:$0xff]   ;;  %v1448_v34 = vpack.c.bf16 %v1272_v31, %v1268_v29  ;;  %v15981_v49 = vld [vmem:[%s20409_s1 + $0x3c0] ss:$16 sps:$4 sm:$0xff]  }
  0x95   : > { %5917 = vmatpush1.bf16.msra.mxu1 %v1435_v38  ;;  %4252 = vmatprep.subr.bf16.mxu0 %v1438_v50  ;;  %v1269_v33 = vld [vmem:[%s16891_s17 + $0x4e0] sm:$0xff]  ;;  %v1267_v36 = vld [vmem:[%s16891_s17 + $0x4d0] sm:$0xff] }
  0x96   : > { %5918 = vmatprep.subr.bf16.mxu1 %v1440_v55  ;;  %v15972_v38 = vld [vmem:[%s20409_s1 + $0x360] ss:$16 sps:$4 sm:$0xff]   ;;  %v15982_v50 = vld [vmem:[%s20409_s1 + $0x3e4] ss:$16 sps:$4 sm:$0xff]  }
  0x97   : > { %v6755_v51 = vld [vmem:[%s20416_s8 + $0x30] sm:$0xff] }
  0x98   : > { %4253 = vmatpush1.bf16.msra.mxu0 %v1437_v56  ;;  %v15984_v53 = vld [vmem:[%s20409_s1 + $0x3e0] ss:$16 sps:$4 sm:$0xff]   ;;  %v1274_v56 = vld [vmem:[%s16891_s17 + $0x508] sm:$0xff] }
  0x99   : > { %5919 = vmatpush1.bf16.msra.mxu1 %v1439_v60  ;;  %v6759_v55 = vld [vmem:[%s20416_s8 + $0x50] sm:$0xff]  ;;  %v1450_v58 = vpack.c.bf16 %v1278_v57, %v1274_v56  ;;  %v1280_v60 = vld [vmem:[%s16891_s17 + $0x538] sm:$0xff]  ;;  %v8258_v57 = vld [vmem:[%s20418_s10] sm:$0xff] }
  0x9a   : > { %3460 = vmatmul.mubr.bf16.gmra.mrb[4].mxu0 %v15894_v3  ;;  %v6779_v29 = vld [vmem:[%s20416_s8 + $0xf0] sm:$0xff] }
  0x9b   : > { %5126 = vmatmul.mubr.bf16.gmra.mrb[4].mxu1 %v15894_v3  ;;  %3469 = vmatprep.mubr.bf16.mxu0 %v15895_v4  ;;  %v15954_v3 = vld [vmem:[%s20409_s1 + $0x2a0] ss:$16 sps:$4 sm:$0xff]  }
  0x9c   : > { %5135 = vmatprep.mubr.bf16.mxu1 %v15895_v4  ;;  %v15955_v4 = vld [vmem:[%s20409_s1 + $0x2c4] ss:$16 sps:$4 sm:$0xff]   ;;  %v16002_v31 = vld [vmem:[%s20409_s1 + $0x4a0] ss:$16 sps:$4 sm:$0xff]  }
  0x9d   : > { %v16008_v56 = vld [vmem:[%s20409_s1 + $0x4e0] ss:$16 sps:$4 sm:$0xff]  }
  0xa2   : > { %3470 = vmatmul.mubr.bf16.gmra.mrb[8].mxu0 %v15897_v5 }
  0xa3   : > { %5136 = vmatmul.mubr.bf16.gmra.mrb[8].mxu1 %v15897_v5  ;;  %3479 = vmatprep.mubr.bf16.mxu0 %v15898_v6  ;;  %v1258_v5 = vld [vmem:[%s16891_s17 + $0x488] sm:$0xff] }
  0xa4   : > { %5145 = vmatprep.mubr.bf16.mxu1 %v15898_v6  ;;  %v1262_v6 = vld [vmem:[%s16891_s17 + $0x4a8] sm:$0xff] }
  0xaa   : > { %3480 = vmatmul.mubr.bf16.gmra.mrb[12].mxu0 %v15900_v7 }
  0xab   : > { %5146 = vmatmul.mubr.bf16.gmra.mrb[12].mxu1 %v15900_v7  ;;  %3489 = vmatprep.mubr.bf16.mxu0 %v15901_v8  ;;  %v1260_v7 = vld [vmem:[%s16891_s17 + $0x498] sm:$0xff] }
  0xac   : > { %5155 = vmatprep.mubr.bf16.mxu1 %v15901_v8  ;;  %v1442_v8 = vpack.c.bf16 %v1262_v6, %v1258_v5  ;;  %v6761_v5 = vld [vmem:[%s20416_s8 + $0x60] sm:$0xff] }
  0xad   : > { %v15988_v6 = vld [vmem:[%s20409_s1 + $0x424] ss:$16 sps:$4 sm:$0xff]  }
  0xae   : > { %4254 = vmatprep.subr.bf16.mxu0 %v1442_v8  ;;  %v15990_v8 = vld [vmem:[%s20409_s1 + $0x420] ss:$16 sps:$4 sm:$0xff]  }
  0xb2   : > { %3490 = vmatmul.mubr.bf16.gmra.mrb[16].mxu0 %v15903_v9 }
  0xb3   : > { %5156 = vmatmul.mubr.bf16.gmra.mrb[16].mxu1 %v15903_v9  ;;  %3499 = vmatprep.mubr.bf16.mxu0 %v15904_v10  ;;  %v1264_v9 = vld [vmem:[%s16891_s17 + $0x4b8] sm:$0xff] }
  0xb4   : > { %5165 = vmatprep.mubr.bf16.mxu1 %v15904_v10  ;;  %v1257_v10 = vld [vmem:[%s16891_s17 + $0x480] sm:$0xff] }
  0xba   : > { %3500 = vmatmul.mubr.bf16.gmra.mrb[20].mxu0 %v15906_v11 }
  0xbb   : > { %5166 = vmatmul.mubr.bf16.gmra.mrb[20].mxu1 %v15906_v11  ;;  %3509 = vmatprep.mubr.bf16.mxu0 %v15907_v12  ;;  %v1261_v11 = vld [vmem:[%s16891_s17 + $0x4a0] sm:$0xff] }
  0xbc   : > { %5175 = vmatprep.mubr.bf16.mxu1 %v15907_v12  ;;  %v1444_v12 = vpack.c.bf16 %v1264_v9, %v1260_v7  ;;  %v6763_v7 = vld [vmem:[%s20416_s8 + $0x70] sm:$0xff]  ;;  %v6765_v9 = vld [vmem:[%s20416_s8 + $0x80] sm:$0xff] }
  0xbe   : > { %5920 = vmatprep.subr.bf16.mxu1 %v1444_v12  ;;  %v6751_v12 = vld [vmem:[%s20416_s8 + $0x10] sm:$0xff] }
  0xc2   : > { %3510 = vmatmul.mubr.bf16.gmra.mrb[24].mxu0 %v15909_v13 }
  0xc3   : > { %5176 = vmatmul.mubr.bf16.gmra.mrb[24].mxu1 %v15909_v13  ;;  %3519 = vmatprep.mubr.bf16.mxu0 %v15910_v14  ;;  %v1441_v13 = vpack.c.bf16 %v1261_v11, %v1257_v10  ;;  %v15991_v10 = vld [vmem:[%s20409_s1 + $0x444] ss:$16 sps:$4 sm:$0xff]  }
  0xc4   : > { %5185 = vmatprep.mubr.bf16.mxu1 %v15910_v14  ;;  %v1259_v14 = vld [vmem:[%s16891_s17 + $0x490] sm:$0xff] }
  0xc5   : > { %4255 = vmatpush1.bf16.msra.mxu0 %v1441_v13  ;;  %v6767_v11 = vld [vmem:[%s20416_s8 + $0x90] sm:$0xff] }
  0xc6   : > { %4256 = vmatprep.subr.bf16.mxu0 %v1446_v30  ;;  %v15993_v13 = vld [vmem:[%s20409_s1 + $0x440] ss:$16 sps:$4 sm:$0xff]   ;;  %v1282_v30 = vld [vmem:[%s16891_s17 + $0x548] sm:$0xff] }
  0xca   : > { %3520 = vmatmul.mubr.bf16.gmra.mrb[28].mxu0 %v15912_v15 }
  0xcb   : > { %5186 = vmatmul.mubr.bf16.gmra.mrb[28].mxu1 %v15912_v15  ;;  %3529 = vmatprep.mubr.bf16.mxu0 %v15913_v16  ;;  %v1263_v15 = vld [vmem:[%s16891_s17 + $0x4b0] sm:$0xff] }
  0xcc   : > { %5195 = vmatprep.mubr.bf16.mxu1 %v15913_v16  ;;  %v15957_v16 = vld [vmem:[%s20409_s1 + $0x2c0] ss:$16 sps:$4 sm:$0xff]  }
  0xd2   : > { %3530 = vmatmul.mubr.bf16.gmra.mrb[32].mxu0 %v15915_v17 }
  0xd3   : > { %5196 = vmatmul.mubr.bf16.gmra.mrb[32].mxu1 %v15915_v17  ;;  %3539 = vmatprep.mubr.bf16.mxu0 %v15916_v18  ;;  %v1443_v17 = vpack.c.bf16 %v1263_v15, %v1259_v14  ;;  %v6769_v14 = vld [vmem:[%s20416_s8 + $0xa0] sm:$0xff] }
  0xd4   : > { %5205 = vmatprep.mubr.bf16.mxu1 %v15916_v18  ;;  %v15958_v18 = vld [vmem:[%s20409_s1 + $0x2e4] ss:$16 sps:$4 sm:$0xff]  }
  0xd5   : > { %5921 = vmatpush1.bf16.msra.mxu1 %v1443_v17  ;;  %v15994_v15 = vld [vmem:[%s20409_s1 + $0x464] ss:$16 sps:$4 sm:$0xff]  }
  0xd6   : > { %5922 = vmatprep.subr.bf16.mxu1 %v1448_v34  ;;  %v6771_v17 = vld [vmem:[%s20416_s8 + $0xb0] sm:$0xff]  ;;  %v1288_v34 = vld [vmem:[%s16891_s17 + $0x578] sm:$0xff] }
  0xda   : > { %3540 = vmatmul.mubr.bf16.gmra.mrb[36].mxu0 %v15918_v19 }
  0xdb   : > { %5206 = vmatmul.mubr.bf16.gmra.mrb[36].mxu1 %v15918_v19  ;;  %3549 = vmatprep.mubr.bf16.mxu0 %v15919_v20  ;;  %v15960_v19 = vld [vmem:[%s20409_s1 + $0x2e0] ss:$16 sps:$4 sm:$0xff]  }
  0xdc   : > { %5215 = vmatprep.mubr.bf16.mxu1 %v15919_v20  ;;  %v15961_v20 = vld [vmem:[%s20409_s1 + $0x304] ss:$16 sps:$4 sm:$0xff]  }
  0xe2   : > { %3550 = vmatmul.mubr.bf16.gmra.mrb[40].mxu0 %v15921_v21 }
  0xe3   : > { %5216 = vmatmul.mubr.bf16.gmra.mrb[40].mxu1 %v15921_v21  ;;  %3559 = vmatprep.mubr.bf16.mxu0 %v15922_v22  ;;  %v15963_v21 = vld [vmem:[%s20409_s1 + $0x300] ss:$16 sps:$4 sm:$0xff]  }
  0xe4   : > { %5225 = vmatprep.mubr.bf16.mxu1 %v15922_v22  ;;  %v15964_v22 = vld [vmem:[%s20409_s1 + $0x324] ss:$16 sps:$4 sm:$0xff]  }
  0xea   : > { %3560 = vmatmul.mubr.bf16.gmra.mrb[44].mxu0 %v15924_v23 }
  0xeb   : > { %5226 = vmatmul.mubr.bf16.gmra.mrb[44].mxu1 %v15924_v23  ;;  %3569 = vmatprep.mubr.bf16.mxu0 %v15925_v24  ;;  %v15966_v23 = vld [vmem:[%s20409_s1 + $0x320] ss:$16 sps:$4 sm:$0xff]  }
  0xec   : > { %5235 = vmatprep.mubr.bf16.mxu1 %v15925_v24  ;;  %v15967_v24 = vld [vmem:[%s20409_s1 + $0x344] ss:$16 sps:$4 sm:$0xff]  }
  0xf2   : > { %3570 = vmatmul.mubr.bf16.gmra.mrb[48].mxu0 %v15927_v32 }
  0xf3   : > { %5236 = vmatmul.mubr.bf16.gmra.mrb[48].mxu1 %v15927_v32  ;;  %3579 = vmatprep.mubr.bf16.mxu0 %v15928_v37  ;;  %v1265_v32 = vld [vmem:[%s16891_s17 + $0x4c0] sm:$0xff] }
  0xf4   : > { %5245 = vmatprep.mubr.bf16.mxu1 %v15928_v37  ;;  %v1445_v35 = vpack.c.bf16 %v1269_v33, %v1265_v32  ;;  %v1271_v37 = vld [vmem:[%s16891_s17 + $0x4f0] sm:$0xff]  ;;  %v1286_v32 = vld [vmem:[%s16891_s17 + $0x568] sm:$0xff]  ;;  %v1284_v33 = vld [vmem:[%s16891_s17 + $0x558] sm:$0xff] }
  0xf6   : > { %4257 = vmatpush1.bf16.msra.mxu0 %v1445_v35  ;;  %v1454_v35 = vpack.c.bf16 %v1286_v32, %v1282_v30  ;;  %v16021_v30 = vld [vmem:[%s20409_s1 + $0x584] ss:$16 sps:$4 sm:$0xff]  }
  0xf7   : > { %4258 = vmatprep.subr.bf16.mxu0 %v1450_v58  ;;  %v16009_v58 = vld [vmem:[%s20409_s1 + $0x504] ss:$16 sps:$4 sm:$0xff]  }
  0xf8   : > { %v8276_v32 = vld [vmem:[%s20418_s10 + $0x90] sm:$0xff] }
  0xfa   : > { %3580 = vmatmul.mubr.bf16.gmra.mrb[52].mxu0 %v15930_v39 }
  0xfb   : > { %5246 = vmatmul.mubr.bf16.gmra.mrb[52].mxu1 %v15930_v39  ;;  %3589 = vmatprep.mubr.bf16.mxu0 %v15931_v40  ;;  %v1447_v39 = vpack.c.bf16 %v1271_v37, %v1267_v36  ;;  %v1456_v36 = vpack.c.bf16 %v1288_v34, %v1284_v33  ;;  %v1281_v37 = vld [vmem:[%s16891_s17 + $0x540] sm:$0xff]  ;;  %v8259_v33 = vld [vmem:[%s20418_s10 + $0x8] sm:$0xff] }
  0xfc   : > { %5255 = vmatprep.mubr.bf16.mxu1 %v15931_v40  ;;  %v15973_v40 = vld [vmem:[%s20409_s1 + $0x384] ss:$16 sps:$4 sm:$0xff]   ;;  %v16023_v34 = vld [vmem:[%s20409_s1 + $0x580] ss:$16 sps:$4 sm:$0xff]  }
  0xfd   : > { %5923 = vmatpush1.bf16.msra.mxu1 %v1447_v39  ;;  %v1283_v39 = vld [vmem:[%s16891_s17 + $0x550] sm:$0xff] }
 0x102   : > { %3590 = vmatmul.mubr.bf16.gmra.mrb[56].mxu0 %v15933_v41 }
 0x103   : > { %5256 = vmatmul.mubr.bf16.gmra.mrb[56].mxu1 %v15933_v41  ;;  %3599 = vmatprep.mubr.bf16.mxu0 %v15934_v42  ;;  %v15975_v41 = vld [vmem:[%s20409_s1 + $0x380] ss:$16 sps:$4 sm:$0xff]  }
 0x104   : > { %5265 = vmatprep.mubr.bf16.mxu1 %v15934_v42  ;;  %v15976_v42 = vld [vmem:[%s20409_s1 + $0x3a4] ss:$16 sps:$4 sm:$0xff]  }
 0x10a   : > { %3600 = vmatmul.mubr.bf16.gmra.mrb[60].mxu0 %v15936_v43 }
 0x10b   : > { %5266 = vmatmul.mubr.bf16.gmra.mrb[60].mxu1 %v15936_v43  ;;  %3609 = vmatprep.mubr.bf16.mxu0 %v15937_v44  ;;  %v6749_v43 = vld [vmem:[%s20416_s8] sm:$0xff] }
 0x10c   : > { %5275 = vmatprep.mubr.bf16.mxu1 %v15937_v44  ;;  %v20426_v44 = vmov 0  }
 0x10d   : > { %15887 = vset.pattern.permute.xlu0 %v20426_v44  ;;  %15888 = vset.pattern.permute.xlu1 %v20426_v44  ;;  %v1327_v44 = vld [vmem:[%s16891_s17 + $0x6b0] sm:$0xff] }
 0x10e   : > { %6783 = vperm.xlu0 %15887, %v6749_v43   ;;  %6793 = vperm.xlu1 %15888, %v6751_v12   ;;  %v7269_v43 = vld [vmem:[%s20417_s9] sm:$0xff]  ;;  %v1292_v12 = vld [vmem:[%s16891_s17 + $0x598] sm:$0xff] }
 0x112   : > { %3610 = vmatmul.mubr.bf16.gmra.mrb[64].mxu0 %v15939_v45  ;;  %6788 = vperm.xlu0 %15887, %v6750_v47   ;;  %v6764_v47 = vld [vmem:[%s20416_s8 + $0x78] sm:$0xff] }
 0x113   : > { %5276 = vmatmul.mubr.bf16.gmra.mrb[64].mxu1 %v15939_v45  ;;  %3619 = vmatprep.mubr.bf16.mxu0 %v15940_v46  ;;  %v15978_v45 = vld [vmem:[%s20409_s1 + $0x3a0] ss:$16 sps:$4 sm:$0xff]  }
 0x114   : > { %5285 = vmatprep.mubr.bf16.mxu1 %v15940_v46  ;;  %v15979_v46 = vld [vmem:[%s20409_s1 + $0x3c4] ss:$16 sps:$4 sm:$0xff]  }
 0x116   : > { %6803 = vperm.xlu0 %15887, %v6753_v48   ;;  %v7271_v48 = vld [vmem:[%s20417_s9 + $0x10] sm:$0xff] }
 0x11a   : > { %3620 = vmatmul.mubr.bf16.gmra.mrb[68].mxu0 %v15942_v54  ;;  %6813 = vperm.xlu0 %15887, %v6755_v51   ;;  %v7273_v51 = vld [vmem:[%s20417_s9 + $0x20] sm:$0xff] }
 0x11b   : > { %5286 = vmatmul.mubr.bf16.gmra.mrb[68].mxu1 %v15942_v54  ;;  %3629 = vmatprep.mubr.bf16.mxu0 %v15943_v59  ;;  %v15985_v54 = vld [vmem:[%s20409_s1 + $0x404] ss:$16 sps:$4 sm:$0xff]  }
 0x11c   : > { %5295 = vmatprep.mubr.bf16.mxu1 %v15943_v59  ;;  %v1276_v59 = vld [vmem:[%s16891_s17 + $0x518] sm:$0xff] }
 0x11e   : > { %6823 = vperm.xlu0 %15887, %v6757_v52   ;;  %v16006_v52 = vld [vmem:[%s20409_s1 + $0x4e4] ss:$16 sps:$4 sm:$0xff]  }
 0x122   : > { %3630 = vmatmul.mubr.bf16.gmra.mrb[72].mxu0 %v15945_v61  ;;  %6833 = vperm.xlu0 %15887, %v6759_v55   ;;  %v6770_v55 = vld [vmem:[%s20416_s8 + $0xa8] sm:$0xff] }
 0x123   : > { %5296 = vmatmul.mubr.bf16.gmra.mrb[72].mxu1 %v15945_v61  ;;  %3639 = vmatprep.mubr.bf16.mxu0 %v15946_v62  ;;  %v1273_v61 = vld [vmem:[%s16891_s17 + $0x500] sm:$0xff] }
 0x124   : > { %5305 = vmatprep.mubr.bf16.mxu1 %v15946_v62  ;;  %v1452_v62 = vpack.c.bf16 %v1280_v60, %v1276_v59  ;;  %v6772_v59 = vld [vmem:[%s20416_s8 + $0xb8] sm:$0xff]  ;;  %v8260_v60 = vld [vmem:[%s20418_s10 + $0x10] sm:$0xff] }
 0x126   : > { %5924 = vmatprep.subr.bf16.mxu1 %v1452_v62  ;;  %6843 = vperm.xlu0 %15887, %v6761_v5   ;;  %v16011_v62 = vld [vmem:[%s20409_s1 + $0x500] ss:$16 sps:$4 sm:$0xff]  }
 0x127   : > { %v8266_v5 = vld [vmem:[%s20418_s10 + $0x40] sm:$0xff] }
 0x12a   : > { %3640 = vmatmul.mubr.bf16.gmra.mrb[76].mxu0 %v15948_v63  ;;  %6853 = vperm.xlu0 %15887, %v6763_v7   ;;  %v6780_v7 = vld [vmem:[%s20416_s8 + $0xf8] sm:$0xff] }
 0x12b   : > { %5306 = vmatmul.mubr.bf16.gmra.mrb[76].mxu1 %v15948_v63  ;;  %3649 = vmatprep.mubr.bf16.mxu0 %v15949_v0  ;;  %v1277_v63 = vld [vmem:[%s16891_s17 + $0x520] sm:$0xff] }
 0x12c   : > { %5315 = vmatprep.mubr.bf16.mxu1 %v15949_v0  ;;  %v1275_v0 = vld [vmem:[%s16891_s17 + $0x510] sm:$0xff] }
 0x12e   : > { %6863 = vperm.xlu0 %15887, %v6765_v9   ;;  %v1290_v9 = vld [vmem:[%s16891_s17 + $0x588] sm:$0xff] }
 0x132   : > { %3650 = vmatmul.mubr.bf16.gmra.mrb[80].mxu0 %v15951_v1  ;;  %6873 = vperm.xlu0 %15887, %v6767_v11   ;;  %v1294_v11 = vld [vmem:[%s16891_s17 + $0x5a8] sm:$0xff] }
 0x133   : > { %5316 = vmatmul.mubr.bf16.gmra.mrb[80].mxu1 %v15951_v1  ;;  %3659 = vmatprep.mubr.bf16.mxu0 %v15952_v2  ;;  %v1279_v1 = vld [vmem:[%s16891_s17 + $0x530] sm:$0xff] }
 0x134   : > { %5325 = vmatprep.mubr.bf16.mxu1 %v15952_v2  ;;  %v15987_v2 = vld [vmem:[%s20409_s1 + $0x400] ss:$16 sps:$4 sm:$0xff]  }
 0x136   : > { %6883 = vperm.xlu0 %15887, %v6769_v14   ;;  %v1458_v14 = vpack.c.bf16 %v1294_v11, %v1290_v9  ;;  %v8780_v11 = vld [vmem:[%s20419_s11 + $0x10] sm:$0xff] }
 0x13a   : > { %3660 = vmatmul.mubr.bf16.gmra.mrb[84].mxu0 %v15954_v3  ;;  %6893 = vperm.xlu0 %15887, %v6771_v17   ;;  %v1293_v17 = vld [vmem:[%s16891_s17 + $0x5a0] sm:$0xff] }
 0x13b   : > { %5326 = vmatmul.mubr.bf16.gmra.mrb[84].mxu1 %v15954_v3  ;;  %3669 = vmatprep.mubr.bf16.mxu0 %v15955_v4  ;;  %v1449_v3 = vpack.c.bf16 %v1277_v63, %v1273_v61  ;;  %v6774_v61 = vld [vmem:[%s20416_s8 + $0xc8] sm:$0xff]  ;;  %v8262_v63 = vld [vmem:[%s20418_s10 + $0x20] sm:$0xff] }
 0x13c   : > { %5335 = vmatprep.mubr.bf16.mxu1 %v15955_v4  ;;  %v1451_v4 = vpack.c.bf16 %v1279_v1, %v1275_v0  ;;  %v16012_v0 = vld [vmem:[%s20409_s1 + $0x524] ss:$16 sps:$4 sm:$0xff]   ;;  %v6776_v1 = vld [vmem:[%s20416_s8 + $0xd8] sm:$0xff] }
 0x13d   : > { %4259 = vmatpush1.bf16.msra.mxu0 %v1449_v3  ;;  %v6778_v3 = vld [vmem:[%s20416_s8 + $0xe8] sm:$0xff] }
 0x13e   : > { %5925 = vmatpush1.bf16.msra.mxu1 %v1451_v4  ;;  %4260 = vmatprep.subr.bf16.mxu0 %v1454_v35  ;;  %v16014_v4 = vld [vmem:[%s20409_s1 + $0x520] ss:$16 sps:$4 sm:$0xff]  }
 0x13f   : > { %5926 = vmatprep.subr.bf16.mxu1 %v1456_v36  ;;  %v8278_v35 = vld [vmem:[%s20418_s10 + $0xa0] sm:$0xff] }
 0x140   : > { %v16024_v36 = vld [vmem:[%s20409_s1 + $0x5a4] ss:$16 sps:$4 sm:$0xff]  }
 0x142   : > { %3670 = vmatmul.mubr.bf16.gmra.mrb[88].mxu0 %v15957_v16 }
 0x143   : > { %5336 = vmatmul.mubr.bf16.gmra.mrb[88].mxu1 %v15957_v16  ;;  %3679 = vmatprep.mubr.bf16.mxu0 %v15958_v18  ;;  %v6752_v16 = vld [vmem:[%s20416_s8 + $0x18] sm:$0xff] }
 0x144   : > { %5345 = vmatprep.mubr.bf16.mxu1 %v15958_v18  ;;  %6798 = vperm.xlu1 %15888, %v6752_v16   ;;  %v6754_v18 = vld [vmem:[%s20416_s8 + $0x28] sm:$0xff]  ;;  %v1289_v16 = vld [vmem:[%s16891_s17 + $0x580] sm:$0xff] }
 0x148   : > { %6808 = vperm.xlu1 %15888, %v6754_v18   ;;  %v1291_v18 = vld [vmem:[%s16891_s17 + $0x590] sm:$0xff] }
 0x14a   : > { %3680 = vmatmul.mubr.bf16.gmra.mrb[92].mxu0 %v15960_v19 }
 0x14b   : > { %5346 = vmatmul.mubr.bf16.gmra.mrb[92].mxu1 %v15960_v19  ;;  %3689 = vmatprep.mubr.bf16.mxu0 %v15961_v20  ;;  %v15996_v19 = vld [vmem:[%s20409_s1 + $0x460] ss:$16 sps:$4 sm:$0xff]  }
 0x14c   : > { %5355 = vmatprep.mubr.bf16.mxu1 %v15961_v20  ;;  %v6773_v20 = vld [vmem:[%s20416_s8 + $0xc0] sm:$0xff] }
 0x14d   : > { %6903 = vperm.xlu0 %15887, %v6773_v20   ;;  %v1295_v20 = vld [vmem:[%s16891_s17 + $0x5b0] sm:$0xff] }
 0x152   : > { %3690 = vmatmul.mubr.bf16.gmra.mrb[96].mxu0 %v15963_v21 }
 0x153   : > { %5356 = vmatmul.mubr.bf16.gmra.mrb[96].mxu1 %v15963_v21  ;;  %3699 = vmatprep.mubr.bf16.mxu0 %v15964_v22  ;;  %v15997_v21 = vld [vmem:[%s20409_s1 + $0x484] ss:$16 sps:$4 sm:$0xff]  }
 0x154   : > { %5365 = vmatprep.mubr.bf16.mxu1 %v15964_v22  ;;  %v6756_v22 = vld [vmem:[%s20416_s8 + $0x38] sm:$0xff] }
 0x155   : > { %6818 = vperm.xlu1 %15888, %v6756_v22   ;;  %v8270_v22 = vld [vmem:[%s20418_s10 + $0x60] sm:$0xff] }
 0x15a   : > { %3700 = vmatmul.mubr.bf16.gmra.mrb[100].mxu0 %v15966_v23 }
 0x15b   : > { %5366 = vmatmul.mubr.bf16.gmra.mrb[100].mxu1 %v15966_v23  ;;  %3709 = vmatprep.mubr.bf16.mxu0 %v15967_v24  ;;  %v6775_v23 = vld [vmem:[%s20416_s8 + $0xd0] sm:$0xff] }
 0x15c   : > { %5375 = vmatprep.mubr.bf16.mxu1 %v15967_v24  ;;  %6913 = vperm.xlu0 %15887, %v6775_v23   ;;  %v6758_v24 = vld [vmem:[%s20416_s8 + $0x48] sm:$0xff]  ;;  %v16018_v23 = vld [vmem:[%s20409_s1 + $0x564] ss:$16 sps:$4 sm:$0xff]  }
 0x15d   : > { %6828 = vperm.xlu1 %15888, %v6758_v24   ;;  %v1459_v24 = vpack.c.bf16 %v1295_v20, %v1291_v18  ;;  %v16038_v20 = vld [vmem:[%s20409_s1 + $0x620] ss:$16 sps:$4 sm:$0xff]  }
 0x161   : > { %6838 = vperm.xlu1 %15888, %v6760_v28   ;;  %v16020_v28 = vld [vmem:[%s20409_s1 + $0x560] ss:$16 sps:$4 sm:$0xff]  }
 0x162   : > { %3710 = vmatmul.mubr.bf16.gmra.mrb[104].mxu0 %v15969_v25 }
 0x163   : > { %5376 = vmatmul.mubr.bf16.gmra.mrb[104].mxu1 %v15969_v25  ;;  %3719 = vmatprep.mubr.bf16.mxu0 %v15970_v26  ;;  %v15999_v25 = vld [vmem:[%s20409_s1 + $0x480] ss:$16 sps:$4 sm:$0xff]  }
 0x164   : > { %5385 = vmatprep.mubr.bf16.mxu1 %v15970_v26  ;;  %v6777_v26 = vld [vmem:[%s20416_s8 + $0xe0] sm:$0xff] }
 0x165   : > { %6923 = vperm.xlu0 %15887, %v6777_v26   ;;  %v8272_v26 = vld [vmem:[%s20418_s10 + $0x70] sm:$0xff] }
 0x169   : > { %6933 = vperm.xlu0 %15887, %v6779_v29   ;;  %v8274_v29 = vld [vmem:[%s20418_s10 + $0x80] sm:$0xff] }
 0x16a   : > { %3720 = vmatmul.mubr.bf16.gmra.mrb[108].mxu0 %v15972_v38 }
 0x16b   : > { %5386 = vmatmul.mubr.bf16.gmra.mrb[108].mxu1 %v15972_v38  ;;  %3729 = vmatprep.mubr.bf16.mxu0 %v15973_v40  ;;  %v1285_v38 = vld [vmem:[%s16891_s17 + $0x560] sm:$0xff] }
 0x16c   : > { %5395 = vmatprep.mubr.bf16.mxu1 %v15973_v40  ;;  %v1453_v40 = vpack.c.bf16 %v1285_v38, %v1281_v37  ;;  %v8261_v37 = vld [vmem:[%s20418_s10 + $0x18] sm:$0xff]  ;;  %v8280_v38 = vld [vmem:[%s20418_s10 + $0xb0] sm:$0xff] }
 0x16d   : > { %7279 = vperm.xlu0 %15887, %v7269_v43   ;;  %v16027_v43 = vld [vmem:[%s20409_s1 + $0x5c4] ss:$16 sps:$4 sm:$0xff]  }
 0x16e   : > { %4261 = vmatpush1.bf16.msra.mxu0 %v1453_v40  ;;  %v8263_v40 = vld [vmem:[%s20418_s10 + $0x28] sm:$0xff] }
 0x16f   : > { %4262 = vmatprep.subr.bf16.mxu0 %v1458_v14 }
 0x171   : > { %7289 = vperm.xlu0 %15887, %v7271_v48   ;;  %v8267_v48 = vld [vmem:[%s20418_s10 + $0x48] sm:$0xff] }
 0x172   : > { %3730 = vmatmul.mubr.bf16.gmra.mrb[112].mxu0 %v15975_v41 }
 0x173   : > { %5396 = vmatmul.mubr.bf16.gmra.mrb[112].mxu1 %v15975_v41  ;;  %3739 = vmatprep.mubr.bf16.mxu0 %v15976_v42  ;;  %v1287_v41 = vld [vmem:[%s16891_s17 + $0x570] sm:$0xff] }
 0x174   : > { %5405 = vmatprep.mubr.bf16.mxu1 %v15976_v42  ;;  %v6762_v42 = vld [vmem:[%s20416_s8 + $0x68] sm:$0xff] }
 0x175   : > { %6848 = vperm.xlu1 %15888, %v6762_v42   ;;  %7299 = vperm.xlu0 %15887, %v7273_v51   ;;  %v8282_v42 = vld [vmem:[%s20418_s10 + $0xc0] sm:$0xff] }
 0x176   : > { %v16030_v51 = vld [vmem:[%s20409_s1 + $0x5e4] ss:$16 sps:$4 sm:$0xff]  }
 0x179   : > { %6858 = vperm.xlu1 %15888, %v6764_v47   ;;  %v8284_v47 = vld [vmem:[%s20418_s10 + $0xd0] sm:$0xff] }
 0x17a   : > { %3740 = vmatmul.mubr.bf16.gmra.mrb[116].mxu0 %v15978_v45 }
 0x17b   : > { %5406 = vmatmul.mubr.bf16.gmra.mrb[116].mxu1 %v15978_v45  ;;  %3749 = vmatprep.mubr.bf16.mxu0 %v15979_v46  ;;  %v16003_v45 = vld [vmem:[%s20409_s1 + $0x4c4] ss:$16 sps:$4 sm:$0xff]  }
 0x17c   : > { %5415 = vmatprep.mubr.bf16.mxu1 %v15979_v46  ;;  %v1455_v46 = vpack.c.bf16 %v1287_v41, %v1283_v39  ;;  %v16026_v41 = vld [vmem:[%s20409_s1 + $0x5a0] ss:$16 sps:$4 sm:$0xff]  }
 0x17e   : > { %5927 = vmatpush1.bf16.msra.mxu1 %v1455_v46  ;;  %v8265_v46 = vld [vmem:[%s20418_s10 + $0x38] sm:$0xff] }
 0x182   : > { %3750 = vmatmul.mubr.bf16.gmra.mrb[120].mxu0 %v15981_v49 }
 0x183   : > { %5416 = vmatmul.mubr.bf16.gmra.mrb[120].mxu1 %v15981_v49  ;;  %3759 = vmatprep.mubr.bf16.mxu0 %v15982_v50  ;;  %v6766_v49 = vld [vmem:[%s20416_s8 + $0x88] sm:$0xff] }
 0x184   : > { %5425 = vmatprep.mubr.bf16.mxu1 %v15982_v50  ;;  %v16005_v50 = vld [vmem:[%s20409_s1 + $0x4c0] ss:$16 sps:$4 sm:$0xff]   ;;  %6868 = vperm.xlu1 %15888, %v6766_v49  }
 0x185   : > { %v16029_v49 = vld [vmem:[%s20409_s1 + $0x5c0] ss:$16 sps:$4 sm:$0xff]  }
 0x18a   : > { %3760 = vmatmul.mubr.bf16.gmra.mrb[124].mxu0 %v15984_v53 }
 0x18b   : > { %5426 = vmatmul.mubr.bf16.gmra.mrb[124].mxu1 %v15984_v53  ;;  %3769 = vmatprep.mubr.bf16.mxu0 %v15985_v54  ;;  %v6768_v53 = vld [vmem:[%s20416_s8 + $0x98] sm:$0xff] }
 0x18c   : > { %5435 = vmatprep.mubr.bf16.mxu1 %v15985_v54  ;;  %v7275_v54 = vld [vmem:[%s20417_s9 + $0x30] sm:$0xff]  ;;  %6878 = vperm.xlu1 %15888, %v6768_v53  }
 0x18d   : > { %7309 = vperm.xlu0 %15887, %v7275_v54   ;;  %v17511_v39 = vpop.permute.xlu0 %6783  ;;  %v8269_v54 = vld [vmem:[%s20418_s10 + $0x58] sm:$0xff] }
 0x190   : > { %6888 = vperm.xlu1 %15888, %v6770_v55   ;;  %v8288_v55 = vld [vmem:[%s20418_s10 + $0xf0] sm:$0xff] }
 0x191   : > { %8292 = vperm.xlu0 %15887, %v8258_v57   ;;  %v16032_v57 = vld [vmem:[%s20409_s1 + $0x5e0] ss:$16 sps:$4 sm:$0xff]  }
 0x192   : > { %3770 = vmatmul.mubr.bf16.gmra.mrb[128].mxu0 %v15987_v2 }
 0x193   : > { %5436 = vmatmul.mubr.bf16.gmra.mrb[128].mxu1 %v15987_v2  ;;  %3779 = vmatprep.mubr.bf16.mxu0 %v15988_v6  ;;  %v8264_v2 = vld [vmem:[%s20418_s10 + $0x30] sm:$0xff] }
 0x194   : > { %5445 = vmatprep.mubr.bf16.mxu1 %v15988_v6  ;;  %6898 = vperm.xlu1 %15888, %v6772_v59   ;;  %v16015_v6 = vld [vmem:[%s20409_s1 + $0x544] ss:$16 sps:$4 sm:$0xff]   ;;  %v1300_v59 = vld [vmem:[%s16891_s17 + $0x5d8] sm:$0xff] }
 0x195   : > { %8302 = vperm.xlu0 %15887, %v8260_v60   ;;  %v1304_v60 = vld [vmem:[%s16891_s17 + $0x5f8] sm:$0xff] }
 0x198   : > { %6908 = vperm.xlu1 %15888, %v6774_v61  }
 0x199   : > { %8312 = vperm.xlu0 %15887, %v8262_v63   ;;  %v1297_v63 = vld [vmem:[%s16891_s17 + $0x5c0] sm:$0xff] }
 0x19a   : > { %3780 = vmatmul.mubr.bf16.gmra.mrb[132].mxu0 %v15990_v8 }
 0x19b   : > { %5446 = vmatmul.mubr.bf16.gmra.mrb[132].mxu1 %v15990_v8  ;;  %3789 = vmatprep.mubr.bf16.mxu0 %v15991_v10  ;;  %v8268_v8 = vld [vmem:[%s20418_s10 + $0x50] sm:$0xff] }
 0x19c   : > { %5455 = vmatprep.mubr.bf16.mxu1 %v15991_v10  ;;  %6918 = vperm.xlu1 %15888, %v6776_v1   ;;  %v16017_v10 = vld [vmem:[%s20409_s1 + $0x540] ss:$16 sps:$4 sm:$0xff]  }
 0x19d   : > { %8322 = vperm.xlu0 %15887, %v8264_v2   ;;  %v1299_v1 = vld [vmem:[%s16891_s17 + $0x5d0] sm:$0xff] }
 0x1a0   : > { %6928 = vperm.xlu1 %15888, %v6778_v3   ;;  %v1303_v3 = vld [vmem:[%s16891_s17 + $0x5f0] sm:$0xff] }
 0x1a1   : > { %8332 = vperm.xlu0 %15887, %v8266_v5   ;;  %v8778_v5 = vld [vmem:[%s20419_s11] sm:$0xff] }
 0x1a2   : > { %3790 = vmatmul.mubr.bf16.gmra.mrb[136].mxu0 %v15993_v13 }
 0x1a3   : > { %5456 = vmatmul.mubr.bf16.gmra.mrb[136].mxu1 %v15993_v13  ;;  %3799 = vmatprep.mubr.bf16.mxu0 %v15994_v15  ;;  %v1296_v13 = vld [vmem:[%s16891_s17 + $0x5b8] sm:$0xff] }
 0x1a4   : > { %5465 = vmatprep.mubr.bf16.mxu1 %v15994_v15  ;;  %6938 = vperm.xlu1 %15888, %v6780_v7   ;;  %v1460_v15 = vpack.c.bf16 %v1296_v13, %v1292_v12  ;;  %v16035_v12 = vld [vmem:[%s20409_s1 + $0x600] ss:$16 sps:$4 sm:$0xff]   ;;  %v16036_v13 = vld [vmem:[%s20409_s1 + $0x624] ss:$16 sps:$4 sm:$0xff]  }
 0x1a5   : > { %8342 = vperm.xlu0 %15887, %v8268_v8   ;;  %v1463_v8 = vpack.c.bf16 %v1303_v3, %v1299_v1  ;;  %v1307_v1 = vld [vmem:[%s16891_s17 + $0x610] sm:$0xff] }
 0x1a6   : > { %5928 = vmatprep.subr.bf16.mxu1 %v1460_v15  ;;  %v8275_v15 = vld [vmem:[%s20418_s10 + $0x88] sm:$0xff] }
 0x1a7   : > { %5929 = vmatpush1.bf16.msra.mxu1 %v1459_v24  ;;  %v9750_v24 = vld [vmem:[%s20420_s12] sm:$0xff] }
 0x1a9   : > { %8352 = vperm.xlu0 %15887, %v8270_v22  }
 0x1aa   : > { %3800 = vmatmul.mubr.bf16.gmra.mrb[140].mxu0 %v15996_v19 }
 0x1ab   : > { %5466 = vmatmul.mubr.bf16.gmra.mrb[140].mxu1 %v15996_v19  ;;  %3809 = vmatprep.mubr.bf16.mxu0 %v15997_v21  ;;  %v1457_v19 = vpack.c.bf16 %v1293_v17, %v1289_v16  ;;  %v8782_v16 = vld [vmem:[%s20419_s11 + $0x20] sm:$0xff]  ;;  %v8277_v17 = vld [vmem:[%s20418_s10 + $0x98] sm:$0xff] }
 0x1ac   : > { %5475 = vmatprep.mubr.bf16.mxu1 %v15997_v21  ;;  %v7270_v21 = vld [vmem:[%s20417_s9 + $0x8] sm:$0xff] }
 0x1ad   : > { %4263 = vmatpush1.bf16.msra.mxu0 %v1457_v19  ;;  %7284 = vperm.xlu1 %15888, %v7270_v21   ;;  %v8784_v19 = vld [vmem:[%s20419_s11 + $0x30] sm:$0xff] }
 0x1ae   : > { %8362 = vperm.xlu0 %15887, %v8272_v26   ;;  %v16039_v21 = vld [vmem:[%s20409_s1 + $0x644] ss:$16 sps:$4 sm:$0xff]  }
 0x1b2   : > { %3810 = vmatmul.mubr.bf16.gmra.mrb[144].mxu0 %v15999_v25  ;;  %8372 = vperm.xlu0 %15887, %v8274_v29   ;;  %v16042_v29 = vld [vmem:[%s20409_s1 + $0x664] ss:$16 sps:$4 sm:$0xff]  }
 0x1b3   : > { %5476 = vmatmul.mubr.bf16.gmra.mrb[144].mxu1 %v15999_v25  ;;  %3819 = vmatprep.mubr.bf16.mxu0 %v16000_v27  ;;  %v7272_v25 = vld [vmem:[%s20417_s9 + $0x18] sm:$0xff] }
 0x1b4   : > { %5485 = vmatprep.mubr.bf16.mxu1 %v16000_v27  ;;  %7294 = vperm.xlu1 %15888, %v7272_v25   ;;  %v7274_v27 = vld [vmem:[%s20417_s9 + $0x28] sm:$0xff]  ;;  %v8281_v25 = vld [vmem:[%s20418_s10 + $0xb8] sm:$0xff] }
 0x1b6   : > { %8382 = vperm.xlu0 %15887, %v8276_v32   ;;  %v8283_v32 = vld [vmem:[%s20418_s10 + $0xc8] sm:$0xff] }
 0x1b8   : > { %7304 = vperm.xlu1 %15888, %v7274_v27   ;;  %v9752_v27 = vld [vmem:[%s20420_s12 + $0x10] sm:$0xff] }
 0x1ba   : > { %3820 = vmatmul.mubr.bf16.gmra.mrb[148].mxu0 %v16002_v31  ;;  %8392 = vperm.xlu0 %15887, %v8278_v35  }
 0x1bb   : > { %5486 = vmatmul.mubr.bf16.gmra.mrb[148].mxu1 %v16002_v31  ;;  %3829 = vmatprep.mubr.bf16.mxu0 %v16003_v45  ;;  %v7276_v31 = vld [vmem:[%s20417_s9 + $0x38] sm:$0xff] }
 0x1bc   : > { %5495 = vmatprep.mubr.bf16.mxu1 %v16003_v45  ;;  %7314 = vperm.xlu1 %15888, %v7276_v31   ;;  %v17525_v45 = vpop.permute.xlu0 %6788 }
 0x1be   : > { %8402 = vperm.xlu0 %15887, %v8280_v38   ;;  %v16044_v38 = vld [vmem:[%s20409_s1 + $0x660] ss:$16 sps:$4 sm:$0xff]  }
 0x1c0   : > { %8297 = vperm.xlu1 %15888, %v8259_v33   ;;  %v9754_v33 = vld [vmem:[%s20420_s12 + $0x20] sm:$0xff] }
 0x1c2   : > { %3830 = vmatmul.mubr.bf16.gmra.mrb[152].mxu0 %v16005_v50  ;;  %8412 = vperm.xlu0 %15887, %v8282_v42  }
 0x1c3   : > { %5496 = vmatmul.mubr.bf16.gmra.mrb[152].mxu1 %v16005_v50  ;;  %3839 = vmatprep.mubr.bf16.mxu0 %v16006_v52  ;;  %v8286_v50 = vld [vmem:[%s20418_s10 + $0xe0] sm:$0xff] }
 0x1c4   : > { %5505 = vmatprep.mubr.bf16.mxu1 %v16006_v52  ;;  %8307 = vperm.xlu1 %15888, %v8261_v37   ;;  %v17545_v52 = vpop.permute.xlu0 %6803  ;;  %v9756_v37 = vld [vmem:[%s20420_s12 + $0x30] sm:$0xff] }
 0x1c6   : > { %8422 = vperm.xlu0 %15887, %v8284_v47   ;;  %v8289_v47 = vld [vmem:[%s20418_s10 + $0xf8] sm:$0xff] }
 0x1c8   : > { %8317 = vperm.xlu1 %15888, %v8263_v40   ;;  %v17547_v53 = vpop.permute.xlu0 %6813  ;;  %v16045_v40 = vld [vmem:[%s20409_s1 + $0x684] ss:$16 sps:$4 sm:$0xff]  }
 0x1ca   : > { %3840 = vmatmul.mubr.bf16.gmra.mrb[156].mxu0 %v16008_v56  ;;  %8432 = vperm.xlu0 %15887, %v8286_v50   ;;  %v9760_v50 = vld [vmem:[%s20420_s12 + $0x50] sm:$0xff] }
 0x1cb   : > { %5506 = vmatmul.mubr.bf16.gmra.mrb[156].mxu1 %v16008_v56  ;;  %3849 = vmatprep.mubr.bf16.mxu0 %v16009_v58  ;;  %v1298_v56 = vld [vmem:[%s16891_s17 + $0x5c8] sm:$0xff] }
 0x1cc   : > { %5515 = vmatprep.mubr.bf16.mxu1 %v16009_v58  ;;  %8327 = vperm.xlu1 %15888, %v8265_v46   ;;  %v1302_v58 = vld [vmem:[%s16891_s17 + $0x5e8] sm:$0xff]  ;;  %v17575_v7 = vpop.permute.xlu0 %6823  ;;  %v9758_v46 = vld [vmem:[%s20420_s12 + $0x40] sm:$0xff] }
 0x1cd   : > { %v1462_v61 = vpack.c.bf16 %v1302_v58, %v1298_v56  ;;  %v1310_v56 = vld [vmem:[%s16891_s17 + $0x628] sm:$0xff]  ;;  %v1308_v58 = vld [vmem:[%s16891_s17 + $0x618] sm:$0xff] }
 0x1ce   : > { %8442 = vperm.xlu0 %15887, %v8288_v55   ;;  %v1306_v55 = vld [vmem:[%s16891_s17 + $0x608] sm:$0xff] }
 0x1cf   : > { %4264 = vmatprep.subr.bf16.mxu0 %v1462_v61 }
 0x1d0   : > { %8337 = vperm.xlu1 %15888, %v8267_v48   ;;  %v17577_v9 = vpop.permute.xlu0 %6833 }
 0x1d2   : > { %3850 = vmatmul.mubr.bf16.gmra.mrb[160].mxu0 %v16011_v62  ;;  %8788 = vperm.xlu0 %15887, %v8778_v5   ;;  %v8779_v5 = vld [vmem:[%s20419_s11 + $0x8] sm:$0xff] }
 0x1d3   : > { %5516 = vmatmul.mubr.bf16.gmra.mrb[160].mxu1 %v16011_v62  ;;  %3859 = vmatprep.mubr.bf16.mxu0 %v16012_v0  ;;  %v1464_v62 = vpack.c.bf16 %v1304_v60, %v1300_v59  ;;  %v1312_v59 = vld [vmem:[%s16891_s17 + $0x638] sm:$0xff] }
 0x1d4   : > { %5525 = vmatprep.mubr.bf16.mxu1 %v16012_v0  ;;  %8347 = vperm.xlu1 %15888, %v8269_v54   ;;  %v1301_v0 = vld [vmem:[%s16891_s17 + $0x5e0] sm:$0xff]  ;;  %v17591_v14 = vpop.permute.xlu0 %6843 }
 0x1d5   : > { %v1461_v2 = vpack.c.bf16 %v1301_v0, %v1297_v63  ;;  %5930 = vmatprep.subr.bf16.mxu1 %v1464_v62  ;;  %v16048_v54 = vld [vmem:[%s20409_s1 + $0x6a4] ss:$16 sps:$4 sm:$0xff]   ;;  %v1468_v63 = vpack.c.bf16 %v1312_v59, %v1308_v58  ;;  %v9757_v58 = vld [vmem:[%s20420_s12 + $0x38] sm:$0xff] }
 0x1d6   : > { %5931 = vmatpush1.bf16.msra.mxu1 %v1463_v8  ;;  %8798 = vperm.xlu0 %15887, %v8780_v11   ;;  %v1305_v62 = vld [vmem:[%s16891_s17 + $0x600] sm:$0xff] }
 0x1d7   : > { %4265 = vmatpush1.bf16.msra.mxu0 %v1461_v2  ;;  %v1309_v0 = vld [vmem:[%s16891_s17 + $0x620] sm:$0xff]  ;;  %v1311_v2 = vld [vmem:[%s16891_s17 + $0x630] sm:$0xff]  ;;  %5932 = vmatprep.subr.bf16.mxu1 %v1468_v63 }
 0x1d8   : > { %v17602_v18 = vpop.permute.xlu0 %6853  ;;  %v1465_v3 = vpack.c.bf16 %v1309_v0, %v1305_v62  ;;  %v16050_v11 = vld [vmem:[%s20409_s1 + $0x6a0] ss:$16 sps:$4 sm:$0xff]   ;;  %v9759_v0 = vld [vmem:[%s20420_s12 + $0x48] sm:$0xff] }
 0x1d9   : > { %v9776_v63 = vld [vmem:[%s20420_s12 + $0xd0] sm:$0xff] }
 0x1da   : > { %3860 = vmatmul.mubr.bf16.gmra.mrb[164].mxu0 %v16014_v4  ;;  %8808 = vperm.xlu0 %15887, %v8782_v16  }
 0x1db   : > { %5526 = vmatmul.mubr.bf16.gmra.mrb[164].mxu1 %v16014_v4  ;;  %3869 = vmatprep.mubr.bf16.mxu0 %v16015_v6  ;;  %v8271_v4 = vld [vmem:[%s20418_s10 + $0x68] sm:$0xff] }
 0x1dc   : > { %5535 = vmatprep.mubr.bf16.mxu1 %v16015_v6  ;;  %v16033_v6 = vld [vmem:[%s20409_s1 + $0x604] ss:$16 sps:$4 sm:$0xff]   ;;  %8357 = vperm.xlu1 %15888, %v8271_v4   ;;  %v17613_v22 = vpop.permute.xlu0 %6863  ;;  %v1467_v4 = vpack.c.bf16 %v1311_v2, %v1307_v1 }
 0x1dd   : > { %v9778_v2 = vld [vmem:[%s20420_s12 + $0xe0] sm:$0xff] }
 0x1de   : > { %8818 = vperm.xlu0 %15887, %v8784_v19   ;;  %5933 = vmatpush1.bf16.msra.mxu1 %v1467_v4  ;;  %v8783_v19 = vld [vmem:[%s20419_s11 + $0x28] sm:$0xff]  ;;  %v16063_v4 = vld [vmem:[%s20409_s1 + $0x744] ss:$16 sps:$4 sm:$0xff]  }
 0x1e0   : > { %v17624_v26 = vpop.permute.xlu0 %6873 }
 0x1e2   : > { %3870 = vmatmul.mubr.bf16.gmra.mrb[168].mxu0 %v16017_v10  ;;  %9784 = vperm.xlu0 %15887, %v9750_v24  }
 0x1e3   : > { %5536 = vmatmul.mubr.bf16.gmra.mrb[168].mxu1 %v16017_v10  ;;  %3879 = vmatprep.mubr.bf16.mxu0 %v16018_v23  ;;  %v8273_v10 = vld [vmem:[%s20418_s10 + $0x78] sm:$0xff] }
 0x1e4   : > { %5545 = vmatprep.mubr.bf16.mxu1 %v16018_v23  ;;  %8367 = vperm.xlu1 %15888, %v8273_v10   ;;  %v8279_v23 = vld [vmem:[%s20418_s10 + $0xa8] sm:$0xff]  ;;  %v17637_v31 = vpop.permute.xlu0 %6883 }
 0x1e6   : > { %9794 = vperm.xlu0 %15887, %v9752_v27   ;;  %v8785_v27 = vld [vmem:[%s20419_s11 + $0x38] sm:$0xff] }
 0x1e8   : > { %8377 = vperm.xlu1 %15888, %v8275_v15  }
 0x1ea   : > { %3880 = vmatmul.mubr.bf16.gmra.mrb[172].mxu0 %v16020_v28  ;;  %9804 = vperm.xlu0 %15887, %v9754_v33  }
 0x1eb   : > { %5546 = vmatmul.mubr.bf16.gmra.mrb[172].mxu1 %v16020_v28  ;;  %3889 = vmatprep.mubr.bf16.mxu0 %v16021_v30  ;;  %v16041_v28 = vld [vmem:[%s20409_s1 + $0x640] ss:$16 sps:$4 sm:$0xff]  }
 0x1ec   : > { %5555 = vmatprep.mubr.bf16.mxu1 %v16021_v30  ;;  %8387 = vperm.xlu1 %15888, %v8277_v17   ;;  %v17635_v30 = vpop.permute.xlu1 %6793  ;;  %v9764_v17 = vld [vmem:[%s20420_s12 + $0x70] sm:$0xff] }
 0x1ee   : > { %9814 = vperm.xlu0 %15887, %v9756_v37   ;;  %v9770_v37 = vld [vmem:[%s20420_s12 + $0xa0] sm:$0xff] }
 0x1f0   : > { %8397 = vperm.xlu1 %15888, %v8279_v23   ;;  %v17648_v35 = vpop.permute.xlu1 %6798  ;;  %v16053_v23 = vld [vmem:[%s20409_s1 + $0x6c0] ss:$16 sps:$4 sm:$0xff]  }
 0x1f2   : > { %3890 = vmatmul.mubr.bf16.gmra.mrb[176].mxu0 %v16023_v34  ;;  %9824 = vperm.xlu0 %15887, %v9758_v46  }
 0x1f3   : > { %5556 = vmatmul.mubr.bf16.gmra.mrb[176].mxu1 %v16023_v34  ;;  %3899 = vmatprep.mubr.bf16.mxu0 %v16024_v36  ;;  %v8285_v34 = vld [vmem:[%s20418_s10 + $0xd8] sm:$0xff] }
 0x1f4   : > { %5565 = vmatprep.mubr.bf16.mxu1 %v16024_v36  ;;  %8407 = vperm.xlu1 %15888, %v8281_v25   ;;  %v17650_v36 = vpop.permute.xlu0 %6893  ;;  %v16054_v25 = vld [vmem:[%s20409_s1 + $0x6e4] ss:$16 sps:$4 sm:$0xff]  }
 0x1f6   : > { %9834 = vperm.xlu0 %15887, %v9760_v50  }
 0x1f8   : > { %8417 = vperm.xlu1 %15888, %v8283_v32   ;;  %v17663_v42 = vpop.permute.xlu0 %6903  ;;  %v9751_v32 = vld [vmem:[%s20420_s12 + $0x8] sm:$0xff] }
 0x1fa   : > { %3900 = vmatmul.mubr.bf16.gmra.mrb[180].mxu0 %v16026_v41 }
 0x1fb   : > { %5566 = vmatmul.mubr.bf16.gmra.mrb[180].mxu1 %v16026_v41  ;;  %3909 = vmatprep.mubr.bf16.mxu0 %v16027_v43  ;;  %v17661_v41 = vpop.permute.xlu1 %6808 }
 0x1fc   : > { %5575 = vmatprep.mubr.bf16.mxu1 %v16027_v43  ;;  %8427 = vperm.xlu1 %15888, %v8285_v34   ;;  %v8287_v43 = vld [vmem:[%s20418_s10 + $0xe8] sm:$0xff] }
 0x1ff   : > { %v17674_v48 = vpop.permute.xlu1 %6818 }
 0x200   : > { %8437 = vperm.xlu1 %15888, %v8287_v43   ;;  %v9753_v43 = vld [vmem:[%s20420_s12 + $0x18] sm:$0xff] }
 0x202   : > { %3910 = vmatmul.mubr.bf16.gmra.mrb[184].mxu0 %v16029_v49 }
 0x203   : > { %5576 = vmatmul.mubr.bf16.gmra.mrb[184].mxu1 %v16029_v49  ;;  %3919 = vmatprep.mubr.bf16.mxu0 %v16030_v51  ;;  %v17676_v49 = vpop.permute.xlu0 %6913  ;;  %v17691_v60 = vpop.permute.xlu1 %6828 }
 0x204   : > { %5585 = vmatprep.mubr.bf16.mxu1 %v16030_v51  ;;  %v16047_v51 = vld [vmem:[%s20409_s1 + $0x680] ss:$16 sps:$4 sm:$0xff]   ;;  %8447 = vperm.xlu1 %15888, %v8289_v47  }
 0x205   : > { %v9772_v47 = vld [vmem:[%s20420_s12 + $0xb0] sm:$0xff] }
 0x207   : > { %v17693_v61 = vpop.permute.xlu0 %6923  ;;  %v17705_v8 = vpop.permute.xlu1 %6838 }
 0x208   : > { %8793 = vperm.xlu1 %15888, %v8779_v5  }
 0x20a   : > { %3920 = vmatmul.mubr.bf16.gmra.mrb[188].mxu0 %v16032_v57 }
 0x20b   : > { %5586 = vmatmul.mubr.bf16.gmra.mrb[188].mxu1 %v16032_v57  ;;  %3929 = vmatprep.mubr.bf16.mxu0 %v16033_v6  ;;  %v1466_v57 = vpack.c.bf16 %v1310_v56, %v1306_v55  ;;  %v17707_v10 = vpop.permute.xlu0 %6933  ;;  %v17718_v15 = vpop.permute.xlu1 %6848  ;;  %v9774_v55 = vld [vmem:[%s20420_s12 + $0xc0] sm:$0xff] }
 0x20c   : > { %5595 = vmatprep.mubr.bf16.mxu1 %v16033_v6  ;;  %v9762_v6 = vld [vmem:[%s20420_s12 + $0x60] sm:$0xff] }
 0x20d   : > { %4266 = vmatprep.subr.bf16.mxu0 %v1466_v57  ;;  %9844 = vperm.xlu0 %15887, %v9762_v6   ;;  %v16059_v56 = vld [vmem:[%s20409_s1 + $0x700] ss:$16 sps:$4 sm:$0xff]   ;;  %v16060_v57 = vld [vmem:[%s20409_s1 + $0x724] ss:$16 sps:$4 sm:$0xff]   ;;  %v9761_v6 = vld [vmem:[%s20420_s12 + $0x58] sm:$0xff] }
 0x20e   : > { %4267 = vmatpush1.bf16.msra.mxu0 %v1465_v3  ;;  %v16062_v3 = vld [vmem:[%s20409_s1 + $0x720] ss:$16 sps:$4 sm:$0xff]  }
 0x20f   : > { %v17720_v16 = vpop.permute.xlu0 %7279 }
 0x211   : > { %9854 = vperm.xlu0 %15887, %v9764_v17   ;;  %v1316_v17 = vld [vmem:[%s16891_s17 + $0x658] sm:$0xff] }
 0x212   : > { %3930 = vmatmul.mubr.bf16.gmra.mrb[192].mxu0 %v16035_v12 }
 0x213   : > { %5596 = vmatmul.mubr.bf16.gmra.mrb[192].mxu1 %v16035_v12  ;;  %3939 = vmatprep.mubr.bf16.mxu0 %v16036_v13  ;;  %v16051_v12 = vld [vmem:[%s20409_s1 + $0x6c4] ss:$16 sps:$4 sm:$0xff]   ;;  %v17736_v24 = vpop.permute.xlu0 %7289 }
 0x214   : > { %5605 = vmatprep.mubr.bf16.mxu1 %v16036_v13  ;;  %v8781_v13 = vld [vmem:[%s20419_s11 + $0x18] sm:$0xff] }
 0x215   : > { %8803 = vperm.xlu1 %15888, %v8781_v13   ;;  %v1318_v13 = vld [vmem:[%s16891_s17 + $0x668] sm:$0xff] }
 0x217   : > { %v17752_v33 = vpop.permute.xlu0 %7299 }
 0x219   : > { %8813 = vperm.xlu1 %15888, %v8783_v19   ;;  %v1320_v19 = vld [vmem:[%s16891_s17 + $0x678] sm:$0xff] }
 0x21a   : > { %3940 = vmatmul.mubr.bf16.gmra.mrb[196].mxu0 %v16038_v20 }
 0x21b   : > { %5606 = vmatmul.mubr.bf16.gmra.mrb[196].mxu1 %v16038_v20  ;;  %3949 = vmatprep.mubr.bf16.mxu0 %v16039_v21  ;;  %v17728_v20 = vpop.permute.xlu1 %6858  ;;  %v17773_v50 = vpop.permute.xlu0 %7309 }
 0x21c   : > { %5615 = vmatprep.mubr.bf16.mxu1 %v16039_v21  ;;  %v9766_v21 = vld [vmem:[%s20420_s12 + $0x80] sm:$0xff] }
 0x21d   : > { %9864 = vperm.xlu0 %15887, %v9766_v21   ;;  %8823 = vperm.xlu1 %15888, %v8785_v27   ;;  %v1472_v27 = vpack.c.bf16 %v1320_v19, %v1316_v17  ;;  %v9769_v17 = vld [vmem:[%s20420_s12 + $0x98] sm:$0xff] }
 0x21f   : > { %v17792_v59 = vpop.permute.xlu0 %8292  ;;  %5934 = vmatprep.subr.bf16.mxu1 %v1472_v27  ;;  %v16071_v27 = vld [vmem:[%s20409_s1 + $0x780] ss:$16 sps:$4 sm:$0xff]  }
 0x220   : > { %20480 = vst [vmem:[#allocation7_spill] sm:$0xff] %v17792_v59 }
 0x221   : > { %9789 = vperm.xlu1 %15888, %v9751_v32   ;;  %v1315_v32 = vld [vmem:[%s16891_s17 + $0x650] sm:$0xff] }
 0x222   : > { %3950 = vmatmul.mubr.bf16.gmra.mrb[200].mxu0 %v16041_v28 }
 0x223   : > { %5616 = vmatmul.mubr.bf16.gmra.mrb[200].mxu1 %v16041_v28  ;;  %3959 = vmatprep.mubr.bf16.mxu0 %v16042_v29  ;;  %v17744_v28 = vpop.permute.xlu1 %6868  ;;  %v17813_v5 = vpop.permute.xlu0 %8302 }
 0x224   : > { %5625 = vmatprep.mubr.bf16.mxu1 %v16042_v29  ;;  %v9768_v29 = vld [vmem:[%s20420_s12 + $0x90] sm:$0xff]  ;;  %20481 = vst [vmem:[#allocation8_spill] sm:$0xff] %v17813_v5 }
 0x225   : > { %9874 = vperm.xlu0 %15887, %v9768_v29   ;;  %9799 = vperm.xlu1 %15888, %v9753_v43   ;;  %v1317_v29 = vld [vmem:[%s16891_s17 + $0x660] sm:$0xff]  ;;  %v1347_v5 = vld [vmem:[%s16891_s17 + $0x750] sm:$0xff] }
 0x227   : > { %v17754_v34 = vpop.permute.xlu1 %6878  ;;  %v17831_v43 = vpop.permute.xlu0 %8312 }
 0x228   : > { %20482 = vst [vmem:[#allocation9_spill] sm:$0xff] %v17831_v43  ;;  %v1339_v43 = vld [vmem:[%s16891_s17 + $0x710] sm:$0xff] }
 0x229   : > { %9884 = vperm.xlu0 %15887, %v9770_v37   ;;  %v1319_v37 = vld [vmem:[%s16891_s17 + $0x670] sm:$0xff] }
 0x22a   : > { %3960 = vmatmul.mubr.bf16.gmra.mrb[204].mxu0 %v16044_v38 }
 0x22b   : > { %5626 = vmatmul.mubr.bf16.gmra.mrb[204].mxu1 %v16044_v38  ;;  %3969 = vmatprep.mubr.bf16.mxu0 %v16045_v40  ;;  %v16056_v38 = vld [vmem:[%s20409_s1 + $0x6e0] ss:$16 sps:$4 sm:$0xff]   ;;  %v17768_v46 = vpop.permute.xlu1 %6888 }
 0x22c   : > { %5635 = vmatprep.mubr.bf16.mxu1 %v16045_v40  ;;  %v16057_v40 = vld [vmem:[%s20409_s1 + $0x704] ss:$16 sps:$4 sm:$0xff]  }
 0x22d   : > { %9894 = vperm.xlu0 %15887, %v9772_v47   ;;  %v9763_v47 = vld [vmem:[%s20420_s12 + $0x68] sm:$0xff] }
 0x231   : > { %9904 = vperm.xlu0 %15887, %v9774_v55   ;;  %v10270_v55 = vld [vmem:[%s20421_s13] sm:$0xff] }
 0x232   : > { %3970 = vmatmul.mubr.bf16.gmra.mrb[208].mxu0 %v16047_v51 }
 0x233   : > { %5636 = vmatmul.mubr.bf16.gmra.mrb[208].mxu1 %v16047_v51  ;;  %3979 = vmatprep.mubr.bf16.mxu0 %v16048_v54  ;;  %v9755_v51 = vld [vmem:[%s20420_s12 + $0x28] sm:$0xff] }
 0x234   : > { %5645 = vmatprep.mubr.bf16.mxu1 %v16048_v54  ;;  %v17778_v54 = vpop.permute.xlu1 %6898  ;;  %9809 = vperm.xlu1 %15888, %v9755_v51  }
 0x235   : > { %9914 = vperm.xlu0 %15887, %v9776_v63   ;;  %v9765_v63 = vld [vmem:[%s20420_s12 + $0x78] sm:$0xff] }
 0x238   : > { %v17794_v62 = vpop.permute.xlu1 %6908  ;;  %9819 = vperm.xlu1 %15888, %v9757_v58  }
 0x239   : > { %9924 = vperm.xlu0 %15887, %v9778_v2   ;;  %v10272_v2 = vld [vmem:[%s20421_s13 + $0x10] sm:$0xff] }
 0x23a   : > { %3980 = vmatmul.mubr.bf16.gmra.mrb[212].mxu0 %v16050_v11 }
 0x23b   : > { %5646 = vmatmul.mubr.bf16.gmra.mrb[212].mxu1 %v16050_v11  ;;  %3989 = vmatprep.mubr.bf16.mxu0 %v16051_v12  ;;  %v9780_v11 = vld [vmem:[%s20420_s12 + $0xf0] sm:$0xff] }
 0x23c   : > { %5655 = vmatprep.mubr.bf16.mxu1 %v16051_v12  ;;  %v17802_v1 = vpop.permute.xlu1 %6918  ;;  %9829 = vperm.xlu1 %15888, %v9759_v0   ;;  %v1314_v12 = vld [vmem:[%s16891_s17 + $0x648] sm:$0xff]  ;;  %v17852_v0 = vpop.permute.xlu0 %8322 }
 0x23d   : > { %9934 = vperm.xlu0 %15887, %v9780_v11   ;;  %20483 = vst [vmem:[#allocation10_spill] sm:$0xff] %v17852_v0  ;;  %v10274_v11 = vld [vmem:[%s20421_s13 + $0x20] sm:$0xff] }
 0x23e   : > { %v1337_v0 = vld [vmem:[%s16891_s17 + $0x700] sm:$0xff] }
 0x240   : > { %v17825_v21 = vpop.permute.xlu1 %6928  ;;  %9839 = vperm.xlu1 %15888, %v9761_v6   ;;  %v16068_v6 = vld [vmem:[%s20409_s1 + $0x760] ss:$16 sps:$4 sm:$0xff]  }
 0x241   : > { %10280 = vperm.xlu0 %15887, %v10270_v55  }
 0x242   : > { %3990 = vmatmul.mubr.bf16.gmra.mrb[216].mxu0 %v16053_v23 }
 0x243   : > { %5656 = vmatmul.mubr.bf16.gmra.mrb[216].mxu1 %v16053_v23  ;;  %3999 = vmatprep.mubr.bf16.mxu0 %v16054_v25  ;;  %v1313_v23 = vld [vmem:[%s16891_s17 + $0x640] sm:$0xff] }
 0x244   : > { %5665 = vmatprep.mubr.bf16.mxu1 %v16054_v25  ;;  %v1470_v25 = vpack.c.bf16 %v1318_v13, %v1314_v12  ;;  %v17836_v51 = vpop.permute.xlu1 %6938  ;;  %9849 = vperm.xlu1 %15888, %v9763_v47   ;;  %v16069_v12 = vld [vmem:[%s20409_s1 + $0x784] ss:$16 sps:$4 sm:$0xff]   ;;  %v17871_v13 = vpop.permute.xlu0 %8332 }
 0x245   : > { %10290 = vperm.xlu0 %15887, %v10272_v2   ;;  %20484 = vst [vmem:[#allocation11_spill] sm:$0xff] %v17871_v13  ;;  %v12028_v47 = vld [vmem:[%s20422_s14 + $0x10] sm:$0xff]  ;;  %v12030_v2 = vld [vmem:[%s20422_s14 + $0x20] sm:$0xff] }
 0x246   : > { %4268 = vmatprep.subr.bf16.mxu0 %v1470_v25  ;;  %v9771_v25 = vld [vmem:[%s20420_s12 + $0xa8] sm:$0xff] }
 0x248   : > { %v17847_v58 = vpop.permute.xlu1 %7284  ;;  %9859 = vperm.xlu1 %15888, %v9765_v63   ;;  %v16074_v63 = vld [vmem:[%s20409_s1 + $0x7a0] ss:$16 sps:$4 sm:$0xff]  }
 0x249   : > { %10300 = vperm.xlu0 %15887, %v10274_v11   ;;  %v1326_v11 = vld [vmem:[%s16891_s17 + $0x6a8] sm:$0xff] }
 0x24a   : > { %4000 = vmatmul.mubr.bf16.gmra.mrb[220].mxu0 %v16056_v38 }
 0x24b   : > { %5666 = vmatmul.mubr.bf16.gmra.mrb[220].mxu1 %v16056_v38  ;;  %4009 = vmatprep.mubr.bf16.mxu0 %v16057_v40  ;;  %v1469_v38 = vpack.c.bf16 %v1317_v29, %v1313_v23  ;;  %v10276_v23 = vld [vmem:[%s20421_s13 + $0x30] sm:$0xff]  ;;  %v17887_v29 = vpop.permute.xlu0 %8342 }
 0x24c   : > { %5675 = vmatprep.mubr.bf16.mxu1 %v16057_v40  ;;  %v1471_v40 = vpack.c.bf16 %v1319_v37, %v1315_v32  ;;  %20485 = vst [vmem:[#allocation12_spill] sm:$0xff] %v17887_v29  ;;  %v12026_v32 = vld [vmem:[%s20422_s14] sm:$0xff] }
 0x24d   : > { %4269 = vmatpush1.bf16.msra.mxu0 %v1469_v38  ;;  %10310 = vperm.xlu0 %15887, %v10276_v23   ;;  %v16072_v37 = vld [vmem:[%s20409_s1 + $0x7a4] ss:$16 sps:$4 sm:$0xff]  }
 0x24e   : > { %5935 = vmatpush1.bf16.msra.mxu1 %v1471_v40  ;;  %v9773_v40 = vld [vmem:[%s20420_s12 + $0xb8] sm:$0xff] }
 0x24f   : > { %v17903_v55 = vpop.permute.xlu0 %8352 }
 0x250   : > { %20486 = vst [vmem:[#allocation13_spill] sm:$0xff] %v17903_v55  ;;  %v1330_v55 = vld [vmem:[%s16891_s17 + $0x6c8] sm:$0xff] }
 0x251   : > { %12092 = vperm.xlu0 %15887, %v12026_v32   ;;  %v1328_v32 = vld [vmem:[%s16891_s17 + $0x6b8] sm:$0xff] }
 0x252   : > { %4010 = vmatmul.mubr.bf16.gmra.mrb[224].mxu0 %v16059_v56 }
 0x253   : > { %5676 = vmatmul.mubr.bf16.gmra.mrb[224].mxu1 %v16059_v56  ;;  %4019 = vmatprep.mubr.bf16.mxu0 %v16060_v57  ;;  %v16065_v56 = vld [vmem:[%s20409_s1 + $0x740] ss:$16 sps:$4 sm:$0xff]  }
 0x254   : > { %5685 = vmatprep.mubr.bf16.mxu1 %v16060_v57  ;;  %v16066_v57 = vld [vmem:[%s20409_s1 + $0x764] ss:$16 sps:$4 sm:$0xff]  }
 0x255   : > { %12102 = vperm.xlu0 %15887, %v12028_v47  }
 0x259   : > { %12112 = vperm.xlu0 %15887, %v12030_v2   ;;  %v1323_v2 = vld [vmem:[%s16891_s17 + $0x690] sm:$0xff] }
 0x25a   : > { %4020 = vmatmul.mubr.bf16.gmra.mrb[228].mxu0 %v16062_v3 }
 0x25b   : > { %5686 = vmatmul.mubr.bf16.gmra.mrb[228].mxu1 %v16062_v3  ;;  %4029 = vmatprep.mubr.bf16.mxu0 %v16063_v4  ;;  %v17857_v3 = vpop.permute.xlu1 %7294 }
 0x25c   : > { %5695 = vmatprep.mubr.bf16.mxu1 %v16063_v4  ;;  %v9767_v4 = vld [vmem:[%s20420_s12 + $0x88] sm:$0xff] }
 0x25d   : > { %9869 = vperm.xlu1 %15888, %v9767_v4   ;;  %v16075_v4 = vld [vmem:[%s20409_s1 + $0x7c4] ss:$16 sps:$4 sm:$0xff]  }
 0x25f   : > { %v17876_v19 = vpop.permute.xlu1 %7304 }
 0x261   : > { %9879 = vperm.xlu1 %15888, %v9769_v17   ;;  %v12032_v17 = vld [vmem:[%s20422_s14 + $0x30] sm:$0xff] }
 0x262   : > { %4030 = vmatmul.mubr.bf16.gmra.mrb[232].mxu0 %v16065_v56  ;;  %12122 = vperm.xlu0 %15887, %v12032_v17   ;;  %v16078_v17 = vld [vmem:[%s20409_s1 + $0x7e4] ss:$16 sps:$4 sm:$0xff]  }
 0x263   : > { %5696 = vmatmul.mubr.bf16.gmra.mrb[232].mxu1 %v16065_v56  ;;  %4039 = vmatprep.mubr.bf16.mxu0 %v16066_v57  ;;  %v17895_v38 = vpop.permute.xlu1 %7314 }
 0x264   : > { %5705 = vmatprep.mubr.bf16.mxu1 %v16066_v57  ;;  %v9775_v57 = vld [vmem:[%s20420_s12 + $0xc8] sm:$0xff] }
 0x265   : > { %9889 = vperm.xlu1 %15888, %v9771_v25   ;;  %v17927_v25 = vpop.permute.xlu0 %8362 }
 0x266   : > { %20488 = vst [vmem:[#allocation15_spill] sm:$0xff] %v17927_v25  ;;  %v1475_v25 = vpack.c.bf16 %v1327_v44, %v1323_v2  ;;  %v1333_v44 = vld [vmem:[%s16891_s17 + $0x6e0] sm:$0xff] }
 0x267   : > { %v17905_v56 = vpop.permute.xlu1 %8297 }
 0x268   : > { %20487 = vst [vmem:[#allocation14_spill] sm:$0xff] %v17905_v56  ;;  %v1358_v56 = vld [vmem:[%s16891_s17 + $0x7a8] sm:$0xff] }
 0x269   : > { %9899 = vperm.xlu1 %15888, %v9773_v40   ;;  %v17957_v2 = vpop.permute.xlu0 %8372 }
 0x26a   : > { %4040 = vmatmul.mubr.bf16.gmra.mrb[236].mxu0 %v16068_v6  ;;  %20490 = vst [vmem:[#allocation17_spill] sm:$0xff] %v17957_v2  ;;  %v1344_v2 = vld [vmem:[%s16891_s17 + $0x738] sm:$0xff] }
 0x26b   : > { %5706 = vmatmul.mubr.bf16.gmra.mrb[236].mxu1 %v16068_v6  ;;  %4049 = vmatprep.mubr.bf16.mxu0 %v16069_v12  ;;  %v1322_v6 = vld [vmem:[%s16891_s17 + $0x688] sm:$0xff]  ;;  %v17932_v40 = vpop.permute.xlu1 %8307 }
 0x26c   : > { %5715 = vmatprep.mubr.bf16.mxu1 %v16069_v12  ;;  %v9777_v12 = vld [vmem:[%s20420_s12 + $0xd8] sm:$0xff]  ;;  %v1474_v23 = vpack.c.bf16 %v1326_v11, %v1322_v6  ;;  %20489 = vst [vmem:[#allocation16_spill] sm:$0xff] %v17932_v40  ;;  %v16077_v6 = vld [vmem:[%s20409_s1 + $0x7c0] ss:$16 sps:$4 sm:$0xff]  }
 0x26d   : > { %9909 = vperm.xlu1 %15888, %v9775_v57   ;;  %v1325_v57 = vld [vmem:[%s16891_s17 + $0x6a0] sm:$0xff]  ;;  %v1343_v40 = vld [vmem:[%s16891_s17 + $0x730] sm:$0xff] }
 0x26e   : > { %4270 = vmatprep.subr.bf16.mxu0 %v1474_v23  ;;  %v1331_v23 = vld [vmem:[%s16891_s17 + $0x6d0] sm:$0xff] }
 0x271   : > { %9919 = vperm.xlu1 %15888, %v9777_v12   ;;  %v12034_v12 = vld [vmem:[%s20422_s14 + $0x40] sm:$0xff] }
 0x272   : > { %4050 = vmatmul.mubr.bf16.gmra.mrb[240].mxu0 %v16071_v27  ;;  %12132 = vperm.xlu0 %15887, %v12034_v12  }
 0x273   : > { %5716 = vmatmul.mubr.bf16.gmra.mrb[240].mxu1 %v16071_v27  ;;  %4059 = vmatprep.mubr.bf16.mxu0 %v16072_v37  ;;  %v1324_v27 = vld [vmem:[%s16891_s17 + $0x698] sm:$0xff] }
 0x274   : > { %5725 = vmatprep.mubr.bf16.mxu1 %v16072_v37  ;;  %v1321_v37 = vld [vmem:[%s16891_s17 + $0x680] sm:$0xff]  ;;  %v1476_v47 = vpack.c.bf16 %v1328_v32, %v1324_v27  ;;  %v1334_v27 = vld [vmem:[%s16891_s17 + $0x6e8] sm:$0xff]  ;;  %v1336_v32 = vld [vmem:[%s16891_s17 + $0x6f8] sm:$0xff] }
 0x275   : > { %v1473_v11 = vpack.c.bf16 %v1325_v57, %v1321_v37  ;;  %v1478_v29 = vpack.c.bf16 %v1334_v27, %v1330_v55  ;;  %v1329_v37 = vld [vmem:[%s16891_s17 + $0x6c0] sm:$0xff]  ;;  %v1335_v57 = vld [vmem:[%s16891_s17 + $0x6f0] sm:$0xff]  ;;  %v17961_v55 = vpop.permute.xlu1 %8317 }
 0x276   : > { %5936 = vmatprep.subr.bf16.mxu1 %v1476_v47  ;;  %v1338_v47 = vld [vmem:[%s16891_s17 + $0x708] sm:$0xff]  ;;  %20491 = vst [vmem:[#allocation18_spill] sm:$0xff] %v17961_v55  ;;  %v12036_v27 = vld [vmem:[%s20422_s14 + $0x50] sm:$0xff]  ;;  %v1341_v55 = vld [vmem:[%s16891_s17 + $0x720] sm:$0xff] }
 0x277   : > { %4271 = vmatpush1.bf16.msra.mxu0 %v1473_v11  ;;  %5937 = vmatpush1.bf16.msra.mxu1 %v1475_v25  ;;  %v1342_v11 = vld [vmem:[%s16891_s17 + $0x728] sm:$0xff]  ;;  %v9781_v25 = vld [vmem:[%s20420_s12 + $0xf8] sm:$0xff] }
 0x278   : > { %4272 = vmatprep.subr.bf16.mxu0 %v1478_v29  ;;  %v1479_v29 = vpack.c.bf16 %v1335_v57, %v1331_v23  ;;  %12142 = vperm.xlu0 %15887, %v12036_v27   ;;  %v1346_v23 = vld [vmem:[%s16891_s17 + $0x748] sm:$0xff]  ;;  %v17988_v57 = vpop.permute.xlu0 %8382 }
 0x279   : > { %20492 = vst [vmem:[#allocation19_spill] sm:$0xff] %v17988_v57  ;;  %v17993_v27 = vpop.permute.xlu1 %8327  ;;  %v1356_v57 = vld [vmem:[%s16891_s17 + $0x798] sm:$0xff] }
 0x27a   : > { %4060 = vmatmul.mubr.bf16.gmra.mrb[244].mxu0 %v16074_v63  ;;  %20493 = vst [vmem:[#allocation20_spill] sm:$0xff] %v17993_v27  ;;  %v1367_v27 = vld [vmem:[%s16891_s17 + $0x7f0] sm:$0xff] }
 0x27b   : > { %5726 = vmatmul.mubr.bf16.gmra.mrb[244].mxu1 %v16074_v63  ;;  %4069 = vmatprep.mubr.bf16.mxu0 %v16075_v4  ;;  %v9779_v63 = vld [vmem:[%s20420_s12 + $0xe8] sm:$0xff] }
 0x27c   : > { %5735 = vmatprep.mubr.bf16.mxu1 %v16075_v4  ;;  %v1332_v4 = vld [vmem:[%s16891_s17 + $0x6d8] sm:$0xff]  ;;  %9929 = vperm.xlu1 %15888, %v9779_v63   ;;  %v1482_v63 = vpack.c.bf16 %v1342_v11, %v1338_v47  ;;  %v1350_v47 = vld [vmem:[%s16891_s17 + $0x768] sm:$0xff] }
 0x27d   : > { %v1480_v13 = vpack.c.bf16 %v1336_v32, %v1332_v4  ;;  %v1477_v4 = vpack.c.bf16 %v1333_v44, %v1329_v37  ;;  %v1340_v32 = vld [vmem:[%s16891_s17 + $0x718] sm:$0xff]  ;;  %v16083_v37 = vld [vmem:[%s20409_s1 + $0x804] ss:$16 sps:$4 sm:$0xff]  }
 0x27e   : > { %v1484_v12 = vpack.c.bf16 %v1344_v2, %v1340_v32  ;;  %v12038_v44 = vld [vmem:[%s20422_s14 + $0x60] sm:$0xff]  ;;  %v1483_v2 = vpack.c.bf16 %v1343_v40, %v1339_v43  ;;  %v1348_v11 = vld [vmem:[%s16891_s17 + $0x758] sm:$0xff]  ;;  %v1486_v40 = vpack.c.bf16 %v1350_v47, %v1346_v23 }
 0x27f   : > { %5938 = vmatprep.subr.bf16.mxu1 %v1480_v13  ;;  %v16080_v13 = vld [vmem:[%s20409_s1 + $0x7e0] ss:$16 sps:$4 sm:$0xff]   ;;  %4273 = vmatpush1.bf16.msra.mxu0 %v1477_v4  ;;  %v10273_v43 = vld [vmem:[%s20421_s13 + $0x18] sm:$0xff] }
 0x280   : > { %9939 = vperm.xlu1 %15888, %v9781_v25   ;;  %5939 = vmatpush1.bf16.msra.mxu1 %v1479_v29  ;;  %v1352_v25 = vld [vmem:[%s16891_s17 + $0x778] sm:$0xff]  ;;  %v1345_v4 = vld [vmem:[%s16891_s17 + $0x740] sm:$0xff]  ;;  %v12040_v29 = vld [vmem:[%s20422_s14 + $0x70] sm:$0xff] }
 0x281   : > { %4274 = vmatprep.subr.bf16.mxu0 %v1482_v63  ;;  %5940 = vmatprep.subr.bf16.mxu1 %v1484_v12  ;;  %v1349_v32 = vld [vmem:[%s16891_s17 + $0x760] sm:$0xff]  ;;  %v1488_v63 = vpack.c.bf16 %v1352_v25, %v1348_v11  ;;  %v18016_v25 = vpop.permute.xlu1 %8337 }
 0x282   : > { %4070 = vmatmul.mubr.bf16.gmra.mrb[248].mxu0 %v16077_v6  ;;  %12152 = vperm.xlu0 %15887, %v12038_v44   ;;  %v1485_v12 = vpack.c.bf16 %v1349_v32, %v1345_v4  ;;  %v16081_v23 = vld [vmem:[%s20409_s1 + $0x800] ss:$16 sps:$4 sm:$0xff]   ;;  %20496 = vst [vmem:[#allocation23_spill] sm:$0xff] %v18016_v25 }
 0x283   : > { %5736 = vmatmul.mubr.bf16.gmra.mrb[248].mxu1 %v16077_v6  ;;  %4079 = vmatprep.mubr.bf16.mxu0 %v16078_v17  ;;  %v10271_v6 = vld [vmem:[%s20421_s13 + $0x8] sm:$0xff]  ;;  %v1355_v32 = vld [vmem:[%s16891_s17 + $0x790] sm:$0xff] }
 0x284   : > { %5745 = vmatprep.mubr.bf16.mxu1 %v16078_v17  ;;  %v1481_v17 = vpack.c.bf16 %v1341_v55, %v1337_v0  ;;  %10285 = vperm.xlu1 %15888, %v10271_v6   ;;  %v1351_v0 = vld [vmem:[%s16891_s17 + $0x770] sm:$0xff]  ;;  %v1354_v55 = vld [vmem:[%s16891_s17 + $0x788] sm:$0xff]  ;;  %v1360_v6 = vld [vmem:[%s16891_s17 + $0x7b8] sm:$0xff] }
 0x285   : > { %5941 = vmatpush1.bf16.msra.mxu1 %v1483_v2  ;;  %v1487_v44 = vpack.c.bf16 %v1351_v0, %v1347_v5  ;;  %v18012_v2 = vpop.permute.xlu0 %8392  ;;  %v1492_v47 = vpack.c.bf16 %v1360_v6, %v1356_v57  ;;  %v10275_v5 = vld [vmem:[%s20421_s13 + $0x28] sm:$0xff]  ;;  %v12042_v57 = vld [vmem:[%s20422_s14 + $0x80] sm:$0xff]  ;;  %v1359_v0 = vld [vmem:[%s16891_s17 + $0x7b0] sm:$0xff] }
 0x286   : > { %4275 = vmatpush1.bf16.msra.mxu0 %v1481_v17  ;;  %v1490_v17 = vpack.c.bf16 %v1358_v56, %v1354_v55  ;;  %20494 = vst [vmem:[#allocation21_spill] sm:$0xff] %v18012_v2  ;;  %12162 = vperm.xlu0 %15887, %v12040_v29   ;;  %v1353_v56 = vld [vmem:[%s16891_s17 + $0x780] sm:$0xff]  ;;  %v1362_v29 = vld [vmem:[%s16891_s17 + $0x7c8] sm:$0xff]  ;;  %v1363_v25 = vld [vmem:[%s16891_s17 + $0x7d0] sm:$0xff] }
 0x287   : > { %4276 = vmatprep.subr.bf16.mxu0 %v1486_v40  ;;  %5942 = vmatprep.subr.bf16.mxu1 %v1488_v63  ;;  %v16086_v40 = vld [vmem:[%s20409_s1 + $0x824] ss:$16 sps:$4 sm:$0xff]   ;;  %v1366_v63 = vld [vmem:[%s16891_s17 + $0x7e8] sm:$0xff] }
 0x288   : > { %10295 = vperm.xlu1 %15888, %v10273_v43   ;;  %v1361_v2 = vld [vmem:[%s16891_s17 + $0x7c0] sm:$0xff] }
 0x289   : > { %5943 = vmatpush1.bf16.msra.mxu1 %v1487_v44  ;;  %v1365_v44 = vld [vmem:[%s16891_s17 + $0x7e0] sm:$0xff] }
 0x28a   : > { %4080 = vmatmul.mubr.bf16.gmra.mrb[252].mxu0 %v16080_v13  ;;  %5944 = vmatprep.subr.bf16.mxu1 %v1492_v47  ;;  %v12044_v47 = vld [vmem:[%s20422_s14 + $0x90] sm:$0xff] }
 0x28b   : > { %5746 = vmatmul.mubr.bf16.gmra.mrb[252].mxu1 %v16080_v13  ;;  %4089 = vmatprep.mubr.bf16.mxu0 %v16083_v37  ;;  %v1357_v13 = vld [vmem:[%s16891_s17 + $0x7a0] sm:$0xff] }
 0x28c   : > { %5755 = vmatprep.mubr.bf16.mxu1 %v16083_v37  ;;  %4277 = vmatpush1.bf16.msra.mxu0 %v1485_v12 }
 0x28d   : > { %v18014_v11 = vpop.f32.mrb[148].mxu0  ;;  %4278 = vmatprep.subr.bf16.mxu0 %v1490_v17  ;;  %10305 = vperm.xlu1 %15888, %v10275_v5   ;;  %v10277_v17 = vld [vmem:[%s20421_s13 + $0x38] sm:$0xff] }
 0x28e   : > { %20495 = vst [vmem:[#allocation22_spill] sm:$0xff] %v18014_v11  ;;  %v18023_v37 = vpop.f32.mrb[148].mxu1  ;;  %v18025_v4 = vpop.f32.mrb[149].mxu0  ;;  %12172 = vperm.xlu0 %15887, %v12042_v57   ;;  %v1491_v11 = vpack.c.bf16 %v1359_v0, %v1355_v32  ;;  %v1495_v0 = vpack.c.bf16 %v1367_v27, %v1363_v25  ;;  %v16089_v27 = vld [vmem:[%s20409_s1 + $0x844] ss:$16 sps:$4 sm:$0xff]  }
 0x28f   : > { %20497 = vst [vmem:[#allocation24_spill] sm:$0xff] %v18023_v37  ;;  %20498 = vst [vmem:[#allocation25_spill] sm:$0xff] %v18025_v4  ;;  %v18032_v55 = vpop.f32.mrb[149].mxu1  ;;  %v18034_v43 = vpop.f32.mrb[150].mxu0  ;;  %v1368_v4 = vld [vmem:[%s16891_s17 + $0x7f8] sm:$0xff] }
 0x290   : > { %20499 = vst [vmem:[#allocation26_spill] sm:$0xff] %v18032_v55  ;;  %20500 = vst [vmem:[#allocation27_spill] sm:$0xff] %v18034_v43  ;;  %v18041_v12 = vpop.f32.mrb[150].mxu1  ;;  %v18043_v6 = vpop.f32.mrb[151].mxu0  ;;  %v1489_v55 = vpack.c.bf16 %v1357_v13, %v1353_v56  ;;  %v1364_v43 = vld [vmem:[%s16891_s17 + $0x7d8] sm:$0xff]  ;;  %v1493_v13 = vpack.c.bf16 %v1365_v44, %v1361_v2  ;;  %5945 = vmatpush1.bf16.msra.mxu1 %v1491_v11  ;;  %v12027_v2 = vld [vmem:[%s20422_s14 + $0x8] sm:$0xff] }
 0x291   : > { %20501 = vst [vmem:[#allocation28_spill] sm:$0xff] %v18041_v12  ;;  %20502 = vst [vmem:[#allocation29_spill] sm:$0xff] %v18043_v6  ;;  %v18047_v37 = vpop.f32.mrb[151].mxu1  ;;  %v1494_v12 = vpack.c.bf16 %v1366_v63, %v1362_v29  ;;  %v1496_v5 = vpack.c.bf16 %v1368_v4, %v1364_v43  ;;  %v18059_v56 = vpop.permute.xlu0 %8402  ;;  %10315 = vperm.xlu1 %15888, %v10277_v17   ;;  %v16084_v4 = vld [vmem:[%s20409_s1 + $0x820] ss:$16 sps:$4 sm:$0xff]   ;;  %s14629_s17 = sshll.u32 (%p16729_p6), %s16595_s20, 9 }
 0x292   : > { %20503 = vst [vmem:[#allocation30_spill] sm:$0xff] %v18047_v37  ;;  %4090 = vmatmul.mubr.bf16.gmra.mrb[148].mxu0 %v16081_v23  ;;  %20504 = vst [vmem:[#allocation31_spill] sm:$0xff] %v18059_v56  ;;  %v18063_v32 = vpop.permute.xlu1 %8347  ;;  %12182 = vperm.xlu0 %15887, %v12044_v47   ;;  %v12046_v11 = vld [vmem:[%s20422_s14 + $0xa0] sm:$0xff]  ;;  %v12048_v44 = vld [vmem:[%s20422_s14 + $0xb0] sm:$0xff]  ;;  %s20255_s26 = scalar_lea.vmem (%p16729_p6), %s20799_s25, %s14629_s17  }
 0x293   : > { %5756 = vmatmul.mubr.bf16.gmra.mrb[148].mxu1 %v16081_v23  ;;  %4099 = vmatprep.mubr.bf16.mxu0 %v16086_v40  ;;  %20506 = vst [vmem:[#allocation33_spill] sm:$0xff] %v18063_v32 }
 0x294   : > { %5765 = vmatprep.mubr.bf16.mxu1 %v16086_v40  ;;  %4279 = vmatpush1.bf16.msra.mxu0 %v1489_v55 }
 0x295   : > { %v18061_v57 = vpop.f32.mrb[152].mxu0  ;;  %4280 = vmatprep.subr.bf16.mxu0 %v1494_v12  ;;  %5946 = vmatprep.subr.bf16.mxu1 %v1496_v5  ;;  %v12029_v12 = vld [vmem:[%s20422_s14 + $0x18] sm:$0xff]  ;;  %v18097_v17 = vpop.permute.xlu0 %8412 }
 0x296   : > { %20505 = vst [vmem:[#allocation32_spill] sm:$0xff] %v18061_v57  ;;  %v18065_v29 = vpop.f32.mrb[152].mxu1  ;;  %v18067_v23 = vpop.f32.mrb[153].mxu0  ;;  %5947 = vmatpush1.bf16.msra.mxu1 %v1495_v0  ;;  %12097 = vperm.xlu1 %15888, %v12027_v2   ;;  %20514 = vst [vmem:[#allocation41_spill] sm:$0xff] %v18097_v17  ;;  %v12031_v2 = vld [vmem:[%s20422_s14 + $0x28] sm:$0xff] }
 0x297   : > { %20507 = vst [vmem:[#allocation34_spill] sm:$0xff] %v18065_v29  ;;  %20508 = vst [vmem:[#allocation35_spill] sm:$0xff] %v18067_v23  ;;  %v18075_v55 = vpop.f32.mrb[153].mxu1  ;;  %v18077_v43 = vpop.f32.mrb[154].mxu0  ;;  %12192 = vperm.xlu0 %15887, %v12046_v11  }
 0x298   : > { %20509 = vst [vmem:[#allocation36_spill] sm:$0xff] %v18075_v55  ;;  %20510 = vst [vmem:[#allocation37_spill] sm:$0xff] %v18077_v43  ;;  %v18085_v25 = vpop.f32.mrb[154].mxu1  ;;  %v18087_v40 = vpop.f32.mrb[155].mxu0  ;;  %4281 = vmatpush1.bf16.msra.mxu0 %v1493_v13 }
 0x299   : > { %20511 = vst [vmem:[#allocation38_spill] sm:$0xff] %v18085_v25  ;;  %20512 = vst [vmem:[#allocation39_spill] sm:$0xff] %v18087_v40  ;;  %v18089_v63 = vpop.f32.mrb[155].mxu1  ;;  %v18101_v5 = vpop.permute.xlu1 %8357 }
 0x29a   : > { %20513 = vst [vmem:[#allocation40_spill] sm:$0xff] %v18089_v63  ;;  %4100 = vmatmul.mubr.bf16.gmra.mrb[152].mxu0 %v16084_v4  ;;  %20516 = vst [vmem:[#allocation43_spill] sm:$0xff] %v18101_v5  ;;  %12107 = vperm.xlu1 %15888, %v12029_v12   ;;  %v16092_v12 = vld [vmem:[%s20409_s1 + $0x864] ss:$16 sps:$4 sm:$0xff]   ;;  %v18135_v63 = vpop.permute.xlu0 %8422 }
 0x29b   : > { %5766 = vmatmul.mubr.bf16.gmra.mrb[152].mxu1 %v16084_v4  ;;  %4109 = vmatprep.mubr.bf16.mxu0 %v16089_v27  ;;  %v16087_v4 = vld [vmem:[%s20409_s1 + $0x840] ss:$16 sps:$4 sm:$0xff]   ;;  %20524 = vst [vmem:[#allocation51_spill] sm:$0xff] %v18135_v63 }
 0x29c   : > { %5775 = vmatprep.mubr.bf16.mxu1 %v16089_v27  ;;  %12202 = vperm.xlu0 %15887, %v12048_v44  }
 0x29d   : > { %v18099_v47 = vpop.f32.mrb[156].mxu0 }
 0x29e   : > { %20515 = vst [vmem:[#allocation42_spill] sm:$0xff] %v18099_v47  ;;  %v18103_v13 = vpop.f32.mrb[156].mxu1  ;;  %v18105_v0 = vpop.f32.mrb[157].mxu0  ;;  %12117 = vperm.xlu1 %15888, %v12031_v2  }
 0x29f   : > { %20517 = vst [vmem:[#allocation44_spill] sm:$0xff] %v18103_v13  ;;  %20518 = vst [vmem:[#allocation45_spill] sm:$0xff] %v18105_v0  ;;  %v18113_v27 = vpop.f32.mrb[157].mxu1  ;;  %v18115_v11 = vpop.f32.mrb[158].mxu0  ;;  %v12050_v0 = vld [vmem:[%s20422_s14 + $0xc0] sm:$0xff] }
 0x2a0   : > { %20519 = vst [vmem:[#allocation46_spill] sm:$0xff] %v18113_v27  ;;  %20520 = vst [vmem:[#allocation47_spill] sm:$0xff] %v18115_v11  ;;  %v18123_v13 = vpop.f32.mrb[158].mxu1  ;;  %v18125_v47 = vpop.f32.mrb[159].mxu0  ;;  %12212 = vperm.xlu0 %15887, %v12050_v0   ;;  %v12033_v11 = vld [vmem:[%s20422_s14 + $0x38] sm:$0xff]  ;;  %v12052_v27 = vld [vmem:[%s20422_s14 + $0xd0] sm:$0xff] }
 0x2a1   : > { %20521 = vst [vmem:[#allocation48_spill] sm:$0xff] %v18123_v13  ;;  %20522 = vst [vmem:[#allocation49_spill] sm:$0xff] %v18125_v47  ;;  %v18127_v44 = vpop.f32.mrb[159].mxu1  ;;  %v18139_v47 = vpop.permute.xlu1 %8367 }
 0x2a2   : > { %20523 = vst [vmem:[#allocation50_spill] sm:$0xff] %v18127_v44  ;;  %4110 = vmatmul.mubr.bf16.gmra.mrb[156].mxu0 %v16087_v4  ;;  %20526 = vst [vmem:[#allocation53_spill] sm:$0xff] %v18139_v47  ;;  %12127 = vperm.xlu1 %15888, %v12033_v11   ;;  %v16095_v11 = vld [vmem:[%s20409_s1 + $0x884] ss:$16 sps:$4 sm:$0xff]   ;;  %v18173_v25 = vpop.permute.xlu0 %8432 }
 0x2a3   : > { %5776 = vmatmul.mubr.bf16.gmra.mrb[156].mxu1 %v16087_v4  ;;  %4119 = vmatprep.mubr.bf16.mxu0 %v16092_v12  ;;  %v16090_v4 = vld [vmem:[%s20409_s1 + $0x860] ss:$16 sps:$4 sm:$0xff]   ;;  %20534 = vst [vmem:[#allocation61_spill] sm:$0xff] %v18173_v25 }
 0x2a4   : > { %5785 = vmatprep.mubr.bf16.mxu1 %v16092_v12  ;;  %12222 = vperm.xlu0 %15887, %v12052_v27   ;;  %v12035_v12 = vld [vmem:[%s20422_s14 + $0x48] sm:$0xff] }
 0x2a5   : > { %v18137_v13 = vpop.f32.mrb[160].mxu0 }
 0x2a6   : > { %20525 = vst [vmem:[#allocation52_spill] sm:$0xff] %v18137_v13  ;;  %v18141_v2 = vpop.f32.mrb[160].mxu1  ;;  %v18143_v0 = vpop.f32.mrb[161].mxu0  ;;  %12137 = vperm.xlu1 %15888, %v12035_v12  }
 0x2a7   : > { %20527 = vst [vmem:[#allocation54_spill] sm:$0xff] %v18141_v2  ;;  %20528 = vst [vmem:[#allocation55_spill] sm:$0xff] %v18143_v0  ;;  %v18151_v44 = vpop.f32.mrb[161].mxu1  ;;  %v18153_v40 = vpop.f32.mrb[162].mxu0  ;;  %v12054_v0 = vld [vmem:[%s20422_s14 + $0xe0] sm:$0xff] }
 0x2a8   : > { %20529 = vst [vmem:[#allocation56_spill] sm:$0xff] %v18151_v44  ;;  %20530 = vst [vmem:[#allocation57_spill] sm:$0xff] %v18153_v40  ;;  %v18161_v2 = vpop.f32.mrb[162].mxu1  ;;  %v18163_v13 = vpop.f32.mrb[163].mxu0  ;;  %12232 = vperm.xlu0 %15887, %v12054_v0   ;;  %v12037_v40 = vld [vmem:[%s20422_s14 + $0x58] sm:$0xff]  ;;  %v12056_v44 = vld [vmem:[%s20422_s14 + $0xf0] sm:$0xff] }
 0x2a9   : > { %20531 = vst [vmem:[#allocation58_spill] sm:$0xff] %v18161_v2  ;;  %20532 = vst [vmem:[#allocation59_spill] sm:$0xff] %v18163_v13  ;;  %v18165_v27 = vpop.f32.mrb[163].mxu1  ;;  %v18177_v13 = vpop.permute.xlu1 %8377 }
 0x2aa   : > { %20533 = vst [vmem:[#allocation60_spill] sm:$0xff] %v18165_v27  ;;  %4120 = vmatmul.mubr.bf16.gmra.mrb[160].mxu0 %v16090_v4  ;;  %20536 = vst [vmem:[#allocation63_spill] sm:$0xff] %v18177_v13  ;;  %12147 = vperm.xlu1 %15888, %v12037_v40   ;;  %v16098_v40 = vld [vmem:[%s20409_s1 + $0x8a4] ss:$16 sps:$4 sm:$0xff]   ;;  %v18211_v55 = vpop.permute.xlu0 %8442 }
 0x2ab   : > { %5786 = vmatmul.mubr.bf16.gmra.mrb[160].mxu1 %v16090_v4  ;;  %4129 = vmatprep.mubr.bf16.mxu0 %v16095_v11  ;;  %v16093_v4 = vld [vmem:[%s20409_s1 + $0x880] ss:$16 sps:$4 sm:$0xff]   ;;  %20544 = vst [vmem:[#allocation71_spill] sm:$0xff] %v18211_v55 }
 0x2ac   : > { %5795 = vmatprep.mubr.bf16.mxu1 %v16095_v11  ;;  %12242 = vperm.xlu0 %15887, %v12056_v44   ;;  %v12039_v11 = vld [vmem:[%s20422_s14 + $0x68] sm:$0xff] }
 0x2ad   : > { %v18175_v2 = vpop.f32.mrb[164].mxu0 }
 0x2ae   : > { %20535 = vst [vmem:[#allocation62_spill] sm:$0xff] %v18175_v2  ;;  %v18179_v12 = vpop.f32.mrb[164].mxu1  ;;  %v18181_v0 = vpop.f32.mrb[165].mxu0  ;;  %12157 = vperm.xlu1 %15888, %v12039_v11  }
 0x2af   : > { %20537 = vst [vmem:[#allocation64_spill] sm:$0xff] %v18179_v12  ;;  %20538 = vst [vmem:[#allocation65_spill] sm:$0xff] %v18181_v0  ;;  %v18189_v27 = vpop.f32.mrb[165].mxu1  ;;  %v18191_v43 = vpop.f32.mrb[166].mxu0  ;;  %v12058_v0 = vld [vmem:[%s20422_s14 + $0x100] sm:$0xff] }
 0x2b0   : > { %20539 = vst [vmem:[#allocation66_spill] sm:$0xff] %v18189_v27  ;;  %20540 = vst [vmem:[#allocation67_spill] sm:$0xff] %v18191_v43  ;;  %v18199_v12 = vpop.f32.mrb[166].mxu1  ;;  %v18201_v2 = vpop.f32.mrb[167].mxu0  ;;  %12252 = vperm.xlu0 %15887, %v12058_v0   ;;  %v12041_v43 = vld [vmem:[%s20422_s14 + $0x78] sm:$0xff]  ;;  %v12060_v27 = vld [vmem:[%s20422_s14 + $0x110] sm:$0xff] }
 0x2b1   : > { %20541 = vst [vmem:[#allocation68_spill] sm:$0xff] %v18199_v12  ;;  %20542 = vst [vmem:[#allocation69_spill] sm:$0xff] %v18201_v2  ;;  %v18203_v44 = vpop.f32.mrb[167].mxu1  ;;  %v18215_v2 = vpop.permute.xlu1 %8387 }
 0x2b2   : > { %20543 = vst [vmem:[#allocation70_spill] sm:$0xff] %v18203_v44  ;;  %4130 = vmatmul.mubr.bf16.gmra.mrb[164].mxu0 %v16093_v4  ;;  %20546 = vst [vmem:[#allocation73_spill] sm:$0xff] %v18215_v2  ;;  %12167 = vperm.xlu1 %15888, %v12041_v43   ;;  %v16101_v43 = vld [vmem:[%s20409_s1 + $0x8c4] ss:$16 sps:$4 sm:$0xff]   ;;  %v18249_v29 = vpop.permute.xlu0 %8788 }
 0x2b3   : > { %5796 = vmatmul.mubr.bf16.gmra.mrb[164].mxu1 %v16093_v4  ;;  %4139 = vmatprep.mubr.bf16.mxu0 %v16098_v40  ;;  %v16096_v4 = vld [vmem:[%s20409_s1 + $0x8a0] ss:$16 sps:$4 sm:$0xff]   ;;  %20554 = vst [vmem:[#allocation81_spill] sm:$0xff] %v18249_v29 }
 0x2b4   : > { %5805 = vmatprep.mubr.bf16.mxu1 %v16098_v40  ;;  %12262 = vperm.xlu0 %15887, %v12060_v27   ;;  %v12043_v40 = vld [vmem:[%s20422_s14 + $0x88] sm:$0xff] }
 0x2b5   : > { %v18213_v12 = vpop.f32.mrb[168].mxu0 }
 0x2b6   : > { %20545 = vst [vmem:[#allocation72_spill] sm:$0xff] %v18213_v12  ;;  %v18217_v11 = vpop.f32.mrb[168].mxu1  ;;  %v18219_v0 = vpop.f32.mrb[169].mxu0  ;;  %12177 = vperm.xlu1 %15888, %v12043_v40  }
 0x2b7   : > { %20547 = vst [vmem:[#allocation74_spill] sm:$0xff] %v18217_v11  ;;  %20548 = vst [vmem:[#allocation75_spill] sm:$0xff] %v18219_v0  ;;  %v18227_v44 = vpop.f32.mrb[169].mxu1  ;;  %v18229_v23 = vpop.f32.mrb[170].mxu0  ;;  %v12062_v0 = vld [vmem:[%s20422_s14 + $0x120] sm:$0xff] }
 0x2b8   : > { %20549 = vst [vmem:[#allocation76_spill] sm:$0xff] %v18227_v44  ;;  %20550 = vst [vmem:[#allocation77_spill] sm:$0xff] %v18229_v23  ;;  %v18237_v11 = vpop.f32.mrb[170].mxu1  ;;  %v18239_v12 = vpop.f32.mrb[171].mxu0  ;;  %12272 = vperm.xlu0 %15887, %v12062_v0   ;;  %v12045_v23 = vld [vmem:[%s20422_s14 + $0x98] sm:$0xff]  ;;  %v12064_v44 = vld [vmem:[%s20422_s14 + $0x130] sm:$0xff] }
 0x2b9   : > { %20551 = vst [vmem:[#allocation78_spill] sm:$0xff] %v18237_v11  ;;  %20552 = vst [vmem:[#allocation79_spill] sm:$0xff] %v18239_v12  ;;  %v18241_v27 = vpop.f32.mrb[171].mxu1  ;;  %v18253_v12 = vpop.permute.xlu1 %8397 }
 0x2ba   : > { %20553 = vst [vmem:[#allocation80_spill] sm:$0xff] %v18241_v27  ;;  %4140 = vmatmul.mubr.bf16.gmra.mrb[168].mxu0 %v16096_v4  ;;  %20556 = vst [vmem:[#allocation83_spill] sm:$0xff] %v18253_v12  ;;  %12187 = vperm.xlu1 %15888, %v12045_v23   ;;  %v16104_v23 = vld [vmem:[%s20409_s1 + $0x8e4] ss:$16 sps:$4 sm:$0xff]   ;;  %v18287_v37 = vpop.permute.xlu0 %8798 }
 0x2bb   : > { %5806 = vmatmul.mubr.bf16.gmra.mrb[168].mxu1 %v16096_v4  ;;  %4149 = vmatprep.mubr.bf16.mxu0 %v16101_v43  ;;  %v16099_v4 = vld [vmem:[%s20409_s1 + $0x8c0] ss:$16 sps:$4 sm:$0xff]   ;;  %20564 = vst [vmem:[#allocation91_spill] sm:$0xff] %v18287_v37 }
 0x2bc   : > { %5815 = vmatprep.mubr.bf16.mxu1 %v16101_v43  ;;  %12282 = vperm.xlu0 %15887, %v12064_v44   ;;  %v12047_v43 = vld [vmem:[%s20422_s14 + $0xa8] sm:$0xff] }
 0x2bd   : > { %v18251_v11 = vpop.f32.mrb[172].mxu0 }
 0x2be   : > { %20555 = vst [vmem:[#allocation82_spill] sm:$0xff] %v18251_v11  ;;  %v18255_v40 = vpop.f32.mrb[172].mxu1  ;;  %v18257_v0 = vpop.f32.mrb[173].mxu0  ;;  %12197 = vperm.xlu1 %15888, %v12047_v43  }
 0x2bf   : > { %20557 = vst [vmem:[#allocation84_spill] sm:$0xff] %v18255_v40  ;;  %20558 = vst [vmem:[#allocation85_spill] sm:$0xff] %v18257_v0  ;;  %v18265_v27 = vpop.f32.mrb[173].mxu1  ;;  %v18267_v57 = vpop.f32.mrb[174].mxu0  ;;  %v12066_v0 = vld [vmem:[%s20422_s14 + $0x140] sm:$0xff] }
 0x2c0   : > { %20559 = vst [vmem:[#allocation86_spill] sm:$0xff] %v18265_v27  ;;  %20560 = vst [vmem:[#allocation87_spill] sm:$0xff] %v18267_v57  ;;  %v18275_v40 = vpop.f32.mrb[174].mxu1  ;;  %v18277_v11 = vpop.f32.mrb[175].mxu0  ;;  %12292 = vperm.xlu0 %15887, %v12066_v0   ;;  %v12049_v57 = vld [vmem:[%s20422_s14 + $0xb8] sm:$0xff]  ;;  %v12068_v27 = vld [vmem:[%s20422_s14 + $0x150] sm:$0xff] }
 0x2c1   : > { %20561 = vst [vmem:[#allocation88_spill] sm:$0xff] %v18275_v40  ;;  %20562 = vst [vmem:[#allocation89_spill] sm:$0xff] %v18277_v11  ;;  %v18279_v44 = vpop.f32.mrb[175].mxu1  ;;  %v18291_v11 = vpop.permute.xlu1 %8407 }
 0x2c2   : > { %20563 = vst [vmem:[#allocation90_spill] sm:$0xff] %v18279_v44  ;;  %4150 = vmatmul.mubr.bf16.gmra.mrb[172].mxu0 %v16099_v4  ;;  %20566 = vst [vmem:[#allocation93_spill] sm:$0xff] %v18291_v11  ;;  %12207 = vperm.xlu1 %15888, %v12049_v57   ;;  %v16107_v57 = vld [vmem:[%s20409_s1 + $0x904] ss:$16 sps:$4 sm:$0xff]   ;;  %v18325_v37 = vpop.permute.xlu0 %8808 }
 0x2c3   : > { %5816 = vmatmul.mubr.bf16.gmra.mrb[172].mxu1 %v16099_v4  ;;  %4159 = vmatprep.mubr.bf16.mxu0 %v16104_v23  ;;  %v16102_v4 = vld [vmem:[%s20409_s1 + $0x8e0] ss:$16 sps:$4 sm:$0xff]   ;;  %20574 = vst [vmem:[#allocation101_spill] sm:$0xff] %v18325_v37 }
 0x2c4   : > { %5825 = vmatprep.mubr.bf16.mxu1 %v16104_v23  ;;  %12302 = vperm.xlu0 %15887, %v12068_v27   ;;  %v12051_v23 = vld [vmem:[%s20422_s14 + $0xc8] sm:$0xff] }
 0x2c5   : > { %v18289_v40 = vpop.f32.mrb[176].mxu0 }
 0x2c6   : > { %20565 = vst [vmem:[#allocation92_spill] sm:$0xff] %v18289_v40  ;;  %v18293_v43 = vpop.f32.mrb[176].mxu1  ;;  %v18295_v0 = vpop.f32.mrb[177].mxu0  ;;  %12217 = vperm.xlu1 %15888, %v12051_v23  }
 0x2c7   : > { %20567 = vst [vmem:[#allocation94_spill] sm:$0xff] %v18293_v43  ;;  %20568 = vst [vmem:[#allocation95_spill] sm:$0xff] %v18295_v0  ;;  %v18303_v44 = vpop.f32.mrb[177].mxu1  ;;  %v18305_v6 = vpop.f32.mrb[178].mxu0  ;;  %v12070_v0 = vld [vmem:[%s20422_s14 + $0x160] sm:$0xff] }
 0x2c8   : > { %20569 = vst [vmem:[#allocation96_spill] sm:$0xff] %v18303_v44  ;;  %20570 = vst [vmem:[#allocation97_spill] sm:$0xff] %v18305_v6  ;;  %v18313_v43 = vpop.f32.mrb[178].mxu1  ;;  %v18315_v40 = vpop.f32.mrb[179].mxu0  ;;  %12312 = vperm.xlu0 %15887, %v12070_v0   ;;  %v12053_v6 = vld [vmem:[%s20422_s14 + $0xd8] sm:$0xff]  ;;  %v12072_v44 = vld [vmem:[%s20422_s14 + $0x170] sm:$0xff] }
 0x2c9   : > { %20571 = vst [vmem:[#allocation98_spill] sm:$0xff] %v18313_v43  ;;  %20572 = vst [vmem:[#allocation99_spill] sm:$0xff] %v18315_v40  ;;  %v18317_v27 = vpop.f32.mrb[179].mxu1  ;;  %v18329_v40 = vpop.permute.xlu1 %8417 }
 0x2ca   : > { %20573 = vst [vmem:[#allocation100_spill] sm:$0xff] %v18317_v27  ;;  %4160 = vmatmul.mubr.bf16.gmra.mrb[176].mxu0 %v16102_v4  ;;  %20576 = vst [vmem:[#allocation103_spill] sm:$0xff] %v18329_v40  ;;  %12227 = vperm.xlu1 %15888, %v12053_v6   ;;  %v16110_v6 = vld [vmem:[%s20409_s1 + $0x924] ss:$16 sps:$4 sm:$0xff]   ;;  %v18363_v29 = vpop.permute.xlu0 %8818 }
 0x2cb   : > { %5826 = vmatmul.mubr.bf16.gmra.mrb[176].mxu1 %v16102_v4  ;;  %4169 = vmatprep.mubr.bf16.mxu0 %v16107_v57  ;;  %v16105_v4 = vld [vmem:[%s20409_s1 + $0x900] ss:$16 sps:$4 sm:$0xff]   ;;  %20584 = vst [vmem:[#allocation111_spill] sm:$0xff] %v18363_v29 }
 0x2cc   : > { %5835 = vmatprep.mubr.bf16.mxu1 %v16107_v57  ;;  %12322 = vperm.xlu0 %15887, %v12072_v44   ;;  %v12055_v57 = vld [vmem:[%s20422_s14 + $0xe8] sm:$0xff] }
 0x2cd   : > { %v18327_v43 = vpop.f32.mrb[180].mxu0 }
 0x2ce   : > { %20575 = vst [vmem:[#allocation102_spill] sm:$0xff] %v18327_v43  ;;  %v18331_v23 = vpop.f32.mrb[180].mxu1  ;;  %v18333_v0 = vpop.f32.mrb[181].mxu0  ;;  %12237 = vperm.xlu1 %15888, %v12055_v57  }
 0x2cf   : > { %20577 = vst [vmem:[#allocation104_spill] sm:$0xff] %v18331_v23  ;;  %20578 = vst [vmem:[#allocation105_spill] sm:$0xff] %v18333_v0  ;;  %v18341_v27 = vpop.f32.mrb[181].mxu1  ;;  %v18343_v37 = vpop.f32.mrb[182].mxu0  ;;  %v12074_v0 = vld [vmem:[%s20422_s14 + $0x180] sm:$0xff] }
 0x2d0   : > { %20579 = vst [vmem:[#allocation106_spill] sm:$0xff] %v18341_v27  ;;  %20580 = vst [vmem:[#allocation107_spill] sm:$0xff] %v18343_v37  ;;  %v18351_v23 = vpop.f32.mrb[182].mxu1  ;;  %v18353_v43 = vpop.f32.mrb[183].mxu0  ;;  %12332 = vperm.xlu0 %15887, %v12074_v0   ;;  %v12057_v37 = vld [vmem:[%s20422_s14 + $0xf8] sm:$0xff]  ;;  %v12076_v27 = vld [vmem:[%s20422_s14 + $0x190] sm:$0xff] }
 0x2d1   : > { %20581 = vst [vmem:[#allocation108_spill] sm:$0xff] %v18351_v23  ;;  %20582 = vst [vmem:[#allocation109_spill] sm:$0xff] %v18353_v43  ;;  %v18355_v44 = vpop.f32.mrb[183].mxu1  ;;  %v18367_v43 = vpop.permute.xlu1 %8427 }
 0x2d2   : > { %20583 = vst [vmem:[#allocation110_spill] sm:$0xff] %v18355_v44  ;;  %4170 = vmatmul.mubr.bf16.gmra.mrb[180].mxu0 %v16105_v4  ;;  %20586 = vst [vmem:[#allocation113_spill] sm:$0xff] %v18367_v43  ;;  %12247 = vperm.xlu1 %15888, %v12057_v37   ;;  %v16113_v37 = vld [vmem:[%s20409_s1 + $0x944] ss:$16 sps:$4 sm:$0xff]   ;;  %v18401_v55 = vpop.permute.xlu0 %9784 }
 0x2d3   : > { %5836 = vmatmul.mubr.bf16.gmra.mrb[180].mxu1 %v16105_v4  ;;  %4179 = vmatprep.mubr.bf16.mxu0 %v16110_v6  ;;  %v16108_v4 = vld [vmem:[%s20409_s1 + $0x920] ss:$16 sps:$4 sm:$0xff]   ;;  %20594 = vst [vmem:[#allocation121_spill] sm:$0xff] %v18401_v55 }
 0x2d4   : > { %5845 = vmatprep.mubr.bf16.mxu1 %v16110_v6  ;;  %12342 = vperm.xlu0 %15887, %v12076_v27   ;;  %v12059_v6 = vld [vmem:[%s20422_s14 + $0x108] sm:$0xff] }
 0x2d5   : > { %v18365_v23 = vpop.f32.mrb[184].mxu0 }
 0x2d6   : > { %20585 = vst [vmem:[#allocation112_spill] sm:$0xff] %v18365_v23  ;;  %v18369_v57 = vpop.f32.mrb[184].mxu1  ;;  %v18371_v0 = vpop.f32.mrb[185].mxu0  ;;  %12257 = vperm.xlu1 %15888, %v12059_v6  }
 0x2d7   : > { %20587 = vst [vmem:[#allocation114_spill] sm:$0xff] %v18369_v57  ;;  %20588 = vst [vmem:[#allocation115_spill] sm:$0xff] %v18371_v0  ;;  %v18379_v44 = vpop.f32.mrb[185].mxu1  ;;  %v18381_v29 = vpop.f32.mrb[186].mxu0  ;;  %v12078_v0 = vld [vmem:[%s20422_s14 + $0x1a0] sm:$0xff] }
 0x2d8   : > { %20589 = vst [vmem:[#allocation116_spill] sm:$0xff] %v18379_v44  ;;  %20590 = vst [vmem:[#allocation117_spill] sm:$0xff] %v18381_v29  ;;  %v18389_v57 = vpop.f32.mrb[186].mxu1  ;;  %v18391_v23 = vpop.f32.mrb[187].mxu0  ;;  %12352 = vperm.xlu0 %15887, %v12078_v0   ;;  %v12061_v29 = vld [vmem:[%s20422_s14 + $0x118] sm:$0xff]  ;;  %v12080_v44 = vld [vmem:[%s20422_s14 + $0x1b0] sm:$0xff] }
 0x2d9   : > { %20591 = vst [vmem:[#allocation118_spill] sm:$0xff] %v18389_v57  ;;  %20592 = vst [vmem:[#allocation119_spill] sm:$0xff] %v18391_v23  ;;  %v18393_v27 = vpop.f32.mrb[187].mxu1  ;;  %v18405_v23 = vpop.permute.xlu1 %8437 }
 0x2da   : > { %20593 = vst [vmem:[#allocation120_spill] sm:$0xff] %v18393_v27  ;;  %4180 = vmatmul.mubr.bf16.gmra.mrb[184].mxu0 %v16108_v4  ;;  %20596 = vst [vmem:[#allocation123_spill] sm:$0xff] %v18405_v23  ;;  %12267 = vperm.xlu1 %15888, %v12061_v29   ;;  %v16116_v29 = vld [vmem:[%s20409_s1 + $0x964] ss:$16 sps:$4 sm:$0xff]   ;;  %v18439_v23 = vpop.permute.xlu0 %9794 }
 0x2db   : > { %5846 = vmatmul.mubr.bf16.gmra.mrb[184].mxu1 %v16108_v4  ;;  %4189 = vmatprep.mubr.bf16.mxu0 %v16113_v37  ;;  %v16111_v4 = vld [vmem:[%s20409_s1 + $0x940] ss:$16 sps:$4 sm:$0xff]   ;;  %20604 = vst [vmem:[#allocation131_spill] sm:$0xff] %v18439_v23 }
 0x2dc   : > { %5855 = vmatprep.mubr.bf16.mxu1 %v16113_v37  ;;  %12362 = vperm.xlu0 %15887, %v12080_v44   ;;  %v12063_v37 = vld [vmem:[%s20422_s14 + $0x128] sm:$0xff] }
 0x2dd   : > { %v18403_v57 = vpop.f32.mrb[188].mxu0 }
 0x2de   : > { %20595 = vst [vmem:[#allocation122_spill] sm:$0xff] %v18403_v57  ;;  %v18407_v6 = vpop.f32.mrb[188].mxu1  ;;  %v18409_v0 = vpop.f32.mrb[189].mxu0  ;;  %12277 = vperm.xlu1 %15888, %v12063_v37  }
 0x2df   : > { %20597 = vst [vmem:[#allocation124_spill] sm:$0xff] %v18407_v6  ;;  %20598 = vst [vmem:[#allocation125_spill] sm:$0xff] %v18409_v0  ;;  %v18417_v27 = vpop.f32.mrb[189].mxu1  ;;  %v18419_v55 = vpop.f32.mrb[190].mxu0  ;;  %v12082_v0 = vld [vmem:[%s20422_s14 + $0x1c0] sm:$0xff] }
 0x2e0   : > { %20599 = vst [vmem:[#allocation126_spill] sm:$0xff] %v18417_v27  ;;  %20600 = vst [vmem:[#allocation127_spill] sm:$0xff] %v18419_v55  ;;  %v18427_v6 = vpop.f32.mrb[190].mxu1  ;;  %v18429_v57 = vpop.f32.mrb[191].mxu0  ;;  %12372 = vperm.xlu0 %15887, %v12082_v0   ;;  %v12065_v55 = vld [vmem:[%s20422_s14 + $0x138] sm:$0xff]  ;;  %v12084_v27 = vld [vmem:[%s20422_s14 + $0x1d0] sm:$0xff] }
 0x2e1   : > { %20601 = vst [vmem:[#allocation128_spill] sm:$0xff] %v18427_v6  ;;  %20602 = vst [vmem:[#allocation129_spill] sm:$0xff] %v18429_v57  ;;  %v18431_v44 = vpop.f32.mrb[191].mxu1  ;;  %v18443_v57 = vpop.permute.xlu1 %8447 }
 0x2e2   : > { %20603 = vst [vmem:[#allocation130_spill] sm:$0xff] %v18431_v44  ;;  %4190 = vmatmul.mubr.bf16.gmra.mrb[188].mxu0 %v16111_v4  ;;  %20606 = vst [vmem:[#allocation133_spill] sm:$0xff] %v18443_v57  ;;  %12287 = vperm.xlu1 %15888, %v12065_v55   ;;  %v16114_v44 = vld [vmem:[%s20409_s1 + $0x960] ss:$16 sps:$4 sm:$0xff]  }
 0x2e3   : > { %5856 = vmatmul.mubr.bf16.gmra.mrb[188].mxu1 %v16111_v4  ;;  %4199 = vmatprep.mubr.bf16.mxu0 %v16116_v29  ;;  %v12067_v4 = vld [vmem:[%s20422_s14 + $0x148] sm:$0xff]  ;;  %v12086_v55 = vld [vmem:[%s20422_s14 + $0x1e0] sm:$0xff] }
 0x2e4   : > { %5865 = vmatprep.mubr.bf16.mxu1 %v16116_v29  ;;  %12382 = vperm.xlu0 %15887, %v12084_v27   ;;  %v12088_v27 = vld [vmem:[%s20422_s14 + $0x1f0] sm:$0xff] }
 0x2e5   : > { %v18441_v6 = vpop.f32.mrb[192].mxu0 }
 0x2e6   : > { %20605 = vst [vmem:[#allocation132_spill] sm:$0xff] %v18441_v6  ;;  %v5597_v37 = vpop.f32.mrb[192].mxu1  ;;  %v3933_v0 = vpop.f32.mrb[193].mxu0  ;;  %v16119_v6 = vld [vmem:[%s20409_s1 + $0x984] ss:$16 sps:$4 sm:$0xff]   ;;  %12297 = vperm.xlu1 %15888, %v12067_v4  }
 0x2e7   : > { %v5599_v25 = vpop.f32.mrb[193].mxu1  ;;  %v18451_v29 = vpop.f32.mrb[194].mxu0 }
 0x2e8   : > { %20607 = vst [vmem:[#allocation134_spill] sm:$0xff] %v18451_v29  ;;  %v5601_v37 = vpop.f32.mrb[194].mxu1  ;;  %v3937_v0 = vpop.f32.mrb[195].mxu0  ;;  %12392 = vperm.xlu0 %15887, %v12086_v55   ;;  %v12069_v25 = vld [vmem:[%s20422_s14 + $0x158] sm:$0xff]  ;;  %v16117_v55 = vld [vmem:[%s20409_s1 + $0x980] ss:$16 sps:$4 sm:$0xff]  }
 0x2e9   : > { %v5603_v23 = vpop.f32.mrb[195].mxu1  ;;  %v18465_v29 = vpop.permute.xlu0 %9804 }
 0x2ea   : > { %4200 = vmatmul.mubr.bf16.gmra.mrb[192].mxu0 %v16114_v44  ;;  %20608 = vst [vmem:[#allocation135_spill] sm:$0xff] %v18465_v29  ;;  %v18469_v37 = vpop.permute.xlu1 %8793  ;;  %12307 = vperm.xlu1 %15888, %v12069_v25  }
 0x2eb   : > { %5866 = vmatmul.mubr.bf16.gmra.mrb[192].mxu1 %v16114_v44  ;;  %4209 = vmatprep.mubr.bf16.mxu0 %v16119_v6  ;;  %20610 = vst [vmem:[#allocation137_spill] sm:$0xff] %v18469_v37  ;;  %v12071_v44 = vld [vmem:[%s20422_s14 + $0x168] sm:$0xff] }
 0x2ec   : > { %5875 = vmatprep.mubr.bf16.mxu1 %v16119_v6  ;;  %12402 = vperm.xlu0 %15887, %v12088_v27   ;;  %v12073_v27 = vld [vmem:[%s20422_s14 + $0x178] sm:$0xff] }
 0x2ed   : > { %v18467_v57 = vpop.f32.mrb[196].mxu0 }
 0x2ee   : > { %20609 = vst [vmem:[#allocation136_spill] sm:$0xff] %v18467_v57  ;;  %v5607_v23 = vpop.f32.mrb[196].mxu1  ;;  %v3943_v4 = vpop.f32.mrb[197].mxu0  ;;  %v16122_v57 = vld [vmem:[%s20409_s1 + $0x9a4] ss:$16 sps:$4 sm:$0xff]   ;;  %12317 = vperm.xlu1 %15888, %v12071_v44   ;;  %v12075_v44 = vld [vmem:[%s20422_s14 + $0x188] sm:$0xff] }
 0x2ef   : > { %v5609_v0 = vpop.f32.mrb[197].mxu1  ;;  %v18477_v6 = vpop.f32.mrb[198].mxu0 }
 0x2f0   : > { %20611 = vst [vmem:[#allocation138_spill] sm:$0xff] %v18477_v6  ;;  %v5611_v29 = vpop.f32.mrb[198].mxu1  ;;  %v3947_v25 = vpop.f32.mrb[199].mxu0 }
 0x2f1   : > { %v5613_v23 = vpop.f32.mrb[199].mxu1  ;;  %v18487_v0 = vpop.permute.xlu1 %8803  ;;  %v16120_v29 = vld [vmem:[%s20409_s1 + $0x9a0] ss:$16 sps:$4 sm:$0xff]  }
 0x2f2   : > { %4210 = vmatmul.mubr.bf16.gmra.mrb[196].mxu0 %v16117_v55  ;;  %20613 = vst [vmem:[#allocation140_spill] sm:$0xff] %v18487_v0  ;;  %12327 = vperm.xlu1 %15888, %v12073_v27  }
 0x2f3   : > { %5876 = vmatmul.mubr.bf16.gmra.mrb[196].mxu1 %v16117_v55  ;;  %4219 = vmatprep.mubr.bf16.mxu0 %v16122_v57 }
 0x2f4   : > { %5885 = vmatprep.mubr.bf16.mxu1 %v16122_v57  ;;  %v16125_v57 = vld [vmem:[%s20409_s1 + $0x9c4] ss:$16 sps:$4 sm:$0xff]  }
 0x2f5   : > { %v18485_v4 = vpop.f32.mrb[200].mxu0 }
 0x2f6   : > { %20612 = vst [vmem:[#allocation139_spill] sm:$0xff] %v18485_v4  ;;  %v5617_v6 = vpop.f32.mrb[200].mxu1  ;;  %v3953_v37 = vpop.f32.mrb[201].mxu0  ;;  %12337 = vperm.xlu1 %15888, %v12075_v44   ;;  %v12079_v44 = vld [vmem:[%s20422_s14 + $0x1a8] sm:$0xff] }
 0x2f7   : > { %v5619_v25 = vpop.f32.mrb[201].mxu1  ;;  %v18495_v23 = vpop.f32.mrb[202].mxu0  ;;  %v12077_v37 = vld [vmem:[%s20422_s14 + $0x198] sm:$0xff] }
 0x2f8   : > { %20614 = vst [vmem:[#allocation141_spill] sm:$0xff] %v18495_v23  ;;  %v5621_v55 = vpop.f32.mrb[202].mxu1  ;;  %v3957_v4 = vpop.f32.mrb[203].mxu0 }
 0x2f9   : > { %v5623_v27 = vpop.f32.mrb[203].mxu1  ;;  %v18505_v25 = vpop.permute.xlu1 %8813  ;;  %v16123_v4 = vld [vmem:[%s20409_s1 + $0x9c0] ss:$16 sps:$4 sm:$0xff]  }
 0x2fa   : > { %4220 = vmatmul.mubr.bf16.gmra.mrb[200].mxu0 %v16120_v29  ;;  %20616 = vst [vmem:[#allocation143_spill] sm:$0xff] %v18505_v25  ;;  %12347 = vperm.xlu1 %15888, %v12077_v37  }
 0x2fb   : > { %5886 = vmatmul.mubr.bf16.gmra.mrb[200].mxu1 %v16120_v29  ;;  %4229 = vmatprep.mubr.bf16.mxu0 %v16125_v57  ;;  %v16128_v29 = vld [vmem:[%s20409_s1 + $0x9e4] ss:$16 sps:$4 sm:$0xff]  }
 0x2fc   : > { %5895 = vmatprep.mubr.bf16.mxu1 %v16125_v57 }
 0x2fd   : > { %v18503_v6 = vpop.f32.mrb[204].mxu0 }
 0x2fe   : > { %20615 = vst [vmem:[#allocation142_spill] sm:$0xff] %v18503_v6  ;;  %v5627_v23 = vpop.f32.mrb[204].mxu1  ;;  %v3963_v0 = vpop.f32.mrb[205].mxu0  ;;  %12357 = vperm.xlu1 %15888, %v12079_v44   ;;  %v12083_v44 = vld [vmem:[%s20422_s14 + $0x1c8] sm:$0xff] }
 0x2ff   : > { %v5629_v55 = vpop.f32.mrb[205].mxu1  ;;  %v18513_v27 = vpop.f32.mrb[206].mxu0  ;;  %v12081_v0 = vld [vmem:[%s20422_s14 + $0x1b8] sm:$0xff] }
 0x300   : > { %20617 = vst [vmem:[#allocation144_spill] sm:$0xff] %v18513_v27  ;;  %v5631_v57 = vpop.f32.mrb[206].mxu1  ;;  %v3967_v6 = vpop.f32.mrb[207].mxu0 }
 0x301   : > { %v5633_v37 = vpop.f32.mrb[207].mxu1  ;;  %v18521_v23 = vpop.permute.xlu1 %8823  ;;  %v16126_v6 = vld [vmem:[%s20409_s1 + $0x9e0] ss:$16 sps:$4 sm:$0xff]  }
 0x302   : > { %4230 = vmatmul.mubr.bf16.gmra.mrb[204].mxu0 %v16123_v4  ;;  %20618 = vst [vmem:[#allocation145_spill] sm:$0xff] %v18521_v23  ;;  %12367 = vperm.xlu1 %15888, %v12081_v0  }
 0x303   : > { %5896 = vmatmul.mubr.bf16.gmra.mrb[204].mxu1 %v16123_v4  ;;  %4239 = vmatprep.mubr.bf16.mxu0 %v16128_v29  ;;  %v16131_v4 = vld [vmem:[%s20409_s1 + $0xc] ss:$16 sps:$4 sm:$0xff]  }
 0x304   : > { %5905 = vmatprep.mubr.bf16.mxu1 %v16128_v29 }
 0x305   : > { %v18523_v55 = vpop.f32.mrb[208].mxu0 }
 0x306   : > { %20619 = vst [vmem:[#allocation146_spill] sm:$0xff] %v18523_v55  ;;  %v5637_v27 = vpop.f32.mrb[208].mxu1  ;;  %v3973_v25 = vpop.f32.mrb[209].mxu0  ;;  %12377 = vperm.xlu1 %15888, %v12083_v44   ;;  %v16132_v44 = vld [vmem:[%s20409_s1 + $0x2c] ss:$16 sps:$4 sm:$0xff]  }
 0x307   : > { %v5639_v57 = vpop.f32.mrb[209].mxu1  ;;  %v18531_v37 = vpop.f32.mrb[210].mxu0  ;;  %v12085_v25 = vld [vmem:[%s20422_s14 + $0x1d8] sm:$0xff] }
 0x308   : > { %20620 = vst [vmem:[#allocation147_spill] sm:$0xff] %v18531_v37  ;;  %v5641_v29 = vpop.f32.mrb[210].mxu1  ;;  %v3977_v55 = vpop.f32.mrb[211].mxu0  ;;  %v16129_v57 = vld [vmem:[%s20409_s1 + $0x8] ss:$16 sps:$4 sm:$0xff]  }
 0x309   : > { %v5643_v0 = vpop.f32.mrb[211].mxu1  ;;  %v18536_v27 = vpop.permute.xlu1 %9789  ;;  %v12087_v55 = vld [vmem:[%s20422_s14 + $0x1e8] sm:$0xff] }
 0x30a   : > { %20621 = vst [vmem:[#allocation148_spill] sm:$0xff] %v18536_v27  ;;  %4240 = vmatmul.mubr.bf16.gmra.mrb[208].mxu0 %v16126_v6  ;;  %12387 = vperm.xlu1 %15888, %v12085_v25   ;;  %v16134_v0 = vld [vmem:[%s20409_s1 + $0x28] ss:$16 sps:$4 sm:$0xff]   ;;  %v16135_v25 = vld [vmem:[%s20409_s1 + $0x4c] ss:$16 sps:$4 sm:$0xff]  }
 0x30b   : > { %5906 = vmatmul.mubr.bf16.gmra.mrb[208].mxu1 %v16126_v6  ;;  %4282 = vmatprep.mubr.bf16.mxu0 %v16131_v4  ;;  %v12089_v6 = vld [vmem:[%s20422_s14 + $0x1f8] sm:$0xff] }
 0x30c   : > { %5948 = vmatprep.mubr.bf16.mxu1 %v16131_v4 }
 0x30d   : > { %v18550_v29 = vpop.permute.xlu1 %9799 }
 0x30e   : > { %20622 = vst [vmem:[#allocation149_spill] sm:$0xff] %v18550_v29  ;;  %12397 = vperm.xlu1 %15888, %v12087_v55   ;;  %v16138_v55 = vld [vmem:[%s20409_s1 + $0x6c] ss:$16 sps:$4 sm:$0xff]  }
 0x311   : > { %v18555_v4 = vpop.permute.xlu1 %9809 }
 0x312   : > { %4283 = vmatmul.mubr.bf16.vlgmr.msra.gmra.mrb[0].mxu0 %v16129_v57  ;;  %20623 = vst [vmem:[#allocation150_spill] sm:$0xff] %v18555_v4  ;;  %12407 = vperm.xlu1 %15888, %v12089_v6   ;;  %v16141_v6 = vld [vmem:[%s20409_s1 + $0x8c] ss:$16 sps:$4 sm:$0xff]  }
 0x313   : > { %5949 = vmatmul.mubr.bf16.vlgmr.msra.gmra.mrb[0].mxu1 %v16129_v57  ;;  %4292 = vmatprep.mubr.bf16.mxu0 %v16132_v44  ;;  %v16137_v57 = vld [vmem:[%s20409_s1 + $0x48] ss:$16 sps:$4 sm:$0xff]  }
 0x314   : > { %5958 = vmatprep.mubr.bf16.mxu1 %v16132_v44  ;;  %v16140_v44 = vld [vmem:[%s20409_s1 + $0x68] ss:$16 sps:$4 sm:$0xff]  }
 0x31a   : > { %4293 = vmatmul.mubr.bf16.gmra.mrb[4].mxu0 %v16134_v0 }
 0x31b   : > { %5959 = vmatmul.mubr.bf16.gmra.mrb[4].mxu1 %v16134_v0  ;;  %4302 = vmatprep.mubr.bf16.mxu0 %v16135_v25  ;;  %v16143_v0 = vld [vmem:[%s20409_s1 + $0x88] ss:$16 sps:$4 sm:$0xff]  }
 0x31c   : > { %5968 = vmatprep.mubr.bf16.mxu1 %v16135_v25  ;;  %v16144_v25 = vld [vmem:[%s20409_s1 + $0xac] ss:$16 sps:$4 sm:$0xff]  }
 0x322   : > { %4303 = vmatmul.mubr.bf16.gmra.mrb[8].mxu0 %v16137_v57 }
 0x323   : > { %5969 = vmatmul.mubr.bf16.gmra.mrb[8].mxu1 %v16137_v57  ;;  %4312 = vmatprep.mubr.bf16.mxu0 %v16138_v55  ;;  %v16146_v57 = vld [vmem:[%s20409_s1 + $0xa8] ss:$16 sps:$4 sm:$0xff]  }
 0x324   : > { %5978 = vmatprep.mubr.bf16.mxu1 %v16138_v55  ;;  %v16147_v55 = vld [vmem:[%s20409_s1 + $0xcc] ss:$16 sps:$4 sm:$0xff]  }
 0x32a   : > { %4313 = vmatmul.mubr.bf16.gmra.mrb[12].mxu0 %v16140_v44 }
 0x32b   : > { %5979 = vmatmul.mubr.bf16.gmra.mrb[12].mxu1 %v16140_v44  ;;  %4322 = vmatprep.mubr.bf16.mxu0 %v16141_v6  ;;  %v16149_v44 = vld [vmem:[%s20409_s1 + $0xc8] ss:$16 sps:$4 sm:$0xff]  }
 0x32c   : > { %5988 = vmatprep.mubr.bf16.mxu1 %v16141_v6  ;;  %v16150_v6 = vld [vmem:[%s20409_s1 + $0xec] ss:$16 sps:$4 sm:$0xff]  }
 0x332   : > { %4323 = vmatmul.mubr.bf16.gmra.mrb[16].mxu0 %v16143_v0 }
 0x333   : > { %5989 = vmatmul.mubr.bf16.gmra.mrb[16].mxu1 %v16143_v0  ;;  %4332 = vmatprep.mubr.bf16.mxu0 %v16144_v25  ;;  %v16152_v0 = vld [vmem:[%s20409_s1 + $0xe8] ss:$16 sps:$4 sm:$0xff]  }
 0x334   : > { %5998 = vmatprep.mubr.bf16.mxu1 %v16144_v25  ;;  %v16153_v25 = vld [vmem:[%s20409_s1 + $0x10c] ss:$16 sps:$4 sm:$0xff]  }
 0x33a   : > { %4333 = vmatmul.mubr.bf16.gmra.mrb[20].mxu0 %v16146_v57 }
 0x33b   : > { %5999 = vmatmul.mubr.bf16.gmra.mrb[20].mxu1 %v16146_v57  ;;  %4342 = vmatprep.mubr.bf16.mxu0 %v16147_v55  ;;  %v16155_v57 = vld [vmem:[%s20409_s1 + $0x108] ss:$16 sps:$4 sm:$0xff]  }
 0x33c   : > { %6008 = vmatprep.mubr.bf16.mxu1 %v16147_v55  ;;  %v16156_v55 = vld [vmem:[%s20409_s1 + $0x12c] ss:$16 sps:$4 sm:$0xff]  }
 0x342   : > { %4343 = vmatmul.mubr.bf16.gmra.mrb[24].mxu0 %v16149_v44 }
 0x343   : > { %6009 = vmatmul.mubr.bf16.gmra.mrb[24].mxu1 %v16149_v44  ;;  %4352 = vmatprep.mubr.bf16.mxu0 %v16150_v6  ;;  %v16158_v44 = vld [vmem:[%s20409_s1 + $0x128] ss:$16 sps:$4 sm:$0xff]  }
 0x344   : > { %6018 = vmatprep.mubr.bf16.mxu1 %v16150_v6  ;;  %v16159_v6 = vld [vmem:[%s20409_s1 + $0x14c] ss:$16 sps:$4 sm:$0xff]  }
 0x34a   : > { %4353 = vmatmul.mubr.bf16.gmra.mrb[28].mxu0 %v16152_v0 }
 0x34b   : > { %6019 = vmatmul.mubr.bf16.gmra.mrb[28].mxu1 %v16152_v0  ;;  %4362 = vmatprep.mubr.bf16.mxu0 %v16153_v25  ;;  %v16161_v0 = vld [vmem:[%s20409_s1 + $0x148] ss:$16 sps:$4 sm:$0xff]  }
 0x34c   : > { %6028 = vmatprep.mubr.bf16.mxu1 %v16153_v25  ;;  %v16162_v25 = vld [vmem:[%s20409_s1 + $0x16c] ss:$16 sps:$4 sm:$0xff]  }
 0x352   : > { %4363 = vmatmul.mubr.bf16.gmra.mrb[32].mxu0 %v16155_v57 }
 0x353   : > { %6029 = vmatmul.mubr.bf16.gmra.mrb[32].mxu1 %v16155_v57  ;;  %4372 = vmatprep.mubr.bf16.mxu0 %v16156_v55  ;;  %v16164_v57 = vld [vmem:[%s20409_s1 + $0x168] ss:$16 sps:$4 sm:$0xff]  }
 0x354   : > { %6038 = vmatprep.mubr.bf16.mxu1 %v16156_v55  ;;  %v16165_v55 = vld [vmem:[%s20409_s1 + $0x18c] ss:$16 sps:$4 sm:$0xff]  }
 0x35a   : > { %4373 = vmatmul.mubr.bf16.gmra.mrb[36].mxu0 %v16158_v44 }
 0x35b   : > { %6039 = vmatmul.mubr.bf16.gmra.mrb[36].mxu1 %v16158_v44  ;;  %4382 = vmatprep.mubr.bf16.mxu0 %v16159_v6  ;;  %v16167_v44 = vld [vmem:[%s20409_s1 + $0x188] ss:$16 sps:$4 sm:$0xff]  }
 0x35c   : > { %6048 = vmatprep.mubr.bf16.mxu1 %v16159_v6  ;;  %v16168_v6 = vld [vmem:[%s20409_s1 + $0x1ac] ss:$16 sps:$4 sm:$0xff]  }
 0x362   : > { %4383 = vmatmul.mubr.bf16.gmra.mrb[40].mxu0 %v16161_v0 }
 0x363   : > { %6049 = vmatmul.mubr.bf16.gmra.mrb[40].mxu1 %v16161_v0  ;;  %4392 = vmatprep.mubr.bf16.mxu0 %v16162_v25  ;;  %v16170_v0 = vld [vmem:[%s20409_s1 + $0x1a8] ss:$16 sps:$4 sm:$0xff]  }
 0x364   : > { %6058 = vmatprep.mubr.bf16.mxu1 %v16162_v25  ;;  %v16171_v25 = vld [vmem:[%s20409_s1 + $0x1cc] ss:$16 sps:$4 sm:$0xff]  }
 0x36a   : > { %4393 = vmatmul.mubr.bf16.gmra.mrb[44].mxu0 %v16164_v57 }
 0x36b   : > { %6059 = vmatmul.mubr.bf16.gmra.mrb[44].mxu1 %v16164_v57  ;;  %4402 = vmatprep.mubr.bf16.mxu0 %v16165_v55  ;;  %v16173_v57 = vld [vmem:[%s20409_s1 + $0x1c8] ss:$16 sps:$4 sm:$0xff]  }
 0x36c   : > { %6068 = vmatprep.mubr.bf16.mxu1 %v16165_v55  ;;  %v16174_v55 = vld [vmem:[%s20409_s1 + $0x1ec] ss:$16 sps:$4 sm:$0xff]  }
 0x372   : > { %4403 = vmatmul.mubr.bf16.gmra.mrb[48].mxu0 %v16167_v44 }
 0x373   : > { %6069 = vmatmul.mubr.bf16.gmra.mrb[48].mxu1 %v16167_v44  ;;  %4412 = vmatprep.mubr.bf16.mxu0 %v16168_v6  ;;  %v16176_v44 = vld [vmem:[%s20409_s1 + $0x1e8] ss:$16 sps:$4 sm:$0xff]  }
 0x374   : > { %6078 = vmatprep.mubr.bf16.mxu1 %v16168_v6  ;;  %v16177_v6 = vld [vmem:[%s20409_s1 + $0x20c] ss:$16 sps:$4 sm:$0xff]  }
 0x37a   : > { %4413 = vmatmul.mubr.bf16.gmra.mrb[52].mxu0 %v16170_v0 }
 0x37b   : > { %6079 = vmatmul.mubr.bf16.gmra.mrb[52].mxu1 %v16170_v0  ;;  %4422 = vmatprep.mubr.bf16.mxu0 %v16171_v25  ;;  %v16179_v0 = vld [vmem:[%s20409_s1 + $0x208] ss:$16 sps:$4 sm:$0xff]  }
 0x37c   : > { %6088 = vmatprep.mubr.bf16.mxu1 %v16171_v25  ;;  %v16180_v25 = vld [vmem:[%s20409_s1 + $0x22c] ss:$16 sps:$4 sm:$0xff]  }
 0x382   : > { %4423 = vmatmul.mubr.bf16.gmra.mrb[56].mxu0 %v16173_v57 }
 0x383   : > { %6089 = vmatmul.mubr.bf16.gmra.mrb[56].mxu1 %v16173_v57  ;;  %4432 = vmatprep.mubr.bf16.mxu0 %v16174_v55  ;;  %v16182_v57 = vld [vmem:[%s20409_s1 + $0x228] ss:$16 sps:$4 sm:$0xff]  }
 0x384   : > { %6098 = vmatprep.mubr.bf16.mxu1 %v16174_v55  ;;  %v16183_v55 = vld [vmem:[%s20409_s1 + $0x24c] ss:$16 sps:$4 sm:$0xff]  }
 0x38a   : > { %4433 = vmatmul.mubr.bf16.gmra.mrb[60].mxu0 %v16176_v44 }
 0x38b   : > { %6099 = vmatmul.mubr.bf16.gmra.mrb[60].mxu1 %v16176_v44  ;;  %4442 = vmatprep.mubr.bf16.mxu0 %v16177_v6  ;;  %v16185_v44 = vld [vmem:[%s20409_s1 + $0x248] ss:$16 sps:$4 sm:$0xff]  }
 0x38c   : > { %6108 = vmatprep.mubr.bf16.mxu1 %v16177_v6  ;;  %v16186_v6 = vld [vmem:[%s20409_s1 + $0x26c] ss:$16 sps:$4 sm:$0xff]  }
 0x392   : > { %4443 = vmatmul.mubr.bf16.gmra.mrb[64].mxu0 %v16179_v0 }
 0x393   : > { %6109 = vmatmul.mubr.bf16.gmra.mrb[64].mxu1 %v16179_v0  ;;  %4452 = vmatprep.mubr.bf16.mxu0 %v16180_v25  ;;  %v16188_v0 = vld [vmem:[%s20409_s1 + $0x268] ss:$16 sps:$4 sm:$0xff]  }
 0x394   : > { %6118 = vmatprep.mubr.bf16.mxu1 %v16180_v25  ;;  %v16189_v25 = vld [vmem:[%s20409_s1 + $0x28c] ss:$16 sps:$4 sm:$0xff]  }
 0x39a   : > { %4453 = vmatmul.mubr.bf16.gmra.mrb[68].mxu0 %v16182_v57 }
 0x39b   : > { %6119 = vmatmul.mubr.bf16.gmra.mrb[68].mxu1 %v16182_v57  ;;  %4462 = vmatprep.mubr.bf16.mxu0 %v16183_v55  ;;  %v16191_v57 = vld [vmem:[%s20409_s1 + $0x288] ss:$16 sps:$4 sm:$0xff]  }
 0x39c   : > { %6128 = vmatprep.mubr.bf16.mxu1 %v16183_v55  ;;  %v16192_v55 = vld [vmem:[%s20409_s1 + $0x2ac] ss:$16 sps:$4 sm:$0xff]  }
 0x3a2   : > { %4463 = vmatmul.mubr.bf16.gmra.mrb[72].mxu0 %v16185_v44 }
 0x3a3   : > { %6129 = vmatmul.mubr.bf16.gmra.mrb[72].mxu1 %v16185_v44  ;;  %4472 = vmatprep.mubr.bf16.mxu0 %v16186_v6  ;;  %v16194_v44 = vld [vmem:[%s20409_s1 + $0x2a8] ss:$16 sps:$4 sm:$0xff]  }
 0x3a4   : > { %6138 = vmatprep.mubr.bf16.mxu1 %v16186_v6  ;;  %v16195_v6 = vld [vmem:[%s20409_s1 + $0x2cc] ss:$16 sps:$4 sm:$0xff]  }
 0x3aa   : > { %4473 = vmatmul.mubr.bf16.gmra.mrb[76].mxu0 %v16188_v0 }
 0x3ab   : > { %6139 = vmatmul.mubr.bf16.gmra.mrb[76].mxu1 %v16188_v0  ;;  %4482 = vmatprep.mubr.bf16.mxu0 %v16189_v25  ;;  %v16197_v0 = vld [vmem:[%s20409_s1 + $0x2c8] ss:$16 sps:$4 sm:$0xff]  }
 0x3ac   : > { %6148 = vmatprep.mubr.bf16.mxu1 %v16189_v25  ;;  %v16198_v25 = vld [vmem:[%s20409_s1 + $0x2ec] ss:$16 sps:$4 sm:$0xff]  }
 0x3b2   : > { %4483 = vmatmul.mubr.bf16.gmra.mrb[80].mxu0 %v16191_v57 }
 0x3b3   : > { %6149 = vmatmul.mubr.bf16.gmra.mrb[80].mxu1 %v16191_v57  ;;  %4492 = vmatprep.mubr.bf16.mxu0 %v16192_v55  ;;  %v16200_v57 = vld [vmem:[%s20409_s1 + $0x2e8] ss:$16 sps:$4 sm:$0xff]  }
 0x3b4   : > { %6158 = vmatprep.mubr.bf16.mxu1 %v16192_v55  ;;  %v16201_v55 = vld [vmem:[%s20409_s1 + $0x30c] ss:$16 sps:$4 sm:$0xff]  }
 0x3ba   : > { %4493 = vmatmul.mubr.bf16.gmra.mrb[84].mxu0 %v16194_v44 }
 0x3bb   : > { %6159 = vmatmul.mubr.bf16.gmra.mrb[84].mxu1 %v16194_v44  ;;  %4502 = vmatprep.mubr.bf16.mxu0 %v16195_v6  ;;  %v16203_v44 = vld [vmem:[%s20409_s1 + $0x308] ss:$16 sps:$4 sm:$0xff]  }
 0x3bc   : > { %6168 = vmatprep.mubr.bf16.mxu1 %v16195_v6  ;;  %v16204_v6 = vld [vmem:[%s20409_s1 + $0x32c] ss:$16 sps:$4 sm:$0xff]  }
 0x3c2   : > { %4503 = vmatmul.mubr.bf16.gmra.mrb[88].mxu0 %v16197_v0 }
 0x3c3   : > { %6169 = vmatmul.mubr.bf16.gmra.mrb[88].mxu1 %v16197_v0  ;;  %4512 = vmatprep.mubr.bf16.mxu0 %v16198_v25  ;;  %v16206_v0 = vld [vmem:[%s20409_s1 + $0x328] ss:$16 sps:$4 sm:$0xff]  }
 0x3c4   : > { %6178 = vmatprep.mubr.bf16.mxu1 %v16198_v25  ;;  %v16207_v25 = vld [vmem:[%s20409_s1 + $0x34c] ss:$16 sps:$4 sm:$0xff]  }
 0x3ca   : > { %4513 = vmatmul.mubr.bf16.gmra.mrb[92].mxu0 %v16200_v57 }
 0x3cb   : > { %6179 = vmatmul.mubr.bf16.gmra.mrb[92].mxu1 %v16200_v57  ;;  %4522 = vmatprep.mubr.bf16.mxu0 %v16201_v55  ;;  %v16209_v57 = vld [vmem:[%s20409_s1 + $0x348] ss:$16 sps:$4 sm:$0xff]  }
 0x3cc   : > { %6188 = vmatprep.mubr.bf16.mxu1 %v16201_v55  ;;  %v16210_v55 = vld [vmem:[%s20409_s1 + $0x36c] ss:$16 sps:$4 sm:$0xff]  }
 0x3d2   : > { %4523 = vmatmul.mubr.bf16.gmra.mrb[96].mxu0 %v16203_v44 }
 0x3d3   : > { %6189 = vmatmul.mubr.bf16.gmra.mrb[96].mxu1 %v16203_v44  ;;  %4532 = vmatprep.mubr.bf16.mxu0 %v16204_v6 }
 0x3d4   : > { %6198 = vmatprep.mubr.bf16.mxu1 %v16204_v6 }
 0x3da   : > { %4533 = vmatmul.mubr.bf16.gmra.mrb[100].mxu0 %v16206_v0 }
 0x3db   : > { %6199 = vmatmul.mubr.bf16.gmra.mrb[100].mxu1 %v16206_v0  ;;  %4542 = vmatprep.mubr.bf16.mxu0 %v16207_v25  ;;  %v16212_v0 = vld [vmem:[%s20409_s1 + $0x368] ss:$16 sps:$4 sm:$0xff]  }
 0x3dc   : > { %6208 = vmatprep.mubr.bf16.mxu1 %v16207_v25 }
 0x3e2   : > { %4543 = vmatmul.mubr.bf16.gmra.mrb[104].mxu0 %v16209_v57 }
 0x3e3   : > { %6209 = vmatmul.mubr.bf16.gmra.mrb[104].mxu1 %v16209_v57  ;;  %4552 = vmatprep.mubr.bf16.mxu0 %v16210_v55  ;;  %v16213_v57 = vld [vmem:[%s20409_s1 + $0x38c] ss:$16 sps:$4 sm:$0xff]  }
 0x3e4   : > { %6218 = vmatprep.mubr.bf16.mxu1 %v16210_v55 }
 0x3e5   : > { %v4284_v44 = vpop.f32.mrb[0].mxu0 }
 0x3e6   : > { %v6941_v6 = vadd.f32 %v17511_v39, %v4284_v44  ;;  %v5950_v37 = vpop.f32.mrb[0].mxu1  ;;  %v4286_v4 = vpop.f32.mrb[1].mxu0 }
 0x3e7   : > { %v6943_v25 = vadd.f32 %v17511_v39, %v5950_v37  ;;  %v6942_v29 = vadd.f32 %v17511_v39, %v4286_v4  ;;  %v5952_v27 = vpop.f32.mrb[1].mxu1  ;;  %v4288_v23 = vpop.f32.mrb[2].mxu0 }
 0x3e8   : > { %v6944_v55 = vadd.f32 %v17511_v39, %v5952_v27  ;;  %v6945_v44 = vadd.f32 %v17525_v45, %v4288_v23  ;;  %v5954_v43 = vpop.f32.mrb[2].mxu1  ;;  %v4290_v63 = vpop.f32.mrb[3].mxu0  ;;  %v7069_v37 = vmax.f32 %v6941_v6, 0.0 }
 0x3e9   : > { %v6947_v40 = vadd.f32 %v17525_v45, %v5954_v43  ;;  %v6946_v17 = vadd.f32 %v17525_v45, %v4290_v63  ;;  %v5956_v11 = vpop.f32.mrb[3].mxu1  ;;  %v7071_v12 = vmax.f32 %v6943_v25, 0.0  ;;  %v7070_v13 = vmax.f32 %v6942_v29, 0.0 }
 0x3ea   : > { %v7073_v56 = vmax.f32 %v6945_v44, 0.0  ;;  %v6948_v4 = vadd.f32 %v17525_v45, %v5956_v11  ;;  %4553 = vmatmul.mubr.bf16.gmra.mrb[108].mxu0 %v16212_v0  ;;  %v7072_v39 = vmax.f32 %v6944_v55, 0.0  ;;  %v16215_v45 = vld [vmem:[%s20409_s1 + $0x388] ss:$16 sps:$4 sm:$0xff]  }
 0x3eb   : > { %v7075_v2 = vmax.f32 %v6947_v40, 0.0  ;;  %6219 = vmatmul.mubr.bf16.gmra.mrb[108].mxu1 %v16212_v0  ;;  %v7074_v47 = vmax.f32 %v6946_v17, 0.0  ;;  %4562 = vmatprep.mubr.bf16.mxu0 %v16213_v57 }
 0x3ec   : > { %v7076_v23 = vmax.f32 %v6948_v4, 0.0  ;;  %v7205_v27 = vpack.c.bf16 %v7073_v56, %v7069_v37  ;;  %6228 = vmatprep.mubr.bf16.mxu1 %v16213_v57  ;;  %v16216_v56 = vld [vmem:[%s20409_s1 + $0x3ac] ss:$16 sps:$4 sm:$0xff]  }
 0x3ed   : > { %v4294_v5 = vpop.f32.mrb[4].mxu0  ;;  %v7206_v43 = vpack.c.bf16 %v7074_v47, %v7070_v13  ;;  %v7207_v32 = vpack.c.bf16 %v7075_v2, %v7071_v12 }
 0x3ee   : > { %v6949_v63 = vadd.f32 %v17635_v30, %v4294_v5  ;;  %v5960_v6 = vpop.f32.mrb[4].mxu1  ;;  %v4296_v44 = vpop.f32.mrb[5].mxu0  ;;  %v7208_v59 = vpack.c.bf16 %v7076_v23, %v7072_v39 }
 0x3ef   : > { %v6951_v11 = vadd.f32 %v17635_v30, %v5960_v6  ;;  %v6950_v17 = vadd.f32 %v17635_v30, %v4296_v44  ;;  %v5962_v40 = vpop.f32.mrb[5].mxu1  ;;  %v4298_v29 = vpop.f32.mrb[6].mxu0  ;;  %7357 = vmatprep.subr.bf16.mxu0 %v7206_v43 }
 0x3f0   : > { %v6952_v47 = vadd.f32 %v17635_v30, %v5962_v40  ;;  %v6953_v5 = vadd.f32 %v17648_v35, %v4298_v29  ;;  %v5964_v13 = vpop.f32.mrb[6].mxu1  ;;  %7430 = vmatprep.subr.bf16.mxu1 %v7208_v59  ;;  %v4300_v2 = vpop.f32.mrb[7].mxu0  ;;  %7358 = vmatpush1.bf16.msra.mxu0 %v7205_v27  ;;  %v7077_v57 = vmax.f32 %v6949_v63, 0.0 }
 0x3f1   : > { %v6955_v12 = vadd.f32 %v17648_v35, %v5964_v13  ;;  %v6954_v0 = vadd.f32 %v17648_v35, %v4300_v2  ;;  %v5966_v25 = vpop.f32.mrb[7].mxu1  ;;  %7431 = vmatpush1.bf16.msra.mxu1 %v7207_v32  ;;  %v7079_v4 = vmax.f32 %v6951_v11, 0.0  ;;  %v7078_v30 = vmax.f32 %v6950_v17, 0.0 }
 0x3f2   : > { %v7081_v55 = vmax.f32 %v6953_v5, 0.0  ;;  %v6956_v37 = vadd.f32 %v17648_v35, %v5966_v25  ;;  %4563 = vmatmul.mubr.bf16.gmra.mrb[112].mxu0 %v16215_v45  ;;  %v7080_v59 = vmax.f32 %v6952_v47, 0.0  ;;  %v16218_v35 = vld [vmem:[%s20409_s1 + $0x3a8] ss:$16 sps:$4 sm:$0xff]  }
 0x3f3   : > { %v7083_v39 = vmax.f32 %v6955_v12, 0.0  ;;  %6229 = vmatmul.mubr.bf16.gmra.mrb[112].mxu1 %v16215_v45  ;;  %v7082_v23 = vmax.f32 %v6954_v0, 0.0  ;;  %4572 = vmatprep.mubr.bf16.mxu0 %v16216_v56 }
 0x3f4   : > { %v7084_v43 = vmax.f32 %v6956_v37, 0.0  ;;  %v7209_v27 = vpack.c.bf16 %v7081_v55, %v7077_v57  ;;  %6238 = vmatprep.mubr.bf16.mxu1 %v16216_v56  ;;  %v16219_v56 = vld [vmem:[%s20409_s1 + $0x3cc] ss:$16 sps:$4 sm:$0xff]  }
 0x3f5   : > { %v4304_v6 = vpop.f32.mrb[8].mxu0  ;;  %v7210_v44 = vpack.c.bf16 %v7082_v23, %v7078_v30  ;;  %v7211_v40 = vpack.c.bf16 %v7083_v39, %v7079_v4 }
 0x3f6   : > { %v6957_v32 = vadd.f32 %v17545_v52, %v4304_v6  ;;  %v5970_v63 = vpop.f32.mrb[8].mxu1  ;;  %v4306_v29 = vpop.f32.mrb[9].mxu0  ;;  %v7212_v5 = vpack.c.bf16 %v7084_v43, %v7080_v59 }
 0x3f7   : > { %v6959_v45 = vadd.f32 %v17545_v52, %v5970_v63  ;;  %v6958_v11 = vadd.f32 %v17545_v52, %v4306_v29  ;;  %v5972_v17 = vpop.f32.mrb[9].mxu1  ;;  %v4308_v47 = vpop.f32.mrb[10].mxu0  ;;  %7359 = vmatprep.subr.bf16.mxu0 %v7210_v44 }
 0x3f8   : > { %v6960_v13 = vadd.f32 %v17545_v52, %v5972_v17  ;;  %v6961_v2 = vadd.f32 %v17661_v41, %v4308_v47  ;;  %v5974_v12 = vpop.f32.mrb[10].mxu1  ;;  %7432 = vmatprep.subr.bf16.mxu1 %v7212_v5  ;;  %v4310_v0 = vpop.f32.mrb[11].mxu0  ;;  %7360 = vmatpush1.bf16.msra.mxu0 %v7209_v27  ;;  %v7085_v37 = vmax.f32 %v6957_v32, 0.0 }
 0x3f9   : > { %v6963_v25 = vadd.f32 %v17661_v41, %v5974_v12  ;;  %v6962_v57 = vadd.f32 %v17661_v41, %v4310_v0  ;;  %v5976_v55 = vpop.f32.mrb[11].mxu1  ;;  %7433 = vmatpush1.bf16.msra.mxu1 %v7211_v40  ;;  %v7087_v30 = vmax.f32 %v6959_v45, 0.0  ;;  %v7086_v52 = vmax.f32 %v6958_v11, 0.0 }
 0x3fa   : > { %v7089_v4 = vmax.f32 %v6961_v2, 0.0  ;;  %v6964_v39 = vadd.f32 %v17661_v41, %v5976_v55  ;;  %4573 = vmatmul.mubr.bf16.gmra.mrb[116].mxu0 %v16218_v35  ;;  %v7088_v43 = vmax.f32 %v6960_v13, 0.0  ;;  %v16221_v41 = vld [vmem:[%s20409_s1 + $0x3c8] ss:$16 sps:$4 sm:$0xff]  }
 0x3fb   : > { %v7091_v23 = vmax.f32 %v6963_v25, 0.0  ;;  %6239 = vmatmul.mubr.bf16.gmra.mrb[116].mxu1 %v16218_v35  ;;  %v7090_v59 = vmax.f32 %v6962_v57, 0.0  ;;  %4582 = vmatprep.mubr.bf16.mxu0 %v16219_v56 }
 0x3fc   : > { %v7092_v6 = vmax.f32 %v6964_v39, 0.0  ;;  %v7213_v27 = vpack.c.bf16 %v7089_v4, %v7085_v37  ;;  %6248 = vmatprep.mubr.bf16.mxu1 %v16219_v56  ;;  %v16222_v56 = vld [vmem:[%s20409_s1 + $0x3ec] ss:$16 sps:$4 sm:$0xff]  }
 0x3fd   : > { %v4314_v44 = vpop.f32.mrb[12].mxu0  ;;  %v7214_v63 = vpack.c.bf16 %v7090_v59, %v7086_v52  ;;  %v7215_v29 = vpack.c.bf16 %v7091_v23, %v7087_v30 }
 0x3fe   : > { %v6965_v40 = vadd.f32 %v17547_v53, %v4314_v44  ;;  %v5980_v32 = vpop.f32.mrb[12].mxu1  ;;  %v4316_v5 = vpop.f32.mrb[13].mxu0  ;;  %v7216_v17 = vpack.c.bf16 %v7092_v6, %v7088_v43 }
 0x3ff   : > { %v6967_v35 = vadd.f32 %v17547_v53, %v5980_v32  ;;  %v6966_v45 = vadd.f32 %v17547_v53, %v4316_v5  ;;  %v5982_v11 = vpop.f32.mrb[13].mxu1  ;;  %v4318_v47 = vpop.f32.mrb[14].mxu0  ;;  %7361 = vmatprep.subr.bf16.mxu0 %v7214_v63 }
 0x400   : > { %v6968_v13 = vadd.f32 %v17547_v53, %v5982_v11  ;;  %v6969_v2 = vadd.f32 %v17674_v48, %v4318_v47  ;;  %v5984_v12 = vpop.f32.mrb[14].mxu1  ;;  %7434 = vmatprep.subr.bf16.mxu1 %v7216_v17  ;;  %v4320_v0 = vpop.f32.mrb[15].mxu0  ;;  %7362 = vmatpush1.bf16.msra.mxu0 %v7213_v27  ;;  %v7093_v37 = vmax.f32 %v6965_v40, 0.0  ;;  %v16225_v11 = vld [vmem:[%s20409_s1 + $0x40c] ss:$16 sps:$4 sm:$0xff]  }
 0x401   : > { %v6971_v25 = vadd.f32 %v17674_v48, %v5984_v12  ;;  %v6970_v57 = vadd.f32 %v17674_v48, %v4320_v0  ;;  %v5986_v55 = vpop.f32.mrb[15].mxu1  ;;  %7435 = vmatpush1.bf16.msra.mxu1 %v7215_v29  ;;  %v7095_v30 = vmax.f32 %v6967_v35, 0.0  ;;  %v7094_v53 = vmax.f32 %v6966_v45, 0.0 }
 0x402   : > { %v7097_v4 = vmax.f32 %v6969_v2, 0.0  ;;  %v6972_v39 = vadd.f32 %v17674_v48, %v5986_v55  ;;  %4583 = vmatmul.mubr.bf16.gmra.mrb[120].mxu0 %v16221_v41  ;;  %v7096_v59 = vmax.f32 %v6968_v13, 0.0  ;;  %v16224_v48 = vld [vmem:[%s20409_s1 + $0x3e8] ss:$16 sps:$4 sm:$0xff]  }
 0x403   : > { %v7099_v23 = vmax.f32 %v6971_v25, 0.0  ;;  %6249 = vmatmul.mubr.bf16.gmra.mrb[120].mxu1 %v16221_v41  ;;  %v7098_v52 = vmax.f32 %v6970_v57, 0.0  ;;  %4592 = vmatprep.mubr.bf16.mxu0 %v16222_v56 }
 0x404   : > { %v7100_v43 = vmax.f32 %v6972_v39, 0.0  ;;  %v7217_v6 = vpack.c.bf16 %v7097_v4, %v7093_v37  ;;  %6258 = vmatprep.mubr.bf16.mxu1 %v16222_v56 }
 0x405   : > { %v4324_v27 = vpop.f32.mrb[16].mxu0  ;;  %v7218_v44 = vpack.c.bf16 %v7098_v52, %v7094_v53  ;;  %v7219_v63 = vpack.c.bf16 %v7099_v23, %v7095_v30 }
 0x406   : > { %v6973_v29 = vadd.f32 %v17575_v7, %v4324_v27  ;;  %v5990_v40 = vpop.f32.mrb[16].mxu1  ;;  %v4326_v32 = vpop.f32.mrb[17].mxu0  ;;  %v7220_v5 = vpack.c.bf16 %v7100_v43, %v7096_v59 }
 0x407   : > { %v6975_v17 = vadd.f32 %v17575_v7, %v5990_v40  ;;  %v6974_v41 = vadd.f32 %v17575_v7, %v4326_v32  ;;  %v5992_v35 = vpop.f32.mrb[17].mxu1  ;;  %v4328_v45 = vpop.f32.mrb[18].mxu0  ;;  %7363 = vmatprep.subr.bf16.mxu0 %v7218_v44 }
 0x408   : > { %v6976_v47 = vadd.f32 %v17575_v7, %v5992_v35  ;;  %v6977_v56 = vadd.f32 %v17691_v60, %v4328_v45  ;;  %v5994_v13 = vpop.f32.mrb[18].mxu1  ;;  %7436 = vmatprep.subr.bf16.mxu1 %v7220_v5  ;;  %v4330_v2 = vpop.f32.mrb[19].mxu0  ;;  %7364 = vmatpush1.bf16.msra.mxu0 %v7217_v6  ;;  %v7101_v57 = vmax.f32 %v6973_v29, 0.0 }
 0x409   : > { %v6979_v12 = vadd.f32 %v17691_v60, %v5994_v13  ;;  %v6978_v0 = vadd.f32 %v17691_v60, %v4330_v2  ;;  %v5996_v25 = vpop.f32.mrb[19].mxu1  ;;  %7437 = vmatpush1.bf16.msra.mxu1 %v7219_v63  ;;  %v7103_v4 = vmax.f32 %v6975_v17, 0.0  ;;  %v7102_v7 = vmax.f32 %v6974_v41, 0.0  ;;  %v16228_v17 = vld [vmem:[%s20409_s1 + $0x42c] ss:$16 sps:$4 sm:$0xff]  }
 0x40a   : > { %v7105_v55 = vmax.f32 %v6977_v56, 0.0  ;;  %v6980_v37 = vadd.f32 %v17691_v60, %v5996_v25  ;;  %4593 = vmatmul.mubr.bf16.gmra.mrb[124].mxu0 %v16224_v48  ;;  %v7104_v23 = vmax.f32 %v6976_v47, 0.0  ;;  %v16227_v60 = vld [vmem:[%s20409_s1 + $0x408] ss:$16 sps:$4 sm:$0xff]  }
 0x40b   : > { %v7107_v39 = vmax.f32 %v6979_v12, 0.0  ;;  %6259 = vmatmul.mubr.bf16.gmra.mrb[124].mxu1 %v16224_v48  ;;  %v7106_v30 = vmax.f32 %v6978_v0, 0.0  ;;  %4602 = vmatprep.mubr.bf16.mxu0 %v16225_v11 }
 0x40c   : > { %v7108_v53 = vmax.f32 %v6980_v37, 0.0  ;;  %v7221_v52 = vpack.c.bf16 %v7105_v55, %v7101_v57  ;;  %6268 = vmatprep.mubr.bf16.mxu1 %v16225_v11 }
 0x40d   : > { %v4334_v59 = vpop.f32.mrb[20].mxu0  ;;  %v7222_v43 = vpack.c.bf16 %v7106_v30, %v7102_v7  ;;  %v7223_v6 = vpack.c.bf16 %v7107_v39, %v7103_v4 }
 0x40e   : > { %v6981_v27 = vadd.f32 %v17577_v9, %v4334_v59  ;;  %v6000_v44 = vpop.f32.mrb[20].mxu1  ;;  %v4336_v63 = vpop.f32.mrb[21].mxu0  ;;  %v7224_v29 = vpack.c.bf16 %v7108_v53, %v7104_v23 }
 0x40f   : > { %v6983_v40 = vadd.f32 %v17577_v9, %v6000_v44  ;;  %v6982_v32 = vadd.f32 %v17577_v9, %v4336_v63  ;;  %v6002_v5 = vpop.f32.mrb[21].mxu1  ;;  %v4338_v48 = vpop.f32.mrb[22].mxu0  ;;  %7365 = vmatprep.subr.bf16.mxu0 %v7222_v43 }
 0x410   : > { %v6984_v41 = vadd.f32 %v17577_v9, %v6002_v5  ;;  %v6985_v35 = vadd.f32 %v17705_v8, %v4338_v48  ;;  %v6004_v45 = vpop.f32.mrb[22].mxu1  ;;  %7438 = vmatprep.subr.bf16.mxu1 %v7224_v29  ;;  %v4340_v11 = vpop.f32.mrb[23].mxu0  ;;  %7366 = vmatpush1.bf16.msra.mxu0 %v7221_v52  ;;  %v7109_v2 = vmax.f32 %v6981_v27, 0.0  ;;  %v16231_v29 = vld [vmem:[%s20409_s1 + $0x44c] ss:$16 sps:$4 sm:$0xff]  }
 0x411   : > { %v6987_v47 = vadd.f32 %v17705_v8, %v6004_v45  ;;  %v6986_v56 = vadd.f32 %v17705_v8, %v4340_v11  ;;  %v6006_v13 = vpop.f32.mrb[23].mxu1  ;;  %7439 = vmatpush1.bf16.msra.mxu1 %v7223_v6  ;;  %v7111_v25 = vmax.f32 %v6983_v40, 0.0  ;;  %v7110_v9 = vmax.f32 %v6982_v32, 0.0 }
 0x412   : > { %v7113_v12 = vmax.f32 %v6985_v35, 0.0  ;;  %v6988_v0 = vadd.f32 %v17705_v8, %v6006_v13  ;;  %4603 = vmatmul.mubr.bf16.gmra.mrb[128].mxu0 %v16227_v60  ;;  %v7112_v37 = vmax.f32 %v6984_v41, 0.0  ;;  %v16230_v8 = vld [vmem:[%s20409_s1 + $0x428] ss:$16 sps:$4 sm:$0xff]  }
 0x413   : > { %v7115_v57 = vmax.f32 %v6987_v47, 0.0  ;;  %6269 = vmatmul.mubr.bf16.gmra.mrb[128].mxu1 %v16227_v60  ;;  %v7114_v55 = vmax.f32 %v6986_v56, 0.0  ;;  %4612 = vmatprep.mubr.bf16.mxu0 %v16228_v17 }
 0x414   : > { %v7116_v4 = vmax.f32 %v6988_v0, 0.0  ;;  %v7225_v39 = vpack.c.bf16 %v7113_v12, %v7109_v2  ;;  %6278 = vmatprep.mubr.bf16.mxu1 %v16228_v17 }
 0x415   : > { %v4344_v7 = vpop.f32.mrb[24].mxu0  ;;  %v7226_v30 = vpack.c.bf16 %v7114_v55, %v7110_v9  ;;  %v7227_v23 = vpack.c.bf16 %v7115_v57, %v7111_v25 }
 0x416   : > { %v6989_v53 = vadd.f32 %v17591_v14, %v4344_v7  ;;  %v6010_v52 = vpop.f32.mrb[24].mxu1  ;;  %v4346_v59 = vpop.f32.mrb[25].mxu0  ;;  %v7228_v43 = vpack.c.bf16 %v7116_v4, %v7112_v37 }
 0x417   : > { %v6991_v6 = vadd.f32 %v17591_v14, %v6010_v52  ;;  %v6990_v27 = vadd.f32 %v17591_v14, %v4346_v59  ;;  %v6012_v44 = vpop.f32.mrb[25].mxu1  ;;  %v4348_v63 = vpop.f32.mrb[26].mxu0  ;;  %7367 = vmatprep.subr.bf16.mxu0 %v7226_v30  ;;  %v16234_v52 = vld [vmem:[%s20409_s1 + $0x46c] ss:$16 sps:$4 sm:$0xff]  }
 0x418   : > { %v6992_v60 = vadd.f32 %v17591_v14, %v6012_v44  ;;  %v6993_v40 = vadd.f32 %v17718_v15, %v4348_v63  ;;  %v6014_v32 = vpop.f32.mrb[26].mxu1  ;;  %7440 = vmatprep.subr.bf16.mxu1 %v7228_v43  ;;  %v4350_v5 = vpop.f32.mrb[27].mxu0  ;;  %7368 = vmatpush1.bf16.msra.mxu0 %v7225_v39  ;;  %v7117_v35 = vmax.f32 %v6989_v53, 0.0 }
 0x419   : > { %v6995_v48 = vadd.f32 %v17718_v15, %v6014_v32  ;;  %v6994_v17 = vadd.f32 %v17718_v15, %v4350_v5  ;;  %v6016_v41 = vpop.f32.mrb[27].mxu1  ;;  %7441 = vmatpush1.bf16.msra.mxu1 %v7227_v23  ;;  %v7119_v47 = vmax.f32 %v6991_v6, 0.0  ;;  %v7118_v14 = vmax.f32 %v6990_v27, 0.0 }
 0x41a   : > { %v7121_v45 = vmax.f32 %v6993_v40, 0.0  ;;  %v6996_v11 = vadd.f32 %v17718_v15, %v6016_v41  ;;  %4613 = vmatmul.mubr.bf16.gmra.mrb[132].mxu0 %v16230_v8  ;;  %v7120_v2 = vmax.f32 %v6992_v60, 0.0  ;;  %v16233_v15 = vld [vmem:[%s20409_s1 + $0x448] ss:$16 sps:$4 sm:$0xff]  }
 0x41b   : > { %v7123_v56 = vmax.f32 %v6995_v48, 0.0  ;;  %6279 = vmatmul.mubr.bf16.gmra.mrb[132].mxu1 %v16230_v8  ;;  %v7122_v13 = vmax.f32 %v6994_v17, 0.0  ;;  %4622 = vmatprep.mubr.bf16.mxu0 %v16231_v29 }
 0x41c   : > { %v7124_v12 = vmax.f32 %v6996_v11, 0.0  ;;  %v7229_v0 = vpack.c.bf16 %v7121_v45, %v7117_v35  ;;  %6288 = vmatprep.mubr.bf16.mxu1 %v16231_v29 }
 0x41d   : > { %v4354_v25 = vpop.f32.mrb[28].mxu0  ;;  %v7230_v57 = vpack.c.bf16 %v7122_v13, %v7118_v14  ;;  %v7231_v9 = vpack.c.bf16 %v7123_v56, %v7119_v47 }
 0x41e   : > { %v6997_v55 = vadd.f32 %v17602_v18, %v4354_v25  ;;  %v6020_v37 = vpop.f32.mrb[28].mxu1  ;;  %v4356_v4 = vpop.f32.mrb[29].mxu0  ;;  %v7232_v39 = vpack.c.bf16 %v7124_v12, %v7120_v2 }
 0x41f   : > { %v6999_v7 = vadd.f32 %v17602_v18, %v6020_v37  ;;  %v6998_v30 = vadd.f32 %v17602_v18, %v4356_v4  ;;  %v6022_v23 = vpop.f32.mrb[29].mxu1  ;;  %v4358_v53 = vpop.f32.mrb[30].mxu0  ;;  %7369 = vmatprep.subr.bf16.mxu0 %v7230_v57 }
 0x420   : > { %v7000_v59 = vadd.f32 %v17602_v18, %v6022_v23  ;;  %v7001_v43 = vadd.f32 %v17728_v20, %v4358_v53  ;;  %v6024_v8 = vpop.f32.mrb[30].mxu1  ;;  %7442 = vmatprep.subr.bf16.mxu1 %v7232_v39  ;;  %v4360_v6 = vpop.f32.mrb[31].mxu0  ;;  %7370 = vmatpush1.bf16.msra.mxu0 %v7229_v0  ;;  %v7125_v29 = vmax.f32 %v6997_v55, 0.0 }
 0x421   : > { %v7003_v27 = vadd.f32 %v17728_v20, %v6024_v8  ;;  %v7002_v44 = vadd.f32 %v17728_v20, %v4360_v6  ;;  %v6026_v63 = vpop.f32.mrb[31].mxu1  ;;  %7443 = vmatpush1.bf16.msra.mxu1 %v7231_v9  ;;  %v7127_v32 = vmax.f32 %v6999_v7, 0.0  ;;  %v7126_v18 = vmax.f32 %v6998_v30, 0.0  ;;  %v16237_v9 = vld [vmem:[%s20409_s1 + $0x48c] ss:$16 sps:$4 sm:$0xff]  }
 0x422   : > { %v7129_v60 = vmax.f32 %v7001_v43, 0.0  ;;  %v7004_v40 = vadd.f32 %v17728_v20, %v6026_v63  ;;  %4623 = vmatmul.mubr.bf16.gmra.mrb[136].mxu0 %v16233_v15  ;;  %v7128_v17 = vmax.f32 %v7000_v59, 0.0  ;;  %v16236_v20 = vld [vmem:[%s20409_s1 + $0x468] ss:$16 sps:$4 sm:$0xff]  }
 0x423   : > { %v7131_v5 = vmax.f32 %v7003_v27, 0.0  ;;  %6289 = vmatmul.mubr.bf16.gmra.mrb[136].mxu1 %v16233_v15  ;;  %v7130_v48 = vmax.f32 %v7002_v44, 0.0  ;;  %4632 = vmatprep.mubr.bf16.mxu0 %v16234_v52 }
 0x424   : > { %v7132_v41 = vmax.f32 %v7004_v40, 0.0  ;;  %v7233_v35 = vpack.c.bf16 %v7129_v60, %v7125_v29  ;;  %6298 = vmatprep.mubr.bf16.mxu1 %v16234_v52 }
 0x425   : > { %v4364_v45 = vpop.f32.mrb[32].mxu0  ;;  %v7234_v11 = vpack.c.bf16 %v7130_v48, %v7126_v18  ;;  %v7235_v47 = vpack.c.bf16 %v7131_v5, %v7127_v32 }
 0x426   : > { %v7005_v56 = vadd.f32 %v17613_v22, %v4364_v45  ;;  %v6030_v14 = vpop.f32.mrb[32].mxu1  ;;  %v4366_v13 = vpop.f32.mrb[33].mxu0  ;;  %v7236_v2 = vpack.c.bf16 %v7132_v41, %v7128_v17  ;;  %v16242_v45 = vld [vmem:[%s20409_s1 + $0x4ac] ss:$16 sps:$4 sm:$0xff]  }
 0x427   : > { %v7007_v12 = vadd.f32 %v17613_v22, %v6030_v14  ;;  %v7006_v0 = vadd.f32 %v17613_v22, %v4366_v13  ;;  %v6032_v25 = vpop.f32.mrb[33].mxu1  ;;  %v4368_v57 = vpop.f32.mrb[34].mxu0  ;;  %7371 = vmatprep.subr.bf16.mxu0 %v7234_v11 }
 0x428   : > { %v7008_v55 = vadd.f32 %v17613_v22, %v6032_v25  ;;  %v7009_v37 = vadd.f32 %v17744_v28, %v4368_v57  ;;  %v6034_v4 = vpop.f32.mrb[34].mxu1  ;;  %7444 = vmatprep.subr.bf16.mxu1 %v7236_v2  ;;  %v4370_v39 = vpop.f32.mrb[35].mxu0  ;;  %7372 = vmatpush1.bf16.msra.mxu0 %v7233_v35  ;;  %v7133_v23 = vmax.f32 %v7005_v56, 0.0 }
 0x429   : > { %v7011_v15 = vadd.f32 %v17744_v28, %v6034_v4  ;;  %v7010_v7 = vadd.f32 %v17744_v28, %v4370_v39  ;;  %v6036_v30 = vpop.f32.mrb[35].mxu1  ;;  %7445 = vmatpush1.bf16.msra.mxu1 %v7235_v47  ;;  %v7135_v59 = vmax.f32 %v7007_v12, 0.0  ;;  %v7134_v22 = vmax.f32 %v7006_v0, 0.0 }
 0x42a   : > { %v7137_v53 = vmax.f32 %v7009_v37, 0.0  ;;  %v7012_v52 = vadd.f32 %v17744_v28, %v6036_v30  ;;  %4633 = vmatmul.mubr.bf16.gmra.mrb[140].mxu0 %v16236_v20  ;;  %v7136_v6 = vmax.f32 %v7008_v55, 0.0  ;;  %v16239_v28 = vld [vmem:[%s20409_s1 + $0x488] ss:$16 sps:$4 sm:$0xff]  }
 0x42b   : > { %v7139_v43 = vmax.f32 %v7011_v15, 0.0  ;;  %6299 = vmatmul.mubr.bf16.gmra.mrb[140].mxu1 %v16236_v20  ;;  %v7138_v8 = vmax.f32 %v7010_v7, 0.0  ;;  %4642 = vmatprep.mubr.bf16.mxu0 %v16237_v9 }
 0x42c   : > { %v7140_v27 = vmax.f32 %v7012_v52, 0.0  ;;  %v7237_v44 = vpack.c.bf16 %v7137_v53, %v7133_v23  ;;  %6308 = vmatprep.mubr.bf16.mxu1 %v16237_v9 }
 0x42d   : > { %v4374_v63 = vpop.f32.mrb[36].mxu0  ;;  %v7238_v29 = vpack.c.bf16 %v7138_v8, %v7134_v22  ;;  %v7239_v60 = vpack.c.bf16 %v7139_v43, %v7135_v59 }
 0x42e   : > { %v7013_v40 = vadd.f32 %v17624_v26, %v4374_v63  ;;  %v6040_v32 = vpop.f32.mrb[36].mxu1  ;;  %v4376_v5 = vpop.f32.mrb[37].mxu0  ;;  %v7240_v18 = vpack.c.bf16 %v7140_v27, %v7136_v6  ;;  %v16245_v27 = vld [vmem:[%s20409_s1 + $0x4cc] ss:$16 sps:$4 sm:$0xff]  }
 0x42f   : > { %v7015_v48 = vadd.f32 %v17624_v26, %v6040_v32  ;;  %v7014_v17 = vadd.f32 %v17624_v26, %v4376_v5  ;;  %v6042_v41 = vpop.f32.mrb[37].mxu1  ;;  %v4378_v35 = vpop.f32.mrb[38].mxu0  ;;  %7373 = vmatprep.subr.bf16.mxu0 %v7238_v29 }
 0x430   : > { %v7016_v11 = vadd.f32 %v17624_v26, %v6042_v41  ;;  %v7017_v47 = vadd.f32 %v17754_v34, %v4378_v35  ;;  %v6044_v56 = vpop.f32.mrb[38].mxu1  ;;  %7446 = vmatprep.subr.bf16.mxu1 %v7240_v18  ;;  %v4380_v14 = vpop.f32.mrb[39].mxu0  ;;  %7374 = vmatpush1.bf16.msra.mxu0 %v7237_v44  ;;  %v7141_v12 = vmax.f32 %v7013_v40, 0.0 }
 0x431   : > { %v7019_v13 = vadd.f32 %v17754_v34, %v6044_v56  ;;  %v7018_v2 = vadd.f32 %v17754_v34, %v4380_v14  ;;  %v6046_v20 = vpop.f32.mrb[39].mxu1  ;;  %7447 = vmatpush1.bf16.msra.mxu1 %v7239_v60  ;;  %v7143_v57 = vmax.f32 %v7015_v48, 0.0  ;;  %v7142_v26 = vmax.f32 %v7014_v17, 0.0 }
 0x432   : > { %v7145_v0 = vmax.f32 %v7017_v47, 0.0  ;;  %v7020_v25 = vadd.f32 %v17754_v34, %v6046_v20  ;;  %4643 = vmatmul.mubr.bf16.gmra.mrb[144].mxu0 %v16239_v28  ;;  %v7144_v37 = vmax.f32 %v7016_v11, 0.0  ;;  %v16240_v34 = vld [vmem:[%s20409_s1 + $0x4a8] ss:$16 sps:$4 sm:$0xff]  }
 0x433   : > { %v7147_v9 = vmax.f32 %v7019_v13, 0.0  ;;  %6309 = vmatmul.mubr.bf16.gmra.mrb[144].mxu1 %v16239_v28  ;;  %v7146_v55 = vmax.f32 %v7018_v2, 0.0  ;;  %4652 = vmatprep.mubr.bf16.mxu0 %v16242_v45 }
 0x434   : > { %v7148_v4 = vmax.f32 %v7020_v25, 0.0  ;;  %v7241_v39 = vpack.c.bf16 %v7145_v0, %v7141_v12  ;;  %6318 = vmatprep.mubr.bf16.mxu1 %v16242_v45 }
 0x435   : > { %v4384_v15 = vpop.f32.mrb[40].mxu0  ;;  %v7242_v7 = vpack.c.bf16 %v7146_v55, %v7142_v26  ;;  %v7243_v30 = vpack.c.bf16 %v7147_v9, %v7143_v57  ;;  %v16248_v55 = vld [vmem:[%s20409_s1 + $0x4ec] ss:$16 sps:$4 sm:$0xff]  }
 0x436   : > { %v7021_v23 = vadd.f32 %v17637_v31, %v4384_v15  ;;  %v6050_v53 = vpop.f32.mrb[40].mxu1  ;;  %v4386_v52 = vpop.f32.mrb[41].mxu0  ;;  %v7244_v59 = vpack.c.bf16 %v7148_v4, %v7144_v37 }
 0x437   : > { %v7023_v43 = vadd.f32 %v17637_v31, %v6050_v53  ;;  %v7022_v22 = vadd.f32 %v17637_v31, %v4386_v52  ;;  %v6052_v8 = vpop.f32.mrb[41].mxu1  ;;  %v4388_v6 = vpop.f32.mrb[42].mxu0  ;;  %7375 = vmatprep.subr.bf16.mxu0 %v7242_v7 }
 0x438   : > { %v7024_v44 = vadd.f32 %v17637_v31, %v6052_v8  ;;  %v7025_v63 = vadd.f32 %v17768_v46, %v4388_v6  ;;  %v6054_v29 = vpop.f32.mrb[42].mxu1  ;;  %7448 = vmatprep.subr.bf16.mxu1 %v7244_v59  ;;  %v4390_v60 = vpop.f32.mrb[43].mxu0  ;;  %7376 = vmatpush1.bf16.msra.mxu0 %v7241_v39  ;;  %v7149_v18 = vmax.f32 %v7021_v23, 0.0 }
 0x439   : > { %v7027_v40 = vadd.f32 %v17768_v46, %v6054_v29  ;;  %v7026_v32 = vadd.f32 %v17768_v46, %v4390_v60  ;;  %v6056_v5 = vpop.f32.mrb[43].mxu1  ;;  %7449 = vmatpush1.bf16.msra.mxu1 %v7243_v30  ;;  %v7151_v17 = vmax.f32 %v7023_v43, 0.0  ;;  %v7150_v31 = vmax.f32 %v7022_v22, 0.0 }
 0x43a   : > { %v7153_v28 = vmax.f32 %v7025_v63, 0.0  ;;  %v7028_v48 = vadd.f32 %v17768_v46, %v6056_v5  ;;  %4653 = vmatmul.mubr.bf16.gmra.mrb[0].mxu0 %v16240_v34  ;;  %v7152_v45 = vmax.f32 %v7024_v44, 0.0  ;;  %v16243_v46 = vld [vmem:[%s20409_s1 + $0x4c8] ss:$16 sps:$4 sm:$0xff]  }
 0x43b   : > { %v7155_v41 = vmax.f32 %v7027_v40, 0.0  ;;  %6319 = vmatmul.mubr.bf16.gmra.mrb[0].mxu1 %v16240_v34  ;;  %v7154_v35 = vmax.f32 %v7026_v32, 0.0  ;;  %4662 = vmatprep.mubr.bf16.mxu0 %v16245_v27 }
 0x43c   : > { %v7156_v11 = vmax.f32 %v7028_v48, 0.0  ;;  %v7245_v47 = vpack.c.bf16 %v7153_v28, %v7149_v18  ;;  %6328 = vmatprep.mubr.bf16.mxu1 %v16245_v27 }
 0x43d   : > { %v4394_v56 = vpop.f32.mrb[44].mxu0  ;;  %v7246_v14 = vpack.c.bf16 %v7154_v35, %v7150_v31  ;;  %v7247_v13 = vpack.c.bf16 %v7155_v41, %v7151_v17  ;;  %v16251_v41 = vld [vmem:[%s20409_s1 + $0x50c] ss:$16 sps:$4 sm:$0xff]  }
 0x43e   : > { %v7029_v2 = vadd.f32 %v17650_v36, %v4394_v56  ;;  %v6060_v20 = vpop.f32.mrb[44].mxu1  ;;  %v4396_v12 = vpop.f32.mrb[45].mxu0  ;;  %v7248_v0 = vpack.c.bf16 %v7156_v11, %v7152_v45 }
 0x43f   : > { %v7031_v25 = vadd.f32 %v17650_v36, %v6060_v20  ;;  %v7030_v57 = vadd.f32 %v17650_v36, %v4396_v12  ;;  %v6062_v9 = vpop.f32.mrb[45].mxu1  ;;  %v4398_v26 = vpop.f32.mrb[46].mxu0  ;;  %7377 = vmatprep.subr.bf16.mxu0 %v7246_v14 }
 0x440   : > { %v7032_v37 = vadd.f32 %v17650_v36, %v6062_v9  ;;  %v7033_v4 = vadd.f32 %v17778_v54, %v4398_v26  ;;  %v6064_v39 = vpop.f32.mrb[46].mxu1  ;;  %7450 = vmatprep.subr.bf16.mxu1 %v7248_v0  ;;  %v4400_v15 = vpop.f32.mrb[47].mxu0  ;;  %7378 = vmatpush1.bf16.msra.mxu0 %v7245_v47  ;;  %v7157_v53 = vmax.f32 %v7029_v2, 0.0 }
 0x441   : > { %v7035_v7 = vadd.f32 %v17778_v54, %v6064_v39  ;;  %v7034_v30 = vadd.f32 %v17778_v54, %v4400_v15  ;;  %v6066_v23 = vpop.f32.mrb[47].mxu1  ;;  %7451 = vmatpush1.bf16.msra.mxu1 %v7247_v13  ;;  %v7159_v34 = vmax.f32 %v7031_v25, 0.0  ;;  %v7158_v36 = vmax.f32 %v7030_v57, 0.0 }
 0x442   : > { %v7161_v52 = vmax.f32 %v7033_v4, 0.0  ;;  %v7036_v59 = vadd.f32 %v17778_v54, %v6066_v23  ;;  %4663 = vmatmul.mubr.bf16.gmra.mrb[4].mxu0 %v16243_v46  ;;  %v7160_v8 = vmax.f32 %v7032_v37, 0.0  ;;  %v16246_v54 = vld [vmem:[%s20409_s1 + $0x4e8] ss:$16 sps:$4 sm:$0xff]  }
 0x443   : > { %v7163_v43 = vmax.f32 %v7035_v7, 0.0  ;;  %6329 = vmatmul.mubr.bf16.gmra.mrb[4].mxu1 %v16243_v46  ;;  %v7162_v22 = vmax.f32 %v7034_v30, 0.0  ;;  %4672 = vmatprep.mubr.bf16.mxu0 %v16248_v55 }
 0x444   : > { %v7164_v6 = vmax.f32 %v7036_v59, 0.0  ;;  %v7249_v27 = vpack.c.bf16 %v7161_v52, %v7157_v53  ;;  %6338 = vmatprep.mubr.bf16.mxu1 %v16248_v55  ;;  %v16254_v59 = vld [vmem:[%s20409_s1 + $0x52c] ss:$16 sps:$4 sm:$0xff]  }
 0x445   : > { %v4404_v44 = vpop.f32.mrb[48].mxu0  ;;  %v7250_v63 = vpack.c.bf16 %v7162_v22, %v7158_v36  ;;  %v7251_v29 = vpack.c.bf16 %v7163_v43, %v7159_v34 }
 0x446   : > { %v7037_v60 = vadd.f32 %v17663_v42, %v4404_v44  ;;  %v6070_v40 = vpop.f32.mrb[48].mxu1  ;;  %v4406_v32 = vpop.f32.mrb[49].mxu0  ;;  %v7252_v5 = vpack.c.bf16 %v7164_v6, %v7160_v8 }
 0x447   : > { %v7039_v18 = vadd.f32 %v17663_v42, %v6070_v40  ;;  %v7038_v28 = vadd.f32 %v17663_v42, %v4406_v32  ;;  %v6072_v48 = vpop.f32.mrb[49].mxu1  ;;  %v4408_v17 = vpop.f32.mrb[50].mxu0  ;;  %7379 = vmatprep.subr.bf16.mxu0 %v7250_v63 }
 0x448   : > { %v7040_v31 = vadd.f32 %v17663_v42, %v6072_v48  ;;  %v7041_v35 = vadd.f32 %v17794_v62, %v4408_v17  ;;  %v6074_v45 = vpop.f32.mrb[50].mxu1  ;;  %7452 = vmatprep.subr.bf16.mxu1 %v7252_v5  ;;  %v4410_v11 = vpop.f32.mrb[51].mxu0  ;;  %7380 = vmatpush1.bf16.msra.mxu0 %v7249_v27  ;;  %v7165_v13 = vmax.f32 %v7037_v60, 0.0 }
 0x449   : > { %v7043_v47 = vadd.f32 %v17794_v62, %v6074_v45  ;;  %v7042_v56 = vadd.f32 %v17794_v62, %v4410_v11  ;;  %v6076_v14 = vpop.f32.mrb[51].mxu1  ;;  %7453 = vmatpush1.bf16.msra.mxu1 %v7251_v29  ;;  %v7167_v12 = vmax.f32 %v7039_v18, 0.0  ;;  %v7166_v42 = vmax.f32 %v7038_v28, 0.0 }
 0x44a   : > { %v7169_v2 = vmax.f32 %v7041_v35, 0.0  ;;  %v7044_v20 = vadd.f32 %v17794_v62, %v6076_v14  ;;  %4673 = vmatmul.mubr.bf16.gmra.mrb[8].mxu0 %v16246_v54  ;;  %v7168_v25 = vmax.f32 %v7040_v31, 0.0  ;;  %v16249_v62 = vld [vmem:[%s20409_s1 + $0x508] ss:$16 sps:$4 sm:$0xff]  }
 0x44b   : > { %v7171_v0 = vmax.f32 %v7043_v47, 0.0  ;;  %6339 = vmatmul.mubr.bf16.gmra.mrb[8].mxu1 %v16246_v54  ;;  %v7170_v46 = vmax.f32 %v7042_v56, 0.0  ;;  %4682 = vmatprep.mubr.bf16.mxu0 %v16251_v41 }
 0x44c   : > { %v7172_v57 = vmax.f32 %v7044_v20, 0.0  ;;  %v7253_v9 = vpack.c.bf16 %v7169_v2, %v7165_v13  ;;  %6348 = vmatprep.mubr.bf16.mxu1 %v16251_v41  ;;  %v16257_v13 = vld [vmem:[%s20409_s1 + $0x54c] ss:$16 sps:$4 sm:$0xff]  }
 0x44d   : > { %v4414_v26 = vpop.f32.mrb[52].mxu0  ;;  %v7254_v55 = vpack.c.bf16 %v7170_v46, %v7166_v42  ;;  %v7255_v37 = vpack.c.bf16 %v7171_v0, %v7167_v12 }
 0x44e   : > { %v7045_v4 = vadd.f32 %v17676_v49, %v4414_v26  ;;  %v6080_v39 = vpop.f32.mrb[52].mxu1  ;;  %v4416_v15 = vpop.f32.mrb[53].mxu0  ;;  %v7256_v7 = vpack.c.bf16 %v7172_v57, %v7168_v25 }
 0x44f   : > { %v7047_v30 = vadd.f32 %v17676_v49, %v6080_v39  ;;  %v7046_v23 = vadd.f32 %v17676_v49, %v4416_v15  ;;  %v6082_v53 = vpop.f32.mrb[53].mxu1  ;;  %v4418_v52 = vpop.f32.mrb[54].mxu0  ;;  %7381 = vmatprep.subr.bf16.mxu0 %v7254_v55 }
 0x450   : > { %v7048_v34 = vadd.f32 %v17676_v49, %v6082_v53  ;;  %v7049_v43 = vadd.f32 %v17802_v1, %v4418_v52  ;;  %v6084_v36 = vpop.f32.mrb[54].mxu1  ;;  %7454 = vmatprep.subr.bf16.mxu1 %v7256_v7  ;;  %v4420_v22 = vpop.f32.mrb[55].mxu0  ;;  %7382 = vmatpush1.bf16.msra.mxu0 %v7253_v9  ;;  %v7173_v44 = vmax.f32 %v7045_v4, 0.0 }
 0x451   : > { %v7051_v8 = vadd.f32 %v17802_v1, %v6084_v36  ;;  %v7050_v6 = vadd.f32 %v17802_v1, %v4420_v22  ;;  %v6086_v27 = vpop.f32.mrb[55].mxu1  ;;  %7455 = vmatpush1.bf16.msra.mxu1 %v7255_v37  ;;  %v7175_v60 = vmax.f32 %v7047_v30, 0.0  ;;  %v7174_v49 = vmax.f32 %v7046_v23, 0.0 }
 0x452   : > { %v7177_v63 = vmax.f32 %v7049_v43, 0.0  ;;  %v7052_v29 = vadd.f32 %v17802_v1, %v6086_v27  ;;  %4683 = vmatmul.mubr.bf16.gmra.mrb[12].mxu0 %v16249_v62  ;;  %v7176_v5 = vmax.f32 %v7048_v34, 0.0  ;;  %v16252_v1 = vld [vmem:[%s20409_s1 + $0x528] ss:$16 sps:$4 sm:$0xff]  }
 0x453   : > { %v7179_v40 = vmax.f32 %v7051_v8, 0.0  ;;  %6349 = vmatmul.mubr.bf16.gmra.mrb[12].mxu1 %v16249_v62  ;;  %v7178_v32 = vmax.f32 %v7050_v6, 0.0  ;;  %4692 = vmatprep.mubr.bf16.mxu0 %v16254_v59  ;;  %v16260_v6 = vld [vmem:[%s20409_s1 + $0x56c] ss:$16 sps:$4 sm:$0xff]  }
 0x454   : > { %v7180_v54 = vmax.f32 %v7052_v29, 0.0  ;;  %v7257_v18 = vpack.c.bf16 %v7177_v63, %v7173_v44  ;;  %6358 = vmatprep.mubr.bf16.mxu1 %v16254_v59 }
 0x455   : > { %v4424_v28 = vpop.f32.mrb[56].mxu0  ;;  %v7258_v48 = vpack.c.bf16 %v7178_v32, %v7174_v49  ;;  %v7259_v17 = vpack.c.bf16 %v7179_v40, %v7175_v60 }
 0x456   : > { %v7053_v41 = vadd.f32 %v17693_v61, %v4424_v28  ;;  %v6090_v31 = vpop.f32.mrb[56].mxu1  ;;  %v4426_v35 = vpop.f32.mrb[57].mxu0  ;;  %v7260_v45 = vpack.c.bf16 %v7180_v54, %v7176_v5 }
 0x457   : > { %v7055_v11 = vadd.f32 %v17693_v61, %v6090_v31  ;;  %v7054_v47 = vadd.f32 %v17693_v61, %v4426_v35  ;;  %v6092_v56 = vpop.f32.mrb[57].mxu1  ;;  %v4428_v14 = vpop.f32.mrb[58].mxu0  ;;  %7383 = vmatprep.subr.bf16.mxu0 %v7258_v48 }
 0x458   : > { %v7056_v2 = vadd.f32 %v17693_v61, %v6092_v56  ;;  %v7057_v20 = vadd.f32 %v17825_v21, %v4428_v14  ;;  %v6094_v12 = vpop.f32.mrb[58].mxu1  ;;  %7456 = vmatprep.subr.bf16.mxu1 %v7260_v45  ;;  %v4430_v0 = vpop.f32.mrb[59].mxu0  ;;  %7384 = vmatpush1.bf16.msra.mxu0 %v7257_v18  ;;  %v7181_v57 = vmax.f32 %v7053_v41, 0.0  ;;  %v16266_v56 = vld [vmem:[%s20409_s1 + $0x5ac] ss:$16 sps:$4 sm:$0xff]  }
 0x459   : > { %v7059_v42 = vadd.f32 %v17825_v21, %v6094_v12  ;;  %v7058_v46 = vadd.f32 %v17825_v21, %v4430_v0  ;;  %v6096_v25 = vpop.f32.mrb[59].mxu1  ;;  %7457 = vmatpush1.bf16.msra.mxu1 %v7259_v17  ;;  %v7183_v55 = vmax.f32 %v7055_v11, 0.0  ;;  %v7182_v61 = vmax.f32 %v7054_v47, 0.0  ;;  %v16258_v11 = vld [vmem:[%s20409_s1 + $0x568] ss:$16 sps:$4 sm:$0xff]  }
 0x45a   : > { %v7185_v9 = vmax.f32 %v7057_v20, 0.0  ;;  %v7060_v26 = vadd.f32 %v17825_v21, %v6096_v25  ;;  %4693 = vmatmul.mubr.bf16.gmra.mrb[16].mxu0 %v16252_v1  ;;  %v7184_v39 = vmax.f32 %v7056_v2, 0.0  ;;  %v16255_v21 = vld [vmem:[%s20409_s1 + $0x548] ss:$16 sps:$4 sm:$0xff]   ;;  %v16272_v20 = vld [vmem:[%s20409_s1 + $0x5ec] ss:$16 sps:$4 sm:$0xff]  }
 0x45b   : > { %v7187_v37 = vmax.f32 %v7059_v42, 0.0  ;;  %6359 = vmatmul.mubr.bf16.gmra.mrb[16].mxu1 %v16252_v1  ;;  %v7186_v4 = vmax.f32 %v7058_v46, 0.0  ;;  %4702 = vmatprep.mubr.bf16.mxu0 %v16257_v13  ;;  %v16261_v47 = vld [vmem:[%s20409_s1 + $0x588] ss:$16 sps:$4 sm:$0xff]   ;;  %v16275_v0 = vld [vmem:[%s20409_s1 + $0x60c] ss:$16 sps:$4 sm:$0xff]  }
 0x45c   : > { %v7188_v15 = vmax.f32 %v7060_v26, 0.0  ;;  %v7261_v7 = vpack.c.bf16 %v7185_v9, %v7181_v57  ;;  %6368 = vmatprep.mubr.bf16.mxu1 %v16257_v13  ;;  %v16264_v14 = vld [vmem:[%s20409_s1 + $0x5a8] ss:$16 sps:$4 sm:$0xff]   ;;  %v16269_v13 = vld [vmem:[%s20409_s1 + $0x5cc] ss:$16 sps:$4 sm:$0xff]  }
 0x45d   : > { %v4434_v62 = vpop.f32.mrb[60].mxu0  ;;  %v7262_v30 = vpack.c.bf16 %v7186_v4, %v7182_v61  ;;  %v7263_v23 = vpack.c.bf16 %v7187_v37, %v7183_v55  ;;  %v16267_v2 = vld [vmem:[%s20409_s1 + $0x5c8] ss:$16 sps:$4 sm:$0xff]   ;;  %v16278_v46 = vld [vmem:[%s20409_s1 + $0x62c] ss:$16 sps:$4 sm:$0xff]  }
 0x45e   : > { %v7061_v53 = vadd.f32 %v17707_v10, %v4434_v62  ;;  %v6100_v52 = vpop.f32.mrb[60].mxu1  ;;  %v4436_v59 = vpop.f32.mrb[61].mxu0  ;;  %v7264_v34 = vpack.c.bf16 %v7188_v15, %v7184_v39  ;;  %v16270_v12 = vld [vmem:[%s20409_s1 + $0x5e8] ss:$16 sps:$4 sm:$0xff]   ;;  %v16281_v57 = vld [vmem:[%s20409_s1 + $0x64c] ss:$16 sps:$4 sm:$0xff]  }
 0x45f   : > { %v7063_v43 = vadd.f32 %v17707_v10, %v6100_v52  ;;  %v7062_v36 = vadd.f32 %v17707_v10, %v4436_v59  ;;  %v6102_v22 = vpop.f32.mrb[61].mxu1  ;;  %v4438_v8 = vpop.f32.mrb[62].mxu0  ;;  %7385 = vmatprep.subr.bf16.mxu0 %v7262_v30  ;;  %v16273_v42 = vld [vmem:[%s20409_s1 + $0x608] ss:$16 sps:$4 sm:$0xff]   ;;  %v16284_v26 = vld [vmem:[%s20409_s1 + $0x66c] ss:$16 sps:$4 sm:$0xff]  }
 0x460   : > { %v7064_v27 = vadd.f32 %v17707_v10, %v6102_v22  ;;  %v7065_v44 = vadd.f32 %v17836_v51, %v4438_v8  ;;  %v6104_v63 = vpop.f32.mrb[62].mxu1  ;;  %7458 = vmatprep.subr.bf16.mxu1 %v7264_v34  ;;  %v4440_v29 = vpop.f32.mrb[63].mxu0  ;;  %7386 = vmatpush1.bf16.msra.mxu0 %v7261_v7  ;;  %v7189_v32 = vmax.f32 %v7061_v53, 0.0  ;;  %v16276_v25 = vld [vmem:[%s20409_s1 + $0x628] ss:$16 sps:$4 sm:$0xff]  }
 0x461   : > { %v7067_v60 = vadd.f32 %v17836_v51, %v6104_v63  ;;  %v7066_v40 = vadd.f32 %v17836_v51, %v4440_v29  ;;  %v6106_v49 = vpop.f32.mrb[63].mxu1  ;;  %7459 = vmatpush1.bf16.msra.mxu1 %v7263_v23  ;;  %v7191_v18 = vmax.f32 %v7063_v43, 0.0  ;;  %v7190_v10 = vmax.f32 %v7062_v36, 0.0  ;;  %v16279_v9 = vld [vmem:[%s20409_s1 + $0x648] ss:$16 sps:$4 sm:$0xff]  }
 0x462   : > { %v7193_v5 = vmax.f32 %v7065_v44, 0.0  ;;  %v7068_v54 = vadd.f32 %v17836_v51, %v6106_v49  ;;  %4703 = vmatmul.mubr.bf16.gmra.mrb[20].mxu0 %v16255_v21  ;;  %v7192_v17 = vmax.f32 %v7064_v27, 0.0  ;;  %v16263_v51 = vld [vmem:[%s20409_s1 + $0x58c] ss:$16 sps:$4 sm:$0xff]   ;;  %v16282_v55 = vld [vmem:[%s20409_s1 + $0x668] ss:$16 sps:$4 sm:$0xff]  }
 0x463   : > { %v7195_v28 = vmax.f32 %v7067_v60, 0.0  ;;  %6369 = vmatmul.mubr.bf16.gmra.mrb[20].mxu1 %v16255_v21  ;;  %v7194_v48 = vmax.f32 %v7066_v40, 0.0  ;;  %4712 = vmatprep.mubr.bf16.mxu0 %v16260_v6  ;;  %v16287_v37 = vld [vmem:[%s20409_s1 + $0x68c] ss:$16 sps:$4 sm:$0xff]   ;;  %v16285_v61 = vld [vmem:[%s20409_s1 + $0x688] ss:$16 sps:$4 sm:$0xff]  }
 0x464   : > { %v7196_v41 = vmax.f32 %v7068_v54, 0.0  ;;  %v7265_v31 = vpack.c.bf16 %v7193_v5, %v7189_v32  ;;  %6378 = vmatprep.mubr.bf16.mxu1 %v16260_v6  ;;  %v16288_v4 = vld [vmem:[%s20409_s1 + $0x6ac] ss:$16 sps:$4 sm:$0xff]   ;;  %v16290_v39 = vld [vmem:[%s20409_s1 + $0x6a8] ss:$16 sps:$4 sm:$0xff]  }
 0x465   : > { %v7266_v35 = vpack.c.bf16 %v7194_v48, %v7190_v10  ;;  %v7267_v45 = vpack.c.bf16 %v7195_v28, %v7191_v18  ;;  %v16291_v15 = vld [vmem:[%s20409_s1 + $0x6cc] ss:$16 sps:$4 sm:$0xff]   ;;  %v16293_v7 = vld [vmem:[%s20409_s1 + $0x6c8] ss:$16 sps:$4 sm:$0xff]  }
 0x466   : > { %v7268_v1 = vpack.c.bf16 %v7196_v41, %v7192_v17  ;;  %v16294_v62 = vld [vmem:[%s20409_s1 + $0x6ec] ss:$16 sps:$4 sm:$0xff]   ;;  %v16296_v30 = vld [vmem:[%s20409_s1 + $0x6e8] ss:$16 sps:$4 sm:$0xff]  }
 0x467   : > { %7387 = vmatprep.subr.bf16.mxu0 %v7266_v35  ;;  %v16297_v23 = vld [vmem:[%s20409_s1 + $0x70c] ss:$16 sps:$4 sm:$0xff]   ;;  %v16299_v53 = vld [vmem:[%s20409_s1 + $0x708] ss:$16 sps:$4 sm:$0xff]  }
 0x468   : > { %7460 = vmatprep.subr.bf16.mxu1 %v7268_v1  ;;  %7388 = vmatpush1.bf16.msra.mxu0 %v7265_v31  ;;  %v16300_v52 = vld [vmem:[%s20409_s1 + $0x72c] ss:$16 sps:$4 sm:$0xff]   ;;  %v16302_v59 = vld [vmem:[%s20409_s1 + $0x728] ss:$16 sps:$4 sm:$0xff]  }
 0x469   : > { %7461 = vmatpush1.bf16.msra.mxu1 %v7267_v45  ;;  %v16303_v34 = vld [vmem:[%s20409_s1 + $0x74c] ss:$16 sps:$4 sm:$0xff]   ;;  %v16305_v21 = vld [vmem:[%s20409_s1 + $0x748] ss:$16 sps:$4 sm:$0xff]  }
 0x46a   : > { %4713 = vmatmul.mubr.bf16.gmra.mrb[24].mxu0 %v16258_v11  ;;  %v16306_v43 = vld [vmem:[%s20409_s1 + $0x76c] ss:$16 sps:$4 sm:$0xff]   ;;  %v16308_v36 = vld [vmem:[%s20409_s1 + $0x768] ss:$16 sps:$4 sm:$0xff]  }
 0x46b   : > { %6379 = vmatmul.mubr.bf16.gmra.mrb[24].mxu1 %v16258_v11  ;;  %4722 = vmatprep.mubr.bf16.mxu0 %v16263_v51  ;;  %v16309_v22 = vld [vmem:[%s20409_s1 + $0x78c] ss:$16 sps:$4 sm:$0xff]   ;;  %v16311_v8 = vld [vmem:[%s20409_s1 + $0x788] ss:$16 sps:$4 sm:$0xff]  }
 0x46c   : > { %6388 = vmatprep.mubr.bf16.mxu1 %v16263_v51  ;;  %v16312_v6 = vld [vmem:[%s20409_s1 + $0x7ac] ss:$16 sps:$4 sm:$0xff]   ;;  %v16314_v27 = vld [vmem:[%s20409_s1 + $0x7a8] ss:$16 sps:$4 sm:$0xff]  }
 0x46d   : > { %v16315_v44 = vld [vmem:[%s20409_s1 + $0x7cc] ss:$16 sps:$4 sm:$0xff]   ;;  %v16317_v63 = vld [vmem:[%s20409_s1 + $0x7c8] ss:$16 sps:$4 sm:$0xff]  }
 0x46e   : > { %v16318_v29 = vld [vmem:[%s20409_s1 + $0x7ec] ss:$16 sps:$4 sm:$0xff]   ;;  %v16320_v60 = vld [vmem:[%s20409_s1 + $0x7e8] ss:$16 sps:$4 sm:$0xff]  }
 0x46f   : > { %v16323_v40 = vld [vmem:[%s20409_s1 + $0x80c] ss:$16 sps:$4 sm:$0xff]   ;;  %v16321_v49 = vld [vmem:[%s20409_s1 + $0x808] ss:$16 sps:$4 sm:$0xff]  }
 0x470   : > { %v16326_v32 = vld [vmem:[%s20409_s1 + $0x82c] ss:$16 sps:$4 sm:$0xff]   ;;  %v16324_v5 = vld [vmem:[%s20409_s1 + $0x828] ss:$16 sps:$4 sm:$0xff]  }
 0x471   : > { %v16329_v54 = vld [vmem:[%s20409_s1 + $0x84c] ss:$16 sps:$4 sm:$0xff]   ;;  %v16327_v18 = vld [vmem:[%s20409_s1 + $0x848] ss:$16 sps:$4 sm:$0xff]  }
 0x472   : > { %4723 = vmatmul.mubr.bf16.gmra.mrb[28].mxu0 %v16261_v47  ;;  %v16332_v28 = vld [vmem:[%s20409_s1 + $0x86c] ss:$16 sps:$4 sm:$0xff]   ;;  %v16330_v10 = vld [vmem:[%s20409_s1 + $0x868] ss:$16 sps:$4 sm:$0xff]  }
 0x473   : > { %6389 = vmatmul.mubr.bf16.gmra.mrb[28].mxu1 %v16261_v47  ;;  %4732 = vmatprep.mubr.bf16.mxu0 %v16266_v56  ;;  %v16335_v48 = vld [vmem:[%s20409_s1 + $0x88c] ss:$16 sps:$4 sm:$0xff]   ;;  %v16333_v17 = vld [vmem:[%s20409_s1 + $0x888] ss:$16 sps:$4 sm:$0xff]  }
 0x474   : > { %6398 = vmatprep.mubr.bf16.mxu1 %v16266_v56  ;;  %v16338_v41 = vld [vmem:[%s20409_s1 + $0x8ac] ss:$16 sps:$4 sm:$0xff]   ;;  %v16336_v31 = vld [vmem:[%s20409_s1 + $0x8a8] ss:$16 sps:$4 sm:$0xff]  }
 0x475   : > { %v16341_v35 = vld [vmem:[%s20409_s1 + $0x8cc] ss:$16 sps:$4 sm:$0xff]   ;;  %v16339_v45 = vld [vmem:[%s20409_s1 + $0x8c8] ss:$16 sps:$4 sm:$0xff]  }
 0x476   : > { %v16344_v1 = vld [vmem:[%s20409_s1 + $0x8ec] ss:$16 sps:$4 sm:$0xff]   ;;  %v16342_v11 = vld [vmem:[%s20409_s1 + $0x8e8] ss:$16 sps:$4 sm:$0xff]  }
 0x477   : > { %v16347_v51 = vld [vmem:[%s20409_s1 + $0x90c] ss:$16 sps:$4 sm:$0xff]   ;;  %v16345_v47 = vld [vmem:[%s20409_s1 + $0x908] ss:$16 sps:$4 sm:$0xff]  }
 0x478   : > { %v16350_v56 = vld [vmem:[%s20409_s1 + $0x92c] ss:$16 sps:$4 sm:$0xff]  }
 0x47a   : > { %4733 = vmatmul.mubr.bf16.gmra.mrb[32].mxu0 %v16264_v14 }
 0x47b   : > { %6399 = vmatmul.mubr.bf16.gmra.mrb[32].mxu1 %v16264_v14  ;;  %4742 = vmatprep.mubr.bf16.mxu0 %v16269_v13  ;;  %v16348_v14 = vld [vmem:[%s20409_s1 + $0x928] ss:$16 sps:$4 sm:$0xff]  }
 0x47c   : > { %6408 = vmatprep.mubr.bf16.mxu1 %v16269_v13  ;;  %v16353_v13 = vld [vmem:[%s20409_s1 + $0x94c] ss:$16 sps:$4 sm:$0xff]  }
 0x482   : > { %4743 = vmatmul.mubr.bf16.gmra.mrb[36].mxu0 %v16267_v2 }
 0x483   : > { %6409 = vmatmul.mubr.bf16.gmra.mrb[36].mxu1 %v16267_v2  ;;  %4752 = vmatprep.mubr.bf16.mxu0 %v16272_v20  ;;  %v16351_v2 = vld [vmem:[%s20409_s1 + $0x948] ss:$16 sps:$4 sm:$0xff]  }
 0x484   : > { %6418 = vmatprep.mubr.bf16.mxu1 %v16272_v20  ;;  %v16356_v20 = vld [vmem:[%s20409_s1 + $0x96c] ss:$16 sps:$4 sm:$0xff]  }
 0x48a   : > { %4753 = vmatmul.mubr.bf16.gmra.mrb[40].mxu0 %v16270_v12 }
 0x48b   : > { %6419 = vmatmul.mubr.bf16.gmra.mrb[40].mxu1 %v16270_v12  ;;  %4762 = vmatprep.mubr.bf16.mxu0 %v16275_v0  ;;  %v16354_v12 = vld [vmem:[%s20409_s1 + $0x968] ss:$16 sps:$4 sm:$0xff]  }
 0x48c   : > { %6428 = vmatprep.mubr.bf16.mxu1 %v16275_v0  ;;  %v16359_v0 = vld [vmem:[%s20409_s1 + $0x98c] ss:$16 sps:$4 sm:$0xff]  }
 0x492   : > { %4763 = vmatmul.mubr.bf16.gmra.mrb[44].mxu0 %v16273_v42 }
 0x493   : > { %6429 = vmatmul.mubr.bf16.gmra.mrb[44].mxu1 %v16273_v42  ;;  %4772 = vmatprep.mubr.bf16.mxu0 %v16278_v46  ;;  %v16357_v42 = vld [vmem:[%s20409_s1 + $0x988] ss:$16 sps:$4 sm:$0xff]  }
 0x494   : > { %6438 = vmatprep.mubr.bf16.mxu1 %v16278_v46  ;;  %v16362_v46 = vld [vmem:[%s20409_s1 + $0x9ac] ss:$16 sps:$4 sm:$0xff]  }
 0x49a   : > { %4773 = vmatmul.mubr.bf16.gmra.mrb[48].mxu0 %v16276_v25 }
 0x49b   : > { %6439 = vmatmul.mubr.bf16.gmra.mrb[48].mxu1 %v16276_v25  ;;  %4782 = vmatprep.mubr.bf16.mxu0 %v16281_v57  ;;  %v16360_v25 = vld [vmem:[%s20409_s1 + $0x9a8] ss:$16 sps:$4 sm:$0xff]  }
 0x49c   : > { %6448 = vmatprep.mubr.bf16.mxu1 %v16281_v57  ;;  %v16365_v57 = vld [vmem:[%s20409_s1 + $0x9cc] ss:$16 sps:$4 sm:$0xff]  }
 0x4a2   : > { %4783 = vmatmul.mubr.bf16.gmra.mrb[52].mxu0 %v16279_v9 }
 0x4a3   : > { %6449 = vmatmul.mubr.bf16.gmra.mrb[52].mxu1 %v16279_v9  ;;  %4792 = vmatprep.mubr.bf16.mxu0 %v16284_v26  ;;  %v16363_v9 = vld [vmem:[%s20409_s1 + $0x9c8] ss:$16 sps:$4 sm:$0xff]  }
 0x4a4   : > { %6458 = vmatprep.mubr.bf16.mxu1 %v16284_v26  ;;  %v16368_v26 = vld [vmem:[%s20409_s1 + $0x9ec] ss:$16 sps:$4 sm:$0xff]  }
 0x4aa   : > { %4793 = vmatmul.mubr.bf16.gmra.mrb[56].mxu0 %v16282_v55 }
 0x4ab   : > { %6459 = vmatmul.mubr.bf16.gmra.mrb[56].mxu1 %v16282_v55  ;;  %4802 = vmatprep.mubr.bf16.mxu0 %v16287_v37  ;;  %v16366_v55 = vld [vmem:[%s20409_s1 + $0x9e8] ss:$16 sps:$4 sm:$0xff]  }
 0x4ac   : > { %6468 = vmatprep.mubr.bf16.mxu1 %v16287_v37  ;;  %v16371_v37 = vld [vmem:[%s20413_s5 + $0x4] ss:$8 sps:$4 sm:$0xff]  }
 0x4b2   : > { %4803 = vmatmul.mubr.bf16.gmra.mrb[60].mxu0 %v16285_v61 }
 0x4b3   : > { %6469 = vmatmul.mubr.bf16.gmra.mrb[60].mxu1 %v16285_v61  ;;  %4812 = vmatprep.mubr.bf16.mxu0 %v16288_v4 }
 0x4b4   : > { %6478 = vmatprep.mubr.bf16.mxu1 %v16288_v4 }
 0x4ba   : > { %4813 = vmatmul.mubr.bf16.gmra.mrb[212].mxu0 %v16290_v39 }
 0x4bb   : > { %6479 = vmatmul.mubr.bf16.gmra.mrb[212].mxu1 %v16290_v39  ;;  %4822 = vmatprep.mubr.bf16.mxu0 %v16291_v15 }
 0x4bc   : > { %6488 = vmatprep.mubr.bf16.mxu1 %v16291_v15  ;;  %v16369_v15 = vld [vmem:[%s20413_s5] ss:$8 sps:$4 sm:$0xff]  }
 0x4c2   : > { %4823 = vmatmul.mubr.bf16.gmra.mrb[216].mxu0 %v16293_v7 }
 0x4c3   : > { %6489 = vmatmul.mubr.bf16.gmra.mrb[216].mxu1 %v16293_v7  ;;  %4832 = vmatprep.mubr.bf16.mxu0 %v16294_v62 }
 0x4c4   : > { %6498 = vmatprep.mubr.bf16.mxu1 %v16294_v62 }
 0x4ca   : > { %4833 = vmatmul.mubr.bf16.gmra.mrb[220].mxu0 %v16296_v30 }
 0x4cb   : > { %6499 = vmatmul.mubr.bf16.gmra.mrb[220].mxu1 %v16296_v30  ;;  %4842 = vmatprep.mubr.bf16.mxu0 %v16297_v23  ;;  %v16374_v30 = vld [vmem:[%s20413_s5 + $0x14] ss:$8 sps:$4 sm:$0xff]  }
 0x4cc   : > { %6508 = vmatprep.mubr.bf16.mxu1 %v16297_v23 }
 0x4d2   : > { %4843 = vmatmul.mubr.bf16.gmra.mrb[224].mxu0 %v16299_v53 }
 0x4d3   : > { %6509 = vmatmul.mubr.bf16.gmra.mrb[224].mxu1 %v16299_v53  ;;  %4852 = vmatprep.mubr.bf16.mxu0 %v16300_v52 }
 0x4d4   : > { %6518 = vmatprep.mubr.bf16.mxu1 %v16300_v52 }
 0x4da   : > { %4853 = vmatmul.mubr.bf16.gmra.mrb[228].mxu0 %v16302_v59 }
 0x4db   : > { %6519 = vmatmul.mubr.bf16.gmra.mrb[228].mxu1 %v16302_v59  ;;  %4862 = vmatprep.mubr.bf16.mxu0 %v16303_v34 }
 0x4dc   : > { %6528 = vmatprep.mubr.bf16.mxu1 %v16303_v34 }
 0x4e2   : > { %4863 = vmatmul.mubr.bf16.gmra.mrb[232].mxu0 %v16305_v21 }
 0x4e3   : > { %6529 = vmatmul.mubr.bf16.gmra.mrb[232].mxu1 %v16305_v21  ;;  %4872 = vmatprep.mubr.bf16.mxu0 %v16306_v43 }
 0x4e4   : > { %6538 = vmatprep.mubr.bf16.mxu1 %v16306_v43  ;;  %v16372_v43 = vld [vmem:[%s20413_s5 + $0x10] ss:$8 sps:$4 sm:$0xff]  }
 0x4ea   : > { %4873 = vmatmul.mubr.bf16.gmra.mrb[236].mxu0 %v16308_v36 }
 0x4eb   : > { %6539 = vmatmul.mubr.bf16.gmra.mrb[236].mxu1 %v16308_v36  ;;  %4882 = vmatprep.mubr.bf16.mxu0 %v16309_v22 }
 0x4ec   : > { %6548 = vmatprep.mubr.bf16.mxu1 %v16309_v22 }
 0x4f2   : > { %4883 = vmatmul.mubr.bf16.gmra.mrb[240].mxu0 %v16311_v8 }
 0x4f3   : > { %6549 = vmatmul.mubr.bf16.gmra.mrb[240].mxu1 %v16311_v8  ;;  %4892 = vmatprep.mubr.bf16.mxu0 %v16312_v6  ;;  %v16377_v8 = vld [vmem:[%s20413_s5 + $0x24] ss:$8 sps:$4 sm:$0xff]  }
 0x4f4   : > { %6558 = vmatprep.mubr.bf16.mxu1 %v16312_v6 }
 0x4fa   : > { %4893 = vmatmul.mubr.bf16.gmra.mrb[244].mxu0 %v16314_v27 }
 0x4fb   : > { %6559 = vmatmul.mubr.bf16.gmra.mrb[244].mxu1 %v16314_v27  ;;  %4902 = vmatprep.mubr.bf16.mxu0 %v16315_v44 }
 0x4fc   : > { %6568 = vmatprep.mubr.bf16.mxu1 %v16315_v44 }
 0x502   : > { %4903 = vmatmul.mubr.bf16.gmra.mrb[248].mxu0 %v16317_v63 }
 0x503   : > { %6569 = vmatmul.mubr.bf16.gmra.mrb[248].mxu1 %v16317_v63  ;;  %4912 = vmatprep.mubr.bf16.mxu0 %v16318_v29 }
 0x504   : > { %6578 = vmatprep.mubr.bf16.mxu1 %v16318_v29 }
 0x50a   : > { %4913 = vmatmul.mubr.bf16.gmra.mrb[252].mxu0 %v16320_v60 }
 0x50b   : > { %6579 = vmatmul.mubr.bf16.gmra.mrb[252].mxu1 %v16320_v60  ;;  %4922 = vmatprep.mubr.bf16.mxu0 %v16323_v40 }
 0x50c   : > { %6588 = vmatprep.mubr.bf16.mxu1 %v16323_v40  ;;  %v16375_v40 = vld [vmem:[%s20413_s5 + $0x20] ss:$8 sps:$4 sm:$0xff]  }
 0x512   : > { %4923 = vmatmul.mubr.bf16.gmra.mrb[148].mxu0 %v16321_v49 }
 0x513   : > { %6589 = vmatmul.mubr.bf16.gmra.mrb[148].mxu1 %v16321_v49  ;;  %4932 = vmatprep.mubr.bf16.mxu0 %v16326_v32 }
 0x514   : > { %6598 = vmatprep.mubr.bf16.mxu1 %v16326_v32 }
 0x51a   : > { %4933 = vmatmul.mubr.bf16.gmra.mrb[152].mxu0 %v16324_v5 }
 0x51b   : > { %6599 = vmatmul.mubr.bf16.gmra.mrb[152].mxu1 %v16324_v5  ;;  %4942 = vmatprep.mubr.bf16.mxu0 %v16329_v54  ;;  %v16380_v5 = vld [vmem:[%s20413_s5 + $0x34] ss:$8 sps:$4 sm:$0xff]  }
 0x51c   : > { %6608 = vmatprep.mubr.bf16.mxu1 %v16329_v54 }
 0x522   : > { %4943 = vmatmul.mubr.bf16.gmra.mrb[156].mxu0 %v16327_v18 }
 0x523   : > { %6609 = vmatmul.mubr.bf16.gmra.mrb[156].mxu1 %v16327_v18  ;;  %4952 = vmatprep.mubr.bf16.mxu0 %v16332_v28 }
 0x524   : > { %6618 = vmatprep.mubr.bf16.mxu1 %v16332_v28 }
 0x52a   : > { %4953 = vmatmul.mubr.bf16.gmra.mrb[160].mxu0 %v16330_v10 }
 0x52b   : > { %6619 = vmatmul.mubr.bf16.gmra.mrb[160].mxu1 %v16330_v10  ;;  %4962 = vmatprep.mubr.bf16.mxu0 %v16335_v48 }
 0x52c   : > { %6628 = vmatprep.mubr.bf16.mxu1 %v16335_v48 }
 0x532   : > { %4963 = vmatmul.mubr.bf16.gmra.mrb[164].mxu0 %v16333_v17 }
 0x533   : > { %6629 = vmatmul.mubr.bf16.gmra.mrb[164].mxu1 %v16333_v17  ;;  %4972 = vmatprep.mubr.bf16.mxu0 %v16338_v41 }
 0x534   : > { %6638 = vmatprep.mubr.bf16.mxu1 %v16338_v41  ;;  %v16378_v41 = vld [vmem:[%s20413_s5 + $0x30] ss:$8 sps:$4 sm:$0xff]  }
 0x53a   : > { %4973 = vmatmul.mubr.bf16.gmra.mrb[168].mxu0 %v16336_v31 }
 0x53b   : > { %6639 = vmatmul.mubr.bf16.gmra.mrb[168].mxu1 %v16336_v31  ;;  %4982 = vmatprep.mubr.bf16.mxu0 %v16341_v35 }
 0x53c   : > { %6648 = vmatprep.mubr.bf16.mxu1 %v16341_v35 }
 0x542   : > { %4983 = vmatmul.mubr.bf16.gmra.mrb[172].mxu0 %v16339_v45 }
 0x543   : > { %6649 = vmatmul.mubr.bf16.gmra.mrb[172].mxu1 %v16339_v45  ;;  %4992 = vmatprep.mubr.bf16.mxu0 %v16344_v1 }
 0x544   : > { %6658 = vmatprep.mubr.bf16.mxu1 %v16344_v1 }
 0x54a   : > { %4993 = vmatmul.mubr.bf16.gmra.mrb[176].mxu0 %v16342_v11 }
 0x54b   : > { %6659 = vmatmul.mubr.bf16.gmra.mrb[176].mxu1 %v16342_v11  ;;  %5002 = vmatprep.mubr.bf16.mxu0 %v16347_v51 }
 0x54c   : > { %6668 = vmatprep.mubr.bf16.mxu1 %v16347_v51  ;;  %v20631_v51 = vmov 0  }
 0x552   : > { %5003 = vmatmul.mubr.bf16.gmra.mrb[180].mxu0 %v16345_v47 }
 0x553   : > { %6669 = vmatmul.mubr.bf16.gmra.mrb[180].mxu1 %v16345_v47  ;;  %5012 = vmatprep.mubr.bf16.mxu0 %v16350_v56 }
 0x554   : > { %6678 = vmatprep.mubr.bf16.mxu1 %v16350_v56 }
 0x55a   : > { %5013 = vmatmul.mubr.bf16.gmra.mrb[184].mxu0 %v16348_v14 }
 0x55b   : > { %6679 = vmatmul.mubr.bf16.gmra.mrb[184].mxu1 %v16348_v14  ;;  %5022 = vmatprep.mubr.bf16.mxu0 %v16353_v13 }
 0x55c   : > { %6688 = vmatprep.mubr.bf16.mxu1 %v16353_v13 }
 0x562   : > { %5023 = vmatmul.mubr.bf16.gmra.mrb[188].mxu0 %v16351_v2 }
 0x563   : > { %6689 = vmatmul.mubr.bf16.gmra.mrb[188].mxu1 %v16351_v2  ;;  %5032 = vmatprep.mubr.bf16.mxu0 %v16356_v20 }
 0x564   : > { %6698 = vmatprep.mubr.bf16.mxu1 %v16356_v20 }
 0x56a   : > { %5033 = vmatmul.mubr.bf16.gmra.mrb[192].mxu0 %v16354_v12 }
 0x56b   : > { %6699 = vmatmul.mubr.bf16.gmra.mrb[192].mxu1 %v16354_v12  ;;  %5042 = vmatprep.mubr.bf16.mxu0 %v16359_v0 }
 0x56c   : > { %6708 = vmatprep.mubr.bf16.mxu1 %v16359_v0 }
 0x572   : > { %5043 = vmatmul.mubr.bf16.gmra.mrb[196].mxu0 %v16357_v42 }
 0x573   : > { %6709 = vmatmul.mubr.bf16.gmra.mrb[196].mxu1 %v16357_v42  ;;  %5052 = vmatprep.mubr.bf16.mxu0 %v16362_v46 }
 0x574   : > { %6718 = vmatprep.mubr.bf16.mxu1 %v16362_v46 }
 0x57a   : > { %5053 = vmatmul.mubr.bf16.gmra.mrb[200].mxu0 %v16360_v25 }
 0x57b   : > { %6719 = vmatmul.mubr.bf16.gmra.mrb[200].mxu1 %v16360_v25  ;;  %5062 = vmatprep.mubr.bf16.mxu0 %v16365_v57 }
 0x57c   : > { %6728 = vmatprep.mubr.bf16.mxu1 %v16365_v57 }
 0x582   : > { %5063 = vmatmul.mubr.bf16.gmra.mrb[204].mxu0 %v16363_v9 }
 0x583   : > { %6729 = vmatmul.mubr.bf16.gmra.mrb[204].mxu1 %v16363_v9  ;;  %5072 = vmatprep.mubr.bf16.mxu0 %v16368_v26 }
 0x584   : > { %6738 = vmatprep.mubr.bf16.mxu1 %v16368_v26 }
 0x58a   : > { %5073 = vmatmul.mubr.bf16.gmra.mrb[208].mxu0 %v16366_v55 }
 0x58b   : > { %6739 = vmatmul.mubr.bf16.gmra.mrb[208].mxu1 %v16366_v55  ;;  %7389 = vmatprep.mubr.bf16.mxu0 %v16371_v37 }
 0x58c   : > { %7462 = vmatprep.mubr.bf16.mxu1 %v16371_v37 }
 0x58d   : > { %v19159_v61 = vpop.f32.mrb[212].mxu0 }
 0x58e   : > { %v6480_v4 = vpop.f32.mrb[212].mxu1  ;;  %v4816_v39 = vpop.f32.mrb[213].mxu0 }
 0x58f   : > { %v6482_v7 = vpop.f32.mrb[213].mxu1  ;;  %v19164_v62 = vpop.f32.mrb[214].mxu0 }
 0x590   : > { %20624 = vst [vmem:[#allocation151_spill] sm:$0xff] %v19164_v62  ;;  %v6484_v23 = vpop.f32.mrb[214].mxu1  ;;  %v4820_v53 = vpop.f32.mrb[215].mxu0  ;;  %v20699_v62 = vld [vmem:[#allocation38_spill] sm:$0xff] }
 0x591   : > { %v6486_v52 = vpop.f32.mrb[215].mxu1 }
 0x592   : > { %7390 = vmatmul.mubr.bf16.vlgmr.msra.gmra.mrb[212].mxu0 %v16369_v15 }
 0x593   : > { %7463 = vmatmul.mubr.bf16.vlgmr.msra.gmra.mrb[212].mxu1 %v16369_v15  ;;  %7399 = vmatprep.mubr.bf16.mxu0 %v16374_v30 }
 0x594   : > { %7472 = vmatprep.mubr.bf16.mxu1 %v16374_v30 }
 0x595   : > { %v19169_v59 = vpop.f32.mrb[216].mxu0 }
 0x596   : > { %20625 = vst [vmem:[#allocation152_spill] sm:$0xff] %v19169_v59  ;;  %v6490_v34 = vpop.f32.mrb[216].mxu1  ;;  %v4826_v21 = vpop.f32.mrb[217].mxu0 }
 0x597   : > { %v6492_v36 = vpop.f32.mrb[217].mxu1  ;;  %v19174_v22 = vpop.f32.mrb[218].mxu0 }
 0x598   : > { %20626 = vst [vmem:[#allocation153_spill] sm:$0xff] %v19174_v22  ;;  %v6494_v6 = vpop.f32.mrb[218].mxu1  ;;  %v4830_v27 = vpop.f32.mrb[219].mxu0 }
 0x599   : > { %v6496_v44 = vpop.f32.mrb[219].mxu1 }
 0x59a   : > { %7400 = vmatmul.mubr.bf16.gmra.mrb[216].mxu0 %v16372_v43 }
 0x59b   : > { %7473 = vmatmul.mubr.bf16.gmra.mrb[216].mxu1 %v16372_v43  ;;  %7409 = vmatprep.mubr.bf16.mxu0 %v16377_v8 }
 0x59c   : > { %7482 = vmatprep.mubr.bf16.mxu1 %v16377_v8 }
 0x59d   : > { %v19179_v63 = vpop.f32.mrb[220].mxu0 }
 0x59e   : > { %20627 = vst [vmem:[#allocation154_spill] sm:$0xff] %v19179_v63  ;;  %v6500_v29 = vpop.f32.mrb[220].mxu1  ;;  %v4836_v60 = vpop.f32.mrb[221].mxu0 }
 0x59f   : > { %v6502_v49 = vpop.f32.mrb[221].mxu1  ;;  %v19184_v32 = vpop.f32.mrb[222].mxu0 }
 0x5a0   : > { %20628 = vst [vmem:[#allocation155_spill] sm:$0xff] %v19184_v32  ;;  %v6504_v54 = vpop.f32.mrb[222].mxu1  ;;  %v4840_v18 = vpop.f32.mrb[223].mxu0 }
 0x5a1   : > { %v6506_v28 = vpop.f32.mrb[223].mxu1 }
 0x5a2   : > { %7410 = vmatmul.mubr.bf16.gmra.mrb[220].mxu0 %v16375_v40 }
 0x5a3   : > { %7483 = vmatmul.mubr.bf16.gmra.mrb[220].mxu1 %v16375_v40  ;;  %7419 = vmatprep.mubr.bf16.mxu0 %v16380_v5 }
 0x5a4   : > { %7492 = vmatprep.mubr.bf16.mxu1 %v16380_v5 }
 0x5a5   : > { %v19189_v10 = vpop.f32.mrb[224].mxu0 }
 0x5a6   : > { %20629 = vst [vmem:[#allocation156_spill] sm:$0xff] %v19189_v10  ;;  %v6510_v48 = vpop.f32.mrb[224].mxu1  ;;  %v4846_v17 = vpop.f32.mrb[225].mxu0 }
 0x5a7   : > { %v6512_v31 = vpop.f32.mrb[225].mxu1  ;;  %v19194_v35 = vpop.f32.mrb[226].mxu0 }
 0x5a8   : > { %20630 = vst [vmem:[#allocation157_spill] sm:$0xff] %v19194_v35  ;;  %v6514_v45 = vpop.f32.mrb[226].mxu1  ;;  %v4850_v1 = vpop.f32.mrb[227].mxu0 }
 0x5a9   : > { %v6516_v11 = vpop.f32.mrb[227].mxu1 }
 0x5aa   : > { %7420 = vmatmul.mubr.bf16.gmra.mrb[224].mxu0 %v16378_v41 }
 0x5ab   : > { %7493 = vmatmul.mubr.bf16.gmra.mrb[224].mxu1 %v16378_v41  ;;  %7776 = vmatprep.mubr.bf16.mxu0 %v20631_v51 }
 0x5ac   : > { %7969 = vmatprep.mubr.bf16.mxu1 %v20631_v51 }
 0x62d   : > { %v19198_v47 = vpop.f32.mrb[184].mxu0 }
 0x62e   : > { %20632 = vst [vmem:[#allocation158_spill] sm:$0xff] %v19198_v47  ;;  %v6680_v56 = vpop.f32.mrb[184].mxu1  ;;  %v5016_v14 = vpop.f32.mrb[185].mxu0 }
 0x62f   : > { %v6682_v13 = vpop.f32.mrb[185].mxu1  ;;  %v19200_v2 = vpop.f32.mrb[186].mxu0 }
 0x630   : > { %20633 = vst [vmem:[#allocation159_spill] sm:$0xff] %v19200_v2  ;;  %v6684_v20 = vpop.f32.mrb[186].mxu1  ;;  %v5020_v12 = vpop.f32.mrb[187].mxu0 }
 0x631   : > { %v6686_v0 = vpop.f32.mrb[187].mxu1 }
 0x635   : > { %v19202_v42 = vpop.f32.mrb[188].mxu0 }
 0x636   : > { %20634 = vst [vmem:[#allocation160_spill] sm:$0xff] %v19202_v42  ;;  %v6690_v46 = vpop.f32.mrb[188].mxu1  ;;  %v5026_v25 = vpop.f32.mrb[189].mxu0 }
 0x637   : > { %v6692_v57 = vpop.f32.mrb[189].mxu1  ;;  %v19204_v9 = vpop.f32.mrb[190].mxu0 }
 0x638   : > { %20635 = vst [vmem:[#allocation161_spill] sm:$0xff] %v19204_v9  ;;  %v6694_v26 = vpop.f32.mrb[190].mxu1  ;;  %v5030_v55 = vpop.f32.mrb[191].mxu0 }
 0x639   : > { %v6696_v37 = vpop.f32.mrb[191].mxu1 }
 0x63d   : > { %v19206_v4 = vpop.f32.mrb[192].mxu0 }
 0x63e   : > { %20636 = vst [vmem:[#allocation162_spill] sm:$0xff] %v19206_v4  ;;  %v6700_v39 = vpop.f32.mrb[192].mxu1  ;;  %v5036_v15 = vpop.f32.mrb[193].mxu0 }
 0x63f   : > { %v6702_v7 = vpop.f32.mrb[193].mxu1  ;;  %v19208_v30 = vpop.f32.mrb[194].mxu0 }
 0x640   : > { %20637 = vst [vmem:[#allocation163_spill] sm:$0xff] %v19208_v30  ;;  %v6704_v23 = vpop.f32.mrb[194].mxu1  ;;  %v5040_v53 = vpop.f32.mrb[195].mxu0 }
 0x641   : > { %v6706_v52 = vpop.f32.mrb[195].mxu1 }
 0x645   : > { %v19210_v34 = vpop.f32.mrb[196].mxu0 }
 0x646   : > { %20638 = vst [vmem:[#allocation164_spill] sm:$0xff] %v19210_v34  ;;  %v6710_v21 = vpop.f32.mrb[196].mxu1  ;;  %v5046_v43 = vpop.f32.mrb[197].mxu0 }
 0x647   : > { %v6712_v36 = vpop.f32.mrb[197].mxu1  ;;  %v19212_v8 = vpop.f32.mrb[198].mxu0 }
 0x648   : > { %20639 = vst [vmem:[#allocation165_spill] sm:$0xff] %v19212_v8  ;;  %v6714_v6 = vpop.f32.mrb[198].mxu1  ;;  %v5050_v27 = vpop.f32.mrb[199].mxu0  ;;  %v20678_v8 = vld [vmem:[#allocation111_spill] sm:$0xff] }
 0x649   : > { %v6716_v44 = vpop.f32.mrb[199].mxu1 }
 0x665   : > { %v7391_v29 = vpop.f32.mrb[212].mxu0 }
 0x666   : > { %v7392_v60 = vadd.f32 %v7391_v29, %v17720_v16  ;;  %v7464_v40 = vpop.f32.mrb[212].mxu1  ;;  %v7393_v49 = vpop.f32.mrb[213].mxu0 }
 0x667   : > { %v7465_v5 = vadd.f32 %v7464_v40, %v17720_v16  ;;  %v7394_v54 = vadd.f32 %v7393_v49, %v17720_v16  ;;  %v7466_v18 = vpop.f32.mrb[213].mxu1  ;;  %v7395_v28 = vpop.f32.mrb[214].mxu0 }
 0x668   : > { %v7467_v48 = vadd.f32 %v7466_v18, %v17720_v16  ;;  %v7396_v17 = vadd.f32 %v7395_v28, %v17847_v58  ;;  %v7468_v41 = vpop.f32.mrb[214].mxu1  ;;  %v7397_v31 = vpop.f32.mrb[215].mxu0  ;;  %v7503_v56 = vmax.f32 %v7392_v60, 0.0 }
 0x669   : > { %v7469_v45 = vadd.f32 %v7468_v41, %v17847_v58  ;;  %v7398_v1 = vadd.f32 %v7397_v31, %v17847_v58  ;;  %v7470_v11 = vpop.f32.mrb[215].mxu1  ;;  %v7505_v20 = vmax.f32 %v7465_v5, 0.0  ;;  %v7504_v12 = vmax.f32 %v7394_v54, 0.0 }
 0x66a   : > { %v7507_v14 = vmax.f32 %v7396_v17, 0.0  ;;  %v7471_v13 = vadd.f32 %v7470_v11, %v17847_v58  ;;  %v7506_v25 = vmax.f32 %v7467_v48, 0.0 }
 0x66b   : > { %v7509_v0 = vmax.f32 %v7469_v45, 0.0  ;;  %v7508_v46 = vmax.f32 %v7398_v1, 0.0 }
 0x66c   : > { %v19222_v57 = vpack.c.bf16 %v7507_v14, %v7503_v56  ;;  %v7510_v16 = vmax.f32 %v7471_v13, 0.0 }
 0x66d   : > { %v19224_v26 = vpack.c.bf16 %v7509_v0, %v7505_v20  ;;  %v7401_v55 = vpop.f32.mrb[216].mxu0  ;;  %v19226_v37 = vpack.c.bf16 %v7508_v46, %v7504_v12 }
 0x66e   : > { %v7402_v39 = vadd.f32 %v7401_v55, %v17736_v24  ;;  %v7474_v15 = vpop.f32.mrb[216].mxu1  ;;  %v7403_v7 = vpop.f32.mrb[217].mxu0  ;;  %v19229_v23 = vpack.c.bf16 %v7510_v16, %v7506_v25 }
 0x66f   : > { %v7475_v58 = vadd.f32 %v7474_v15, %v17736_v24  ;;  %v7404_v53 = vadd.f32 %v7403_v7, %v17736_v24  ;;  %v7476_v52 = vpop.f32.mrb[217].mxu1  ;;  %v7405_v21 = vpop.f32.mrb[218].mxu0  ;;  %7744 = vmatprep.subr.bf16.mxu0 %v19226_v37 }
 0x670   : > { %v7477_v43 = vadd.f32 %v7476_v52, %v17736_v24  ;;  %v7406_v36 = vadd.f32 %v7405_v21, %v17857_v3  ;;  %v7478_v6 = vpop.f32.mrb[218].mxu1  ;;  %7937 = vmatprep.subr.bf16.mxu1 %v19229_v23  ;;  %v7407_v27 = vpop.f32.mrb[219].mxu0  ;;  %7745 = vmatpush1.bf16.msra.mxu0 %v19222_v57  ;;  %v7511_v40 = vmax.f32 %v7402_v39, 0.0 }
 0x671   : > { %v7479_v44 = vadd.f32 %v7478_v6, %v17857_v3  ;;  %v7408_v29 = vadd.f32 %v7407_v27, %v17857_v3  ;;  %v7480_v60 = vpop.f32.mrb[219].mxu1  ;;  %7938 = vmatpush1.bf16.msra.mxu1 %v19224_v26  ;;  %v7513_v24 = vmax.f32 %v7475_v58, 0.0  ;;  %v7512_v54 = vmax.f32 %v7404_v53, 0.0 }
 0x672   : > { %v7515_v49 = vmax.f32 %v7406_v36, 0.0  ;;  %v7481_v5 = vadd.f32 %v7480_v60, %v17857_v3  ;;  %v7514_v48 = vmax.f32 %v7477_v43, 0.0 }
 0x673   : > { %v7517_v18 = vmax.f32 %v7479_v44, 0.0  ;;  %v7516_v28 = vmax.f32 %v7408_v29, 0.0 }
 0x674   : > { %v19242_v17 = vpack.c.bf16 %v7515_v49, %v7511_v40  ;;  %v7518_v41 = vmax.f32 %v7481_v5, 0.0 }
 0x675   : > { %v19244_v31 = vpack.c.bf16 %v7517_v18, %v7513_v24  ;;  %v7411_v45 = vpop.f32.mrb[220].mxu0  ;;  %v19246_v1 = vpack.c.bf16 %v7516_v28, %v7512_v54 }
 0x676   : > { %v7412_v11 = vadd.f32 %v7411_v45, %v17752_v33  ;;  %v7484_v56 = vpop.f32.mrb[220].mxu1  ;;  %v7413_v14 = vpop.f32.mrb[221].mxu0  ;;  %v19249_v13 = vpack.c.bf16 %v7518_v41, %v7514_v48 }
 0x677   : > { %v7485_v3 = vadd.f32 %v7484_v56, %v17752_v33  ;;  %v7414_v20 = vadd.f32 %v7413_v14, %v17752_v33  ;;  %v7486_v12 = vpop.f32.mrb[221].mxu1  ;;  %v7415_v0 = vpop.f32.mrb[222].mxu0  ;;  %7746 = vmatprep.subr.bf16.mxu0 %v19246_v1 }
 0x678   : > { %v7487_v46 = vadd.f32 %v7486_v12, %v17752_v33  ;;  %v7416_v25 = vadd.f32 %v7415_v0, %v17876_v19  ;;  %v7488_v16 = vpop.f32.mrb[222].mxu1  ;;  %7939 = vmatprep.subr.bf16.mxu1 %v19249_v13  ;;  %v7417_v55 = vpop.f32.mrb[223].mxu0  ;;  %7747 = vmatpush1.bf16.msra.mxu0 %v19242_v17  ;;  %v7519_v58 = vmax.f32 %v7412_v11, 0.0 }
 0x679   : > { %v7489_v39 = vadd.f32 %v7488_v16, %v17876_v19  ;;  %v7418_v15 = vadd.f32 %v7417_v55, %v17876_v19  ;;  %v7490_v7 = vpop.f32.mrb[223].mxu1  ;;  %7940 = vmatpush1.bf16.msra.mxu1 %v19244_v31  ;;  %v7521_v33 = vmax.f32 %v7485_v3, 0.0  ;;  %v7520_v21 = vmax.f32 %v7414_v20, 0.0 }
 0x67a   : > { %v7523_v53 = vmax.f32 %v7416_v25, 0.0  ;;  %v7491_v52 = vadd.f32 %v7490_v7, %v17876_v19  ;;  %v7522_v6 = vmax.f32 %v7487_v46, 0.0 }
 0x67b   : > { %v7525_v43 = vmax.f32 %v7489_v39, 0.0  ;;  %v7524_v36 = vmax.f32 %v7418_v15, 0.0 }
 0x67c   : > { %v19262_v27 = vpack.c.bf16 %v7523_v53, %v7519_v58  ;;  %v7526_v44 = vmax.f32 %v7491_v52, 0.0 }
 0x67d   : > { %v19264_v29 = vpack.c.bf16 %v7525_v43, %v7521_v33  ;;  %v7421_v60 = vpop.f32.mrb[224].mxu0  ;;  %v19266_v40 = vpack.c.bf16 %v7524_v36, %v7520_v21  ;;  %v16382_v33 = vld [vmem:[%s20410_s2 + $0x8] sm:$0xff]   ;;  %v16383_v21 = vld [vmem:[%s20410_s2 + $0x10] sm:$0xff]   ;;  %v16384_v43 = vld [vmem:[%s20410_s2 + $0x18] sm:$0xff]  }
 0x67e   : > { %v7422_v49 = vadd.f32 %v7421_v60, %v17773_v50  ;;  %v7494_v5 = vpop.f32.mrb[224].mxu1  ;;  %v7423_v24 = vpop.f32.mrb[225].mxu0  ;;  %v19269_v54 = vpack.c.bf16 %v7526_v44, %v7522_v6  ;;  %v16385_v36 = vld [vmem:[%s20410_s2 + $0x20] sm:$0xff]   ;;  %v16386_v6 = vld [vmem:[%s20410_s2 + $0x28] sm:$0xff]   ;;  %v16387_v44 = vld [vmem:[%s20410_s2 + $0x30] sm:$0xff]  }
 0x67f   : > { %v7495_v19 = vadd.f32 %v7494_v5, %v17773_v50  ;;  %v7424_v18 = vadd.f32 %v7423_v24, %v17773_v50  ;;  %v7496_v28 = vpop.f32.mrb[225].mxu1  ;;  %v7425_v48 = vpop.f32.mrb[226].mxu0  ;;  %7748 = vmatprep.subr.bf16.mxu0 %v19266_v40  ;;  %v16388_v60 = vld [vmem:[%s20410_s2 + $0x38] sm:$0xff]   ;;  %v16390_v5 = vld [vmem:[%s20410_s2 + $0x48] sm:$0xff]   ;;  %v16391_v24 = vld [vmem:[%s20410_s2 + $0x50] sm:$0xff]  }
 0x680   : > { %v7497_v41 = vadd.f32 %v7496_v28, %v17773_v50  ;;  %v7426_v45 = vadd.f32 %v7425_v48, %v17895_v38  ;;  %v7498_v11 = vpop.f32.mrb[226].mxu1  ;;  %7941 = vmatprep.subr.bf16.mxu1 %v19269_v54  ;;  %v7427_v56 = vpop.f32.mrb[227].mxu0  ;;  %7749 = vmatpush1.bf16.msra.mxu0 %v19262_v27  ;;  %v7527_v12 = vmax.f32 %v7422_v49, 0.0  ;;  %v16389_v49 = vld [vmem:[%s20410_s2 + $0x40] sm:$0xff]   ;;  %v16394_v28 = vld [vmem:[%s20410_s2 + $0x68] sm:$0xff]   ;;  %v16395_v48 = vld [vmem:[%s20410_s2 + $0x70] sm:$0xff]  }
 0x681   : > { %v7499_v14 = vadd.f32 %v7498_v11, %v17895_v38  ;;  %v7428_v3 = vadd.f32 %v7427_v56, %v17895_v38  ;;  %v7500_v20 = vpop.f32.mrb[227].mxu1  ;;  %7942 = vmatpush1.bf16.msra.mxu1 %v19264_v29  ;;  %v7529_v50 = vmax.f32 %v7495_v19, 0.0  ;;  %v7528_v25 = vmax.f32 %v7424_v18, 0.0  ;;  %v16392_v19 = vld [vmem:[%s20410_s2 + $0x58] sm:$0xff]   ;;  %v16393_v18 = vld [vmem:[%s20410_s2 + $0x60] sm:$0xff]  }
 0x682   : > { %v7531_v0 = vmax.f32 %v7426_v45, 0.0  ;;  %v7501_v46 = vadd.f32 %v7500_v20, %v17895_v38  ;;  %v7530_v39 = vmax.f32 %v7497_v41, 0.0  ;;  %v16381_v38 = vld [vmem:[%s20410_s2] sm:$0xff]   ;;  %v16396_v41 = vld [vmem:[%s20410_s2 + $0x78] sm:$0xff]  }
 0x683   : > { %v7533_v16 = vmax.f32 %v7499_v14, 0.0  ;;  %v7532_v55 = vmax.f32 %v7428_v3, 0.0  ;;  %v20640_v11 = vld [vmem:[#allocation7_spill] sm:$0xff] }
 0x684   : > { %v19282_v15 = vpack.c.bf16 %v7531_v0, %v7527_v12  ;;  %v7534_v7 = vmax.f32 %v7501_v46, 0.0 }
 0x685   : > { %v19284_v58 = vpack.c.bf16 %v7533_v16, %v7529_v50  ;;  %v19286_v53 = vpack.c.bf16 %v7532_v55, %v7528_v25  ;;  %v20641_v25 = vld [vmem:[#allocation14_spill] sm:$0xff] }
 0x686   : > { %v19288_v52 = vpack.c.bf16 %v7534_v7, %v7530_v39 }
 0x687   : > { %7750 = vmatprep.subr.bf16.mxu0 %v19286_v53 }
 0x688   : > { %7943 = vmatprep.subr.bf16.mxu1 %v19288_v52  ;;  %7751 = vmatpush1.bf16.msra.mxu0 %v19282_v15 }
 0x689   : > { %7944 = vmatpush1.bf16.msra.mxu1 %v19284_v58 }
 0x68b   : > { %14363 = vmatmul.mubr.msk.bf16.vlgmr.msra.gmra.mrb[64].mxu0 %vm7695_vm0, %v16381_v38 }
 0x68c   : > { %14379 = vmatmul.mubr.msk.bf16.vlgmr.msra.gmra.mrb[64].mxu1 %vm7695_vm0, %v16381_v38  ;;  %7786 = vmatprep.mubr.bf16.mxu0 %v20631_v51 }
 0x68d   : > { %7979 = vmatprep.mubr.bf16.mxu1 %v20631_v51 }
 0x693   : > { %14364 = vmatmul.mubr.msk.bf16.gmra.mrb[68].mxu0 %vm7695_vm0, %v16382_v33 }
 0x694   : > { %14380 = vmatmul.mubr.msk.bf16.gmra.mrb[68].mxu1 %vm7695_vm0, %v16382_v33  ;;  %7796 = vmatprep.mubr.bf16.mxu0 %v20631_v51 }
 0x695   : > { %7989 = vmatprep.mubr.bf16.mxu1 %v20631_v51 }
 0x69b   : > { %14365 = vmatmul.mubr.msk.bf16.gmra.mrb[72].mxu0 %vm7695_vm0, %v16383_v21 }
 0x69c   : > { %14381 = vmatmul.mubr.msk.bf16.gmra.mrb[72].mxu1 %vm7695_vm0, %v16383_v21  ;;  %7806 = vmatprep.mubr.bf16.mxu0 %v20631_v51  ;;  %v16399_v21 = vld [vmem:[%s20414_s6 + $0x4] ss:$8 sps:$4 sm:$0xff]  }
 0x69d   : > { %7999 = vmatprep.mubr.bf16.mxu1 %v20631_v51 }
 0x6a3   : > { %14366 = vmatmul.mubr.msk.bf16.gmra.mrb[76].mxu0 %vm7695_vm0, %v16384_v43 }
 0x6a4   : > { %14382 = vmatmul.mubr.msk.bf16.gmra.mrb[76].mxu1 %vm7695_vm0, %v16384_v43  ;;  %7816 = vmatprep.mubr.bf16.mxu0 %v20631_v51 }
 0x6a5   : > { %8009 = vmatprep.mubr.bf16.mxu1 %v20631_v51 }
 0x6ab   : > { %14367 = vmatmul.mubr.msk.bf16.gmra.mrb[80].mxu0 %vm7695_vm0, %v16385_v36 }
 0x6ac   : > { %14383 = vmatmul.mubr.msk.bf16.gmra.mrb[80].mxu1 %vm7695_vm0, %v16385_v36  ;;  %7826 = vmatprep.mubr.bf16.mxu0 %v20631_v51 }
 0x6ad   : > { %8019 = vmatprep.mubr.bf16.mxu1 %v20631_v51 }
 0x6b3   : > { %14368 = vmatmul.mubr.msk.bf16.gmra.mrb[84].mxu0 %vm7695_vm0, %v16386_v6 }
 0x6b4   : > { %14384 = vmatmul.mubr.msk.bf16.gmra.mrb[84].mxu1 %vm7695_vm0, %v16386_v6  ;;  %7836 = vmatprep.mubr.bf16.mxu0 %v20631_v51 }
 0x6b5   : > { %8029 = vmatprep.mubr.bf16.mxu1 %v20631_v51 }
 0x6bb   : > { %14369 = vmatmul.mubr.msk.bf16.gmra.mrb[88].mxu0 %vm7695_vm0, %v16387_v44 }
 0x6bc   : > { %14385 = vmatmul.mubr.msk.bf16.gmra.mrb[88].mxu1 %vm7695_vm0, %v16387_v44  ;;  %7846 = vmatprep.mubr.bf16.mxu0 %v20631_v51 }
 0x6bd   : > { %8039 = vmatprep.mubr.bf16.mxu1 %v20631_v51 }
 0x6c3   : > { %14370 = vmatmul.mubr.msk.bf16.gmra.mrb[92].mxu0 %vm7695_vm0, %v16388_v60 }
 0x6c4   : > { %14386 = vmatmul.mubr.msk.bf16.gmra.mrb[92].mxu1 %vm7695_vm0, %v16388_v60  ;;  %7856 = vmatprep.mubr.bf16.mxu0 %v20631_v51 }
 0x6c5   : > { %8049 = vmatprep.mubr.bf16.mxu1 %v20631_v51 }
 0x6cb   : > { %14371 = vmatmul.mubr.msk.bf16.gmra.mrb[96].mxu0 %vm7695_vm0, %v16389_v49 }
 0x6cc   : > { %14387 = vmatmul.mubr.msk.bf16.gmra.mrb[96].mxu1 %vm7695_vm0, %v16389_v49  ;;  %7866 = vmatprep.mubr.bf16.mxu0 %v20631_v51 }
 0x6cd   : > { %8059 = vmatprep.mubr.bf16.mxu1 %v20631_v51 }
 0x6d3   : > { %14372 = vmatmul.mubr.msk.bf16.gmra.mrb[100].mxu0 %vm7695_vm0, %v16390_v5 }
 0x6d4   : > { %14388 = vmatmul.mubr.msk.bf16.gmra.mrb[100].mxu1 %vm7695_vm0, %v16390_v5  ;;  %7876 = vmatprep.mubr.bf16.mxu0 %v20631_v51 }
 0x6d5   : > { %8069 = vmatprep.mubr.bf16.mxu1 %v20631_v51 }
 0x6db   : > { %14373 = vmatmul.mubr.msk.bf16.gmra.mrb[104].mxu0 %vm7695_vm0, %v16391_v24 }
 0x6dc   : > { %14389 = vmatmul.mubr.msk.bf16.gmra.mrb[104].mxu1 %vm7695_vm0, %v16391_v24  ;;  %7886 = vmatprep.mubr.bf16.mxu0 %v20631_v51 }
 0x6dd   : > { %8079 = vmatprep.mubr.bf16.mxu1 %v20631_v51 }
 0x6e3   : > { %14374 = vmatmul.mubr.msk.bf16.gmra.mrb[108].mxu0 %vm7695_vm0, %v16392_v19 }
 0x6e4   : > { %14390 = vmatmul.mubr.msk.bf16.gmra.mrb[108].mxu1 %vm7695_vm0, %v16392_v19  ;;  %7896 = vmatprep.mubr.bf16.mxu0 %v20631_v51 }
 0x6e5   : > { %8089 = vmatprep.mubr.bf16.mxu1 %v20631_v51 }
 0x6eb   : > { %14375 = vmatmul.mubr.msk.bf16.gmra.mrb[112].mxu0 %vm7695_vm0, %v16393_v18 }
 0x6ec   : > { %14391 = vmatmul.mubr.msk.bf16.gmra.mrb[112].mxu1 %vm7695_vm0, %v16393_v18  ;;  %7906 = vmatprep.mubr.bf16.mxu0 %v20631_v51 }
 0x6ed   : > { %8099 = vmatprep.mubr.bf16.mxu1 %v20631_v51 }
 0x6f3   : > { %14376 = vmatmul.mubr.msk.bf16.gmra.mrb[116].mxu0 %vm7695_vm0, %v16394_v28 }
 0x6f4   : > { %14392 = vmatmul.mubr.msk.bf16.gmra.mrb[116].mxu1 %vm7695_vm0, %v16394_v28  ;;  %7916 = vmatprep.mubr.bf16.mxu0 %v20631_v51 }
 0x6f5   : > { %8109 = vmatprep.mubr.bf16.mxu1 %v20631_v51 }
 0x6fb   : > { %14377 = vmatmul.mubr.msk.bf16.gmra.mrb[120].mxu0 %vm7695_vm0, %v16395_v48 }
 0x6fc   : > { %14393 = vmatmul.mubr.msk.bf16.gmra.mrb[120].mxu1 %vm7695_vm0, %v16395_v48  ;;  %7926 = vmatprep.mubr.bf16.mxu0 %v20631_v51 }
 0x6fd   : > { %8119 = vmatprep.mubr.bf16.mxu1 %v20631_v51 }
 0x703   : > { %14378 = vmatmul.mubr.msk.bf16.gmra.mrb[124].mxu0 %vm7695_vm0, %v16396_v41 }
 0x704   : > { %14394 = vmatmul.mubr.msk.bf16.gmra.mrb[124].mxu1 %vm7695_vm0, %v16396_v41  ;;  %8898 = vmatprep.mubr.bf16.mxu0 %v16399_v21 }
 0x705   : > { %8971 = vmatprep.mubr.bf16.mxu1 %v16399_v21 }
 0x75e   : > { %v7778_v45 = vpop.f32.mrb[64].mxu0 }
 0x75f   : > { %v8450_v56 = vadd.f32 %v20640_v11, %v7778_v45  ;;  %v7971_v14 = vpop.f32.mrb[64].mxu1  ;;  %v7780_v3 = vpop.f32.mrb[65].mxu0  ;;  %v20642_v45 = vld [vmem:[#allocation8_spill] sm:$0xff] }
 0x760   : > { %v8452_v20 = vadd.f32 %v20640_v11, %v7971_v14  ;;  %v8451_v12 = vadd.f32 %v20640_v11, %v7780_v3  ;;  %v7973_v0 = vpop.f32.mrb[65].mxu1  ;;  %v7782_v46 = vpop.f32.mrb[66].mxu0 }
 0x761   : > { %v8453_v50 = vadd.f32 %v20640_v11, %v7973_v0  ;;  %v8454_v16 = vadd.f32 %v20641_v25, %v7782_v46  ;;  %v7975_v55 = vpop.f32.mrb[66].mxu1  ;;  %v7784_v39 = vpop.f32.mrb[67].mxu0  ;;  %v8578_v43 = vmax.f32 %v8450_v56, 0.0 }
 0x762   : > { %v8456_v7 = vadd.f32 %v20641_v25, %v7975_v55  ;;  %v8455_v38 = vadd.f32 %v20641_v25, %v7784_v39  ;;  %v7977_v33 = vpop.f32.mrb[67].mxu1  ;;  %v8580_v44 = vmax.f32 %v8452_v20, 0.0  ;;  %v8579_v60 = vmax.f32 %v8451_v12, 0.0 }
 0x763   : > { %v8582_v36 = vmax.f32 %v8454_v16, 0.0  ;;  %v8457_v6 = vadd.f32 %v20641_v25, %v7977_v33  ;;  %v8581_v24 = vmax.f32 %v8453_v50, 0.0  ;;  %v20643_v50 = vld [vmem:[#allocation16_spill] sm:$0xff] }
 0x764   : > { %v8584_v49 = vmax.f32 %v8456_v7, 0.0  ;;  %v8583_v5 = vmax.f32 %v8455_v38, 0.0 }
 0x765   : > { %v8714_v19 = vpack.c.bf16 %v8582_v36, %v8578_v43  ;;  %v8585_v18 = vmax.f32 %v8457_v6, 0.0 }
 0x766   : > { %v8716_v28 = vpack.c.bf16 %v8584_v49, %v8580_v44  ;;  %v7788_v48 = vpop.f32.mrb[68].mxu0  ;;  %v8715_v41 = vpack.c.bf16 %v8583_v5, %v8579_v60 }
 0x767   : > { %v8458_v11 = vadd.f32 %v20642_v45, %v7788_v48  ;;  %v7981_v14 = vpop.f32.mrb[68].mxu1  ;;  %v7790_v3 = vpop.f32.mrb[69].mxu0  ;;  %v8717_v56 = vpack.c.bf16 %v8585_v18, %v8581_v24 }
 0x768   : > { %v8460_v0 = vadd.f32 %v20642_v45, %v7981_v14  ;;  %v8459_v20 = vadd.f32 %v20642_v45, %v7790_v3  ;;  %v7983_v12 = vpop.f32.mrb[69].mxu1  ;;  %v7792_v46 = vpop.f32.mrb[70].mxu0  ;;  %8866 = vmatprep.subr.bf16.mxu0 %v8715_v41 }
 0x769   : > { %v8461_v25 = vadd.f32 %v20642_v45, %v7983_v12  ;;  %v8462_v16 = vadd.f32 %v20643_v50, %v7792_v46  ;;  %v7985_v55 = vpop.f32.mrb[70].mxu1  ;;  %8939 = vmatprep.subr.bf16.mxu1 %v8717_v56  ;;  %v7794_v39 = vpop.f32.mrb[71].mxu0  ;;  %8867 = vmatpush1.bf16.msra.mxu0 %v8714_v19  ;;  %v8586_v21 = vmax.f32 %v8458_v11, 0.0  ;;  %v20644_v45 = vld [vmem:[#allocation9_spill] sm:$0xff] }
 0x76a   : > { %v8464_v7 = vadd.f32 %v20643_v50, %v7985_v55  ;;  %v8463_v38 = vadd.f32 %v20643_v50, %v7794_v39  ;;  %v7987_v33 = vpop.f32.mrb[71].mxu1  ;;  %8940 = vmatpush1.bf16.msra.mxu1 %v8716_v28  ;;  %v8588_v6 = vmax.f32 %v8460_v0, 0.0  ;;  %v8587_v44 = vmax.f32 %v8459_v20, 0.0 }
 0x76b   : > { %v8590_v43 = vmax.f32 %v8462_v16, 0.0  ;;  %v8465_v36 = vadd.f32 %v20643_v50, %v7987_v33  ;;  %v8589_v5 = vmax.f32 %v8461_v25, 0.0  ;;  %v20645_v25 = vld [vmem:[#allocation18_spill] sm:$0xff] }
 0x76c   : > { %v8592_v60 = vmax.f32 %v8464_v7, 0.0  ;;  %v8591_v49 = vmax.f32 %v8463_v38, 0.0 }
 0x76d   : > { %v8718_v24 = vpack.c.bf16 %v8590_v43, %v8586_v21  ;;  %v8593_v18 = vmax.f32 %v8465_v36, 0.0 }
 0x76e   : > { %v8720_v48 = vpack.c.bf16 %v8592_v60, %v8588_v6  ;;  %v7798_v41 = vpop.f32.mrb[72].mxu0  ;;  %v8719_v19 = vpack.c.bf16 %v8591_v49, %v8587_v44 }
 0x76f   : > { %v8466_v14 = vadd.f32 %v20644_v45, %v7798_v41  ;;  %v7991_v3 = vpop.f32.mrb[72].mxu1  ;;  %v7800_v56 = vpop.f32.mrb[73].mxu0  ;;  %v8721_v12 = vpack.c.bf16 %v8593_v18, %v8589_v5 }
 0x770   : > { %v8468_v28 = vadd.f32 %v20644_v45, %v7991_v3  ;;  %v8467_v11 = vadd.f32 %v20644_v45, %v7800_v56  ;;  %v7993_v46 = vpop.f32.mrb[73].mxu1  ;;  %v7802_v0 = vpop.f32.mrb[74].mxu0  ;;  %8868 = vmatprep.subr.bf16.mxu0 %v8719_v19 }
 0x771   : > { %v8469_v20 = vadd.f32 %v20644_v45, %v7993_v46  ;;  %v8470_v50 = vadd.f32 %v20645_v25, %v7802_v0  ;;  %v7995_v16 = vpop.f32.mrb[74].mxu1  ;;  %8941 = vmatprep.subr.bf16.mxu1 %v8721_v12  ;;  %v7804_v55 = vpop.f32.mrb[75].mxu0  ;;  %8869 = vmatpush1.bf16.msra.mxu0 %v8718_v24  ;;  %v8594_v33 = vmax.f32 %v8466_v14, 0.0  ;;  %v20646_v45 = vld [vmem:[#allocation10_spill] sm:$0xff] }
 0x772   : > { %v8472_v39 = vadd.f32 %v20645_v25, %v7995_v16  ;;  %v8471_v7 = vadd.f32 %v20645_v25, %v7804_v55  ;;  %v7997_v38 = vpop.f32.mrb[75].mxu1  ;;  %8942 = vmatpush1.bf16.msra.mxu1 %v8720_v48  ;;  %v8596_v36 = vmax.f32 %v8468_v28, 0.0  ;;  %v8595_v6 = vmax.f32 %v8467_v11, 0.0 }
 0x773   : > { %v8598_v21 = vmax.f32 %v8470_v50, 0.0  ;;  %v8473_v43 = vadd.f32 %v20645_v25, %v7997_v38  ;;  %v8597_v49 = vmax.f32 %v8469_v20, 0.0  ;;  %v20647_v20 = vld [vmem:[#allocation20_spill] sm:$0xff] }
 0x774   : > { %v8600_v44 = vmax.f32 %v8472_v39, 0.0  ;;  %v8599_v60 = vmax.f32 %v8471_v7, 0.0 }
 0x775   : > { %v8722_v5 = vpack.c.bf16 %v8598_v21, %v8594_v33  ;;  %v8601_v18 = vmax.f32 %v8473_v43, 0.0 }
 0x776   : > { %v8724_v41 = vpack.c.bf16 %v8600_v44, %v8596_v36  ;;  %v7808_v19 = vpop.f32.mrb[76].mxu0  ;;  %v8723_v24 = vpack.c.bf16 %v8599_v60, %v8595_v6 }
 0x777   : > { %v8474_v3 = vadd.f32 %v20646_v45, %v7808_v19  ;;  %v8001_v56 = vpop.f32.mrb[76].mxu1  ;;  %v7810_v12 = vpop.f32.mrb[77].mxu0  ;;  %v8725_v46 = vpack.c.bf16 %v8601_v18, %v8597_v49 }
 0x778   : > { %v8476_v48 = vadd.f32 %v20646_v45, %v8001_v56  ;;  %v8475_v14 = vadd.f32 %v20646_v45, %v7810_v12  ;;  %v8003_v0 = vpop.f32.mrb[77].mxu1  ;;  %v7812_v28 = vpop.f32.mrb[78].mxu0  ;;  %8870 = vmatprep.subr.bf16.mxu0 %v8723_v24 }
 0x779   : > { %v8477_v11 = vadd.f32 %v20646_v45, %v8003_v0  ;;  %v8478_v25 = vadd.f32 %v20647_v20, %v7812_v28  ;;  %v8005_v50 = vpop.f32.mrb[78].mxu1  ;;  %8943 = vmatprep.subr.bf16.mxu1 %v8725_v46  ;;  %v7814_v16 = vpop.f32.mrb[79].mxu0  ;;  %8871 = vmatpush1.bf16.msra.mxu0 %v8722_v5  ;;  %v8602_v38 = vmax.f32 %v8474_v3, 0.0  ;;  %v20648_v45 = vld [vmem:[#allocation11_spill] sm:$0xff] }
 0x77a   : > { %v8480_v55 = vadd.f32 %v20647_v20, %v8005_v50  ;;  %v8479_v39 = vadd.f32 %v20647_v20, %v7814_v16  ;;  %v8007_v7 = vpop.f32.mrb[79].mxu1  ;;  %8944 = vmatpush1.bf16.msra.mxu1 %v8724_v41  ;;  %v8604_v43 = vmax.f32 %v8476_v48, 0.0  ;;  %v8603_v36 = vmax.f32 %v8475_v14, 0.0 }
 0x77b   : > { %v8606_v33 = vmax.f32 %v8478_v25, 0.0  ;;  %v8481_v21 = vadd.f32 %v20647_v20, %v8007_v7  ;;  %v8605_v60 = vmax.f32 %v8477_v11, 0.0  ;;  %v20649_v11 = vld [vmem:[#allocation23_spill] sm:$0xff] }
 0x77c   : > { %v8608_v6 = vmax.f32 %v8480_v55, 0.0  ;;  %v8607_v44 = vmax.f32 %v8479_v39, 0.0 }
 0x77d   : > { %v8726_v49 = vpack.c.bf16 %v8606_v33, %v8602_v38  ;;  %v8609_v18 = vmax.f32 %v8481_v21, 0.0 }
 0x77e   : > { %v8728_v19 = vpack.c.bf16 %v8608_v6, %v8604_v43  ;;  %v7818_v24 = vpop.f32.mrb[80].mxu0  ;;  %v8727_v5 = vpack.c.bf16 %v8607_v44, %v8603_v36 }
 0x77f   : > { %v8482_v56 = vadd.f32 %v20648_v45, %v7818_v24  ;;  %v8011_v12 = vpop.f32.mrb[80].mxu1  ;;  %v7820_v46 = vpop.f32.mrb[81].mxu0  ;;  %v8729_v0 = vpack.c.bf16 %v8609_v18, %v8605_v60 }
 0x780   : > { %v8484_v41 = vadd.f32 %v20648_v45, %v8011_v12  ;;  %v8483_v3 = vadd.f32 %v20648_v45, %v7820_v46  ;;  %v8013_v28 = vpop.f32.mrb[81].mxu1  ;;  %v7822_v48 = vpop.f32.mrb[82].mxu0  ;;  %8872 = vmatprep.subr.bf16.mxu0 %v8727_v5 }
 0x781   : > { %v8485_v14 = vadd.f32 %v20648_v45, %v8013_v28  ;;  %v8486_v20 = vadd.f32 %v20649_v11, %v7822_v48  ;;  %v8015_v25 = vpop.f32.mrb[82].mxu1  ;;  %8945 = vmatprep.subr.bf16.mxu1 %v8729_v0  ;;  %v7824_v50 = vpop.f32.mrb[83].mxu0  ;;  %8873 = vmatpush1.bf16.msra.mxu0 %v8726_v49  ;;  %v8610_v7 = vmax.f32 %v8482_v56, 0.0  ;;  %v20650_v45 = vld [vmem:[#allocation12_spill] sm:$0xff] }
 0x782   : > { %v8488_v16 = vadd.f32 %v20649_v11, %v8015_v25  ;;  %v8487_v55 = vadd.f32 %v20649_v11, %v7824_v50  ;;  %v8017_v39 = vpop.f32.mrb[83].mxu1  ;;  %8946 = vmatpush1.bf16.msra.mxu1 %v8728_v19  ;;  %v8612_v21 = vmax.f32 %v8484_v41, 0.0  ;;  %v8611_v43 = vmax.f32 %v8483_v3, 0.0 }
 0x783   : > { %v8614_v38 = vmax.f32 %v8486_v20, 0.0  ;;  %v8489_v33 = vadd.f32 %v20649_v11, %v8017_v39  ;;  %v8613_v44 = vmax.f32 %v8485_v14, 0.0  ;;  %v20651_v14 = vld [vmem:[#allocation33_spill] sm:$0xff] }
 0x784   : > { %v8616_v36 = vmax.f32 %v8488_v16, 0.0  ;;  %v8615_v6 = vmax.f32 %v8487_v55, 0.0 }
 0x785   : > { %v8730_v60 = vpack.c.bf16 %v8614_v38, %v8610_v7  ;;  %v8617_v18 = vmax.f32 %v8489_v33, 0.0 }
 0x786   : > { %v8732_v24 = vpack.c.bf16 %v8616_v36, %v8612_v21  ;;  %v7828_v5 = vpop.f32.mrb[84].mxu0  ;;  %v8731_v49 = vpack.c.bf16 %v8615_v6, %v8611_v43 }
 0x787   : > { %v8490_v12 = vadd.f32 %v20650_v45, %v7828_v5  ;;  %v8021_v46 = vpop.f32.mrb[84].mxu1  ;;  %v7830_v0 = vpop.f32.mrb[85].mxu0  ;;  %v8733_v28 = vpack.c.bf16 %v8617_v18, %v8613_v44 }
 0x788   : > { %v8492_v19 = vadd.f32 %v20650_v45, %v8021_v46  ;;  %v8491_v56 = vadd.f32 %v20650_v45, %v7830_v0  ;;  %v8023_v48 = vpop.f32.mrb[85].mxu1  ;;  %v7832_v41 = vpop.f32.mrb[86].mxu0  ;;  %8874 = vmatprep.subr.bf16.mxu0 %v8731_v49 }
 0x789   : > { %v8493_v3 = vadd.f32 %v20650_v45, %v8023_v48  ;;  %v8494_v11 = vadd.f32 %v20651_v14, %v7832_v41  ;;  %v8025_v20 = vpop.f32.mrb[86].mxu1  ;;  %8947 = vmatprep.subr.bf16.mxu1 %v8733_v28  ;;  %v7834_v25 = vpop.f32.mrb[87].mxu0  ;;  %8875 = vmatpush1.bf16.msra.mxu0 %v8730_v60  ;;  %v8618_v39 = vmax.f32 %v8490_v12, 0.0  ;;  %v20652_v45 = vld [vmem:[#allocation13_spill] sm:$0xff] }
 0x78a   : > { %v8496_v50 = vadd.f32 %v20651_v14, %v8025_v20  ;;  %v8495_v16 = vadd.f32 %v20651_v14, %v7834_v25  ;;  %v8027_v55 = vpop.f32.mrb[87].mxu1  ;;  %8948 = vmatpush1.bf16.msra.mxu1 %v8732_v24  ;;  %v8620_v33 = vmax.f32 %v8492_v19, 0.0  ;;  %v8619_v21 = vmax.f32 %v8491_v56, 0.0 }
 0x78b   : > { %v8622_v7 = vmax.f32 %v8494_v11, 0.0  ;;  %v8497_v38 = vadd.f32 %v20651_v14, %v8027_v55  ;;  %v8621_v6 = vmax.f32 %v8493_v3, 0.0  ;;  %v20653_v3 = vld [vmem:[#allocation43_spill] sm:$0xff] }
 0x78c   : > { %v8624_v43 = vmax.f32 %v8496_v50, 0.0  ;;  %v8623_v36 = vmax.f32 %v8495_v16, 0.0 }
 0x78d   : > { %v8734_v44 = vpack.c.bf16 %v8622_v7, %v8618_v39  ;;  %v8625_v18 = vmax.f32 %v8497_v38, 0.0 }
 0x78e   : > { %v8736_v5 = vpack.c.bf16 %v8624_v43, %v8620_v33  ;;  %v7838_v49 = vpop.f32.mrb[88].mxu0  ;;  %v8735_v60 = vpack.c.bf16 %v8623_v36, %v8619_v21 }
 0x78f   : > { %v8498_v46 = vadd.f32 %v20652_v45, %v7838_v49  ;;  %v8031_v0 = vpop.f32.mrb[88].mxu1  ;;  %v7840_v28 = vpop.f32.mrb[89].mxu0  ;;  %v8737_v48 = vpack.c.bf16 %v8625_v18, %v8621_v6 }
 0x790   : > { %v8500_v24 = vadd.f32 %v20652_v45, %v8031_v0  ;;  %v8499_v12 = vadd.f32 %v20652_v45, %v7840_v28  ;;  %v8033_v41 = vpop.f32.mrb[89].mxu1  ;;  %v7842_v19 = vpop.f32.mrb[90].mxu0  ;;  %8876 = vmatprep.subr.bf16.mxu0 %v8735_v60 }
 0x791   : > { %v8501_v56 = vadd.f32 %v20652_v45, %v8033_v41  ;;  %v8502_v14 = vadd.f32 %v20653_v3, %v7842_v19  ;;  %v8035_v11 = vpop.f32.mrb[90].mxu1  ;;  %8949 = vmatprep.subr.bf16.mxu1 %v8737_v48  ;;  %v7844_v20 = vpop.f32.mrb[91].mxu0  ;;  %8877 = vmatpush1.bf16.msra.mxu0 %v8734_v44  ;;  %v8626_v55 = vmax.f32 %v8498_v46, 0.0  ;;  %v20654_v45 = vld [vmem:[#allocation15_spill] sm:$0xff] }
 0x792   : > { %v8504_v25 = vadd.f32 %v20653_v3, %v8035_v11  ;;  %v8503_v50 = vadd.f32 %v20653_v3, %v7844_v20  ;;  %v8037_v16 = vpop.f32.mrb[91].mxu1  ;;  %8950 = vmatpush1.bf16.msra.mxu1 %v8736_v5  ;;  %v8628_v38 = vmax.f32 %v8500_v24, 0.0  ;;  %v8627_v33 = vmax.f32 %v8499_v12, 0.0 }
 0x793   : > { %v8630_v39 = vmax.f32 %v8502_v14, 0.0  ;;  %v8505_v7 = vadd.f32 %v20653_v3, %v8037_v16  ;;  %v8629_v36 = vmax.f32 %v8501_v56, 0.0  ;;  %v20655_v56 = vld [vmem:[#allocation53_spill] sm:$0xff] }
 0x794   : > { %v8632_v21 = vmax.f32 %v8504_v25, 0.0  ;;  %v8631_v43 = vmax.f32 %v8503_v50, 0.0 }
 0x795   : > { %v8738_v6 = vpack.c.bf16 %v8630_v39, %v8626_v55  ;;  %v8633_v18 = vmax.f32 %v8505_v7, 0.0 }
 0x796   : > { %v8740_v49 = vpack.c.bf16 %v8632_v21, %v8628_v38  ;;  %v7848_v60 = vpop.f32.mrb[92].mxu0  ;;  %v8739_v44 = vpack.c.bf16 %v8631_v43, %v8627_v33 }
 0x797   : > { %v8506_v0 = vadd.f32 %v20654_v45, %v7848_v60  ;;  %v8041_v28 = vpop.f32.mrb[92].mxu1  ;;  %v7850_v48 = vpop.f32.mrb[93].mxu0  ;;  %v8741_v41 = vpack.c.bf16 %v8633_v18, %v8629_v36 }
 0x798   : > { %v8508_v5 = vadd.f32 %v20654_v45, %v8041_v28  ;;  %v8507_v46 = vadd.f32 %v20654_v45, %v7850_v48  ;;  %v8043_v19 = vpop.f32.mrb[93].mxu1  ;;  %v7852_v24 = vpop.f32.mrb[94].mxu0  ;;  %8878 = vmatprep.subr.bf16.mxu0 %v8739_v44 }
 0x799   : > { %v8509_v12 = vadd.f32 %v20654_v45, %v8043_v19  ;;  %v8510_v3 = vadd.f32 %v20655_v56, %v7852_v24  ;;  %v8045_v14 = vpop.f32.mrb[94].mxu1  ;;  %8951 = vmatprep.subr.bf16.mxu1 %v8741_v41  ;;  %v7854_v11 = vpop.f32.mrb[95].mxu0  ;;  %8879 = vmatpush1.bf16.msra.mxu0 %v8738_v6  ;;  %v8634_v16 = vmax.f32 %v8506_v0, 0.0  ;;  %v20656_v45 = vld [vmem:[#allocation17_spill] sm:$0xff] }
 0x79a   : > { %v8512_v20 = vadd.f32 %v20655_v56, %v8045_v14  ;;  %v8511_v25 = vadd.f32 %v20655_v56, %v7854_v11  ;;  %v8047_v50 = vpop.f32.mrb[95].mxu1  ;;  %8952 = vmatpush1.bf16.msra.mxu1 %v8740_v49  ;;  %v8636_v7 = vmax.f32 %v8508_v5, 0.0  ;;  %v8635_v38 = vmax.f32 %v8507_v46, 0.0 }
 0x79b   : > { %v8638_v55 = vmax.f32 %v8510_v3, 0.0  ;;  %v8513_v39 = vadd.f32 %v20655_v56, %v8047_v50  ;;  %v8637_v43 = vmax.f32 %v8509_v12, 0.0  ;;  %v20657_v12 = vld [vmem:[#allocation63_spill] sm:$0xff] }
 0x79c   : > { %v8640_v33 = vmax.f32 %v8512_v20, 0.0  ;;  %v8639_v21 = vmax.f32 %v8511_v25, 0.0 }
 0x79d   : > { %v8742_v36 = vpack.c.bf16 %v8638_v55, %v8634_v16  ;;  %v8641_v18 = vmax.f32 %v8513_v39, 0.0 }
 0x79e   : > { %v8744_v60 = vpack.c.bf16 %v8640_v33, %v8636_v7  ;;  %v7858_v44 = vpop.f32.mrb[96].mxu0  ;;  %v8743_v6 = vpack.c.bf16 %v8639_v21, %v8635_v38 }
 0x79f   : > { %v8514_v28 = vadd.f32 %v20656_v45, %v7858_v44  ;;  %v8051_v48 = vpop.f32.mrb[96].mxu1  ;;  %v7860_v41 = vpop.f32.mrb[97].mxu0  ;;  %v8745_v19 = vpack.c.bf16 %v8641_v18, %v8637_v43 }
 0x7a0   : > { %v8516_v49 = vadd.f32 %v20656_v45, %v8051_v48  ;;  %v8515_v0 = vadd.f32 %v20656_v45, %v7860_v41  ;;  %v8053_v24 = vpop.f32.mrb[97].mxu1  ;;  %v7862_v5 = vpop.f32.mrb[98].mxu0  ;;  %8880 = vmatprep.subr.bf16.mxu0 %v8743_v6  ;;  %v20658_v48 = vld [vmem:[#allocation19_spill] sm:$0xff] }
 0x7a1   : > { %v8517_v46 = vadd.f32 %v20656_v45, %v8053_v24  ;;  %v8518_v56 = vadd.f32 %v20657_v12, %v7862_v5  ;;  %v8055_v3 = vpop.f32.mrb[98].mxu1  ;;  %8953 = vmatprep.subr.bf16.mxu1 %v8745_v19  ;;  %v7864_v14 = vpop.f32.mrb[99].mxu0  ;;  %8881 = vmatpush1.bf16.msra.mxu0 %v8742_v36  ;;  %v8642_v50 = vmax.f32 %v8514_v28, 0.0 }
 0x7a2   : > { %v8520_v11 = vadd.f32 %v20657_v12, %v8055_v3  ;;  %v8519_v20 = vadd.f32 %v20657_v12, %v7864_v14  ;;  %v8057_v25 = vpop.f32.mrb[99].mxu1  ;;  %8954 = vmatpush1.bf16.msra.mxu1 %v8744_v60  ;;  %v8644_v39 = vmax.f32 %v8516_v49, 0.0  ;;  %v8643_v7 = vmax.f32 %v8515_v0, 0.0 }
 0x7a3   : > { %v8646_v16 = vmax.f32 %v8518_v56, 0.0  ;;  %v8521_v55 = vadd.f32 %v20657_v12, %v8057_v25  ;;  %v8645_v21 = vmax.f32 %v8517_v46, 0.0  ;;  %v20659_v46 = vld [vmem:[#allocation73_spill] sm:$0xff] }
 0x7a4   : > { %v8648_v38 = vmax.f32 %v8520_v11, 0.0  ;;  %v8647_v33 = vmax.f32 %v8519_v20, 0.0 }
 0x7a5   : > { %v8746_v43 = vpack.c.bf16 %v8646_v16, %v8642_v50  ;;  %v8649_v18 = vmax.f32 %v8521_v55, 0.0 }
 0x7a6   : > { %v8748_v44 = vpack.c.bf16 %v8648_v38, %v8644_v39  ;;  %v8747_v6 = vpack.c.bf16 %v8647_v33, %v8643_v7  ;;  %v7868_v36 = vpop.f32.mrb[100].mxu0 }
 0x7a7   : > { %v8749_v45 = vpack.c.bf16 %v8649_v18, %v8645_v21  ;;  %v8522_v41 = vadd.f32 %v20658_v48, %v7868_v36  ;;  %v8061_v19 = vpop.f32.mrb[100].mxu1  ;;  %v7870_v24 = vpop.f32.mrb[101].mxu0 }
 0x7a8   : > { %v8524_v60 = vadd.f32 %v20658_v48, %v8061_v19  ;;  %v8523_v28 = vadd.f32 %v20658_v48, %v7870_v24  ;;  %v8063_v5 = vpop.f32.mrb[101].mxu1  ;;  %v7872_v49 = vpop.f32.mrb[102].mxu0  ;;  %8882 = vmatprep.subr.bf16.mxu0 %v8747_v6 }
 0x7a9   : > { %v8525_v0 = vadd.f32 %v20658_v48, %v8063_v5  ;;  %v8526_v12 = vadd.f32 %v20659_v46, %v7872_v49  ;;  %v8065_v56 = vpop.f32.mrb[102].mxu1  ;;  %8955 = vmatprep.subr.bf16.mxu1 %v8749_v45  ;;  %v7874_v3 = vpop.f32.mrb[103].mxu0  ;;  %8883 = vmatpush1.bf16.msra.mxu0 %v8746_v43  ;;  %v8650_v25 = vmax.f32 %v8522_v41, 0.0  ;;  %v20660_v48 = vld [vmem:[#allocation21_spill] sm:$0xff] }
 0x7aa   : > { %v8528_v14 = vadd.f32 %v20659_v46, %v8065_v56  ;;  %v8527_v11 = vadd.f32 %v20659_v46, %v7874_v3  ;;  %v8067_v20 = vpop.f32.mrb[103].mxu1  ;;  %8956 = vmatpush1.bf16.msra.mxu1 %v8748_v44  ;;  %v8652_v55 = vmax.f32 %v8524_v60, 0.0  ;;  %v8651_v39 = vmax.f32 %v8523_v28, 0.0 }
 0x7ab   : > { %v8654_v50 = vmax.f32 %v8526_v12, 0.0  ;;  %v8529_v16 = vadd.f32 %v20659_v46, %v8067_v20  ;;  %v8653_v33 = vmax.f32 %v8525_v0, 0.0  ;;  %v20661_v0 = vld [vmem:[#allocation83_spill] sm:$0xff] }
 0x7ac   : > { %v8656_v7 = vmax.f32 %v8528_v14, 0.0  ;;  %v8655_v38 = vmax.f32 %v8527_v11, 0.0 }
 0x7ad   : > { %v8750_v21 = vpack.c.bf16 %v8654_v50, %v8650_v25  ;;  %v8657_v18 = vmax.f32 %v8529_v16, 0.0 }
 0x7ae   : > { %v8752_v6 = vpack.c.bf16 %v8656_v7, %v8652_v55  ;;  %v8751_v36 = vpack.c.bf16 %v8655_v38, %v8651_v39  ;;  %v7878_v43 = vpop.f32.mrb[104].mxu0 }
 0x7af   : > { %v8753_v45 = vpack.c.bf16 %v8657_v18, %v8653_v33  ;;  %v8530_v19 = vadd.f32 %v20660_v48, %v7878_v43  ;;  %v8071_v24 = vpop.f32.mrb[104].mxu1  ;;  %v7880_v5 = vpop.f32.mrb[105].mxu0 }
 0x7b0   : > { %v8532_v44 = vadd.f32 %v20660_v48, %v8071_v24  ;;  %v8531_v41 = vadd.f32 %v20660_v48, %v7880_v5  ;;  %v8073_v49 = vpop.f32.mrb[105].mxu1  ;;  %v7882_v60 = vpop.f32.mrb[106].mxu0  ;;  %8884 = vmatprep.subr.bf16.mxu0 %v8751_v36 }
 0x7b1   : > { %v8533_v28 = vadd.f32 %v20660_v48, %v8073_v49  ;;  %v8534_v46 = vadd.f32 %v20661_v0, %v7882_v60  ;;  %v8075_v12 = vpop.f32.mrb[106].mxu1  ;;  %8957 = vmatprep.subr.bf16.mxu1 %v8753_v45  ;;  %v7884_v56 = vpop.f32.mrb[107].mxu0  ;;  %8885 = vmatpush1.bf16.msra.mxu0 %v8750_v21  ;;  %v8658_v20 = vmax.f32 %v8530_v19, 0.0  ;;  %v20662_v48 = vld [vmem:[#allocation31_spill] sm:$0xff] }
 0x7b2   : > { %v8536_v3 = vadd.f32 %v20661_v0, %v8075_v12  ;;  %v8535_v14 = vadd.f32 %v20661_v0, %v7884_v56  ;;  %v8077_v11 = vpop.f32.mrb[107].mxu1  ;;  %8958 = vmatpush1.bf16.msra.mxu1 %v8752_v6  ;;  %v8660_v16 = vmax.f32 %v8532_v44, 0.0  ;;  %v8659_v55 = vmax.f32 %v8531_v41, 0.0 }
 0x7b3   : > { %v8662_v25 = vmax.f32 %v8534_v46, 0.0  ;;  %v8537_v50 = vadd.f32 %v20661_v0, %v8077_v11  ;;  %v8661_v38 = vmax.f32 %v8533_v28, 0.0  ;;  %v20663_v28 = vld [vmem:[#allocation93_spill] sm:$0xff] }
 0x7b4   : > { %v8664_v39 = vmax.f32 %v8536_v3, 0.0  ;;  %v8663_v7 = vmax.f32 %v8535_v14, 0.0 }
 0x7b5   : > { %v8754_v33 = vpack.c.bf16 %v8662_v25, %v8658_v20  ;;  %v8665_v18 = vmax.f32 %v8537_v50, 0.0 }
 0x7b6   : > { %v8756_v36 = vpack.c.bf16 %v8664_v39, %v8660_v16  ;;  %v8755_v43 = vpack.c.bf16 %v8663_v7, %v8659_v55  ;;  %v7888_v21 = vpop.f32.mrb[108].mxu0 }
 0x7b7   : > { %v8757_v45 = vpack.c.bf16 %v8665_v18, %v8661_v38  ;;  %v8538_v24 = vadd.f32 %v20662_v48, %v7888_v21  ;;  %v8081_v5 = vpop.f32.mrb[108].mxu1  ;;  %v7890_v49 = vpop.f32.mrb[109].mxu0 }
 0x7b8   : > { %v8540_v6 = vadd.f32 %v20662_v48, %v8081_v5  ;;  %v8539_v19 = vadd.f32 %v20662_v48, %v7890_v49  ;;  %v8083_v60 = vpop.f32.mrb[109].mxu1  ;;  %v7892_v44 = vpop.f32.mrb[110].mxu0  ;;  %8886 = vmatprep.subr.bf16.mxu0 %v8755_v43 }
 0x7b9   : > { %v8541_v41 = vadd.f32 %v20662_v48, %v8083_v60  ;;  %v8542_v0 = vadd.f32 %v20663_v28, %v7892_v44  ;;  %v8085_v46 = vpop.f32.mrb[110].mxu1  ;;  %8959 = vmatprep.subr.bf16.mxu1 %v8757_v45  ;;  %v7894_v12 = vpop.f32.mrb[111].mxu0  ;;  %8887 = vmatpush1.bf16.msra.mxu0 %v8754_v33  ;;  %v8666_v11 = vmax.f32 %v8538_v24, 0.0  ;;  %v20664_v48 = vld [vmem:[#allocation41_spill] sm:$0xff] }
 0x7ba   : > { %v8544_v56 = vadd.f32 %v20663_v28, %v8085_v46  ;;  %v8543_v3 = vadd.f32 %v20663_v28, %v7894_v12  ;;  %v8087_v14 = vpop.f32.mrb[111].mxu1  ;;  %8960 = vmatpush1.bf16.msra.mxu1 %v8756_v36  ;;  %v8668_v50 = vmax.f32 %v8540_v6, 0.0  ;;  %v8667_v16 = vmax.f32 %v8539_v19, 0.0 }
 0x7bb   : > { %v8670_v20 = vmax.f32 %v8542_v0, 0.0  ;;  %v8545_v25 = vadd.f32 %v20663_v28, %v8087_v14  ;;  %v8669_v7 = vmax.f32 %v8541_v41, 0.0  ;;  %v20665_v41 = vld [vmem:[#allocation103_spill] sm:$0xff] }
 0x7bc   : > { %v8672_v55 = vmax.f32 %v8544_v56, 0.0  ;;  %v8671_v39 = vmax.f32 %v8543_v3, 0.0 }
 0x7bd   : > { %v8758_v38 = vpack.c.bf16 %v8670_v20, %v8666_v11  ;;  %v8673_v18 = vmax.f32 %v8545_v25, 0.0 }
 0x7be   : > { %v8760_v43 = vpack.c.bf16 %v8672_v55, %v8668_v50  ;;  %v8759_v21 = vpack.c.bf16 %v8671_v39, %v8667_v16  ;;  %v7898_v33 = vpop.f32.mrb[112].mxu0 }
 0x7bf   : > { %v8761_v45 = vpack.c.bf16 %v8673_v18, %v8669_v7  ;;  %v8546_v5 = vadd.f32 %v20664_v48, %v7898_v33  ;;  %v8091_v49 = vpop.f32.mrb[112].mxu1  ;;  %v7900_v60 = vpop.f32.mrb[113].mxu0 }
 0x7c0   : > { %v8548_v36 = vadd.f32 %v20664_v48, %v8091_v49  ;;  %v8547_v24 = vadd.f32 %v20664_v48, %v7900_v60  ;;  %v8093_v44 = vpop.f32.mrb[113].mxu1  ;;  %v7902_v6 = vpop.f32.mrb[114].mxu0  ;;  %8888 = vmatprep.subr.bf16.mxu0 %v8759_v21 }
 0x7c1   : > { %v8549_v19 = vadd.f32 %v20664_v48, %v8093_v44  ;;  %v8550_v28 = vadd.f32 %v20665_v41, %v7902_v6  ;;  %v8095_v0 = vpop.f32.mrb[114].mxu1  ;;  %8961 = vmatprep.subr.bf16.mxu1 %v8761_v45  ;;  %v7904_v46 = vpop.f32.mrb[115].mxu0  ;;  %8889 = vmatpush1.bf16.msra.mxu0 %v8758_v38  ;;  %v8674_v14 = vmax.f32 %v8546_v5, 0.0  ;;  %v20666_v48 = vld [vmem:[#allocation51_spill] sm:$0xff] }
 0x7c2   : > { %v8552_v12 = vadd.f32 %v20665_v41, %v8095_v0  ;;  %v8551_v56 = vadd.f32 %v20665_v41, %v7904_v46  ;;  %v8097_v3 = vpop.f32.mrb[115].mxu1  ;;  %8962 = vmatpush1.bf16.msra.mxu1 %v8760_v43  ;;  %v8676_v25 = vmax.f32 %v8548_v36, 0.0  ;;  %v8675_v50 = vmax.f32 %v8547_v24, 0.0 }
 0x7c3   : > { %v8678_v11 = vmax.f32 %v8550_v28, 0.0  ;;  %v8553_v20 = vadd.f32 %v20665_v41, %v8097_v3  ;;  %v8677_v39 = vmax.f32 %v8549_v19, 0.0  ;;  %v20667_v19 = vld [vmem:[#allocation113_spill] sm:$0xff] }
 0x7c4   : > { %v8680_v16 = vmax.f32 %v8552_v12, 0.0  ;;  %v8679_v55 = vmax.f32 %v8551_v56, 0.0 }
 0x7c5   : > { %v8762_v7 = vpack.c.bf16 %v8678_v11, %v8674_v14  ;;  %v8681_v18 = vmax.f32 %v8553_v20, 0.0 }
 0x7c6   : > { %v8764_v21 = vpack.c.bf16 %v8680_v16, %v8676_v25  ;;  %v8763_v33 = vpack.c.bf16 %v8679_v55, %v8675_v50  ;;  %v7908_v38 = vpop.f32.mrb[116].mxu0 }
 0x7c7   : > { %v8765_v45 = vpack.c.bf16 %v8681_v18, %v8677_v39  ;;  %v8554_v49 = vadd.f32 %v20666_v48, %v7908_v38  ;;  %v8101_v60 = vpop.f32.mrb[116].mxu1  ;;  %v7910_v44 = vpop.f32.mrb[117].mxu0 }
 0x7c8   : > { %v8556_v43 = vadd.f32 %v20666_v48, %v8101_v60  ;;  %v8555_v5 = vadd.f32 %v20666_v48, %v7910_v44  ;;  %v8103_v6 = vpop.f32.mrb[117].mxu1  ;;  %v7912_v36 = vpop.f32.mrb[118].mxu0  ;;  %8890 = vmatprep.subr.bf16.mxu0 %v8763_v33 }
 0x7c9   : > { %v8557_v24 = vadd.f32 %v20666_v48, %v8103_v6  ;;  %v8558_v41 = vadd.f32 %v20667_v19, %v7912_v36  ;;  %v8105_v28 = vpop.f32.mrb[118].mxu1  ;;  %8963 = vmatprep.subr.bf16.mxu1 %v8765_v45  ;;  %v7914_v0 = vpop.f32.mrb[119].mxu0  ;;  %8891 = vmatpush1.bf16.msra.mxu0 %v8762_v7  ;;  %v8682_v3 = vmax.f32 %v8554_v49, 0.0  ;;  %v20668_v48 = vld [vmem:[#allocation61_spill] sm:$0xff] }
 0x7ca   : > { %v8560_v46 = vadd.f32 %v20667_v19, %v8105_v28  ;;  %v8559_v12 = vadd.f32 %v20667_v19, %v7914_v0  ;;  %v8107_v56 = vpop.f32.mrb[119].mxu1  ;;  %8964 = vmatpush1.bf16.msra.mxu1 %v8764_v21  ;;  %v8684_v20 = vmax.f32 %v8556_v43, 0.0  ;;  %v8683_v25 = vmax.f32 %v8555_v5, 0.0 }
 0x7cb   : > { %v8686_v14 = vmax.f32 %v8558_v41, 0.0  ;;  %v8561_v11 = vadd.f32 %v20667_v19, %v8107_v56  ;;  %v8685_v55 = vmax.f32 %v8557_v24, 0.0  ;;  %v20669_v24 = vld [vmem:[#allocation123_spill] sm:$0xff] }
 0x7cc   : > { %v8688_v50 = vmax.f32 %v8560_v46, 0.0  ;;  %v8687_v16 = vmax.f32 %v8559_v12, 0.0 }
 0x7cd   : > { %v8766_v39 = vpack.c.bf16 %v8686_v14, %v8682_v3  ;;  %v8689_v18 = vmax.f32 %v8561_v11, 0.0 }
 0x7ce   : > { %v8768_v33 = vpack.c.bf16 %v8688_v50, %v8684_v20  ;;  %v8767_v38 = vpack.c.bf16 %v8687_v16, %v8683_v25  ;;  %v7918_v7 = vpop.f32.mrb[120].mxu0 }
 0x7cf   : > { %v8769_v45 = vpack.c.bf16 %v8689_v18, %v8685_v55  ;;  %v8562_v60 = vadd.f32 %v20668_v48, %v7918_v7  ;;  %v8111_v44 = vpop.f32.mrb[120].mxu1  ;;  %v7920_v6 = vpop.f32.mrb[121].mxu0 }
 0x7d0   : > { %v8564_v21 = vadd.f32 %v20668_v48, %v8111_v44  ;;  %v8563_v49 = vadd.f32 %v20668_v48, %v7920_v6  ;;  %v8113_v36 = vpop.f32.mrb[121].mxu1  ;;  %v7922_v43 = vpop.f32.mrb[122].mxu0  ;;  %8892 = vmatprep.subr.bf16.mxu0 %v8767_v38 }
 0x7d1   : > { %v8565_v5 = vadd.f32 %v20668_v48, %v8113_v36  ;;  %v8566_v19 = vadd.f32 %v20669_v24, %v7922_v43  ;;  %v8115_v41 = vpop.f32.mrb[122].mxu1  ;;  %8965 = vmatprep.subr.bf16.mxu1 %v8769_v45  ;;  %v7924_v28 = vpop.f32.mrb[123].mxu0  ;;  %8893 = vmatpush1.bf16.msra.mxu0 %v8766_v39  ;;  %v8690_v56 = vmax.f32 %v8562_v60, 0.0  ;;  %v20670_v48 = vld [vmem:[#allocation71_spill] sm:$0xff] }
 0x7d2   : > { %v8568_v0 = vadd.f32 %v20669_v24, %v8115_v41  ;;  %v8567_v46 = vadd.f32 %v20669_v24, %v7924_v28  ;;  %v8117_v12 = vpop.f32.mrb[123].mxu1  ;;  %8966 = vmatpush1.bf16.msra.mxu1 %v8768_v33  ;;  %v8692_v11 = vmax.f32 %v8564_v21, 0.0  ;;  %v8691_v20 = vmax.f32 %v8563_v49, 0.0 }
 0x7d3   : > { %v8694_v3 = vmax.f32 %v8566_v19, 0.0  ;;  %v8569_v14 = vadd.f32 %v20669_v24, %v8117_v12  ;;  %v8693_v16 = vmax.f32 %v8565_v5, 0.0  ;;  %v20671_v5 = vld [vmem:[#allocation133_spill] sm:$0xff] }
 0x7d4   : > { %v8696_v25 = vmax.f32 %v8568_v0, 0.0  ;;  %v8695_v50 = vmax.f32 %v8567_v46, 0.0 }
 0x7d5   : > { %v8770_v55 = vpack.c.bf16 %v8694_v3, %v8690_v56  ;;  %v8697_v18 = vmax.f32 %v8569_v14, 0.0 }
 0x7d6   : > { %v8772_v38 = vpack.c.bf16 %v8696_v25, %v8692_v11  ;;  %v8771_v7 = vpack.c.bf16 %v8695_v50, %v8691_v20  ;;  %v7928_v39 = vpop.f32.mrb[124].mxu0 }
 0x7d7   : > { %v8773_v45 = vpack.c.bf16 %v8697_v18, %v8693_v16  ;;  %v8570_v44 = vadd.f32 %v20670_v48, %v7928_v39  ;;  %v8121_v6 = vpop.f32.mrb[124].mxu1  ;;  %v7930_v36 = vpop.f32.mrb[125].mxu0 }
 0x7d8   : > { %v8572_v33 = vadd.f32 %v20670_v48, %v8121_v6  ;;  %v8571_v60 = vadd.f32 %v20670_v48, %v7930_v36  ;;  %v8123_v43 = vpop.f32.mrb[125].mxu1  ;;  %v7932_v21 = vpop.f32.mrb[126].mxu0  ;;  %8894 = vmatprep.subr.bf16.mxu0 %v8771_v7  ;;  %v16403_v6 = vld [vmem:[%s20414_s6 + $0x20] ss:$8 sps:$4 sm:$0xff]   ;;  %v16408_v36 = vld [vmem:[%s20414_s6 + $0x34] ss:$8 sps:$4 sm:$0xff]  }
 0x7d9   : > { %v8573_v49 = vadd.f32 %v20670_v48, %v8123_v43  ;;  %v8574_v24 = vadd.f32 %v20671_v5, %v7932_v21  ;;  %v8125_v19 = vpop.f32.mrb[126].mxu1  ;;  %8967 = vmatprep.subr.bf16.mxu1 %v8773_v45  ;;  %v7934_v41 = vpop.f32.mrb[127].mxu0  ;;  %8895 = vmatpush1.bf16.msra.mxu0 %v8770_v55  ;;  %v8698_v12 = vmax.f32 %v8570_v44, 0.0  ;;  %v16397_v45 = vld [vmem:[%s20414_s6] ss:$8 sps:$4 sm:$0xff]   ;;  %v20672_v43 = vld [vmem:[#allocation81_spill] sm:$0xff] }
 0x7da   : > { %v8576_v28 = vadd.f32 %v20671_v5, %v8125_v19  ;;  %v8575_v0 = vadd.f32 %v20671_v5, %v7934_v41  ;;  %v8127_v46 = vpop.f32.mrb[127].mxu1  ;;  %8968 = vmatpush1.bf16.msra.mxu1 %v8772_v38  ;;  %v8700_v14 = vmax.f32 %v8572_v33, 0.0  ;;  %v8699_v11 = vmax.f32 %v8571_v60, 0.0  ;;  %v16402_v38 = vld [vmem:[%s20414_s6 + $0x14] ss:$8 sps:$4 sm:$0xff]  }
 0x7db   : > { %v8702_v56 = vmax.f32 %v8574_v24, 0.0  ;;  %v8577_v3 = vadd.f32 %v20671_v5, %v8127_v46  ;;  %v8701_v50 = vmax.f32 %v8573_v49, 0.0  ;;  %v16400_v48 = vld [vmem:[%s20414_s6 + $0x10] ss:$8 sps:$4 sm:$0xff]   ;;  %v16405_v44 = vld [vmem:[%s20414_s6 + $0x24] ss:$8 sps:$4 sm:$0xff]  }
 0x7dc   : > { %v8704_v20 = vmax.f32 %v8576_v28, 0.0  ;;  %v8703_v25 = vmax.f32 %v8575_v0, 0.0  ;;  %v16406_v33 = vld [vmem:[%s20414_s6 + $0x30] ss:$8 sps:$4 sm:$0xff]  }
 0x7dd   : > { %v8774_v16 = vpack.c.bf16 %v8702_v56, %v8698_v12  ;;  %v8705_v18 = vmax.f32 %v8577_v3, 0.0  ;;  %v20673_v46 = vld [vmem:[#allocation137_spill] sm:$0xff] }
 0x7de   : > { %v8776_v7 = vpack.c.bf16 %v8704_v20, %v8700_v14  ;;  %v8775_v39 = vpack.c.bf16 %v8703_v25, %v8699_v11 }
 0x7df   : > { %v8777_v55 = vpack.c.bf16 %v8705_v18, %v8701_v50 }
 0x7e0   : > { %8896 = vmatprep.subr.bf16.mxu0 %v8775_v39 }
 0x7e1   : > { %8969 = vmatprep.subr.bf16.mxu1 %v8777_v55  ;;  %8897 = vmatpush1.bf16.msra.mxu0 %v8774_v16 }
 0x7e2   : > { %8970 = vmatpush1.bf16.msra.mxu1 %v8776_v7  ;;  %9236 = vmatprep.subr.bf16.mxu0 %v19226_v37 }
 0x7e3   : > { %9429 = vmatprep.subr.bf16.mxu1 %v19229_v23 }
 0x7e4   : > { %8899 = vmatmul.mubr.bf16.vlgmr.msra.gmra.mrb[184].mxu0 %v16397_v45 }
 0x7e5   : > { %8972 = vmatmul.mubr.bf16.vlgmr.msra.gmra.mrb[184].mxu1 %v16397_v45  ;;  %9237 = vmatpush1.bf16.msra.mxu0 %v19222_v57 }
 0x7e6   : > { %9430 = vmatpush1.bf16.msra.mxu1 %v19224_v26  ;;  %9238 = vmatprep.subr.bf16.mxu0 %v19246_v1 }
 0x7e7   : > { %9431 = vmatprep.subr.bf16.mxu1 %v19249_v13  ;;  %8908 = vmatprep.mubr.bf16.mxu0 %v16402_v38 }
 0x7e8   : > { %8981 = vmatprep.mubr.bf16.mxu1 %v16402_v38 }
 0x7e9   : > { %9239 = vmatpush1.bf16.msra.mxu0 %v19242_v17 }
 0x7ea   : > { %9432 = vmatpush1.bf16.msra.mxu1 %v19244_v31  ;;  %9240 = vmatprep.subr.bf16.mxu0 %v19266_v40 }
 0x7eb   : > { %9433 = vmatprep.subr.bf16.mxu1 %v19269_v54 }
 0x7ec   : > { %8909 = vmatmul.mubr.bf16.gmra.mrb[188].mxu0 %v16400_v48 }
 0x7ed   : > { %8982 = vmatmul.mubr.bf16.gmra.mrb[188].mxu1 %v16400_v48  ;;  %9241 = vmatpush1.bf16.msra.mxu0 %v19262_v27 }
 0x7ee   : > { %9434 = vmatpush1.bf16.msra.mxu1 %v19264_v29  ;;  %9242 = vmatprep.subr.bf16.mxu0 %v19286_v53 }
 0x7ef   : > { %9435 = vmatprep.subr.bf16.mxu1 %v19288_v52  ;;  %8918 = vmatprep.mubr.bf16.mxu0 %v16405_v44 }
 0x7f0   : > { %8991 = vmatprep.mubr.bf16.mxu1 %v16405_v44 }
 0x7f1   : > { %9243 = vmatpush1.bf16.msra.mxu0 %v19282_v15 }
 0x7f2   : > { %9436 = vmatpush1.bf16.msra.mxu1 %v19284_v58 }
 0x7f4   : > { %8919 = vmatmul.mubr.bf16.gmra.mrb[192].mxu0 %v16403_v6 }
 0x7f5   : > { %8992 = vmatmul.mubr.bf16.gmra.mrb[192].mxu1 %v16403_v6  ;;  %8928 = vmatprep.mubr.bf16.mxu0 %v16408_v36 }
 0x7f6   : > { %9001 = vmatprep.mubr.bf16.mxu1 %v16408_v36 }
 0x7fc   : > { %8929 = vmatmul.mubr.bf16.gmra.mrb[196].mxu0 %v16406_v33 }
 0x7fd   : > { %9002 = vmatmul.mubr.bf16.gmra.mrb[196].mxu1 %v16406_v33  ;;  %9268 = vmatprep.mubr.bf16.mxu0 %v20631_v51 }
 0x7fe   : > { %9461 = vmatprep.mubr.bf16.mxu1 %v20631_v51 }
 0x8b7   : > { %v8900_v60 = vpop.f32.mrb[184].mxu0 }
 0x8b8   : > { %v8901_v21 = vadd.f32 %v8900_v60, %v20672_v43  ;;  %v8973_v49 = vpop.f32.mrb[184].mxu1  ;;  %v8902_v5 = vpop.f32.mrb[185].mxu0  ;;  %v20674_v60 = vld [vmem:[#allocation91_spill] sm:$0xff] }
 0x8b9   : > { %v8974_v24 = vadd.f32 %v8973_v49, %v20672_v43  ;;  %v8903_v19 = vadd.f32 %v8902_v5, %v20672_v43  ;;  %v8975_v41 = vpop.f32.mrb[185].mxu1  ;;  %v8904_v28 = vpop.f32.mrb[186].mxu0 }
 0x8ba   : > { %v8976_v0 = vadd.f32 %v8975_v41, %v20672_v43  ;;  %v8905_v12 = vadd.f32 %v8904_v28, %v20673_v46  ;;  %v8977_v56 = vpop.f32.mrb[186].mxu1  ;;  %v8906_v3 = vpop.f32.mrb[187].mxu0  ;;  %v9012_v25 = vmax.f32 %v8901_v21, 0.0 }
 0x8bb   : > { %v8978_v14 = vadd.f32 %v8977_v56, %v20673_v46  ;;  %v8907_v11 = vadd.f32 %v8906_v3, %v20673_v46  ;;  %v8979_v20 = vpop.f32.mrb[187].mxu1  ;;  %v9014_v18 = vmax.f32 %v8974_v24, 0.0  ;;  %v9013_v7 = vmax.f32 %v8903_v19, 0.0 }
 0x8bc   : > { %v9016_v50 = vmax.f32 %v8905_v12, 0.0  ;;  %v8980_v16 = vadd.f32 %v8979_v20, %v20673_v46  ;;  %v9015_v45 = vmax.f32 %v8976_v0, 0.0  ;;  %v20675_v0 = vld [vmem:[#allocation140_spill] sm:$0xff] }
 0x8bd   : > { %v9018_v39 = vmax.f32 %v8978_v14, 0.0  ;;  %v9017_v55 = vmax.f32 %v8907_v11, 0.0 }
 0x8be   : > { %v19582_v38 = vpack.c.bf16 %v9016_v50, %v9012_v25  ;;  %v9019_v48 = vmax.f32 %v8980_v16, 0.0 }
 0x8bf   : > { %v19584_v44 = vpack.c.bf16 %v9018_v39, %v9014_v18  ;;  %v19586_v6 = vpack.c.bf16 %v9017_v55, %v9013_v7  ;;  %v8910_v36 = vpop.f32.mrb[188].mxu0 }
 0x8c0   : > { %v19588_v33 = vpack.c.bf16 %v9019_v48, %v9015_v45  ;;  %v8911_v43 = vadd.f32 %v8910_v36, %v20674_v60  ;;  %v8983_v21 = vpop.f32.mrb[188].mxu1  ;;  %v8912_v49 = vpop.f32.mrb[189].mxu0 }
 0x8c1   : > { %v8984_v5 = vadd.f32 %v8983_v21, %v20674_v60  ;;  %v8913_v24 = vadd.f32 %v8912_v49, %v20674_v60  ;;  %v8985_v19 = vpop.f32.mrb[189].mxu1  ;;  %v8914_v41 = vpop.f32.mrb[190].mxu0  ;;  %9244 = vmatprep.subr.bf16.mxu0 %v19586_v6 }
 0x8c2   : > { %v8986_v28 = vadd.f32 %v8985_v19, %v20674_v60  ;;  %v8915_v46 = vadd.f32 %v8914_v41, %v20675_v0  ;;  %v8987_v12 = vpop.f32.mrb[190].mxu1  ;;  %9437 = vmatprep.subr.bf16.mxu1 %v19588_v33  ;;  %v8916_v56 = vpop.f32.mrb[191].mxu0  ;;  %9245 = vmatpush1.bf16.msra.mxu0 %v19582_v38  ;;  %v9020_v20 = vmax.f32 %v8911_v43, 0.0  ;;  %v20676_v19 = vld [vmem:[#allocation101_spill] sm:$0xff] }
 0x8c3   : > { %v8988_v3 = vadd.f32 %v8987_v12, %v20675_v0  ;;  %v8917_v14 = vadd.f32 %v8916_v56, %v20675_v0  ;;  %v8989_v11 = vpop.f32.mrb[191].mxu1  ;;  %9438 = vmatpush1.bf16.msra.mxu1 %v19584_v44  ;;  %v9022_v16 = vmax.f32 %v8984_v5, 0.0  ;;  %v9021_v18 = vmax.f32 %v8913_v24, 0.0  ;;  %v20677_v56 = vld [vmem:[#allocation143_spill] sm:$0xff] }
 0x8c4   : > { %v9024_v25 = vmax.f32 %v8915_v46, 0.0  ;;  %v8990_v50 = vadd.f32 %v8989_v11, %v20675_v0  ;;  %v9023_v55 = vmax.f32 %v8986_v28, 0.0 }
 0x8c5   : > { %v9026_v7 = vmax.f32 %v8988_v3, 0.0  ;;  %v9025_v39 = vmax.f32 %v8917_v14, 0.0 }
 0x8c6   : > { %v19602_v45 = vpack.c.bf16 %v9024_v25, %v9020_v20  ;;  %v9027_v48 = vmax.f32 %v8990_v50, 0.0 }
 0x8c7   : > { %v19604_v36 = vpack.c.bf16 %v9026_v7, %v9022_v16  ;;  %v19606_v60 = vpack.c.bf16 %v9025_v39, %v9021_v18  ;;  %v8920_v21 = vpop.f32.mrb[192].mxu0 }
 0x8c8   : > { %v19608_v49 = vpack.c.bf16 %v9027_v48, %v9023_v55  ;;  %v8921_v43 = vadd.f32 %v8920_v21, %v20676_v19  ;;  %v8993_v41 = vpop.f32.mrb[192].mxu1  ;;  %v8922_v46 = vpop.f32.mrb[193].mxu0 }
 0x8c9   : > { %v8994_v5 = vadd.f32 %v8993_v41, %v20676_v19  ;;  %v8923_v24 = vadd.f32 %v8922_v46, %v20676_v19  ;;  %v8995_v0 = vpop.f32.mrb[193].mxu1  ;;  %v8924_v28 = vpop.f32.mrb[194].mxu0  ;;  %9246 = vmatprep.subr.bf16.mxu0 %v19606_v60 }
 0x8ca   : > { %v8996_v12 = vadd.f32 %v8995_v0, %v20676_v19  ;;  %v8925_v3 = vadd.f32 %v8924_v28, %v20677_v56  ;;  %v8997_v14 = vpop.f32.mrb[194].mxu1  ;;  %9439 = vmatprep.subr.bf16.mxu1 %v19608_v49  ;;  %v8926_v11 = vpop.f32.mrb[195].mxu0  ;;  %9247 = vmatpush1.bf16.msra.mxu0 %v19602_v45  ;;  %v9028_v16 = vmax.f32 %v8921_v43, 0.0 }
 0x8cb   : > { %v8998_v20 = vadd.f32 %v8997_v14, %v20677_v56  ;;  %v8927_v25 = vadd.f32 %v8926_v11, %v20677_v56  ;;  %v8999_v50 = vpop.f32.mrb[195].mxu1  ;;  %9440 = vmatpush1.bf16.msra.mxu1 %v19604_v36  ;;  %v9030_v39 = vmax.f32 %v8994_v5, 0.0  ;;  %v9029_v55 = vmax.f32 %v8923_v24, 0.0 }
 0x8cc   : > { %v9032_v18 = vmax.f32 %v8925_v3, 0.0  ;;  %v9000_v7 = vadd.f32 %v8999_v50, %v20677_v56  ;;  %v9031_v19 = vmax.f32 %v8996_v12, 0.0 }
 0x8cd   : > { %v9034_v48 = vmax.f32 %v8998_v20, 0.0  ;;  %v9033_v21 = vmax.f32 %v8927_v25, 0.0  ;;  %v20679_v25 = vld [vmem:[#allocation145_spill] sm:$0xff] }
 0x8ce   : > { %v19622_v41 = vpack.c.bf16 %v9032_v18, %v9028_v16  ;;  %v9035_v46 = vmax.f32 %v9000_v7, 0.0 }
 0x8cf   : > { %v19624_v0 = vpack.c.bf16 %v9034_v48, %v9030_v39  ;;  %v19626_v28 = vpack.c.bf16 %v9033_v21, %v9029_v55  ;;  %v8930_v14 = vpop.f32.mrb[196].mxu0 }
 0x8d0   : > { %v19628_v11 = vpack.c.bf16 %v9035_v46, %v9031_v19  ;;  %v8931_v43 = vadd.f32 %v8930_v14, %v20678_v8  ;;  %v9003_v3 = vpop.f32.mrb[196].mxu1  ;;  %v8932_v34 = vpop.f32.mrb[197].mxu0 }
 0x8d1   : > { %v9004_v5 = vadd.f32 %v9003_v3, %v20678_v8  ;;  %v8933_v24 = vadd.f32 %v8932_v34, %v20678_v8  ;;  %v9005_v56 = vpop.f32.mrb[197].mxu1  ;;  %v8934_v12 = vpop.f32.mrb[198].mxu0  ;;  %9248 = vmatprep.subr.bf16.mxu0 %v19626_v28 }
 0x8d2   : > { %v9006_v20 = vadd.f32 %v9005_v56, %v20678_v8  ;;  %v8935_v50 = vadd.f32 %v8934_v12, %v20679_v25  ;;  %v9007_v16 = vpop.f32.mrb[198].mxu1  ;;  %9441 = vmatprep.subr.bf16.mxu1 %v19628_v11  ;;  %v8936_v18 = vpop.f32.mrb[199].mxu0  ;;  %9249 = vmatpush1.bf16.msra.mxu0 %v19622_v41  ;;  %v9036_v34 = vmax.f32 %v8931_v43, 0.0  ;;  %v16409_v43 = vld [vmem:[%s20411_s3] sm:$0xff]  }
 0x8d3   : > { %v9008_v7 = vadd.f32 %v9007_v16, %v20679_v25  ;;  %v8937_v39 = vadd.f32 %v8936_v18, %v20679_v25  ;;  %v9009_v55 = vpop.f32.mrb[199].mxu1  ;;  %9442 = vmatpush1.bf16.msra.mxu1 %v19624_v0  ;;  %v9038_v8 = vmax.f32 %v9004_v5, 0.0  ;;  %v9037_v19 = vmax.f32 %v8933_v24, 0.0  ;;  %v16410_v5 = vld [vmem:[%s20411_s3 + $0x8] sm:$0xff]   ;;  %v16411_v24 = vld [vmem:[%s20411_s3 + $0x10] sm:$0xff]  }
 0x8d4   : > { %v9040_v48 = vmax.f32 %v8935_v50, 0.0  ;;  %v9010_v21 = vadd.f32 %v9009_v55, %v20679_v25  ;;  %v9039_v3 = vmax.f32 %v9006_v20, 0.0  ;;  %v16412_v20 = vld [vmem:[%s20411_s3 + $0x18] sm:$0xff]   ;;  %v16413_v25 = vld [vmem:[%s20411_s3 + $0x20] sm:$0xff]   ;;  %v16414_v50 = vld [vmem:[%s20411_s3 + $0x28] sm:$0xff]  }
 0x8d5   : > { %v9042_v46 = vmax.f32 %v9008_v7, 0.0  ;;  %v9041_v14 = vmax.f32 %v8937_v39, 0.0  ;;  %v16415_v7 = vld [vmem:[%s20411_s3 + $0x30] sm:$0xff]   ;;  %v16416_v39 = vld [vmem:[%s20411_s3 + $0x38] sm:$0xff]   ;;  %v16417_v55 = vld [vmem:[%s20411_s3 + $0x40] sm:$0xff]  }
 0x8d6   : > { %v19642_v56 = vpack.c.bf16 %v9040_v48, %v9036_v34  ;;  %v9043_v12 = vmax.f32 %v9010_v21, 0.0  ;;  %v16418_v34 = vld [vmem:[%s20411_s3 + $0x48] sm:$0xff]   ;;  %v16419_v48 = vld [vmem:[%s20411_s3 + $0x50] sm:$0xff]   ;;  %v16420_v21 = vld [vmem:[%s20411_s3 + $0x58] sm:$0xff]  }
 0x8d7   : > { %v19644_v30 = vpack.c.bf16 %v9042_v46, %v9038_v8  ;;  %v19646_v16 = vpack.c.bf16 %v9041_v14, %v9037_v19  ;;  %v16421_v8 = vld [vmem:[%s20411_s3 + $0x60] sm:$0xff]   ;;  %v16422_v19 = vld [vmem:[%s20411_s3 + $0x68] sm:$0xff]   ;;  %v16423_v46 = vld [vmem:[%s20411_s3 + $0x70] sm:$0xff]  }
 0x8d8   : > { %v19648_v18 = vpack.c.bf16 %v9043_v12, %v9039_v3  ;;  %v16424_v14 = vld [vmem:[%s20411_s3 + $0x78] sm:$0xff]   ;;  %v20680_v12 = vld [vmem:[#allocation121_spill] sm:$0xff] }
 0x8d9   : > { %9250 = vmatprep.subr.bf16.mxu0 %v19646_v16 }
 0x8da   : > { %9443 = vmatprep.subr.bf16.mxu1 %v19648_v18  ;;  %9251 = vmatpush1.bf16.msra.mxu0 %v19642_v56 }
 0x8db   : > { %9444 = vmatpush1.bf16.msra.mxu1 %v19644_v30 }
 0x8dd   : > { %9269 = vmatmul.mubr.bf16.vlgmr.msra.gmra.mrb[128].mxu0 %v16409_v43 }
 0x8de   : > { %9462 = vmatmul.mubr.bf16.vlgmr.msra.gmra.mrb[128].mxu1 %v16409_v43  ;;  %9278 = vmatprep.mubr.bf16.mxu0 %v20631_v51 }
 0x8df   : > { %9471 = vmatprep.mubr.bf16.mxu1 %v20631_v51 }
 0x8e5   : > { %9279 = vmatmul.mubr.bf16.gmra.mrb[132].mxu0 %v16410_v5 }
 0x8e6   : > { %9472 = vmatmul.mubr.bf16.gmra.mrb[132].mxu1 %v16410_v5  ;;  %9288 = vmatprep.mubr.bf16.mxu0 %v20631_v51 }
 0x8e7   : > { %9481 = vmatprep.mubr.bf16.mxu1 %v20631_v51 }
 0x8ed   : > { %9289 = vmatmul.mubr.bf16.gmra.mrb[136].mxu0 %v16411_v24 }
 0x8ee   : > { %9482 = vmatmul.mubr.bf16.gmra.mrb[136].mxu1 %v16411_v24  ;;  %9298 = vmatprep.mubr.bf16.mxu0 %v20631_v51 }
 0x8ef   : > { %9491 = vmatprep.mubr.bf16.mxu1 %v20631_v51 }
 0x8f5   : > { %9299 = vmatmul.mubr.bf16.gmra.mrb[140].mxu0 %v16412_v20 }
 0x8f6   : > { %9492 = vmatmul.mubr.bf16.gmra.mrb[140].mxu1 %v16412_v20  ;;  %9308 = vmatprep.mubr.bf16.mxu0 %v20631_v51 }
 0x8f7   : > { %9501 = vmatprep.mubr.bf16.mxu1 %v20631_v51 }
 0x8fd   : > { %9309 = vmatmul.mubr.bf16.gmra.mrb[144].mxu0 %v16413_v25 }
 0x8fe   : > { %9502 = vmatmul.mubr.bf16.gmra.mrb[144].mxu1 %v16413_v25  ;;  %9318 = vmatprep.mubr.bf16.mxu0 %v20631_v51 }
 0x8ff   : > { %9511 = vmatprep.mubr.bf16.mxu1 %v20631_v51 }
 0x905   : > { %9319 = vmatmul.mubr.bf16.gmra.mrb[0].mxu0 %v16414_v50 }
 0x906   : > { %9512 = vmatmul.mubr.bf16.gmra.mrb[0].mxu1 %v16414_v50  ;;  %9328 = vmatprep.mubr.bf16.mxu0 %v20631_v51 }
 0x907   : > { %9521 = vmatprep.mubr.bf16.mxu1 %v20631_v51 }
 0x90d   : > { %9329 = vmatmul.mubr.bf16.gmra.mrb[4].mxu0 %v16415_v7 }
 0x90e   : > { %9522 = vmatmul.mubr.bf16.gmra.mrb[4].mxu1 %v16415_v7  ;;  %9338 = vmatprep.mubr.bf16.mxu0 %v20631_v51 }
 0x90f   : > { %9531 = vmatprep.mubr.bf16.mxu1 %v20631_v51 }
 0x915   : > { %9339 = vmatmul.mubr.bf16.gmra.mrb[8].mxu0 %v16416_v39 }
 0x916   : > { %9532 = vmatmul.mubr.bf16.gmra.mrb[8].mxu1 %v16416_v39  ;;  %9348 = vmatprep.mubr.bf16.mxu0 %v20631_v51 }
 0x917   : > { %9541 = vmatprep.mubr.bf16.mxu1 %v20631_v51 }
 0x91d   : > { %9349 = vmatmul.mubr.bf16.gmra.mrb[12].mxu0 %v16417_v55 }
 0x91e   : > { %9542 = vmatmul.mubr.bf16.gmra.mrb[12].mxu1 %v16417_v55  ;;  %9358 = vmatprep.mubr.bf16.mxu0 %v20631_v51 }
 0x91f   : > { %9551 = vmatprep.mubr.bf16.mxu1 %v20631_v51 }
 0x925   : > { %9359 = vmatmul.mubr.bf16.gmra.mrb[16].mxu0 %v16418_v34 }
 0x926   : > { %9552 = vmatmul.mubr.bf16.gmra.mrb[16].mxu1 %v16418_v34  ;;  %9368 = vmatprep.mubr.bf16.mxu0 %v20631_v51 }
 0x927   : > { %9561 = vmatprep.mubr.bf16.mxu1 %v20631_v51 }
 0x92d   : > { %9369 = vmatmul.mubr.bf16.gmra.mrb[20].mxu0 %v16419_v48 }
 0x92e   : > { %9562 = vmatmul.mubr.bf16.gmra.mrb[20].mxu1 %v16419_v48  ;;  %9378 = vmatprep.mubr.bf16.mxu0 %v20631_v51 }
 0x92f   : > { %9571 = vmatprep.mubr.bf16.mxu1 %v20631_v51 }
 0x935   : > { %9379 = vmatmul.mubr.bf16.gmra.mrb[24].mxu0 %v16420_v21 }
 0x936   : > { %9572 = vmatmul.mubr.bf16.gmra.mrb[24].mxu1 %v16420_v21  ;;  %9388 = vmatprep.mubr.bf16.mxu0 %v20631_v51 }
 0x937   : > { %9581 = vmatprep.mubr.bf16.mxu1 %v20631_v51 }
 0x93d   : > { %9389 = vmatmul.mubr.bf16.gmra.mrb[28].mxu0 %v16421_v8 }
 0x93e   : > { %9582 = vmatmul.mubr.bf16.gmra.mrb[28].mxu1 %v16421_v8  ;;  %9398 = vmatprep.mubr.bf16.mxu0 %v20631_v51 }
 0x93f   : > { %9591 = vmatprep.mubr.bf16.mxu1 %v20631_v51 }
 0x945   : > { %9399 = vmatmul.mubr.bf16.gmra.mrb[32].mxu0 %v16422_v19 }
 0x946   : > { %9592 = vmatmul.mubr.bf16.gmra.mrb[32].mxu1 %v16422_v19  ;;  %9408 = vmatprep.mubr.bf16.mxu0 %v20631_v51 }
 0x947   : > { %9601 = vmatprep.mubr.bf16.mxu1 %v20631_v51 }
 0x94d   : > { %9409 = vmatmul.mubr.bf16.gmra.mrb[36].mxu0 %v16423_v46 }
 0x94e   : > { %9602 = vmatmul.mubr.bf16.gmra.mrb[36].mxu1 %v16423_v46  ;;  %9418 = vmatprep.mubr.bf16.mxu0 %v20631_v51 }
 0x94f   : > { %9611 = vmatprep.mubr.bf16.mxu1 %v20631_v51  ;;  %v20681_v51 = vld [vmem:[#allocation148_spill] sm:$0xff] }
 0x955   : > { %9419 = vmatmul.mubr.bf16.gmra.mrb[40].mxu0 %v16424_v14 }
 0x956   : > { %9612 = vmatmul.mubr.bf16.gmra.mrb[40].mxu1 %v16424_v14 }
 0x9b0   : > { %v9270_v3 = vpop.f32.mrb[128].mxu0 }
 0x9b1   : > { %v9942_v43 = vadd.f32 %v20680_v12, %v9270_v3  ;;  %v9463_v5 = vpop.f32.mrb[128].mxu1  ;;  %v9272_v24 = vpop.f32.mrb[129].mxu0 }
 0x9b2   : > { %v9944_v20 = vadd.f32 %v20680_v12, %v9463_v5  ;;  %v9943_v25 = vadd.f32 %v20680_v12, %v9272_v24  ;;  %v9465_v50 = vpop.f32.mrb[129].mxu1  ;;  %v9274_v7 = vpop.f32.mrb[130].mxu0 }
 0x9b3   : > { %v9945_v39 = vadd.f32 %v20680_v12, %v9465_v50  ;;  %v9946_v55 = vadd.f32 %v20681_v51, %v9274_v7  ;;  %v9467_v34 = vpop.f32.mrb[130].mxu1  ;;  %v9276_v48 = vpop.f32.mrb[131].mxu0  ;;  %v10070_v46 = vmax.f32 %v9942_v43, 0.0  ;;  %v16427_v12 = vld [vmem:[%s20415_s7 + $0x4] ss:$8 sps:$4 sm:$0xff]  }
 0x9b4   : > { %v9948_v21 = vadd.f32 %v20681_v51, %v9467_v34  ;;  %v9947_v8 = vadd.f32 %v20681_v51, %v9276_v48  ;;  %v9469_v19 = vpop.f32.mrb[131].mxu1  ;;  %v10072_v5 = vmax.f32 %v9944_v20, 0.0  ;;  %v10071_v4 = vmax.f32 %v9943_v25, 0.0  ;;  %10390 = vmatprep.mubr.bf16.mxu0 %v16427_v12  ;;  %10463 = vmatprep.mubr.bf16.mxu1 %v16427_v12 }
 0x9b5   : > { %v10074_v14 = vmax.f32 %v9946_v55, 0.0  ;;  %v9949_v3 = vadd.f32 %v20681_v51, %v9469_v19  ;;  %v10073_v50 = vmax.f32 %v9945_v39, 0.0  ;;  %v20682_v55 = vld [vmem:[#allocation131_spill] sm:$0xff] }
 0x9b6   : > { %v10076_v24 = vmax.f32 %v9948_v21, 0.0  ;;  %v10075_v9 = vmax.f32 %v9947_v8, 0.0 }
 0x9b7   : > { %v10206_v7 = vpack.c.bf16 %v10074_v14, %v10070_v46  ;;  %v10077_v42 = vmax.f32 %v9949_v3, 0.0  ;;  %v20683_v46 = vld [vmem:[#allocation149_spill] sm:$0xff] }
 0x9b8   : > { %v10208_v2 = vpack.c.bf16 %v10076_v24, %v10072_v5  ;;  %v10207_v34 = vpack.c.bf16 %v10075_v9, %v10071_v4  ;;  %v9280_v47 = vpop.f32.mrb[132].mxu0 }
 0x9b9   : > { %v10209_v43 = vpack.c.bf16 %v10077_v42, %v10073_v50  ;;  %v9950_v48 = vadd.f32 %v20682_v55, %v9280_v47  ;;  %v9473_v51 = vpop.f32.mrb[132].mxu1  ;;  %v9282_v20 = vpop.f32.mrb[133].mxu0 }
 0x9ba   : > { %v9952_v25 = vadd.f32 %v20682_v55, %v9473_v51  ;;  %v9951_v21 = vadd.f32 %v20682_v55, %v9282_v20  ;;  %v9475_v8 = vpop.f32.mrb[133].mxu1  ;;  %v9284_v19 = vpop.f32.mrb[134].mxu0  ;;  %10358 = vmatprep.subr.bf16.mxu0 %v10207_v34 }
 0x9bb   : > { %v9953_v39 = vadd.f32 %v20682_v55, %v9475_v8  ;;  %v9954_v14 = vadd.f32 %v20683_v46, %v9284_v19  ;;  %v9477_v9 = vpop.f32.mrb[134].mxu1  ;;  %10431 = vmatprep.subr.bf16.mxu1 %v10209_v43  ;;  %v9286_v4 = vpop.f32.mrb[135].mxu0  ;;  %10359 = vmatpush1.bf16.msra.mxu0 %v10206_v7  ;;  %v10078_v5 = vmax.f32 %v9950_v48, 0.0 }
 0x9bc   : > { %v9956_v42 = vadd.f32 %v20683_v46, %v9477_v9  ;;  %v9955_v47 = vadd.f32 %v20683_v46, %v9286_v4  ;;  %v9479_v3 = vpop.f32.mrb[135].mxu1  ;;  %10432 = vmatpush1.bf16.msra.mxu1 %v10208_v2  ;;  %v10080_v50 = vmax.f32 %v9952_v25, 0.0  ;;  %v10079_v34 = vmax.f32 %v9951_v21, 0.0  ;;  %v20684_v9 = vld [vmem:[#allocation135_spill] sm:$0xff] }
 0x9bd   : > { %v10082_v24 = vmax.f32 %v9954_v14, 0.0  ;;  %v9957_v12 = vadd.f32 %v20683_v46, %v9479_v3  ;;  %v10081_v20 = vmax.f32 %v9953_v39, 0.0  ;;  %v20685_v39 = vld [vmem:[#allocation150_spill] sm:$0xff] }
 0x9be   : > { %v10084_v51 = vmax.f32 %v9956_v42, 0.0  ;;  %v10083_v55 = vmax.f32 %v9955_v47, 0.0 }
 0x9bf   : > { %v10210_v8 = vpack.c.bf16 %v10082_v24, %v10078_v5  ;;  %v10085_v19 = vmax.f32 %v9957_v12, 0.0 }
 0x9c0   : > { %v10212_v43 = vpack.c.bf16 %v10084_v51, %v10080_v50  ;;  %v10211_v35 = vpack.c.bf16 %v10083_v55, %v10079_v34  ;;  %v9290_v7 = vpop.f32.mrb[136].mxu0 }
 0x9c1   : > { %v10213_v10 = vpack.c.bf16 %v10085_v19, %v10081_v20  ;;  %v9958_v32 = vadd.f32 %v20684_v9, %v9290_v7  ;;  %v9483_v4 = vpop.f32.mrb[136].mxu1  ;;  %v9292_v63 = vpop.f32.mrb[137].mxu0 }
 0x9c2   : > { %v9960_v2 = vadd.f32 %v20684_v9, %v9483_v4  ;;  %v9959_v48 = vadd.f32 %v20684_v9, %v9292_v63  ;;  %v9485_v46 = vpop.f32.mrb[137].mxu1  ;;  %v9294_v25 = vpop.f32.mrb[138].mxu0  ;;  %10360 = vmatprep.subr.bf16.mxu0 %v10211_v35 }
 0x9c3   : > { %v9961_v21 = vadd.f32 %v20684_v9, %v9485_v46  ;;  %v9962_v14 = vadd.f32 %v20685_v39, %v9294_v25  ;;  %v9487_v42 = vpop.f32.mrb[138].mxu1  ;;  %10433 = vmatprep.subr.bf16.mxu1 %v10213_v10  ;;  %v9296_v47 = vpop.f32.mrb[139].mxu0  ;;  %10361 = vmatpush1.bf16.msra.mxu0 %v10210_v8  ;;  %v10086_v12 = vmax.f32 %v9958_v32, 0.0 }
 0x9c4   : > { %v9964_v3 = vadd.f32 %v20685_v39, %v9487_v42  ;;  %v9963_v5 = vadd.f32 %v20685_v39, %v9296_v47  ;;  %v9489_v24 = vpop.f32.mrb[139].mxu1  ;;  %10434 = vmatpush1.bf16.msra.mxu1 %v10212_v43  ;;  %v10088_v34 = vmax.f32 %v9960_v2, 0.0  ;;  %v10087_v35 = vmax.f32 %v9959_v48, 0.0  ;;  %v9815_v20 = vpop.permute.xlu0 %9814 }
 0x9c5   : > { %v10090_v50 = vmax.f32 %v9962_v14, 0.0  ;;  %v9965_v63 = vadd.f32 %v20685_v39, %v9489_v24  ;;  %v10089_v19 = vmax.f32 %v9961_v21, 0.0  ;;  %v9820_v9 = vpop.permute.xlu1 %9819 }
 0x9c6   : > { %v10092_v51 = vmax.f32 %v9964_v3, 0.0  ;;  %v10091_v55 = vmax.f32 %v9963_v5, 0.0 }
 0x9c7   : > { %v10214_v7 = vpack.c.bf16 %v10090_v50, %v10086_v12  ;;  %v10093_v10 = vmax.f32 %v9965_v63, 0.0 }
 0x9c8   : > { %v10216_v8 = vpack.c.bf16 %v10092_v51, %v10088_v34  ;;  %v10215_v4 = vpack.c.bf16 %v10091_v55, %v10087_v35  ;;  %v9300_v46 = vpop.f32.mrb[140].mxu0 }
 0x9c9   : > { %v10217_v25 = vpack.c.bf16 %v10093_v10, %v10089_v19  ;;  %v9966_v42 = vadd.f32 %v9815_v20, %v9300_v46  ;;  %v9493_v47 = vpop.f32.mrb[140].mxu1  ;;  %v9302_v43 = vpop.f32.mrb[141].mxu0 }
 0x9ca   : > { %v9968_v32 = vadd.f32 %v9815_v20, %v9493_v47  ;;  %v9967_v14 = vadd.f32 %v9815_v20, %v9302_v43  ;;  %v9495_v22 = vpop.f32.mrb[141].mxu1  ;;  %v9304_v39 = vpop.f32.mrb[142].mxu0  ;;  %10362 = vmatprep.subr.bf16.mxu0 %v10215_v4 }
 0x9cb   : > { %v9969_v2 = vadd.f32 %v9815_v20, %v9495_v22  ;;  %v9970_v48 = vadd.f32 %v9820_v9, %v9304_v39  ;;  %v9497_v3 = vpop.f32.mrb[142].mxu1  ;;  %10435 = vmatprep.subr.bf16.mxu1 %v10217_v25  ;;  %v9306_v21 = vpop.f32.mrb[143].mxu0  ;;  %10363 = vmatpush1.bf16.msra.mxu0 %v10214_v7  ;;  %v10094_v50 = vmax.f32 %v9966_v42, 0.0 }
 0x9cc   : > { %v9972_v5 = vadd.f32 %v9820_v9, %v9497_v3  ;;  %v9971_v24 = vadd.f32 %v9820_v9, %v9306_v21  ;;  %v9499_v12 = vpop.f32.mrb[143].mxu1  ;;  %10436 = vmatpush1.bf16.msra.mxu1 %v10216_v8  ;;  %v10096_v35 = vmax.f32 %v9968_v32, 0.0  ;;  %v10095_v51 = vmax.f32 %v9967_v14, 0.0  ;;  %v9825_v10 = vpop.permute.xlu0 %9824 }
 0x9cd   : > { %v10098_v63 = vmax.f32 %v9970_v48, 0.0  ;;  %v9973_v34 = vadd.f32 %v9820_v9, %v9499_v12  ;;  %v10097_v46 = vmax.f32 %v9969_v2, 0.0  ;;  %v9830_v20 = vpop.permute.xlu1 %9829 }
 0x9ce   : > { %v10100_v55 = vmax.f32 %v9972_v5, 0.0  ;;  %v10099_v19 = vmax.f32 %v9971_v24, 0.0 }
 0x9cf   : > { %v10218_v4 = vpack.c.bf16 %v10098_v63, %v10094_v50  ;;  %v10101_v22 = vmax.f32 %v9973_v34, 0.0 }
 0x9d0   : > { %v10220_v47 = vpack.c.bf16 %v10100_v55, %v10096_v35  ;;  %v10219_v25 = vpack.c.bf16 %v10099_v19, %v10095_v51  ;;  %v9310_v43 = vpop.f32.mrb[144].mxu0 }
 0x9d1   : > { %v10221_v7 = vpack.c.bf16 %v10101_v22, %v10097_v46  ;;  %v9974_v39 = vadd.f32 %v9825_v10, %v9310_v43  ;;  %v9503_v3 = vpop.f32.mrb[144].mxu1  ;;  %v9312_v21 = vpop.f32.mrb[145].mxu0 }
 0x9d2   : > { %v9976_v8 = vadd.f32 %v9825_v10, %v9503_v3  ;;  %v9975_v42 = vadd.f32 %v9825_v10, %v9312_v21  ;;  %v9505_v48 = vpop.f32.mrb[145].mxu1  ;;  %v9314_v9 = vpop.f32.mrb[146].mxu0  ;;  %10364 = vmatprep.subr.bf16.mxu0 %v10219_v25 }
 0x9d3   : > { %v9977_v32 = vadd.f32 %v9825_v10, %v9505_v48  ;;  %v9978_v14 = vadd.f32 %v9830_v20, %v9314_v9  ;;  %v9507_v5 = vpop.f32.mrb[146].mxu1  ;;  %10437 = vmatprep.subr.bf16.mxu1 %v10221_v7  ;;  %v9316_v2 = vpop.f32.mrb[147].mxu0  ;;  %10365 = vmatpush1.bf16.msra.mxu0 %v10218_v4  ;;  %v10102_v63 = vmax.f32 %v9974_v39, 0.0  ;;  %v20686_v4 = vld [vmem:[#allocation22_spill] sm:$0xff] }
 0x9d4   : > { %v9980_v24 = vadd.f32 %v9830_v20, %v9507_v5  ;;  %v9979_v12 = vadd.f32 %v9830_v20, %v9316_v2  ;;  %v9509_v50 = vpop.f32.mrb[147].mxu1  ;;  %10438 = vmatpush1.bf16.msra.mxu1 %v10220_v47  ;;  %v10104_v51 = vmax.f32 %v9976_v8, 0.0  ;;  %v10103_v55 = vmax.f32 %v9975_v42, 0.0  ;;  %v9835_v10 = vpop.permute.xlu0 %9834  ;;  %v20687_v47 = vld [vmem:[#allocation24_spill] sm:$0xff] }
 0x9d5   : > { %v10106_v34 = vmax.f32 %v9978_v14, 0.0  ;;  %v9981_v35 = vadd.f32 %v9830_v20, %v9509_v50  ;;  %v10105_v22 = vmax.f32 %v9977_v32, 0.0  ;;  %v20688_v14 = vld [vmem:[#allocation25_spill] sm:$0xff]  ;;  %v20689_v32 = vld [vmem:[#allocation26_spill] sm:$0xff]  ;;  %v20690_v50 = vld [vmem:[#allocation27_spill] sm:$0xff] }
 0x9d6   : > { %v10108_v19 = vmax.f32 %v9980_v24, 0.0  ;;  %v10107_v46 = vmax.f32 %v9979_v12, 0.0 }
 0x9d7   : > { %v10222_v43 = vpack.c.bf16 %v10106_v34, %v10102_v63  ;;  %v10109_v25 = vmax.f32 %v9981_v35, 0.0 }
 0x9d8   : > { %v10224_v3 = vpack.c.bf16 %v10108_v19, %v10104_v51  ;;  %v10223_v21 = vpack.c.bf16 %v10107_v46, %v10103_v55  ;;  %v9320_v7 = vpop.f32.mrb[0].mxu0  ;;  %v9840_v51 = vpop.permute.xlu1 %9839  ;;  %v20691_v46 = vld [vmem:[#allocation28_spill] sm:$0xff] }
 0x9d9   : > { %v10225_v48 = vpack.c.bf16 %v10109_v25, %v10105_v22  ;;  %v14630_v9 = vadd.f32 %v9320_v7, %v20686_v4  ;;  %v9513_v5 = vpop.f32.mrb[0].mxu1  ;;  %v9322_v2 = vpop.f32.mrb[1].mxu0  ;;  %v20692_v25 = vld [vmem:[#allocation29_spill] sm:$0xff] }
 0x9da   : > { %v14726_v39 = vadd.f32 %v9513_v5, %v20687_v47  ;;  %v14631_v20 = vadd.f32 %v9322_v2, %v20688_v14  ;;  %v9515_v8 = vpop.f32.mrb[1].mxu1  ;;  %v9324_v42 = vpop.f32.mrb[2].mxu0  ;;  %10366 = vmatprep.subr.bf16.mxu0 %v10223_v21 }
 0x9db   : > { %v9982_v24 = vadd.f32 %v14630_v9, %v9835_v10  ;;  %v14727_v12 = vadd.f32 %v9515_v8, %v20689_v32  ;;  %v14632_v63 = vadd.f32 %v9324_v42, %v20690_v50  ;;  %v9517_v34 = vpop.f32.mrb[2].mxu1  ;;  %10439 = vmatprep.subr.bf16.mxu1 %v10225_v48  ;;  %v9326_v35 = vpop.f32.mrb[3].mxu0  ;;  %10367 = vmatpush1.bf16.msra.mxu0 %v10222_v43  ;;  %v20693_v9 = vld [vmem:[#allocation30_spill] sm:$0xff] }
 0x9dc   : > { %v9984_v55 = vadd.f32 %v14726_v39, %v9835_v10  ;;  %v9983_v19 = vadd.f32 %v14631_v20, %v9835_v10  ;;  %v14728_v22 = vadd.f32 %v9517_v34, %v20691_v46  ;;  %v14633_v7 = vadd.f32 %v9326_v35, %v20692_v25  ;;  %v9519_v4 = vpop.f32.mrb[3].mxu1  ;;  %10440 = vmatpush1.bf16.msra.mxu1 %v10224_v3  ;;  %v9845_v32 = vpop.permute.xlu0 %9844  ;;  %v20694_v25 = vld [vmem:[#allocation32_spill] sm:$0xff] }
 0x9dd   : > { %v9985_v5 = vadd.f32 %v14727_v12, %v9835_v10  ;;  %v9986_v21 = vadd.f32 %v14632_v63, %v9840_v51  ;;  %v14729_v2 = vadd.f32 %v9519_v4, %v20693_v9  ;;  %v10110_v8 = vmax.f32 %v9982_v24, 0.0  ;;  %v20695_v4 = vld [vmem:[#allocation34_spill] sm:$0xff] }
 0x9de   : > { %v9988_v47 = vadd.f32 %v14728_v22, %v9840_v51  ;;  %v9987_v14 = vadd.f32 %v14633_v7, %v9840_v51  ;;  %v10112_v43 = vmax.f32 %v9984_v55, 0.0  ;;  %v10111_v50 = vmax.f32 %v9983_v19, 0.0  ;;  %v20696_v7 = vld [vmem:[#allocation35_spill] sm:$0xff]  ;;  %v20697_v19 = vld [vmem:[#allocation36_spill] sm:$0xff] }
 0x9df   : > { %v10114_v42 = vmax.f32 %v9986_v21, 0.0  ;;  %v9989_v48 = vadd.f32 %v14729_v2, %v9840_v51  ;;  %v10113_v34 = vmax.f32 %v9985_v5, 0.0 }
 0x9e0   : > { %v10116_v39 = vmax.f32 %v9988_v47, 0.0  ;;  %v10115_v20 = vmax.f32 %v9987_v14, 0.0  ;;  %v9330_v59 = vpop.f32.mrb[4].mxu0  ;;  %v20698_v47 = vld [vmem:[#allocation37_spill] sm:$0xff] }
 0x9e1   : > { %v10226_v46 = vpack.c.bf16 %v10114_v42, %v10110_v8  ;;  %v10117_v35 = vmax.f32 %v9989_v48, 0.0  ;;  %v14634_v3 = vadd.f32 %v9330_v59, %v20694_v25  ;;  %v9523_v10 = vpop.f32.mrb[4].mxu1  ;;  %v9332_v12 = vpop.f32.mrb[5].mxu0 }
 0x9e2   : > { %v10228_v63 = vpack.c.bf16 %v10116_v39, %v10112_v43  ;;  %v14730_v22 = vadd.f32 %v9523_v10, %v20695_v4  ;;  %v14635_v24 = vadd.f32 %v9332_v12, %v20696_v7  ;;  %v9525_v21 = vpop.f32.mrb[5].mxu1  ;;  %v9334_v51 = vpop.f32.mrb[6].mxu0  ;;  %v10227_v9 = vpack.c.bf16 %v10115_v20, %v10111_v50  ;;  %v20700_v39 = vld [vmem:[#allocation39_spill] sm:$0xff]  ;;  %v20701_v50 = vld [vmem:[#allocation40_spill] sm:$0xff] }
 0x9e3   : > { %v9990_v55 = vadd.f32 %v14634_v3, %v9845_v32  ;;  %v14731_v2 = vadd.f32 %v9525_v21, %v20697_v19  ;;  %v14636_v14 = vadd.f32 %v9334_v51, %v20698_v47  ;;  %v9527_v5 = vpop.f32.mrb[6].mxu1  ;;  %v9336_v8 = vpop.f32.mrb[7].mxu0  ;;  %v10229_v42 = vpack.c.bf16 %v10117_v35, %v10113_v34 }
 0x9e4   : > { %v9850_v48 = vpop.permute.xlu1 %9849  ;;  %v9992_v59 = vadd.f32 %v14730_v22, %v9845_v32  ;;  %v9991_v25 = vadd.f32 %v14635_v24, %v9845_v32  ;;  %v14732_v43 = vadd.f32 %v9527_v5, %v20699_v62  ;;  %v14637_v10 = vadd.f32 %v9336_v8, %v20700_v39  ;;  %v9529_v4 = vpop.f32.mrb[7].mxu1  ;;  %10368 = vmatprep.subr.bf16.mxu0 %v10227_v9 }
 0x9e5   : > { %v9993_v12 = vadd.f32 %v14731_v2, %v9845_v32  ;;  %v9994_v7 = vadd.f32 %v14636_v14, %v9850_v48  ;;  %v14733_v20 = vadd.f32 %v9529_v4, %v20701_v50  ;;  %10441 = vmatprep.subr.bf16.mxu1 %v10229_v42  ;;  %10369 = vmatpush1.bf16.msra.mxu0 %v10226_v46  ;;  %v10118_v51 = vmax.f32 %v9990_v55, 0.0  ;;  %v9855_v22 = vpop.permute.xlu0 %9854  ;;  %v20702_v2 = vld [vmem:[#allocation42_spill] sm:$0xff] }
 0x9e6   : > { %v9996_v3 = vadd.f32 %v14732_v43, %v9850_v48  ;;  %v9995_v21 = vadd.f32 %v14637_v10, %v9850_v48  ;;  %10442 = vmatpush1.bf16.msra.mxu1 %v10228_v63  ;;  %v10120_v24 = vmax.f32 %v9992_v59, 0.0  ;;  %v10119_v19 = vmax.f32 %v9991_v25, 0.0  ;;  %v20703_v43 = vld [vmem:[#allocation44_spill] sm:$0xff]  ;;  %v20704_v63 = vld [vmem:[#allocation45_spill] sm:$0xff]  ;;  %v20705_v25 = vld [vmem:[#allocation46_spill] sm:$0xff] }
 0x9e7   : > { %v10122_v34 = vmax.f32 %v9994_v7, 0.0  ;;  %v9997_v35 = vadd.f32 %v14733_v20, %v9850_v48  ;;  %v10121_v8 = vmax.f32 %v9993_v12, 0.0  ;;  %v20706_v20 = vld [vmem:[#allocation47_spill] sm:$0xff] }
 0x9e8   : > { %v10124_v62 = vmax.f32 %v9996_v3, 0.0  ;;  %v10123_v47 = vmax.f32 %v9995_v21, 0.0  ;;  %v9340_v5 = vpop.f32.mrb[8].mxu0 }
 0x9e9   : > { %v10230_v9 = vpack.c.bf16 %v10122_v34, %v10118_v51  ;;  %v10125_v32 = vmax.f32 %v9997_v35, 0.0  ;;  %v14638_v14 = vadd.f32 %v9340_v5, %v20702_v2  ;;  %v9533_v39 = vpop.f32.mrb[8].mxu1  ;;  %v9342_v42 = vpop.f32.mrb[9].mxu0  ;;  %v20707_v2 = vld [vmem:[#allocation48_spill] sm:$0xff] }
 0x9ea   : > { %v10232_v46 = vpack.c.bf16 %v10124_v62, %v10120_v24  ;;  %v14734_v10 = vadd.f32 %v9533_v39, %v20703_v43  ;;  %v14639_v55 = vadd.f32 %v9342_v42, %v20704_v63  ;;  %v9535_v4 = vpop.f32.mrb[9].mxu1  ;;  %v9344_v48 = vpop.f32.mrb[10].mxu0  ;;  %v10231_v7 = vpack.c.bf16 %v10123_v47, %v10119_v19  ;;  %v20708_v62 = vld [vmem:[#allocation49_spill] sm:$0xff]  ;;  %v20709_v19 = vld [vmem:[#allocation50_spill] sm:$0xff] }
 0x9eb   : > { %v9998_v59 = vadd.f32 %v14638_v14, %v9855_v22  ;;  %v14735_v50 = vadd.f32 %v9535_v4, %v20705_v25  ;;  %v14640_v3 = vadd.f32 %v9344_v48, %v20706_v20  ;;  %v9537_v12 = vpop.f32.mrb[10].mxu1  ;;  %v9346_v21 = vpop.f32.mrb[11].mxu0  ;;  %v10233_v51 = vpack.c.bf16 %v10125_v32, %v10121_v8 }
 0x9ec   : > { %v9860_v34 = vpop.permute.xlu1 %9859  ;;  %v10000_v35 = vadd.f32 %v14734_v10, %v9855_v22  ;;  %v9999_v5 = vadd.f32 %v14639_v55, %v9855_v22  ;;  %v14736_v24 = vadd.f32 %v9537_v12, %v20707_v2  ;;  %v14641_v39 = vadd.f32 %v9346_v21, %v20708_v62  ;;  %v9539_v43 = vpop.f32.mrb[11].mxu1  ;;  %10370 = vmatprep.subr.bf16.mxu0 %v10231_v7 }
 0x9ed   : > { %v10001_v42 = vadd.f32 %v14735_v50, %v9855_v22  ;;  %v10002_v63 = vadd.f32 %v14640_v3, %v9860_v34  ;;  %v14737_v47 = vadd.f32 %v9539_v43, %v20709_v19  ;;  %10443 = vmatprep.subr.bf16.mxu1 %v10233_v51  ;;  %10371 = vmatpush1.bf16.msra.mxu0 %v10230_v9  ;;  %v10126_v48 = vmax.f32 %v9998_v59, 0.0  ;;  %v9865_v10 = vpop.permute.xlu0 %9864  ;;  %v20710_v50 = vld [vmem:[#allocation52_spill] sm:$0xff] }
 0x9ee   : > { %v10004_v14 = vadd.f32 %v14736_v24, %v9860_v34  ;;  %v10003_v4 = vadd.f32 %v14641_v39, %v9860_v34  ;;  %10444 = vmatpush1.bf16.msra.mxu1 %v10232_v46  ;;  %v10128_v55 = vmax.f32 %v10000_v35, 0.0  ;;  %v10127_v25 = vmax.f32 %v9999_v5, 0.0  ;;  %v20711_v24 = vld [vmem:[#allocation54_spill] sm:$0xff]  ;;  %v20712_v46 = vld [vmem:[#allocation55_spill] sm:$0xff]  ;;  %v20713_v5 = vld [vmem:[#allocation56_spill] sm:$0xff] }
 0x9ef   : > { %v10130_v8 = vmax.f32 %v10002_v63, 0.0  ;;  %v10005_v32 = vadd.f32 %v14737_v47, %v9860_v34  ;;  %v10129_v2 = vmax.f32 %v10001_v42, 0.0  ;;  %v20714_v47 = vld [vmem:[#allocation57_spill] sm:$0xff] }
 0x9f0   : > { %v10132_v20 = vmax.f32 %v10004_v14, 0.0  ;;  %v10131_v12 = vmax.f32 %v10003_v4, 0.0  ;;  %v9350_v21 = vpop.f32.mrb[12].mxu0 }
 0x9f1   : > { %v10234_v7 = vpack.c.bf16 %v10130_v8, %v10126_v48  ;;  %v10133_v22 = vmax.f32 %v10005_v32, 0.0  ;;  %v14642_v3 = vadd.f32 %v9350_v21, %v20710_v50  ;;  %v9543_v62 = vpop.f32.mrb[12].mxu1  ;;  %v9352_v51 = vpop.f32.mrb[13].mxu0  ;;  %v20715_v50 = vld [vmem:[#allocation58_spill] sm:$0xff] }
 0x9f2   : > { %v10236_v9 = vpack.c.bf16 %v10132_v20, %v10128_v55  ;;  %v14738_v39 = vadd.f32 %v9543_v62, %v20711_v24  ;;  %v14643_v59 = vadd.f32 %v9352_v51, %v20712_v46  ;;  %v9545_v43 = vpop.f32.mrb[13].mxu1  ;;  %v9354_v34 = vpop.f32.mrb[14].mxu0  ;;  %v10235_v63 = vpack.c.bf16 %v10131_v12, %v10127_v25  ;;  %v20716_v20 = vld [vmem:[#allocation59_spill] sm:$0xff]  ;;  %v20717_v25 = vld [vmem:[#allocation60_spill] sm:$0xff] }
 0x9f3   : > { %v10006_v35 = vadd.f32 %v14642_v3, %v9865_v10  ;;  %v14739_v19 = vadd.f32 %v9545_v43, %v20713_v5  ;;  %v14644_v14 = vadd.f32 %v9354_v34, %v20714_v47  ;;  %v9547_v42 = vpop.f32.mrb[14].mxu1  ;;  %v9356_v4 = vpop.f32.mrb[15].mxu0  ;;  %v10237_v48 = vpack.c.bf16 %v10133_v22, %v10129_v2 }
 0x9f4   : > { %v9870_v8 = vpop.permute.xlu1 %9869  ;;  %v10008_v32 = vadd.f32 %v14738_v39, %v9865_v10  ;;  %v10007_v21 = vadd.f32 %v14643_v59, %v9865_v10  ;;  %v14740_v55 = vadd.f32 %v9547_v42, %v20715_v50  ;;  %v14645_v62 = vadd.f32 %v9356_v4, %v20716_v20  ;;  %v9549_v24 = vpop.f32.mrb[15].mxu1  ;;  %10372 = vmatprep.subr.bf16.mxu0 %v10235_v63 }
 0x9f5   : > { %v10009_v51 = vadd.f32 %v14739_v19, %v9865_v10  ;;  %v10010_v46 = vadd.f32 %v14644_v14, %v9870_v8  ;;  %v14741_v12 = vadd.f32 %v9549_v24, %v20717_v25  ;;  %10445 = vmatprep.subr.bf16.mxu1 %v10237_v48  ;;  %10373 = vmatpush1.bf16.msra.mxu0 %v10234_v7  ;;  %v10134_v34 = vmax.f32 %v10006_v35, 0.0  ;;  %v9875_v39 = vpop.permute.xlu0 %9874  ;;  %v20718_v19 = vld [vmem:[#allocation62_spill] sm:$0xff] }
 0x9f6   : > { %v10012_v3 = vadd.f32 %v14740_v55, %v9870_v8  ;;  %v10011_v43 = vadd.f32 %v14645_v62, %v9870_v8  ;;  %10446 = vmatpush1.bf16.msra.mxu1 %v10236_v9  ;;  %v10136_v59 = vmax.f32 %v10008_v32, 0.0  ;;  %v10135_v5 = vmax.f32 %v10007_v21, 0.0  ;;  %v20719_v55 = vld [vmem:[#allocation64_spill] sm:$0xff]  ;;  %v20720_v9 = vld [vmem:[#allocation65_spill] sm:$0xff]  ;;  %v20721_v21 = vld [vmem:[#allocation66_spill] sm:$0xff] }
 0x9f7   : > { %v10138_v2 = vmax.f32 %v10010_v46, 0.0  ;;  %v10013_v22 = vadd.f32 %v14741_v12, %v9870_v8  ;;  %v10137_v50 = vmax.f32 %v10009_v51, 0.0  ;;  %v20722_v12 = vld [vmem:[#allocation67_spill] sm:$0xff] }
 0x9f8   : > { %v10140_v47 = vmax.f32 %v10012_v3, 0.0  ;;  %v10139_v42 = vmax.f32 %v10011_v43, 0.0  ;;  %v9360_v4 = vpop.f32.mrb[16].mxu0 }
 0x9f9   : > { %v10238_v63 = vpack.c.bf16 %v10138_v2, %v10134_v34  ;;  %v10141_v10 = vmax.f32 %v10013_v22, 0.0  ;;  %v14646_v14 = vadd.f32 %v9360_v4, %v20718_v19  ;;  %v9553_v20 = vpop.f32.mrb[16].mxu1  ;;  %v9362_v48 = vpop.f32.mrb[17].mxu0  ;;  %v20723_v19 = vld [vmem:[#allocation68_spill] sm:$0xff] }
 0x9fa   : > { %v10240_v7 = vpack.c.bf16 %v10140_v47, %v10136_v59  ;;  %v14742_v62 = vadd.f32 %v9553_v20, %v20719_v55  ;;  %v14647_v35 = vadd.f32 %v9362_v48, %v20720_v9  ;;  %v9555_v24 = vpop.f32.mrb[17].mxu1  ;;  %v9364_v8 = vpop.f32.mrb[18].mxu0  ;;  %v10239_v46 = vpack.c.bf16 %v10139_v42, %v10135_v5  ;;  %v20724_v47 = vld [vmem:[#allocation69_spill] sm:$0xff]  ;;  %v20725_v5 = vld [vmem:[#allocation70_spill] sm:$0xff] }
 0x9fb   : > { %v10014_v32 = vadd.f32 %v14646_v14, %v9875_v39  ;;  %v14743_v25 = vadd.f32 %v9555_v24, %v20721_v21  ;;  %v14648_v3 = vadd.f32 %v9364_v8, %v20722_v12  ;;  %v9557_v51 = vpop.f32.mrb[18].mxu1  ;;  %v9366_v43 = vpop.f32.mrb[19].mxu0  ;;  %v10241_v34 = vpack.c.bf16 %v10141_v10, %v10137_v50 }
 0x9fc   : > { %v9880_v2 = vpop.permute.xlu1 %9879  ;;  %v10016_v22 = vadd.f32 %v14742_v62, %v9875_v39  ;;  %v10015_v4 = vadd.f32 %v14647_v35, %v9875_v39  ;;  %v14744_v59 = vadd.f32 %v9557_v51, %v20723_v19  ;;  %v14649_v20 = vadd.f32 %v9366_v43, %v20724_v47  ;;  %v9559_v55 = vpop.f32.mrb[19].mxu1  ;;  %10374 = vmatprep.subr.bf16.mxu0 %v10239_v46 }
 0x9fd   : > { %v10017_v48 = vadd.f32 %v14743_v25, %v9875_v39  ;;  %v10018_v9 = vadd.f32 %v14648_v3, %v9880_v2  ;;  %v14745_v42 = vadd.f32 %v9559_v55, %v20725_v5  ;;  %10447 = vmatprep.subr.bf16.mxu1 %v10241_v34  ;;  %10375 = vmatpush1.bf16.msra.mxu0 %v10238_v63  ;;  %v10142_v8 = vmax.f32 %v10014_v32, 0.0  ;;  %v9885_v62 = vpop.permute.xlu0 %9884  ;;  %v20726_v25 = vld [vmem:[#allocation72_spill] sm:$0xff] }
 0x9fe   : > { %v10020_v14 = vadd.f32 %v14744_v59, %v9880_v2  ;;  %v10019_v24 = vadd.f32 %v14649_v20, %v9880_v2  ;;  %10448 = vmatpush1.bf16.msra.mxu1 %v10240_v7  ;;  %v10144_v35 = vmax.f32 %v10016_v22, 0.0  ;;  %v10143_v21 = vmax.f32 %v10015_v4, 0.0  ;;  %v20727_v59 = vld [vmem:[#allocation74_spill] sm:$0xff]  ;;  %v20728_v7 = vld [vmem:[#allocation75_spill] sm:$0xff]  ;;  %v20729_v4 = vld [vmem:[#allocation76_spill] sm:$0xff] }
 0x9ff   : > { %v10146_v50 = vmax.f32 %v10018_v9, 0.0  ;;  %v10021_v10 = vadd.f32 %v14745_v42, %v9880_v2  ;;  %v10145_v19 = vmax.f32 %v10017_v48, 0.0  ;;  %v20730_v42 = vld [vmem:[#allocation77_spill] sm:$0xff] }
 0xa00   : > { %v10148_v12 = vmax.f32 %v10020_v14, 0.0  ;;  %v10147_v51 = vmax.f32 %v10019_v24, 0.0  ;;  %v9370_v43 = vpop.f32.mrb[20].mxu0 }
 0xa01   : > { %v10242_v46 = vpack.c.bf16 %v10146_v50, %v10142_v8  ;;  %v10149_v39 = vmax.f32 %v10021_v10, 0.0  ;;  %v14650_v3 = vadd.f32 %v9370_v43, %v20726_v25  ;;  %v9563_v47 = vpop.f32.mrb[20].mxu1  ;;  %v9372_v34 = vpop.f32.mrb[21].mxu0  ;;  %v20731_v25 = vld [vmem:[#allocation78_spill] sm:$0xff] }
 0xa02   : > { %v10244_v63 = vpack.c.bf16 %v10148_v12, %v10144_v35  ;;  %v14746_v20 = vadd.f32 %v9563_v47, %v20727_v59  ;;  %v14651_v32 = vadd.f32 %v9372_v34, %v20728_v7  ;;  %v9565_v55 = vpop.f32.mrb[21].mxu1  ;;  %v9374_v2 = vpop.f32.mrb[22].mxu0  ;;  %v10243_v9 = vpack.c.bf16 %v10147_v51, %v10143_v21  ;;  %v20732_v12 = vld [vmem:[#allocation79_spill] sm:$0xff]  ;;  %v20733_v21 = vld [vmem:[#allocation80_spill] sm:$0xff] }
 0xa03   : > { %v10022_v22 = vadd.f32 %v14650_v3, %v9885_v62  ;;  %v14747_v5 = vadd.f32 %v9565_v55, %v20729_v4  ;;  %v14652_v14 = vadd.f32 %v9374_v2, %v20730_v42  ;;  %v9567_v48 = vpop.f32.mrb[22].mxu1  ;;  %v9376_v24 = vpop.f32.mrb[23].mxu0  ;;  %v10245_v8 = vpack.c.bf16 %v10149_v39, %v10145_v19 }
 0xa04   : > { %v9890_v50 = vpop.permute.xlu1 %9889  ;;  %v10024_v10 = vadd.f32 %v14746_v20, %v9885_v62  ;;  %v10023_v43 = vadd.f32 %v14651_v32, %v9885_v62  ;;  %v14748_v35 = vadd.f32 %v9567_v48, %v20731_v25  ;;  %v14653_v47 = vadd.f32 %v9376_v24, %v20732_v12  ;;  %v9569_v59 = vpop.f32.mrb[23].mxu1  ;;  %10376 = vmatprep.subr.bf16.mxu0 %v10243_v9 }
 0xa05   : > { %v10025_v34 = vadd.f32 %v14747_v5, %v9885_v62  ;;  %v10026_v7 = vadd.f32 %v14652_v14, %v9890_v50  ;;  %v14749_v51 = vadd.f32 %v9569_v59, %v20733_v21  ;;  %10449 = vmatprep.subr.bf16.mxu1 %v10245_v8  ;;  %10377 = vmatpush1.bf16.msra.mxu0 %v10242_v46  ;;  %v10150_v2 = vmax.f32 %v10022_v22, 0.0  ;;  %v9895_v20 = vpop.permute.xlu0 %9894  ;;  %v20734_v5 = vld [vmem:[#allocation82_spill] sm:$0xff] }
 0xa06   : > { %v10028_v3 = vadd.f32 %v14748_v35, %v9890_v50  ;;  %v10027_v55 = vadd.f32 %v14653_v47, %v9890_v50  ;;  %10450 = vmatpush1.bf16.msra.mxu1 %v10244_v63  ;;  %v10152_v32 = vmax.f32 %v10024_v10, 0.0  ;;  %v10151_v4 = vmax.f32 %v10023_v43, 0.0  ;;  %v20735_v35 = vld [vmem:[#allocation84_spill] sm:$0xff]  ;;  %v20736_v63 = vld [vmem:[#allocation85_spill] sm:$0xff]  ;;  %v20737_v43 = vld [vmem:[#allocation86_spill] sm:$0xff] }
 0xa07   : > { %v10154_v19 = vmax.f32 %v10026_v7, 0.0  ;;  %v10029_v39 = vadd.f32 %v14749_v51, %v9890_v50  ;;  %v10153_v25 = vmax.f32 %v10025_v34, 0.0  ;;  %v20738_v51 = vld [vmem:[#allocation87_spill] sm:$0xff] }
 0xa08   : > { %v10156_v42 = vmax.f32 %v10028_v3, 0.0  ;;  %v10155_v48 = vmax.f32 %v10027_v55, 0.0  ;;  %v9380_v24 = vpop.f32.mrb[24].mxu0 }
 0xa09   : > { %v10246_v9 = vpack.c.bf16 %v10154_v19, %v10150_v2  ;;  %v10157_v62 = vmax.f32 %v10029_v39, 0.0  ;;  %v14654_v14 = vadd.f32 %v9380_v24, %v20734_v5  ;;  %v9573_v12 = vpop.f32.mrb[24].mxu1  ;;  %v9382_v8 = vpop.f32.mrb[25].mxu0  ;;  %v20739_v5 = vld [vmem:[#allocation88_spill] sm:$0xff] }
 0xa0a   : > { %v10248_v46 = vpack.c.bf16 %v10156_v42, %v10152_v32  ;;  %v14750_v47 = vadd.f32 %v9573_v12, %v20735_v35  ;;  %v14655_v22 = vadd.f32 %v9382_v8, %v20736_v63  ;;  %v9575_v59 = vpop.f32.mrb[25].mxu1  ;;  %v9384_v50 = vpop.f32.mrb[26].mxu0  ;;  %v10247_v7 = vpack.c.bf16 %v10155_v48, %v10151_v4  ;;  %v20740_v42 = vld [vmem:[#allocation89_spill] sm:$0xff]  ;;  %v20741_v4 = vld [vmem:[#allocation90_spill] sm:$0xff] }
 0xa0b   : > { %v10030_v10 = vadd.f32 %v14654_v14, %v9895_v20  ;;  %v14751_v21 = vadd.f32 %v9575_v59, %v20737_v43  ;;  %v14656_v3 = vadd.f32 %v9384_v50, %v20738_v51  ;;  %v9577_v34 = vpop.f32.mrb[26].mxu1  ;;  %v9386_v55 = vpop.f32.mrb[27].mxu0  ;;  %v10249_v2 = vpack.c.bf16 %v10157_v62, %v10153_v25 }
 0xa0c   : > { %v9900_v19 = vpop.permute.xlu1 %9899  ;;  %v10032_v39 = vadd.f32 %v14750_v47, %v9895_v20  ;;  %v10031_v24 = vadd.f32 %v14655_v22, %v9895_v20  ;;  %v14752_v32 = vadd.f32 %v9577_v34, %v20739_v5  ;;  %v14657_v12 = vadd.f32 %v9386_v55, %v20740_v42  ;;  %v9579_v35 = vpop.f32.mrb[27].mxu1  ;;  %10378 = vmatprep.subr.bf16.mxu0 %v10247_v7 }
 0xa0d   : > { %v10033_v8 = vadd.f32 %v14751_v21, %v9895_v20  ;;  %v10034_v63 = vadd.f32 %v14656_v3, %v9900_v19  ;;  %v14753_v48 = vadd.f32 %v9579_v35, %v20741_v4  ;;  %10451 = vmatprep.subr.bf16.mxu1 %v10249_v2  ;;  %10379 = vmatpush1.bf16.msra.mxu0 %v10246_v9  ;;  %v10158_v50 = vmax.f32 %v10030_v10, 0.0  ;;  %v9905_v47 = vpop.permute.xlu0 %9904  ;;  %v20742_v21 = vld [vmem:[#allocation92_spill] sm:$0xff] }
 0xa0e   : > { %v10036_v14 = vadd.f32 %v14752_v32, %v9900_v19  ;;  %v10035_v59 = vadd.f32 %v14657_v12, %v9900_v19  ;;  %10452 = vmatpush1.bf16.msra.mxu1 %v10248_v46  ;;  %v10160_v22 = vmax.f32 %v10032_v39, 0.0  ;;  %v10159_v43 = vmax.f32 %v10031_v24, 0.0  ;;  %v20743_v32 = vld [vmem:[#allocation94_spill] sm:$0xff]  ;;  %v20744_v46 = vld [vmem:[#allocation95_spill] sm:$0xff]  ;;  %v20745_v24 = vld [vmem:[#allocation96_spill] sm:$0xff] }
 0xa0f   : > { %v10162_v25 = vmax.f32 %v10034_v63, 0.0  ;;  %v10037_v62 = vadd.f32 %v14753_v48, %v9900_v19  ;;  %v10161_v5 = vmax.f32 %v10033_v8, 0.0  ;;  %v20746_v48 = vld [vmem:[#allocation97_spill] sm:$0xff] }
 0xa10   : > { %v10164_v51 = vmax.f32 %v10036_v14, 0.0  ;;  %v10163_v34 = vmax.f32 %v10035_v59, 0.0  ;;  %v9390_v55 = vpop.f32.mrb[28].mxu0 }
 0xa11   : > { %v10250_v7 = vpack.c.bf16 %v10162_v25, %v10158_v50  ;;  %v10165_v20 = vmax.f32 %v10037_v62, 0.0  ;;  %v14658_v3 = vadd.f32 %v9390_v55, %v20742_v21  ;;  %v9583_v42 = vpop.f32.mrb[28].mxu1  ;;  %v9392_v2 = vpop.f32.mrb[29].mxu0  ;;  %v20747_v21 = vld [vmem:[#allocation98_spill] sm:$0xff] }
 0xa12   : > { %v10252_v9 = vpack.c.bf16 %v10164_v51, %v10160_v22  ;;  %v14754_v12 = vadd.f32 %v9583_v42, %v20743_v32  ;;  %v14659_v10 = vadd.f32 %v9392_v2, %v20744_v46  ;;  %v9585_v35 = vpop.f32.mrb[29].mxu1  ;;  %v9394_v19 = vpop.f32.mrb[30].mxu0  ;;  %v10251_v63 = vpack.c.bf16 %v10163_v34, %v10159_v43  ;;  %v20748_v51 = vld [vmem:[#allocation99_spill] sm:$0xff]  ;;  %v20749_v43 = vld [vmem:[#allocation100_spill] sm:$0xff] }
 0xa13   : > { %v10038_v39 = vadd.f32 %v14658_v3, %v9905_v47  ;;  %v14755_v4 = vadd.f32 %v9585_v35, %v20745_v24  ;;  %v14660_v14 = vadd.f32 %v9394_v19, %v20746_v48  ;;  %v9587_v8 = vpop.f32.mrb[30].mxu1  ;;  %v9396_v59 = vpop.f32.mrb[31].mxu0  ;;  %v10253_v50 = vpack.c.bf16 %v10165_v20, %v10161_v5 }
 0xa14   : > { %v9910_v25 = vpop.permute.xlu1 %9909  ;;  %v10040_v62 = vadd.f32 %v14754_v12, %v9905_v47  ;;  %v10039_v55 = vadd.f32 %v14659_v10, %v9905_v47  ;;  %v14756_v22 = vadd.f32 %v9587_v8, %v20747_v21  ;;  %v14661_v42 = vadd.f32 %v9396_v59, %v20748_v51  ;;  %v9589_v32 = vpop.f32.mrb[31].mxu1  ;;  %10380 = vmatprep.subr.bf16.mxu0 %v10251_v63 }
 0xa15   : > { %v10041_v2 = vadd.f32 %v14755_v4, %v9905_v47  ;;  %v10042_v46 = vadd.f32 %v14660_v14, %v9910_v25  ;;  %v14757_v34 = vadd.f32 %v9589_v32, %v20749_v43  ;;  %10453 = vmatprep.subr.bf16.mxu1 %v10253_v50  ;;  %10381 = vmatpush1.bf16.msra.mxu0 %v10250_v7  ;;  %v10166_v19 = vmax.f32 %v10038_v39, 0.0  ;;  %v9915_v12 = vpop.permute.xlu0 %9914  ;;  %v20750_v4 = vld [vmem:[#allocation102_spill] sm:$0xff] }
 0xa16   : > { %v10044_v3 = vadd.f32 %v14756_v22, %v9910_v25  ;;  %v10043_v35 = vadd.f32 %v14661_v42, %v9910_v25  ;;  %10454 = vmatpush1.bf16.msra.mxu1 %v10252_v9  ;;  %v10168_v10 = vmax.f32 %v10040_v62, 0.0  ;;  %v10167_v24 = vmax.f32 %v10039_v55, 0.0  ;;  %v20751_v22 = vld [vmem:[#allocation104_spill] sm:$0xff]  ;;  %v20752_v9 = vld [vmem:[#allocation105_spill] sm:$0xff]  ;;  %v20753_v55 = vld [vmem:[#allocation106_spill] sm:$0xff] }
 0xa17   : > { %v10170_v5 = vmax.f32 %v10042_v46, 0.0  ;;  %v10045_v20 = vadd.f32 %v14757_v34, %v9910_v25  ;;  %v10169_v21 = vmax.f32 %v10041_v2, 0.0  ;;  %v20754_v34 = vld [vmem:[#allocation107_spill] sm:$0xff] }
 0xa18   : > { %v10172_v48 = vmax.f32 %v10044_v3, 0.0  ;;  %v10171_v8 = vmax.f32 %v10043_v35, 0.0  ;;  %v9400_v59 = vpop.f32.mrb[32].mxu0 }
 0xa19   : > { %v10254_v63 = vpack.c.bf16 %v10170_v5, %v10166_v19  ;;  %v10173_v47 = vmax.f32 %v10045_v20, 0.0  ;;  %v14662_v14 = vadd.f32 %v9400_v59, %v20750_v4  ;;  %v9593_v51 = vpop.f32.mrb[32].mxu1  ;;  %v9402_v50 = vpop.f32.mrb[33].mxu0  ;;  %v20755_v4 = vld [vmem:[#allocation108_spill] sm:$0xff] }
 0xa1a   : > { %v10256_v7 = vpack.c.bf16 %v10172_v48, %v10168_v10  ;;  %v14758_v42 = vadd.f32 %v9593_v51, %v20751_v22  ;;  %v14663_v39 = vadd.f32 %v9402_v50, %v20752_v9  ;;  %v9595_v32 = vpop.f32.mrb[33].mxu1  ;;  %v9404_v25 = vpop.f32.mrb[34].mxu0  ;;  %v10255_v46 = vpack.c.bf16 %v10171_v8, %v10167_v24  ;;  %v20756_v48 = vld [vmem:[#allocation109_spill] sm:$0xff]  ;;  %v20757_v24 = vld [vmem:[#allocation110_spill] sm:$0xff] }
 0xa1b   : > { %v10046_v62 = vadd.f32 %v14662_v14, %v9915_v12  ;;  %v14759_v43 = vadd.f32 %v9595_v32, %v20753_v55  ;;  %v14664_v3 = vadd.f32 %v9404_v25, %v20754_v34  ;;  %v9597_v2 = vpop.f32.mrb[34].mxu1  ;;  %v9406_v35 = vpop.f32.mrb[35].mxu0  ;;  %v10257_v19 = vpack.c.bf16 %v10173_v47, %v10169_v21 }
 0xa1c   : > { %v9920_v5 = vpop.permute.xlu1 %9919  ;;  %v10048_v20 = vadd.f32 %v14758_v42, %v9915_v12  ;;  %v10047_v59 = vadd.f32 %v14663_v39, %v9915_v12  ;;  %v14760_v10 = vadd.f32 %v9597_v2, %v20755_v4  ;;  %v14665_v51 = vadd.f32 %v9406_v35, %v20756_v48  ;;  %v9599_v22 = vpop.f32.mrb[35].mxu1  ;;  %10382 = vmatprep.subr.bf16.mxu0 %v10255_v46 }
 0xa1d   : > { %v10049_v50 = vadd.f32 %v14759_v43, %v9915_v12  ;;  %v10050_v9 = vadd.f32 %v14664_v3, %v9920_v5  ;;  %v14761_v8 = vadd.f32 %v9599_v22, %v20757_v24  ;;  %10455 = vmatprep.subr.bf16.mxu1 %v10257_v19  ;;  %10383 = vmatpush1.bf16.msra.mxu0 %v10254_v63  ;;  %v10174_v25 = vmax.f32 %v10046_v62, 0.0  ;;  %v9925_v42 = vpop.permute.xlu0 %9924  ;;  %v20758_v43 = vld [vmem:[#allocation112_spill] sm:$0xff] }
 0xa1e   : > { %v10052_v14 = vadd.f32 %v14760_v10, %v9920_v5  ;;  %v10051_v32 = vadd.f32 %v14665_v51, %v9920_v5  ;;  %10456 = vmatpush1.bf16.msra.mxu1 %v10256_v7  ;;  %v10176_v39 = vmax.f32 %v10048_v20, 0.0  ;;  %v10175_v55 = vmax.f32 %v10047_v59, 0.0  ;;  %v20759_v10 = vld [vmem:[#allocation114_spill] sm:$0xff]  ;;  %v20760_v7 = vld [vmem:[#allocation115_spill] sm:$0xff]  ;;  %v20761_v59 = vld [vmem:[#allocation116_spill] sm:$0xff] }
 0xa1f   : > { %v10178_v21 = vmax.f32 %v10050_v9, 0.0  ;;  %v10053_v47 = vadd.f32 %v14761_v8, %v9920_v5  ;;  %v10177_v4 = vmax.f32 %v10049_v50, 0.0  ;;  %v20762_v8 = vld [vmem:[#allocation117_spill] sm:$0xff] }
 0xa20   : > { %v10180_v34 = vmax.f32 %v10052_v14, 0.0  ;;  %v10179_v2 = vmax.f32 %v10051_v32, 0.0  ;;  %v9410_v35 = vpop.f32.mrb[36].mxu0 }
 0xa21   : > { %v10258_v46 = vpack.c.bf16 %v10178_v21, %v10174_v25  ;;  %v10181_v12 = vmax.f32 %v10053_v47, 0.0  ;;  %v14666_v3 = vadd.f32 %v9410_v35, %v20758_v43  ;;  %v9603_v48 = vpop.f32.mrb[36].mxu1  ;;  %v9412_v19 = vpop.f32.mrb[37].mxu0  ;;  %v20763_v43 = vld [vmem:[#allocation118_spill] sm:$0xff] }
 0xa22   : > { %v10260_v63 = vpack.c.bf16 %v10180_v34, %v10176_v39  ;;  %v14762_v51 = vadd.f32 %v9603_v48, %v20759_v10  ;;  %v14667_v62 = vadd.f32 %v9412_v19, %v20760_v7  ;;  %v9605_v22 = vpop.f32.mrb[37].mxu1  ;;  %v9414_v5 = vpop.f32.mrb[38].mxu0  ;;  %v10259_v9 = vpack.c.bf16 %v10179_v2, %v10175_v55  ;;  %v20764_v34 = vld [vmem:[#allocation119_spill] sm:$0xff]  ;;  %v20765_v55 = vld [vmem:[#allocation120_spill] sm:$0xff] }
 0xa23   : > { %v10054_v20 = vadd.f32 %v14666_v3, %v9925_v42  ;;  %v14763_v24 = vadd.f32 %v9605_v22, %v20761_v59  ;;  %v14668_v14 = vadd.f32 %v9414_v5, %v20762_v8  ;;  %v9607_v50 = vpop.f32.mrb[38].mxu1  ;;  %v9416_v32 = vpop.f32.mrb[39].mxu0  ;;  %v10261_v25 = vpack.c.bf16 %v10181_v12, %v10177_v4 }
 0xa24   : > { %v9930_v21 = vpop.permute.xlu1 %9929  ;;  %v10056_v47 = vadd.f32 %v14762_v51, %v9925_v42  ;;  %v10055_v35 = vadd.f32 %v14667_v62, %v9925_v42  ;;  %v14764_v39 = vadd.f32 %v9607_v50, %v20763_v43  ;;  %v14669_v48 = vadd.f32 %v9416_v32, %v20764_v34  ;;  %v9609_v10 = vpop.f32.mrb[39].mxu1  ;;  %10384 = vmatprep.subr.bf16.mxu0 %v10259_v9 }
 0xa25   : > { %v10057_v19 = vadd.f32 %v14763_v24, %v9925_v42  ;;  %v10058_v7 = vadd.f32 %v14668_v14, %v9930_v21  ;;  %v14765_v2 = vadd.f32 %v9609_v10, %v20765_v55  ;;  %10457 = vmatprep.subr.bf16.mxu1 %v10261_v25  ;;  %10385 = vmatpush1.bf16.msra.mxu0 %v10258_v46  ;;  %v10182_v5 = vmax.f32 %v10054_v20, 0.0  ;;  %v9935_v51 = vpop.permute.xlu0 %9934  ;;  %v20766_v24 = vld [vmem:[#allocation122_spill] sm:$0xff] }
 0xa26   : > { %v10060_v3 = vadd.f32 %v14764_v39, %v9930_v21  ;;  %v10059_v22 = vadd.f32 %v14669_v48, %v9930_v21  ;;  %10458 = vmatpush1.bf16.msra.mxu1 %v10260_v63  ;;  %v10184_v62 = vmax.f32 %v10056_v47, 0.0  ;;  %v10183_v59 = vmax.f32 %v10055_v35, 0.0  ;;  %v20767_v39 = vld [vmem:[#allocation124_spill] sm:$0xff]  ;;  %v20768_v63 = vld [vmem:[#allocation125_spill] sm:$0xff]  ;;  %v20769_v35 = vld [vmem:[#allocation126_spill] sm:$0xff] }
 0xa27   : > { %v10186_v4 = vmax.f32 %v10058_v7, 0.0  ;;  %v10061_v12 = vadd.f32 %v14765_v2, %v9930_v21  ;;  %v10185_v43 = vmax.f32 %v10057_v19, 0.0  ;;  %v20770_v2 = vld [vmem:[#allocation127_spill] sm:$0xff] }
 0xa28   : > { %v10188_v8 = vmax.f32 %v10060_v3, 0.0  ;;  %v10187_v50 = vmax.f32 %v10059_v22, 0.0  ;;  %v9420_v32 = vpop.f32.mrb[40].mxu0 }
 0xa29   : > { %v10262_v9 = vpack.c.bf16 %v10186_v4, %v10182_v5  ;;  %v10189_v42 = vmax.f32 %v10061_v12, 0.0  ;;  %v14670_v14 = vadd.f32 %v9420_v32, %v20766_v24  ;;  %v9613_v34 = vpop.f32.mrb[40].mxu1  ;;  %v9422_v25 = vpop.f32.mrb[41].mxu0  ;;  %v20771_v24 = vld [vmem:[#allocation128_spill] sm:$0xff] }
 0xa2a   : > { %v10264_v46 = vpack.c.bf16 %v10188_v8, %v10184_v62  ;;  %v14766_v48 = vadd.f32 %v9613_v34, %v20767_v39  ;;  %v14671_v20 = vadd.f32 %v9422_v25, %v20768_v63  ;;  %v9615_v10 = vpop.f32.mrb[41].mxu1  ;;  %v9424_v21 = vpop.f32.mrb[42].mxu0  ;;  %v10263_v7 = vpack.c.bf16 %v10187_v50, %v10183_v59  ;;  %v20772_v8 = vld [vmem:[#allocation129_spill] sm:$0xff]  ;;  %v20773_v59 = vld [vmem:[#allocation130_spill] sm:$0xff] }
 0xa2b   : > { %v10062_v47 = vadd.f32 %v14670_v14, %v9935_v51  ;;  %v14767_v55 = vadd.f32 %v9615_v10, %v20769_v35  ;;  %v14672_v3 = vadd.f32 %v9424_v21, %v20770_v2  ;;  %v9617_v19 = vpop.f32.mrb[42].mxu1  ;;  %v9426_v22 = vpop.f32.mrb[43].mxu0  ;;  %v10265_v5 = vpack.c.bf16 %v10189_v42, %v10185_v43 }
 0xa2c   : > { %v9940_v4 = vpop.permute.xlu1 %9939  ;;  %v10064_v12 = vadd.f32 %v14766_v48, %v9935_v51  ;;  %v10063_v32 = vadd.f32 %v14671_v20, %v9935_v51  ;;  %v14768_v62 = vadd.f32 %v9617_v19, %v20771_v24  ;;  %v14673_v34 = vadd.f32 %v9426_v22, %v20772_v8  ;;  %v9619_v39 = vpop.f32.mrb[43].mxu1  ;;  %10386 = vmatprep.subr.bf16.mxu0 %v10263_v7 }
 0xa2d   : > { %v10065_v25 = vadd.f32 %v14767_v55, %v9935_v51  ;;  %v10066_v63 = vadd.f32 %v14672_v3, %v9940_v4  ;;  %v14769_v50 = vadd.f32 %v9619_v39, %v20773_v59  ;;  %10459 = vmatprep.subr.bf16.mxu1 %v10265_v5  ;;  %10387 = vmatpush1.bf16.msra.mxu0 %v10262_v9  ;;  %v10190_v21 = vmax.f32 %v10062_v47, 0.0  ;;  %v16425_v9 = vld [vmem:[%s20415_s7] ss:$8 sps:$4 sm:$0xff]  }
 0xa2e   : > { %v10068_v14 = vadd.f32 %v14768_v62, %v9940_v4  ;;  %v10067_v10 = vadd.f32 %v14673_v34, %v9940_v4  ;;  %10460 = vmatpush1.bf16.msra.mxu1 %v10264_v46  ;;  %v10192_v48 = vmax.f32 %v10064_v12, 0.0  ;;  %v10191_v20 = vmax.f32 %v10063_v32, 0.0  ;;  %v16430_v46 = vld [vmem:[%s20415_s7 + $0x14] ss:$8 sps:$4 sm:$0xff]  }
 0xa2f   : > { %v10194_v43 = vmax.f32 %v10066_v63, 0.0  ;;  %v10069_v42 = vadd.f32 %v14769_v50, %v9940_v4  ;;  %v10193_v19 = vmax.f32 %v10065_v25, 0.0 }
 0xa30   : > { %v10196_v35 = vmax.f32 %v10068_v14, 0.0  ;;  %v10195_v2 = vmax.f32 %v10067_v10, 0.0 }
 0xa31   : > { %v10266_v22 = vpack.c.bf16 %v10194_v43, %v10190_v21  ;;  %v10197_v24 = vmax.f32 %v10069_v42, 0.0 }
 0xa32   : > { %v10268_v7 = vpack.c.bf16 %v10196_v35, %v10192_v48  ;;  %v10267_v51 = vpack.c.bf16 %v10195_v2, %v10191_v20 }
 0xa33   : > { %v10269_v55 = vpack.c.bf16 %v10197_v24, %v10193_v19 }
 0xa34   : > { %10388 = vmatprep.subr.bf16.mxu0 %v10267_v51 }
 0xa35   : > { %10461 = vmatprep.subr.bf16.mxu1 %v10269_v55  ;;  %10389 = vmatpush1.bf16.msra.mxu0 %v10266_v22 }
 0xa36   : > { %10462 = vmatpush1.bf16.msra.mxu1 %v10268_v7  ;;  %11064 = vmatprep.subr.bf16.mxu0 %v19226_v37  ;;  %v16428_v37 = vld [vmem:[%s20415_s7 + $0x10] ss:$8 sps:$4 sm:$0xff]  }
 0xa37   : > { %11417 = vmatprep.subr.bf16.mxu1 %v19229_v23  ;;  %v16436_v23 = vld [vmem:[%s20415_s7 + $0x34] ss:$8 sps:$4 sm:$0xff]  }
 0xa38   : > { %10391 = vmatmul.mubr.bf16.vlgmr.msra.gmra.mrb[212].mxu0 %v16425_v9 }
 0xa39   : > { %10464 = vmatmul.mubr.bf16.vlgmr.msra.gmra.mrb[212].mxu1 %v16425_v9  ;;  %11065 = vmatpush1.bf16.msra.mxu0 %v19222_v57  ;;  %v16433_v57 = vld [vmem:[%s20415_s7 + $0x24] ss:$8 sps:$4 sm:$0xff]  }
 0xa3a   : > { %11418 = vmatpush1.bf16.msra.mxu1 %v19224_v26  ;;  %11066 = vmatprep.subr.bf16.mxu0 %v19246_v1  ;;  %v16431_v26 = vld [vmem:[%s20415_s7 + $0x20] ss:$8 sps:$4 sm:$0xff]   ;;  %v10281_v1 = vpop.permute.xlu0 %10280 }
 0xa3b   : > { %11419 = vmatprep.subr.bf16.mxu1 %v19249_v13  ;;  %10400 = vmatprep.mubr.bf16.mxu0 %v16430_v46  ;;  %v10286_v13 = vpop.permute.xlu1 %10285 }
 0xa3c   : > { %10473 = vmatprep.mubr.bf16.mxu1 %v16430_v46 }
 0xa3d   : > { %11067 = vmatpush1.bf16.msra.mxu0 %v19242_v17  ;;  %v16434_v17 = vld [vmem:[%s20415_s7 + $0x30] ss:$8 sps:$4 sm:$0xff]  }
 0xa3e   : > { %11420 = vmatpush1.bf16.msra.mxu1 %v19244_v31  ;;  %11068 = vmatprep.subr.bf16.mxu0 %v19266_v40  ;;  %v16439_v31 = vld [vmem:[%s20412_s4 + $0x4] ss:$8 sps:$4 sm:$0xff]  }
 0xa3f   : > { %11421 = vmatprep.subr.bf16.mxu1 %v19269_v54  ;;  %v10296_v5 = vpop.permute.xlu1 %10295 }
 0xa40   : > { %10401 = vmatmul.mubr.bf16.gmra.mrb[216].mxu0 %v16428_v37 }
 0xa41   : > { %10474 = vmatmul.mubr.bf16.gmra.mrb[216].mxu1 %v16428_v37  ;;  %11069 = vmatpush1.bf16.msra.mxu0 %v19262_v27 }
 0xa42   : > { %11422 = vmatpush1.bf16.msra.mxu1 %v19264_v29  ;;  %11070 = vmatprep.subr.bf16.mxu0 %v19286_v53 }
 0xa43   : > { %11423 = vmatprep.subr.bf16.mxu1 %v19288_v52  ;;  %10410 = vmatprep.mubr.bf16.mxu0 %v16433_v57 }
 0xa44   : > { %10483 = vmatprep.mubr.bf16.mxu1 %v16433_v57  ;;  %v10306_v57 = vpop.permute.xlu1 %10305 }
 0xa45   : > { %11071 = vmatpush1.bf16.msra.mxu0 %v19282_v15 }
 0xa46   : > { %11424 = vmatpush1.bf16.msra.mxu1 %v19284_v58  ;;  %11072 = vmatprep.subr.bf16.mxu0 %v19586_v6 }
 0xa47   : > { %11425 = vmatprep.subr.bf16.mxu1 %v19588_v33 }
 0xa48   : > { %10411 = vmatmul.mubr.bf16.gmra.mrb[220].mxu0 %v16431_v26 }
 0xa49   : > { %10484 = vmatmul.mubr.bf16.gmra.mrb[220].mxu1 %v16431_v26  ;;  %11073 = vmatpush1.bf16.msra.mxu0 %v19582_v38 }
 0xa4a   : > { %11426 = vmatpush1.bf16.msra.mxu1 %v19584_v44  ;;  %11074 = vmatprep.subr.bf16.mxu0 %v19606_v60 }
 0xa4b   : > { %11427 = vmatprep.subr.bf16.mxu1 %v19608_v49  ;;  %10420 = vmatprep.mubr.bf16.mxu0 %v16436_v23 }
 0xa4c   : > { %10493 = vmatprep.mubr.bf16.mxu1 %v16436_v23 }
 0xa4d   : > { %11075 = vmatpush1.bf16.msra.mxu0 %v19602_v45 }
 0xa4e   : > { %11428 = vmatpush1.bf16.msra.mxu1 %v19604_v36  ;;  %11076 = vmatprep.subr.bf16.mxu0 %v19626_v28 }
 0xa4f   : > { %11429 = vmatprep.subr.bf16.mxu1 %v19628_v11 }
 0xa50   : > { %10421 = vmatmul.mubr.bf16.gmra.mrb[224].mxu0 %v16434_v17 }
 0xa51   : > { %10494 = vmatmul.mubr.bf16.gmra.mrb[224].mxu1 %v16434_v17  ;;  %11077 = vmatpush1.bf16.msra.mxu0 %v19622_v41 }
 0xa52   : > { %11430 = vmatpush1.bf16.msra.mxu1 %v19624_v0  ;;  %11078 = vmatprep.subr.bf16.mxu0 %v19646_v16  ;;  %v10291_v16 = vpop.permute.xlu0 %10290 }
 0xa53   : > { %11431 = vmatprep.subr.bf16.mxu1 %v19648_v18  ;;  %14491 = vmatprep.mubr.msk.bf16.mxu0 %vm7695_vm0, %v16439_v31 }
 0xa54   : > { %14523 = vmatprep.mubr.msk.bf16.mxu1 %vm7695_vm0, %v16439_v31 }
 0xa55   : > { %11079 = vmatpush1.bf16.msra.mxu0 %v19642_v56 }
 0xa56   : > { %11432 = vmatpush1.bf16.msra.mxu1 %v19644_v30  ;;  %v10301_v55 = vpop.permute.xlu0 %10300 }
 0xb0b   : > { %v10392_v27 = vpop.f32.mrb[212].mxu0 }
 0xb0c   : > { %v10393_v29 = vadd.f32 %v10392_v27, %v10281_v1  ;;  %v10465_v40 = vpop.f32.mrb[212].mxu1  ;;  %v10394_v54 = vpop.f32.mrb[213].mxu0 }
 0xb0d   : > { %v10466_v15 = vadd.f32 %v10465_v40, %v10281_v1  ;;  %v10395_v58 = vadd.f32 %v10394_v54, %v10281_v1  ;;  %v10467_v53 = vpop.f32.mrb[213].mxu1  ;;  %v10396_v52 = vpop.f32.mrb[214].mxu0 }
 0xb0e   : > { %v10468_v38 = vadd.f32 %v10467_v53, %v10281_v1  ;;  %v10397_v30 = vadd.f32 %v10396_v52, %v10286_v13  ;;  %v10469_v44 = vpop.f32.mrb[214].mxu1  ;;  %v10398_v6 = vpop.f32.mrb[215].mxu0  ;;  %v10504_v60 = vmax.f32 %v10393_v29, 0.0 }
 0xb0f   : > { %v10470_v33 = vadd.f32 %v10469_v44, %v10286_v13  ;;  %v10399_v45 = vadd.f32 %v10398_v6, %v10286_v13  ;;  %v10471_v36 = vpop.f32.mrb[215].mxu1  ;;  %v10506_v0 = vmax.f32 %v10466_v15, 0.0  ;;  %v10505_v28 = vmax.f32 %v10395_v58, 0.0 }
 0xb10   : > { %v10508_v49 = vmax.f32 %v10397_v30, 0.0  ;;  %v10472_v41 = vadd.f32 %v10471_v36, %v10286_v13  ;;  %v10507_v18 = vmax.f32 %v10468_v38, 0.0 }
 0xb11   : > { %v10510_v11 = vmax.f32 %v10470_v33, 0.0  ;;  %v10509_v56 = vmax.f32 %v10399_v45, 0.0 }
 0xb12   : > { %v10536_v47 = vpack.c.bf16 %v10508_v49, %v10504_v60  ;;  %v10511_v3 = vmax.f32 %v10472_v41, 0.0 }
 0xb13   : > { %v10538_v4 = vpack.c.bf16 %v10510_v11, %v10506_v0  ;;  %v10537_v12 = vpack.c.bf16 %v10509_v56, %v10505_v28  ;;  %v10402_v32 = vpop.f32.mrb[216].mxu0  ;;  %v10311_v28 = vpop.permute.xlu0 %10310 }
 0xb14   : > { %v10539_v62 = vpack.c.bf16 %v10511_v3, %v10507_v18  ;;  %v10403_v8 = vadd.f32 %v10402_v32, %v10291_v16  ;;  %v10475_v34 = vpop.f32.mrb[216].mxu1  ;;  %v10404_v39 = vpop.f32.mrb[217].mxu0 }
 0xb15   : > { %v10476_v25 = vadd.f32 %v10475_v34, %v10291_v16  ;;  %v10405_v63 = vadd.f32 %v10404_v39, %v10291_v16  ;;  %v10477_v59 = vpop.f32.mrb[217].mxu1  ;;  %v10406_v50 = vpop.f32.mrb[218].mxu0  ;;  %11080 = vmatprep.subr.bf16.mxu0 %v10537_v12 }
 0xb16   : > { %v10478_v14 = vadd.f32 %v10477_v59, %v10291_v16  ;;  %v10407_v10 = vadd.f32 %v10406_v50, %v10296_v5  ;;  %v10479_v21 = vpop.f32.mrb[218].mxu1  ;;  %11433 = vmatprep.subr.bf16.mxu1 %v10539_v62  ;;  %v10408_v43 = vpop.f32.mrb[219].mxu0  ;;  %11081 = vmatpush1.bf16.msra.mxu0 %v10536_v47  ;;  %v10512_v35 = vmax.f32 %v10403_v8, 0.0 }
 0xb17   : > { %v10480_v42 = vadd.f32 %v10479_v21, %v10296_v5  ;;  %v10409_v48 = vadd.f32 %v10408_v43, %v10296_v5  ;;  %v10481_v20 = vpop.f32.mrb[219].mxu1  ;;  %11434 = vmatpush1.bf16.msra.mxu1 %v10538_v4  ;;  %v10514_v22 = vmax.f32 %v10476_v25, 0.0  ;;  %v10513_v24 = vmax.f32 %v10405_v63, 0.0  ;;  %v10316_v18 = vpop.permute.xlu1 %10315 }
 0xb18   : > { %v10516_v2 = vmax.f32 %v10407_v10, 0.0  ;;  %v10482_v19 = vadd.f32 %v10481_v20, %v10296_v5  ;;  %v10515_v9 = vmax.f32 %v10478_v14, 0.0 }
 0xb19   : > { %v10518_v7 = vmax.f32 %v10480_v42, 0.0  ;;  %v10517_v51 = vmax.f32 %v10409_v48, 0.0 }
 0xb1a   : > { %v10540_v46 = vpack.c.bf16 %v10516_v2, %v10512_v35  ;;  %v10519_v37 = vmax.f32 %v10482_v19, 0.0 }
 0xb1b   : > { %v10542_v26 = vpack.c.bf16 %v10518_v7, %v10514_v22  ;;  %v10541_v23 = vpack.c.bf16 %v10517_v51, %v10513_v24  ;;  %v10412_v17 = vpop.f32.mrb[220].mxu0 }
 0xb1c   : > { %v10543_v31 = vpack.c.bf16 %v10519_v37, %v10515_v9  ;;  %v10413_v1 = vadd.f32 %v10412_v17, %v10301_v55  ;;  %v10485_v13 = vpop.f32.mrb[220].mxu1  ;;  %v10414_v27 = vpop.f32.mrb[221].mxu0  ;;  %v16437_v37 = vld [vmem:[%s20412_s4] ss:$8 sps:$4 sm:$0xff]  }
 0xb1d   : > { %v10486_v29 = vadd.f32 %v10485_v13, %v10301_v55  ;;  %v10415_v40 = vadd.f32 %v10414_v27, %v10301_v55  ;;  %v10487_v54 = vpop.f32.mrb[221].mxu1  ;;  %v10416_v15 = vpop.f32.mrb[222].mxu0  ;;  %11082 = vmatprep.subr.bf16.mxu0 %v10541_v23  ;;  %v16445_v23 = vld [vmem:[%s20412_s4 + $0x24] ss:$8 sps:$4 sm:$0xff]   ;;  %v16443_v17 = vld [vmem:[%s20412_s4 + $0x20] ss:$8 sps:$4 sm:$0xff]  }
 0xb1e   : > { %v10488_v58 = vadd.f32 %v10487_v54, %v10301_v55  ;;  %v10417_v53 = vadd.f32 %v10416_v15, %v10306_v57  ;;  %v10489_v52 = vpop.f32.mrb[222].mxu1  ;;  %11435 = vmatprep.subr.bf16.mxu1 %v10543_v31  ;;  %v10418_v38 = vpop.f32.mrb[223].mxu0  ;;  %11083 = vmatpush1.bf16.msra.mxu0 %v10540_v46  ;;  %v10520_v33 = vmax.f32 %v10413_v1, 0.0  ;;  %v16448_v31 = vld [vmem:[%s20412_s4 + $0x34] ss:$8 sps:$4 sm:$0xff]  }
 0xb1f   : > { %v10490_v30 = vadd.f32 %v10489_v52, %v10306_v57  ;;  %v10419_v44 = vadd.f32 %v10418_v38, %v10306_v57  ;;  %v10491_v6 = vpop.f32.mrb[223].mxu1  ;;  %11436 = vmatpush1.bf16.msra.mxu1 %v10542_v26  ;;  %v10522_v60 = vmax.f32 %v10486_v29, 0.0  ;;  %v10521_v49 = vmax.f32 %v10415_v40, 0.0  ;;  %v16440_v26 = vld [vmem:[%s20412_s4 + $0x10] ss:$8 sps:$4 sm:$0xff]  }
 0xb20   : > { %v10524_v45 = vmax.f32 %v10417_v53, 0.0  ;;  %v10492_v36 = vadd.f32 %v10491_v6, %v10306_v57  ;;  %v10523_v11 = vmax.f32 %v10488_v58, 0.0  ;;  %v16442_v57 = vld [vmem:[%s20412_s4 + $0x14] ss:$8 sps:$4 sm:$0xff]   ;;  %v16446_v1 = vld [vmem:[%s20412_s4 + $0x30] ss:$8 sps:$4 sm:$0xff]  }
 0xb21   : > { %v10526_v41 = vmax.f32 %v10490_v30, 0.0  ;;  %v10525_v0 = vmax.f32 %v10419_v44, 0.0  ;;  %v16451_v13 = vld [vmem:[%s20412_s4 + $0x44] ss:$8 sps:$4 sm:$0xff]   ;;  %v16449_v27 = vld [vmem:[%s20412_s4 + $0x40] ss:$8 sps:$4 sm:$0xff]  }
 0xb22   : > { %v10544_v56 = vpack.c.bf16 %v10524_v45, %v10520_v33  ;;  %v10527_v16 = vmax.f32 %v10492_v36, 0.0  ;;  %v16454_v29 = vld [vmem:[%s20412_s4 + $0x54] ss:$8 sps:$4 sm:$0xff]   ;;  %v16452_v40 = vld [vmem:[%s20412_s4 + $0x50] ss:$8 sps:$4 sm:$0xff]  }
 0xb23   : > { %v10546_v47 = vpack.c.bf16 %v10526_v41, %v10522_v60  ;;  %v10545_v3 = vpack.c.bf16 %v10525_v0, %v10521_v49  ;;  %v10422_v5 = vpop.f32.mrb[224].mxu0  ;;  %v16457_v54 = vld [vmem:[%s20412_s4 + $0x64] ss:$8 sps:$4 sm:$0xff]   ;;  %v16455_v15 = vld [vmem:[%s20412_s4 + $0x60] ss:$8 sps:$4 sm:$0xff]  }
 0xb24   : > { %v10547_v4 = vpack.c.bf16 %v10527_v16, %v10523_v11  ;;  %v10423_v12 = vadd.f32 %v10422_v5, %v10311_v28  ;;  %v10495_v32 = vpop.f32.mrb[224].mxu1  ;;  %v10424_v62 = vpop.f32.mrb[225].mxu0  ;;  %v16460_v58 = vld [vmem:[%s20412_s4 + $0x74] ss:$8 sps:$4 sm:$0xff]   ;;  %v16458_v53 = vld [vmem:[%s20412_s4 + $0x70] ss:$8 sps:$4 sm:$0xff]  }
 0xb25   : > { %v10496_v8 = vadd.f32 %v10495_v32, %v10311_v28  ;;  %v10425_v34 = vadd.f32 %v10424_v62, %v10311_v28  ;;  %v10497_v39 = vpop.f32.mrb[225].mxu1  ;;  %v10426_v25 = vpop.f32.mrb[226].mxu0  ;;  %11084 = vmatprep.subr.bf16.mxu0 %v10545_v3  ;;  %v16463_v52 = vld [vmem:[%s20412_s4 + $0x84] ss:$8 sps:$4 sm:$0xff]   ;;  %v16461_v38 = vld [vmem:[%s20412_s4 + $0x80] ss:$8 sps:$4 sm:$0xff]  }
 0xb26   : > { %v10498_v63 = vadd.f32 %v10497_v39, %v10311_v28  ;;  %v10427_v59 = vadd.f32 %v10426_v25, %v10316_v18  ;;  %v10499_v50 = vpop.f32.mrb[226].mxu1  ;;  %11437 = vmatprep.subr.bf16.mxu1 %v10547_v4  ;;  %v10428_v14 = vpop.f32.mrb[227].mxu0  ;;  %11085 = vmatpush1.bf16.msra.mxu0 %v10544_v56  ;;  %v10528_v42 = vmax.f32 %v10423_v12, 0.0  ;;  %v16464_v30 = vld [vmem:[%s20412_s4 + $0x94] ss:$8 sps:$4 sm:$0xff]  }
 0xb27   : > { %v10500_v10 = vadd.f32 %v10499_v50, %v10316_v18  ;;  %v10429_v21 = vadd.f32 %v10428_v14, %v10316_v18  ;;  %v10501_v43 = vpop.f32.mrb[227].mxu1  ;;  %11438 = vmatpush1.bf16.msra.mxu1 %v10546_v47  ;;  %v10530_v35 = vmax.f32 %v10496_v8, 0.0  ;;  %v10529_v2 = vmax.f32 %v10425_v34, 0.0  ;;  %v16466_v44 = vld [vmem:[%s20412_s4 + $0x90] ss:$8 sps:$4 sm:$0xff]  }
 0xb28   : > { %v10532_v48 = vmax.f32 %v10427_v59, 0.0  ;;  %v10502_v20 = vadd.f32 %v10501_v43, %v10316_v18  ;;  %v10531_v24 = vmax.f32 %v10498_v63, 0.0  ;;  %v16467_v6 = vld [vmem:[%s20412_s4 + $0xa4] ss:$8 sps:$4 sm:$0xff]   ;;  %v16469_v33 = vld [vmem:[%s20412_s4 + $0xa0] ss:$8 sps:$4 sm:$0xff]  }
 0xb29   : > { %v10534_v19 = vmax.f32 %v10500_v10, 0.0  ;;  %v10533_v22 = vmax.f32 %v10429_v21, 0.0  ;;  %v16470_v45 = vld [vmem:[%s20412_s4 + $0xb4] ss:$8 sps:$4 sm:$0xff]   ;;  %v16472_v36 = vld [vmem:[%s20412_s4 + $0xb0] ss:$8 sps:$4 sm:$0xff]  }
 0xb2a   : > { %v10548_v7 = vpack.c.bf16 %v10532_v48, %v10528_v42  ;;  %v10535_v51 = vmax.f32 %v10502_v20, 0.0  ;;  %v16473_v60 = vld [vmem:[%s20412_s4 + $0xc4] ss:$8 sps:$4 sm:$0xff]   ;;  %v16475_v49 = vld [vmem:[%s20412_s4 + $0xc0] ss:$8 sps:$4 sm:$0xff]  }
 0xb2b   : > { %v10550_v55 = vpack.c.bf16 %v10534_v19, %v10530_v35  ;;  %v10549_v9 = vpack.c.bf16 %v10533_v22, %v10529_v2  ;;  %v16476_v41 = vld [vmem:[%s20412_s4 + $0xd4] ss:$8 sps:$4 sm:$0xff]   ;;  %v16478_v0 = vld [vmem:[%s20412_s4 + $0xd0] ss:$8 sps:$4 sm:$0xff]   ;;  %v16479_v28 = vld [vmem:[%s20412_s4 + $0xe4] ss:$8 sps:$4 sm:$0xff]   ;;  %v12093_v2 = vpop.permute.xlu0 %12092  ;;  %v12098_v19 = vpop.permute.xlu1 %12097 }
 0xb2c   : > { %v10551_v46 = vpack.c.bf16 %v10535_v51, %v10531_v24  ;;  %v16481_v11 = vld [vmem:[%s20412_s4 + $0xe0] ss:$8 sps:$4 sm:$0xff]   ;;  %v16482_v56 = vld [vmem:[%s20412_s4 + $0xf4] ss:$8 sps:$4 sm:$0xff]   ;;  %v16484_v16 = vld [vmem:[%s20412_s4 + $0xf0] ss:$8 sps:$4 sm:$0xff]  }
 0xb2d   : > { %11086 = vmatprep.subr.bf16.mxu0 %v10549_v9  ;;  %v16487_v18 = vld [vmem:[%s20412_s4 + $0x104] ss:$8 sps:$4 sm:$0xff]   ;;  %v16485_v47 = vld [vmem:[%s20412_s4 + $0x100] ss:$8 sps:$4 sm:$0xff]   ;;  %v16490_v3 = vld [vmem:[%s20412_s4 + $0x114] ss:$8 sps:$4 sm:$0xff]  }
 0xb2e   : > { %11439 = vmatprep.subr.bf16.mxu1 %v10551_v46  ;;  %11087 = vmatpush1.bf16.msra.mxu0 %v10548_v7  ;;  %v16488_v5 = vld [vmem:[%s20412_s4 + $0x110] ss:$8 sps:$4 sm:$0xff]   ;;  %v16493_v4 = vld [vmem:[%s20412_s4 + $0x124] ss:$8 sps:$4 sm:$0xff]   ;;  %v16491_v12 = vld [vmem:[%s20412_s4 + $0x120] ss:$8 sps:$4 sm:$0xff]  }
 0xb2f   : > { %11440 = vmatpush1.bf16.msra.mxu1 %v10550_v55  ;;  %v16496_v32 = vld [vmem:[%s20412_s4 + $0x134] ss:$8 sps:$4 sm:$0xff]   ;;  %v16494_v62 = vld [vmem:[%s20412_s4 + $0x130] ss:$8 sps:$4 sm:$0xff]   ;;  %v16499_v8 = vld [vmem:[%s20412_s4 + $0x144] ss:$8 sps:$4 sm:$0xff]  }
 0xb30   : > { %v16497_v34 = vld [vmem:[%s20412_s4 + $0x140] ss:$8 sps:$4 sm:$0xff]   ;;  %v16502_v39 = vld [vmem:[%s20412_s4 + $0x154] ss:$8 sps:$4 sm:$0xff]   ;;  %v16500_v25 = vld [vmem:[%s20412_s4 + $0x150] ss:$8 sps:$4 sm:$0xff]  }
 0xb31   : > { %11097 = vmatmul.mubr.bf16.vlgmr.msra.gmra.mrb[44].mxu0 %v16437_v37  ;;  %v16505_v63 = vld [vmem:[%s20412_s4 + $0x164] ss:$8 sps:$4 sm:$0xff]   ;;  %v16503_v59 = vld [vmem:[%s20412_s4 + $0x160] ss:$8 sps:$4 sm:$0xff]   ;;  %v16508_v50 = vld [vmem:[%s20412_s4 + $0x174] ss:$8 sps:$4 sm:$0xff]  }
 0xb32   : > { %11450 = vmatmul.mubr.bf16.vlgmr.msra.gmra.mrb[44].mxu1 %v16437_v37  ;;  %14492 = vmatprep.mubr.msk.bf16.mxu0 %vm7695_vm0, %v16442_v57  ;;  %v16506_v14 = vld [vmem:[%s20412_s4 + $0x170] ss:$8 sps:$4 sm:$0xff]   ;;  %v16511_v10 = vld [vmem:[%s20412_s4 + $0x184] ss:$8 sps:$4 sm:$0xff]   ;;  %v16509_v21 = vld [vmem:[%s20412_s4 + $0x180] ss:$8 sps:$4 sm:$0xff]  }
 0xb33   : > { %14524 = vmatprep.mubr.msk.bf16.mxu1 %vm7695_vm0, %v16442_v57  ;;  %v16514_v43 = vld [vmem:[%s20412_s4 + $0x194] ss:$8 sps:$4 sm:$0xff]   ;;  %v16512_v42 = vld [vmem:[%s20412_s4 + $0x190] ss:$8 sps:$4 sm:$0xff]   ;;  %v16517_v48 = vld [vmem:[%s20412_s4 + $0x1a4] ss:$8 sps:$4 sm:$0xff]  }
 0xb34   : > { %v16515_v20 = vld [vmem:[%s20412_s4 + $0x1a0] ss:$8 sps:$4 sm:$0xff]   ;;  %v16520_v35 = vld [vmem:[%s20412_s4 + $0x1b4] ss:$8 sps:$4 sm:$0xff]   ;;  %v16518_v9 = vld [vmem:[%s20412_s4 + $0x1b0] ss:$8 sps:$4 sm:$0xff]  }
 0xb35   : > { %v20774_v24 = vld [vmem:[#allocation132_spill] sm:$0xff] }
 0xb36   : > { %v16523_v57 = vld [vmem:[%s20412_s4 + $0x1c4] ss:$8 sps:$4 sm:$0xff]  }
 0xb39   : > { %11107 = vmatmul.mubr.bf16.gmra.mrb[48].mxu0 %v16440_v26 }
 0xb3a   : > { %11460 = vmatmul.mubr.bf16.gmra.mrb[48].mxu1 %v16440_v26  ;;  %14493 = vmatprep.mubr.msk.bf16.mxu0 %vm7695_vm0, %v16445_v23 }
 0xb3b   : > { %14525 = vmatprep.mubr.msk.bf16.mxu1 %vm7695_vm0, %v16445_v23  ;;  %v20775_v23 = vld [vmem:[#allocation134_spill] sm:$0xff] }
 0xb41   : > { %11117 = vmatmul.mubr.bf16.gmra.mrb[52].mxu0 %v16443_v17 }
 0xb42   : > { %11470 = vmatmul.mubr.bf16.gmra.mrb[52].mxu1 %v16443_v17  ;;  %14494 = vmatprep.mubr.msk.bf16.mxu0 %vm7695_vm0, %v16448_v31 }
 0xb43   : > { %14526 = vmatprep.mubr.msk.bf16.mxu1 %vm7695_vm0, %v16448_v31 }
 0xb49   : > { %11127 = vmatmul.mubr.bf16.gmra.mrb[56].mxu0 %v16446_v1 }
 0xb4a   : > { %11480 = vmatmul.mubr.bf16.gmra.mrb[56].mxu1 %v16446_v1  ;;  %14495 = vmatprep.mubr.msk.bf16.mxu0 %vm7695_vm0, %v16451_v13 }
 0xb4b   : > { %14527 = vmatprep.mubr.msk.bf16.mxu1 %vm7695_vm0, %v16451_v13 }
 0xb51   : > { %11137 = vmatmul.mubr.bf16.gmra.mrb[60].mxu0 %v16449_v27 }
 0xb52   : > { %11490 = vmatmul.mubr.bf16.gmra.mrb[60].mxu1 %v16449_v27  ;;  %14496 = vmatprep.mubr.msk.bf16.mxu0 %vm7695_vm0, %v16454_v29 }
 0xb53   : > { %14528 = vmatprep.mubr.msk.bf16.mxu1 %vm7695_vm0, %v16454_v29 }
 0xb59   : > { %11147 = vmatmul.mubr.bf16.gmra.mrb[64].mxu0 %v16452_v40 }
 0xb5a   : > { %11500 = vmatmul.mubr.bf16.gmra.mrb[64].mxu1 %v16452_v40  ;;  %14497 = vmatprep.mubr.msk.bf16.mxu0 %vm7695_vm0, %v16457_v54  ;;  %v12103_v40 = vpop.permute.xlu0 %12102 }
 0xb5b   : > { %14529 = vmatprep.mubr.msk.bf16.mxu1 %vm7695_vm0, %v16457_v54 }
 0xb61   : > { %11157 = vmatmul.mubr.bf16.gmra.mrb[68].mxu0 %v16455_v15 }
 0xb62   : > { %11510 = vmatmul.mubr.bf16.gmra.mrb[68].mxu1 %v16455_v15  ;;  %14498 = vmatprep.mubr.msk.bf16.mxu0 %vm7695_vm0, %v16460_v58  ;;  %v12108_v15 = vpop.permute.xlu1 %12107 }
 0xb63   : > { %14530 = vmatprep.mubr.msk.bf16.mxu1 %vm7695_vm0, %v16460_v58 }
 0xb69   : > { %11167 = vmatmul.mubr.bf16.gmra.mrb[72].mxu0 %v16458_v53 }
 0xb6a   : > { %11520 = vmatmul.mubr.bf16.gmra.mrb[72].mxu1 %v16458_v53  ;;  %14499 = vmatprep.mubr.msk.bf16.mxu0 %vm7695_vm0, %v16463_v52  ;;  %v20776_v53 = vld [vmem:[#allocation136_spill] sm:$0xff] }
 0xb6b   : > { %14531 = vmatprep.mubr.msk.bf16.mxu1 %vm7695_vm0, %v16463_v52 }
 0xb71   : > { %11177 = vmatmul.mubr.bf16.gmra.mrb[76].mxu0 %v16461_v38 }
 0xb72   : > { %11530 = vmatmul.mubr.bf16.gmra.mrb[76].mxu1 %v16461_v38  ;;  %14500 = vmatprep.mubr.msk.bf16.mxu0 %vm7695_vm0, %v16464_v30 }
 0xb73   : > { %14532 = vmatprep.mubr.msk.bf16.mxu1 %vm7695_vm0, %v16464_v30 }
 0xb79   : > { %11187 = vmatmul.mubr.bf16.gmra.mrb[228].mxu0 %v16466_v44 }
 0xb7a   : > { %11540 = vmatmul.mubr.bf16.gmra.mrb[228].mxu1 %v16466_v44  ;;  %14501 = vmatprep.mubr.msk.bf16.mxu0 %vm7695_vm0, %v16467_v6  ;;  %v16521_v44 = vld [vmem:[%s20412_s4 + $0x1c0] ss:$8 sps:$4 sm:$0xff]  }
 0xb7b   : > { %14533 = vmatprep.mubr.msk.bf16.mxu1 %vm7695_vm0, %v16467_v6 }
 0xb81   : > { %11197 = vmatmul.mubr.bf16.gmra.mrb[232].mxu0 %v16469_v33 }
 0xb82   : > { %11550 = vmatmul.mubr.bf16.gmra.mrb[232].mxu1 %v16469_v33  ;;  %14502 = vmatprep.mubr.msk.bf16.mxu0 %vm7695_vm0, %v16470_v45 }
 0xb83   : > { %14534 = vmatprep.mubr.msk.bf16.mxu1 %vm7695_vm0, %v16470_v45  ;;  %v16526_v45 = vld [vmem:[%s20412_s4 + $0x1d4] ss:$8 sps:$4 sm:$0xff]  }
 0xb89   : > { %11207 = vmatmul.mubr.bf16.gmra.mrb[236].mxu0 %v16472_v36 }
 0xb8a   : > { %11560 = vmatmul.mubr.bf16.gmra.mrb[236].mxu1 %v16472_v36  ;;  %14503 = vmatprep.mubr.msk.bf16.mxu0 %vm7695_vm0, %v16473_v60 }
 0xb8b   : > { %14535 = vmatprep.mubr.msk.bf16.mxu1 %vm7695_vm0, %v16473_v60  ;;  %v20777_v60 = vld [vmem:[#allocation138_spill] sm:$0xff] }
 0xb91   : > { %11217 = vmatmul.mubr.bf16.gmra.mrb[240].mxu0 %v16475_v49 }
 0xb92   : > { %11570 = vmatmul.mubr.bf16.gmra.mrb[240].mxu1 %v16475_v49  ;;  %14504 = vmatprep.mubr.msk.bf16.mxu0 %vm7695_vm0, %v16476_v41 }
 0xb93   : > { %14536 = vmatprep.mubr.msk.bf16.mxu1 %vm7695_vm0, %v16476_v41 }
 0xb99   : > { %11227 = vmatmul.mubr.bf16.gmra.mrb[244].mxu0 %v16478_v0 }
 0xb9a   : > { %11580 = vmatmul.mubr.bf16.gmra.mrb[244].mxu1 %v16478_v0  ;;  %14505 = vmatprep.mubr.msk.bf16.mxu0 %vm7695_vm0, %v16479_v28 }
 0xb9b   : > { %14537 = vmatprep.mubr.msk.bf16.mxu1 %vm7695_vm0, %v16479_v28 }
 0xba1   : > { %11237 = vmatmul.mubr.bf16.gmra.mrb[248].mxu0 %v16481_v11 }
 0xba2   : > { %11590 = vmatmul.mubr.bf16.gmra.mrb[248].mxu1 %v16481_v11  ;;  %14506 = vmatprep.mubr.msk.bf16.mxu0 %vm7695_vm0, %v16482_v56 }
 0xba3   : > { %14538 = vmatprep.mubr.msk.bf16.mxu1 %vm7695_vm0, %v16482_v56 }
 0xba9   : > { %11247 = vmatmul.mubr.bf16.gmra.mrb[252].mxu0 %v16484_v16 }
 0xbaa   : > { %11600 = vmatmul.mubr.bf16.gmra.mrb[252].mxu1 %v16484_v16  ;;  %14507 = vmatprep.mubr.msk.bf16.mxu0 %vm7695_vm0, %v16487_v18  ;;  %v12113_v16 = vpop.permute.xlu0 %12112 }
 0xbab   : > { %14539 = vmatprep.mubr.msk.bf16.mxu1 %vm7695_vm0, %v16487_v18 }
 0xbb1   : > { %11257 = vmatmul.mubr.bf16.gmra.mrb[148].mxu0 %v16485_v47 }
 0xbb2   : > { %11610 = vmatmul.mubr.bf16.gmra.mrb[148].mxu1 %v16485_v47  ;;  %14508 = vmatprep.mubr.msk.bf16.mxu0 %vm7695_vm0, %v16490_v3  ;;  %v12118_v47 = vpop.permute.xlu1 %12117 }
 0xbb3   : > { %14540 = vmatprep.mubr.msk.bf16.mxu1 %vm7695_vm0, %v16490_v3 }
 0xbb9   : > { %11267 = vmatmul.mubr.bf16.gmra.mrb[152].mxu0 %v16488_v5 }
 0xbba   : > { %11620 = vmatmul.mubr.bf16.gmra.mrb[152].mxu1 %v16488_v5  ;;  %14509 = vmatprep.mubr.msk.bf16.mxu0 %vm7695_vm0, %v16493_v4  ;;  %v20778_v5 = vld [vmem:[#allocation139_spill] sm:$0xff] }
 0xbbb   : > { %14541 = vmatprep.mubr.msk.bf16.mxu1 %vm7695_vm0, %v16493_v4 }
 0xbc1   : > { %11277 = vmatmul.mubr.bf16.gmra.mrb[156].mxu0 %v16491_v12 }
 0xbc2   : > { %11630 = vmatmul.mubr.bf16.gmra.mrb[156].mxu1 %v16491_v12  ;;  %14510 = vmatprep.mubr.msk.bf16.mxu0 %vm7695_vm0, %v16496_v32 }
 0xbc3   : > { %14542 = vmatprep.mubr.msk.bf16.mxu1 %vm7695_vm0, %v16496_v32 }
 0xbc9   : > { %11287 = vmatmul.mubr.bf16.gmra.mrb[160].mxu0 %v16494_v62 }
 0xbca   : > { %11640 = vmatmul.mubr.bf16.gmra.mrb[160].mxu1 %v16494_v62  ;;  %14511 = vmatprep.mubr.msk.bf16.mxu0 %vm7695_vm0, %v16499_v8  ;;  %v16524_v62 = vld [vmem:[%s20412_s4 + $0x1d0] ss:$8 sps:$4 sm:$0xff]  }
 0xbcb   : > { %14543 = vmatprep.mubr.msk.bf16.mxu1 %vm7695_vm0, %v16499_v8 }
 0xbd1   : > { %11297 = vmatmul.mubr.bf16.gmra.mrb[164].mxu0 %v16497_v34 }
 0xbd2   : > { %11650 = vmatmul.mubr.bf16.gmra.mrb[164].mxu1 %v16497_v34  ;;  %14512 = vmatprep.mubr.msk.bf16.mxu0 %vm7695_vm0, %v16502_v39 }
 0xbd3   : > { %14544 = vmatprep.mubr.msk.bf16.mxu1 %vm7695_vm0, %v16502_v39  ;;  %v16529_v39 = vld [vmem:[%s20412_s4 + $0x1e4] ss:$8 sps:$4 sm:$0xff]  }
 0xbd9   : > { %11307 = vmatmul.mubr.bf16.gmra.mrb[168].mxu0 %v16500_v25 }
 0xbda   : > { %11660 = vmatmul.mubr.bf16.gmra.mrb[168].mxu1 %v16500_v25  ;;  %14513 = vmatprep.mubr.msk.bf16.mxu0 %vm7695_vm0, %v16505_v63 }
 0xbdb   : > { %14545 = vmatprep.mubr.msk.bf16.mxu1 %vm7695_vm0, %v16505_v63  ;;  %v20779_v63 = vld [vmem:[#allocation141_spill] sm:$0xff] }
 0xbe1   : > { %11317 = vmatmul.mubr.bf16.gmra.mrb[172].mxu0 %v16503_v59 }
 0xbe2   : > { %11670 = vmatmul.mubr.bf16.gmra.mrb[172].mxu1 %v16503_v59  ;;  %14514 = vmatprep.mubr.msk.bf16.mxu0 %vm7695_vm0, %v16508_v50 }
 0xbe3   : > { %14546 = vmatprep.mubr.msk.bf16.mxu1 %vm7695_vm0, %v16508_v50 }
 0xbe9   : > { %11327 = vmatmul.mubr.bf16.gmra.mrb[176].mxu0 %v16506_v14 }
 0xbea   : > { %11680 = vmatmul.mubr.bf16.gmra.mrb[176].mxu1 %v16506_v14  ;;  %14515 = vmatprep.mubr.msk.bf16.mxu0 %vm7695_vm0, %v16511_v10 }
 0xbeb   : > { %14547 = vmatprep.mubr.msk.bf16.mxu1 %vm7695_vm0, %v16511_v10 }
 0xbf1   : > { %11337 = vmatmul.mubr.bf16.gmra.mrb[180].mxu0 %v16509_v21 }
 0xbf2   : > { %11690 = vmatmul.mubr.bf16.gmra.mrb[180].mxu1 %v16509_v21  ;;  %14516 = vmatprep.mubr.msk.bf16.mxu0 %vm7695_vm0, %v16514_v43 }
 0xbf3   : > { %14548 = vmatprep.mubr.msk.bf16.mxu1 %vm7695_vm0, %v16514_v43 }
 0xbf9   : > { %11347 = vmatmul.mubr.bf16.gmra.mrb[80].mxu0 %v16512_v42 }
 0xbfa   : > { %11700 = vmatmul.mubr.bf16.gmra.mrb[80].mxu1 %v16512_v42  ;;  %14517 = vmatprep.mubr.msk.bf16.mxu0 %vm7695_vm0, %v16517_v48  ;;  %v12123_v42 = vpop.permute.xlu0 %12122 }
 0xbfb   : > { %14549 = vmatprep.mubr.msk.bf16.mxu1 %vm7695_vm0, %v16517_v48 }
 0xc01   : > { %11357 = vmatmul.mubr.bf16.gmra.mrb[84].mxu0 %v16515_v20 }
 0xc02   : > { %11710 = vmatmul.mubr.bf16.gmra.mrb[84].mxu1 %v16515_v20  ;;  %14518 = vmatprep.mubr.msk.bf16.mxu0 %vm7695_vm0, %v16520_v35  ;;  %v12128_v20 = vpop.permute.xlu1 %12127 }
 0xc03   : > { %14550 = vmatprep.mubr.msk.bf16.mxu1 %vm7695_vm0, %v16520_v35 }
 0xc04   : > { %v11098_v22 = vpop.f32.mrb[44].mxu0 }
 0xc05   : > { %v14674_v7 = vadd.f32 %v11098_v22, %v20774_v24  ;;  %v11451_v51 = vpop.f32.mrb[44].mxu1  ;;  %v11100_v55 = vpop.f32.mrb[45].mxu0 }
 0xc06   : > { %v11453_v46 = vpop.f32.mrb[45].mxu1  ;;  %v11102_v37 = vpop.f32.mrb[46].mxu0 }
 0xc07   : > { %v12410_v26 = vadd.f32 %v14674_v7, %v12093_v2  ;;  %v14676_v17 = vadd.f32 %v11102_v37, %v20775_v23  ;;  %v11455_v31 = vpop.f32.mrb[46].mxu1  ;;  %v11104_v1 = vpop.f32.mrb[47].mxu0  ;;  %v20780_v2 = vld [vmem:[#allocation142_spill] sm:$0xff]  ;;  %v16527_v7 = vld [vmem:[%s20412_s4 + $0x1e0] ss:$8 sps:$4 sm:$0xff]  }
 0xc08   : > { %v11457_v13 = vpop.f32.mrb[47].mxu1  ;;  %v20781_v37 = vld [vmem:[#allocation144_spill] sm:$0xff] }
 0xc09   : > { %v12666_v27 = vmax.f32 %v12410_v26, 0.0  ;;  %v12414_v29 = vadd.f32 %v14676_v17, %v12098_v19  ;;  %11367 = vmatmul.mubr.bf16.gmra.mrb[88].mxu0 %v16518_v9  ;;  %v12133_v13 = vpop.permute.xlu0 %12132 }
 0xc0a   : > { %11720 = vmatmul.mubr.bf16.gmra.mrb[88].mxu1 %v16518_v9  ;;  %14519 = vmatprep.mubr.msk.bf16.mxu0 %vm7695_vm0, %v16523_v57  ;;  %v16532_v9 = vld [vmem:[%s20412_s4 + $0x1f4] ss:$8 sps:$4 sm:$0xff]  }
 0xc0b   : > { %12922 = vst [vmem:[%s20131_s15] sm:$0xff] %v12666_v27  ;;  %v12670_v54 = vmax.f32 %v12414_v29, 0.0  ;;  %14551 = vmatprep.mubr.msk.bf16.mxu1 %vm7695_vm0, %v16523_v57  ;;  %v12138_v29 = vpop.permute.xlu1 %12137 }
 0xc0c   : > { %v11108_v58 = vpop.f32.mrb[48].mxu0 }
 0xc0d   : > { %12926 = vst [vmem:[%s20131_s15 + $0x20] sm:$0xff] %v12670_v54  ;;  %v14678_v52 = vadd.f32 %v11108_v58, %v20776_v53  ;;  %v11461_v38 = vpop.f32.mrb[48].mxu1  ;;  %v11110_v30 = vpop.f32.mrb[49].mxu0  ;;  %v20782_v54 = vld [vmem:[#allocation146_spill] sm:$0xff] }
 0xc0e   : > { %v11463_v6 = vpop.f32.mrb[49].mxu1  ;;  %v11112_v33 = vpop.f32.mrb[50].mxu0 }
 0xc0f   : > { %v12418_v36 = vadd.f32 %v14678_v52, %v12103_v40  ;;  %v14680_v49 = vadd.f32 %v11112_v33, %v20777_v60  ;;  %v11465_v41 = vpop.f32.mrb[50].mxu1  ;;  %v11114_v0 = vpop.f32.mrb[51].mxu0  ;;  %v16530_v52 = vld [vmem:[%s20412_s4 + $0x1f0] ss:$8 sps:$4 sm:$0xff]   ;;  %v20783_v6 = vld [vmem:[#allocation147_spill] sm:$0xff] }
 0xc10   : > { %v11467_v28 = vpop.f32.mrb[51].mxu1  ;;  %v12143_v0 = vpop.permute.xlu0 %12142 }
 0xc11   : > { %v12674_v11 = vmax.f32 %v12418_v36, 0.0  ;;  %v12422_v56 = vadd.f32 %v14680_v49, %v12108_v15  ;;  %11377 = vmatmul.mubr.bf16.gmra.mrb[92].mxu0 %v16521_v44 }
 0xc12   : > { %11730 = vmatmul.mubr.bf16.gmra.mrb[92].mxu1 %v16521_v44  ;;  %14520 = vmatprep.mubr.msk.bf16.mxu0 %vm7695_vm0, %v16526_v45 }
 0xc13   : > { %12930 = vst [vmem:[%s20131_s15 + $0x40] sm:$0xff] %v12674_v11  ;;  %v12678_v18 = vmax.f32 %v12422_v56, 0.0  ;;  %14552 = vmatprep.mubr.msk.bf16.mxu1 %vm7695_vm0, %v16526_v45  ;;  %v12148_v11 = vpop.permute.xlu1 %12147 }
 0xc14   : > { %v11118_v3 = vpop.f32.mrb[52].mxu0 }
 0xc15   : > { %12934 = vst [vmem:[%s20131_s15 + $0x60] sm:$0xff] %v12678_v18  ;;  %v14682_v4 = vadd.f32 %v11118_v3, %v20778_v5  ;;  %v11471_v12 = vpop.f32.mrb[52].mxu1  ;;  %v11120_v32 = vpop.f32.mrb[53].mxu0 }
 0xc16   : > { %v11473_v8 = vpop.f32.mrb[53].mxu1  ;;  %v11122_v34 = vpop.f32.mrb[54].mxu0  ;;  %v20784_v12 = vld [vmem:[#allocation151_spill] sm:$0xff] }
 0xc17   : > { %v12426_v25 = vadd.f32 %v14682_v4, %v12113_v16  ;;  %v14684_v59 = vadd.f32 %v11122_v34, %v20779_v63  ;;  %v11475_v50 = vpop.f32.mrb[54].mxu1  ;;  %v11124_v14 = vpop.f32.mrb[55].mxu0 }
 0xc18   : > { %v11477_v10 = vpop.f32.mrb[55].mxu1  ;;  %v12153_v63 = vpop.permute.xlu0 %12152 }
 0xc19   : > { %v12682_v21 = vmax.f32 %v12426_v25, 0.0  ;;  %v12430_v43 = vadd.f32 %v14684_v59, %v12118_v47  ;;  %11387 = vmatmul.mubr.bf16.gmra.mrb[200].mxu0 %v16524_v62  ;;  %v12158_v50 = vpop.permute.xlu1 %12157 }
 0xc1a   : > { %11740 = vmatmul.mubr.bf16.gmra.mrb[200].mxu1 %v16524_v62  ;;  %14521 = vmatprep.mubr.msk.bf16.mxu0 %vm7695_vm0, %v16529_v39 }
 0xc1b   : > { %12938 = vst [vmem:[%s20131_s15 + $0x80] sm:$0xff] %v12682_v21  ;;  %v12686_v48 = vmax.f32 %v12430_v43, 0.0  ;;  %14553 = vmatprep.mubr.msk.bf16.mxu1 %vm7695_vm0, %v16529_v39 }
 0xc1c   : > { %v11128_v35 = vpop.f32.mrb[56].mxu0 }
 0xc1d   : > { %12942 = vst [vmem:[%s20131_s15 + $0xa0] sm:$0xff] %v12686_v48  ;;  %v14686_v19 = vadd.f32 %v11128_v35, %v20780_v2  ;;  %v11481_v22 = vpop.f32.mrb[56].mxu1  ;;  %v11130_v24 = vpop.f32.mrb[57].mxu0  ;;  %v20786_v35 = vld [vmem:[#allocation153_spill] sm:$0xff] }
 0xc1e   : > { %v11483_v51 = vpop.f32.mrb[57].mxu1  ;;  %v11132_v55 = vpop.f32.mrb[58].mxu0 }
 0xc1f   : > { %v12434_v46 = vadd.f32 %v14686_v19, %v12123_v42  ;;  %v14688_v57 = vadd.f32 %v11132_v55, %v20781_v37  ;;  %v11485_v26 = vpop.f32.mrb[58].mxu1  ;;  %v11134_v23 = vpop.f32.mrb[59].mxu0 }
 0xc20   : > { %v11487_v17 = vpop.f32.mrb[59].mxu1  ;;  %v12163_v55 = vpop.permute.xlu0 %12162 }
 0xc21   : > { %v12690_v31 = vmax.f32 %v12434_v46, 0.0  ;;  %v12438_v1 = vadd.f32 %v14688_v57, %v12128_v20  ;;  %11397 = vmatmul.mubr.bf16.gmra.mrb[204].mxu0 %v16527_v7  ;;  %v12168_v46 = vpop.permute.xlu1 %12167  ;;  %v20787_v57 = vld [vmem:[#allocation154_spill] sm:$0xff] }
 0xc22   : > { %11750 = vmatmul.mubr.bf16.gmra.mrb[204].mxu1 %v16527_v7  ;;  %14522 = vmatprep.mubr.msk.bf16.mxu0 %vm7695_vm0, %v16532_v9 }
 0xc23   : > { %12946 = vst [vmem:[%s20131_s15 + $0xc0] sm:$0xff] %v12690_v31  ;;  %v12694_v27 = vmax.f32 %v12438_v1, 0.0  ;;  %14554 = vmatprep.mubr.msk.bf16.mxu1 %vm7695_vm0, %v16532_v9 }
 0xc24   : > { %v11138_v40 = vpop.f32.mrb[60].mxu0 }
 0xc25   : > { %12950 = vst [vmem:[%s20131_s15 + $0xe0] sm:$0xff] %v12694_v27  ;;  %v14690_v15 = vadd.f32 %v11138_v40, %v20782_v54  ;;  %v11491_v58 = vpop.f32.mrb[60].mxu1  ;;  %v11140_v53 = vpop.f32.mrb[61].mxu0  ;;  %v20788_v27 = vld [vmem:[#allocation155_spill] sm:$0xff] }
 0xc26   : > { %v11493_v38 = vpop.f32.mrb[61].mxu1  ;;  %v11142_v30 = vpop.f32.mrb[62].mxu0 }
 0xc27   : > { %v12442_v44 = vadd.f32 %v14690_v15, %v12133_v13  ;;  %v14692_v33 = vadd.f32 %v11142_v30, %v20783_v6  ;;  %v11495_v45 = vpop.f32.mrb[62].mxu1  ;;  %v11144_v36 = vpop.f32.mrb[63].mxu0  ;;  %v20789_v6 = vld [vmem:[#allocation156_spill] sm:$0xff] }
 0xc28   : > { %v11497_v60 = vpop.f32.mrb[63].mxu1  ;;  %v12178_v30 = vpop.permute.xlu1 %12177 }
 0xc29   : > { %v12698_v49 = vmax.f32 %v12442_v44, 0.0  ;;  %v12446_v41 = vadd.f32 %v14692_v33, %v12138_v29  ;;  %11407 = vmatmul.mubr.bf16.gmra.mrb[208].mxu0 %v16530_v52 }
 0xc2a   : > { %11760 = vmatmul.mubr.bf16.gmra.mrb[208].mxu1 %v16530_v52  ;;  %v12173_v52 = vpop.permute.xlu0 %12172 }
 0xc2b   : > { %12954 = vst [vmem:[%s20131_s15 + $0x100] sm:$0xff] %v12698_v49  ;;  %v12702_v28 = vmax.f32 %v12446_v41, 0.0 }
 0xc2c   : > { %v11148_v56 = vpop.f32.mrb[64].mxu0 }
 0xc2d   : > { %12958 = vst [vmem:[%s20131_s15 + $0x120] sm:$0xff] %v12702_v28  ;;  %v14694_v16 = vadd.f32 %v11148_v56, %v19159_v61  ;;  %v11501_v18 = vpop.f32.mrb[64].mxu1  ;;  %v11150_v47 = vpop.f32.mrb[65].mxu0  ;;  %v20785_v61 = vld [vmem:[#allocation152_spill] sm:$0xff] }
 0xc2e   : > { %v11503_v3 = vpop.f32.mrb[65].mxu1  ;;  %v11152_v5 = vpop.f32.mrb[66].mxu0 }
 0xc2f   : > { %v12450_v4 = vadd.f32 %v14694_v16, %v12143_v0  ;;  %v14696_v32 = vadd.f32 %v11152_v5, %v20784_v12  ;;  %v11505_v62 = vpop.f32.mrb[66].mxu1  ;;  %v11154_v8 = vpop.f32.mrb[67].mxu0  ;;  %v20790_v0 = vld [vmem:[#allocation157_spill] sm:$0xff] }
 0xc30   : > { %v11507_v34 = vpop.f32.mrb[67].mxu1  ;;  %v12183_v3 = vpop.permute.xlu0 %12182 }
 0xc31   : > { %v12706_v39 = vmax.f32 %v12450_v4, 0.0  ;;  %v12454_v25 = vadd.f32 %v14696_v32, %v12148_v11  ;;  %v12188_v4 = vpop.permute.xlu1 %12187 }
 0xc33   : > { %12962 = vst [vmem:[%s20131_s15 + $0x140] sm:$0xff] %v12706_v39  ;;  %v12710_v59 = vmax.f32 %v12454_v25, 0.0 }
 0xc34   : > { %v11158_v14 = vpop.f32.mrb[68].mxu0 }
 0xc35   : > { %12966 = vst [vmem:[%s20131_s15 + $0x160] sm:$0xff] %v12710_v59  ;;  %v14698_v10 = vadd.f32 %v11158_v14, %v20785_v61  ;;  %v11511_v21 = vpop.f32.mrb[68].mxu1  ;;  %v11160_v43 = vpop.f32.mrb[69].mxu0 }
 0xc36   : > { %v11513_v42 = vpop.f32.mrb[69].mxu1  ;;  %v11162_v48 = vpop.f32.mrb[70].mxu0 }
 0xc37   : > { %v12458_v20 = vadd.f32 %v14698_v10, %v12153_v63  ;;  %v14700_v2 = vadd.f32 %v11162_v48, %v20786_v35  ;;  %v11515_v19 = vpop.f32.mrb[70].mxu1  ;;  %v11164_v22 = vpop.f32.mrb[71].mxu0 }
 0xc38   : > { %v11517_v24 = vpop.f32.mrb[71].mxu1  ;;  %v12193_v10 = vpop.permute.xlu0 %12192 }
 0xc39   : > { %v12714_v7 = vmax.f32 %v12458_v20, 0.0  ;;  %v12462_v51 = vadd.f32 %v14700_v2, %v12158_v50  ;;  %v12198_v21 = vpop.permute.xlu1 %12197 }
 0xc3b   : > { %12970 = vst [vmem:[%s20131_s15 + $0x180] sm:$0xff] %v12714_v7  ;;  %v12718_v9 = vmax.f32 %v12462_v51, 0.0 }
 0xc3c   : > { %v11168_v37 = vpop.f32.mrb[72].mxu0 }
 0xc3d   : > { %12974 = vst [vmem:[%s20131_s15 + $0x1a0] sm:$0xff] %v12718_v9  ;;  %v14702_v26 = vadd.f32 %v11168_v37, %v20787_v57  ;;  %v11521_v23 = vpop.f32.mrb[72].mxu1  ;;  %v11170_v17 = vpop.f32.mrb[73].mxu0 }
 0xc3e   : > { %v11523_v31 = vpop.f32.mrb[73].mxu1  ;;  %v11172_v1 = vpop.f32.mrb[74].mxu0 }
 0xc3f   : > { %v12466_v13 = vadd.f32 %v14702_v26, %v12163_v55  ;;  %v14704_v29 = vadd.f32 %v11172_v1, %v20788_v27  ;;  %v11525_v40 = vpop.f32.mrb[74].mxu1  ;;  %v11174_v54 = vpop.f32.mrb[75].mxu0 }
 0xc40   : > { %v11527_v15 = vpop.f32.mrb[75].mxu1  ;;  %v12203_v9 = vpop.permute.xlu0 %12202 }
 0xc41   : > { %v12722_v58 = vmax.f32 %v12466_v13, 0.0  ;;  %v12470_v53 = vadd.f32 %v14704_v29, %v12168_v46  ;;  %v12208_v46 = vpop.permute.xlu1 %12207 }
 0xc43   : > { %12978 = vst [vmem:[%s20131_s15 + $0x1c0] sm:$0xff] %v12722_v58  ;;  %v12726_v38 = vmax.f32 %v12470_v53, 0.0 }
 0xc44   : > { %v11178_v44 = vpop.f32.mrb[76].mxu0  ;;  %v12213_v15 = vpop.permute.xlu0 %12212 }
 0xc45   : > { %12982 = vst [vmem:[%s20131_s15 + $0x1e0] sm:$0xff] %v12726_v38  ;;  %v14706_v33 = vadd.f32 %v11178_v44, %v20789_v6  ;;  %v11531_v45 = vpop.f32.mrb[76].mxu1  ;;  %v11180_v36 = vpop.f32.mrb[77].mxu0 }
 0xc46   : > { %v11533_v60 = vpop.f32.mrb[77].mxu1  ;;  %v11182_v49 = vpop.f32.mrb[78].mxu0 }
 0xc47   : > { %v12474_v41 = vadd.f32 %v14706_v33, %v12173_v52  ;;  %v14708_v28 = vadd.f32 %v11182_v49, %v20790_v0  ;;  %v11535_v11 = vpop.f32.mrb[78].mxu1  ;;  %v11184_v56 = vpop.f32.mrb[79].mxu0 }
 0xc48   : > { %v11537_v16 = vpop.f32.mrb[79].mxu1  ;;  %v12218_v58 = vpop.permute.xlu1 %12217 }
 0xc49   : > { %v12730_v18 = vmax.f32 %v12474_v41, 0.0  ;;  %v12478_v47 = vadd.f32 %v14708_v28, %v12178_v30  ;;  %v12223_v0 = vpop.permute.xlu0 %12222 }
 0xc4b   : > { %12986 = vst [vmem:[%s20131_s15 + $0x200] sm:$0xff] %v12730_v18  ;;  %v12734_v5 = vmax.f32 %v12478_v47, 0.0 }
 0xc4c   : > { %v11188_v12 = vpop.f32.mrb[228].mxu0  ;;  %v12228_v28 = vpop.permute.xlu1 %12227 }
 0xc4d   : > { %12990 = vst [vmem:[%s20131_s15 + $0x220] sm:$0xff] %v12734_v5  ;;  %v12482_v32 = vadd.f32 %v12183_v3, %v11188_v12  ;;  %v11541_v62 = vpop.f32.mrb[228].mxu1  ;;  %v11190_v8 = vpop.f32.mrb[229].mxu0 }
 0xc4e   : > { %v11543_v34 = vpop.f32.mrb[229].mxu1  ;;  %v11192_v39 = vpop.f32.mrb[230].mxu0 }
 0xc4f   : > { %v12738_v25 = vmax.f32 %v12482_v32, 0.0  ;;  %v12486_v63 = vadd.f32 %v12188_v4, %v11192_v39  ;;  %v11545_v59 = vpop.f32.mrb[230].mxu1  ;;  %v11194_v50 = vpop.f32.mrb[231].mxu0 }
 0xc50   : > { %v11547_v14 = vpop.f32.mrb[231].mxu1  ;;  %v12233_v34 = vpop.permute.xlu0 %12232 }
 0xc51   : > { %12994 = vst [vmem:[%s20131_s15 + $0x240] sm:$0xff] %v12738_v25  ;;  %v12742_v61 = vmax.f32 %v12486_v63, 0.0  ;;  %v12238_v39 = vpop.permute.xlu1 %12237 }
 0xc53   : > { %12998 = vst [vmem:[%s20131_s15 + $0x260] sm:$0xff] %v12742_v61 }
 0xc54   : > { %v11198_v43 = vpop.f32.mrb[232].mxu0 }
 0xc55   : > { %v12490_v42 = vadd.f32 %v12193_v10, %v11198_v43  ;;  %v11551_v48 = vpop.f32.mrb[232].mxu1  ;;  %v11200_v20 = vpop.f32.mrb[233].mxu0 }
 0xc56   : > { %v11553_v35 = vpop.f32.mrb[233].mxu1  ;;  %v11202_v2 = vpop.f32.mrb[234].mxu0 }
 0xc57   : > { %v12746_v19 = vmax.f32 %v12490_v42, 0.0  ;;  %v12494_v22 = vadd.f32 %v12198_v21, %v11202_v2  ;;  %v11555_v24 = vpop.f32.mrb[234].mxu1  ;;  %v11204_v7 = vpop.f32.mrb[235].mxu0 }
 0xc58   : > { %v11557_v51 = vpop.f32.mrb[235].mxu1  ;;  %v12243_v35 = vpop.permute.xlu0 %12242 }
 0xc59   : > { %13002 = vst [vmem:[%s20131_s15 + $0x280] sm:$0xff] %v12746_v19  ;;  %v12750_v55 = vmax.f32 %v12494_v22, 0.0  ;;  %v12248_v2 = vpop.permute.xlu1 %12247 }
 0xc5b   : > { %13006 = vst [vmem:[%s20131_s15 + $0x2a0] sm:$0xff] %v12750_v55 }
 0xc5c   : > { %v11208_v37 = vpop.f32.mrb[236].mxu0 }
 0xc5d   : > { %v12498_v57 = vadd.f32 %v12203_v9, %v11208_v37  ;;  %v11561_v26 = vpop.f32.mrb[236].mxu1  ;;  %v11210_v23 = vpop.f32.mrb[237].mxu0 }
 0xc5e   : > { %v11563_v17 = vpop.f32.mrb[237].mxu1  ;;  %v11212_v31 = vpop.f32.mrb[238].mxu0 }
 0xc5f   : > { %v12754_v1 = vmax.f32 %v12498_v57, 0.0  ;;  %v12502_v13 = vadd.f32 %v12208_v46, %v11212_v31  ;;  %v11565_v27 = vpop.f32.mrb[238].mxu1  ;;  %v11214_v29 = vpop.f32.mrb[239].mxu0 }
 0xc60   : > { %v11567_v40 = vpop.f32.mrb[239].mxu1  ;;  %v12253_v17 = vpop.permute.xlu0 %12252 }
 0xc61   : > { %13010 = vst [vmem:[%s20131_s15 + $0x2c0] sm:$0xff] %v12754_v1  ;;  %v12758_v54 = vmax.f32 %v12502_v13, 0.0  ;;  %v12258_v31 = vpop.permute.xlu1 %12257 }
 0xc63   : > { %13014 = vst [vmem:[%s20131_s15 + $0x2e0] sm:$0xff] %v12758_v54 }
 0xc64   : > { %v11218_v53 = vpop.f32.mrb[240].mxu0 }
 0xc65   : > { %v12506_v52 = vadd.f32 %v12213_v15, %v11218_v53  ;;  %v11571_v38 = vpop.f32.mrb[240].mxu1  ;;  %v11220_v30 = vpop.f32.mrb[241].mxu0 }
 0xc66   : > { %v11573_v44 = vpop.f32.mrb[241].mxu1  ;;  %v11222_v6 = vpop.f32.mrb[242].mxu0 }
 0xc67   : > { %v12762_v33 = vmax.f32 %v12506_v52, 0.0  ;;  %v12510_v45 = vadd.f32 %v12218_v58, %v11222_v6  ;;  %v11575_v36 = vpop.f32.mrb[242].mxu1  ;;  %v11224_v60 = vpop.f32.mrb[243].mxu0 }
 0xc68   : > { %v11577_v49 = vpop.f32.mrb[243].mxu1  ;;  %v12263_v44 = vpop.permute.xlu0 %12262 }
 0xc69   : > { %13018 = vst [vmem:[%s20131_s15 + $0x300] sm:$0xff] %v12762_v33  ;;  %v12766_v41 = vmax.f32 %v12510_v45, 0.0  ;;  %v12268_v6 = vpop.permute.xlu1 %12267 }
 0xc6b   : > { %13022 = vst [vmem:[%s20131_s15 + $0x320] sm:$0xff] %v12766_v41 }
 0xc6c   : > { %v11228_v11 = vpop.f32.mrb[244].mxu0 }
 0xc6d   : > { %v12514_v56 = vadd.f32 %v12223_v0, %v11228_v11  ;;  %v11581_v16 = vpop.f32.mrb[244].mxu1  ;;  %v11230_v18 = vpop.f32.mrb[245].mxu0 }
 0xc6e   : > { %v11583_v47 = vpop.f32.mrb[245].mxu1  ;;  %v11232_v3 = vpop.f32.mrb[246].mxu0 }
 0xc6f   : > { %v12770_v5 = vmax.f32 %v12514_v56, 0.0  ;;  %v12518_v4 = vadd.f32 %v12228_v28, %v11232_v3  ;;  %v11585_v12 = vpop.f32.mrb[246].mxu1  ;;  %v11234_v32 = vpop.f32.mrb[247].mxu0 }
 0xc70   : > { %v11587_v62 = vpop.f32.mrb[247].mxu1  ;;  %v12273_v47 = vpop.permute.xlu0 %12272 }
 0xc71   : > { %13026 = vst [vmem:[%s20131_s15 + $0x340] sm:$0xff] %v12770_v5  ;;  %v12774_v8 = vmax.f32 %v12518_v4, 0.0  ;;  %v12278_v3 = vpop.permute.xlu1 %12277 }
 0xc73   : > { %13030 = vst [vmem:[%s20131_s15 + $0x360] sm:$0xff] %v12774_v8 }
 0xc74   : > { %v11238_v25 = vpop.f32.mrb[248].mxu0 }
 0xc75   : > { %v12522_v63 = vadd.f32 %v12233_v34, %v11238_v25  ;;  %v11591_v59 = vpop.f32.mrb[248].mxu1  ;;  %v11240_v50 = vpop.f32.mrb[249].mxu0 }
 0xc76   : > { %v11593_v14 = vpop.f32.mrb[249].mxu1  ;;  %v11242_v61 = vpop.f32.mrb[250].mxu0 }
 0xc77   : > { %v12778_v10 = vmax.f32 %v12522_v63, 0.0  ;;  %v12526_v21 = vadd.f32 %v12238_v39, %v11242_v61  ;;  %v11595_v43 = vpop.f32.mrb[250].mxu1  ;;  %v11244_v42 = vpop.f32.mrb[251].mxu0 }
 0xc78   : > { %v11597_v48 = vpop.f32.mrb[251].mxu1  ;;  %v12283_v14 = vpop.permute.xlu0 %12282 }
 0xc79   : > { %13034 = vst [vmem:[%s20131_s15 + $0x380] sm:$0xff] %v12778_v10  ;;  %v12782_v20 = vmax.f32 %v12526_v21, 0.0  ;;  %v12288_v61 = vpop.permute.xlu1 %12287 }
 0xc7b   : > { %13038 = vst [vmem:[%s20131_s15 + $0x3a0] sm:$0xff] %v12782_v20 }
 0xc7c   : > { %v11248_v19 = vpop.f32.mrb[252].mxu0 }
 0xc7d   : > { %v12530_v22 = vadd.f32 %v12243_v35, %v11248_v19  ;;  %v11601_v24 = vpop.f32.mrb[252].mxu1  ;;  %v11250_v7 = vpop.f32.mrb[253].mxu0 }
 0xc7e   : > { %v11603_v51 = vpop.f32.mrb[253].mxu1  ;;  %v11252_v55 = vpop.f32.mrb[254].mxu0 }
 0xc7f   : > { %v12786_v9 = vmax.f32 %v12530_v22, 0.0  ;;  %v12534_v46 = vadd.f32 %v12248_v2, %v11252_v55  ;;  %v11605_v37 = vpop.f32.mrb[254].mxu1  ;;  %v11254_v57 = vpop.f32.mrb[255].mxu0 }
 0xc80   : > { %v11607_v26 = vpop.f32.mrb[255].mxu1  ;;  %v12293_v51 = vpop.permute.xlu0 %12292 }
 0xc81   : > { %13042 = vst [vmem:[%s20131_s15 + $0x3c0] sm:$0xff] %v12786_v9  ;;  %v12790_v23 = vmax.f32 %v12534_v46, 0.0  ;;  %v12298_v55 = vpop.permute.xlu1 %12297 }
 0xc83   : > { %13046 = vst [vmem:[%s20131_s15 + $0x3e0] sm:$0xff] %v12790_v23 }
 0xc84   : > { %v11258_v1 = vpop.f32.mrb[148].mxu0 }
 0xc85   : > { %v12538_v13 = vadd.f32 %v12253_v17, %v11258_v1  ;;  %v11611_v27 = vpop.f32.mrb[148].mxu1  ;;  %v11260_v29 = vpop.f32.mrb[149].mxu0 }
 0xc86   : > { %v11613_v40 = vpop.f32.mrb[149].mxu1  ;;  %v11262_v54 = vpop.f32.mrb[150].mxu0 }
 0xc87   : > { %v12794_v15 = vmax.f32 %v12538_v13, 0.0  ;;  %v12542_v58 = vadd.f32 %v12258_v31, %v11262_v54  ;;  %v11615_v53 = vpop.f32.mrb[150].mxu1  ;;  %v11264_v52 = vpop.f32.mrb[151].mxu0 }
 0xc88   : > { %v11617_v38 = vpop.f32.mrb[151].mxu1  ;;  %v12303_v40 = vpop.permute.xlu0 %12302 }
 0xc89   : > { %13050 = vst [vmem:[%s20131_s15 + $0x400] sm:$0xff] %v12794_v15  ;;  %v12798_v30 = vmax.f32 %v12542_v58, 0.0  ;;  %v12308_v54 = vpop.permute.xlu1 %12307 }
 0xc8b   : > { %13054 = vst [vmem:[%s20131_s15 + $0x420] sm:$0xff] %v12798_v30 }
 0xc8c   : > { %v11268_v33 = vpop.f32.mrb[152].mxu0 }
 0xc8d   : > { %v12546_v45 = vadd.f32 %v12263_v44, %v11268_v33  ;;  %v11621_v36 = vpop.f32.mrb[152].mxu1  ;;  %v11270_v60 = vpop.f32.mrb[153].mxu0 }
 0xc8e   : > { %v11623_v49 = vpop.f32.mrb[153].mxu1  ;;  %v11272_v41 = vpop.f32.mrb[154].mxu0 }
 0xc8f   : > { %v12802_v0 = vmax.f32 %v12546_v45, 0.0  ;;  %v12550_v28 = vadd.f32 %v12268_v6, %v11272_v41  ;;  %v11625_v11 = vpop.f32.mrb[154].mxu1  ;;  %v11274_v56 = vpop.f32.mrb[155].mxu0 }
 0xc90   : > { %v11627_v16 = vpop.f32.mrb[155].mxu1  ;;  %v12313_v49 = vpop.permute.xlu0 %12312 }
 0xc91   : > { %13058 = vst [vmem:[%s20131_s15 + $0x440] sm:$0xff] %v12802_v0  ;;  %v12806_v18 = vmax.f32 %v12550_v28, 0.0  ;;  %v12318_v41 = vpop.permute.xlu1 %12317 }
 0xc93   : > { %13062 = vst [vmem:[%s20131_s15 + $0x460] sm:$0xff] %v12806_v18 }
 0xc94   : > { %v11278_v5 = vpop.f32.mrb[156].mxu0 }
 0xc95   : > { %v12554_v4 = vadd.f32 %v12273_v47, %v11278_v5  ;;  %v11631_v12 = vpop.f32.mrb[156].mxu1  ;;  %v11280_v32 = vpop.f32.mrb[157].mxu0 }
 0xc96   : > { %v11633_v62 = vpop.f32.mrb[157].mxu1  ;;  %v11282_v8 = vpop.f32.mrb[158].mxu0 }
 0xc97   : > { %v12810_v34 = vmax.f32 %v12554_v4, 0.0  ;;  %v12558_v39 = vadd.f32 %v12278_v3, %v11282_v8  ;;  %v11635_v25 = vpop.f32.mrb[158].mxu1  ;;  %v11284_v63 = vpop.f32.mrb[159].mxu0 }
 0xc98   : > { %v11637_v59 = vpop.f32.mrb[159].mxu1  ;;  %v12323_v62 = vpop.permute.xlu0 %12322 }
 0xc99   : > { %13066 = vst [vmem:[%s20131_s15 + $0x480] sm:$0xff] %v12810_v34  ;;  %v12814_v50 = vmax.f32 %v12558_v39, 0.0  ;;  %v12328_v8 = vpop.permute.xlu1 %12327 }
 0xc9b   : > { %13070 = vst [vmem:[%s20131_s15 + $0x4a0] sm:$0xff] %v12814_v50 }
 0xc9c   : > { %v11288_v10 = vpop.f32.mrb[160].mxu0 }
 0xc9d   : > { %v12562_v21 = vadd.f32 %v12283_v14, %v11288_v10  ;;  %v11641_v43 = vpop.f32.mrb[160].mxu1  ;;  %v11290_v42 = vpop.f32.mrb[161].mxu0 }
 0xc9e   : > { %v11643_v48 = vpop.f32.mrb[161].mxu1  ;;  %v11292_v20 = vpop.f32.mrb[162].mxu0 }
 0xc9f   : > { %v12818_v35 = vmax.f32 %v12562_v21, 0.0  ;;  %v12566_v2 = vadd.f32 %v12288_v61, %v11292_v20  ;;  %v11645_v19 = vpop.f32.mrb[162].mxu1  ;;  %v11294_v22 = vpop.f32.mrb[163].mxu0 }
 0xca0   : > { %v11647_v24 = vpop.f32.mrb[163].mxu1  ;;  %v12333_v48 = vpop.permute.xlu0 %12332 }
 0xca1   : > { %13074 = vst [vmem:[%s20131_s15 + $0x4c0] sm:$0xff] %v12818_v35  ;;  %v12822_v7 = vmax.f32 %v12566_v2, 0.0  ;;  %v12338_v20 = vpop.permute.xlu1 %12337 }
 0xca3   : > { %13078 = vst [vmem:[%s20131_s15 + $0x4e0] sm:$0xff] %v12822_v7 }
 0xca4   : > { %v11298_v9 = vpop.f32.mrb[164].mxu0 }
 0xca5   : > { %v12570_v46 = vadd.f32 %v12293_v51, %v11298_v9  ;;  %v11651_v37 = vpop.f32.mrb[164].mxu1  ;;  %v11300_v57 = vpop.f32.mrb[165].mxu0 }
 0xca6   : > { %v11653_v26 = vpop.f32.mrb[165].mxu1  ;;  %v11302_v23 = vpop.f32.mrb[166].mxu0 }
 0xca7   : > { %v12826_v17 = vmax.f32 %v12570_v46, 0.0  ;;  %v12574_v31 = vadd.f32 %v12298_v55, %v11302_v23  ;;  %v11655_v1 = vpop.f32.mrb[166].mxu1  ;;  %v11304_v13 = vpop.f32.mrb[167].mxu0 }
 0xca8   : > { %v11657_v27 = vpop.f32.mrb[167].mxu1  ;;  %v12343_v26 = vpop.permute.xlu0 %12342 }
 0xca9   : > { %13082 = vst [vmem:[%s20131_s15 + $0x500] sm:$0xff] %v12826_v17  ;;  %v12830_v29 = vmax.f32 %v12574_v31, 0.0  ;;  %v12348_v23 = vpop.permute.xlu1 %12347  ;;  %v20791_v31 = vld [vmem:[#allocation158_spill] sm:$0xff] }
 0xcab   : > { %13086 = vst [vmem:[%s20131_s15 + $0x520] sm:$0xff] %v12830_v29 }
 0xcac   : > { %v11308_v15 = vpop.f32.mrb[168].mxu0 }
 0xcad   : > { %v12578_v58 = vadd.f32 %v12303_v40, %v11308_v15  ;;  %v11661_v53 = vpop.f32.mrb[168].mxu1  ;;  %v11310_v52 = vpop.f32.mrb[169].mxu0  ;;  %v20792_v15 = vld [vmem:[#allocation159_spill] sm:$0xff] }
 0xcae   : > { %v11663_v38 = vpop.f32.mrb[169].mxu1  ;;  %v11312_v30 = vpop.f32.mrb[170].mxu0 }
 0xcaf   : > { %v12834_v44 = vmax.f32 %v12578_v58, 0.0  ;;  %v12582_v6 = vadd.f32 %v12308_v54, %v11312_v30  ;;  %v11665_v33 = vpop.f32.mrb[170].mxu1  ;;  %v11314_v45 = vpop.f32.mrb[171].mxu0 }
 0xcb0   : > { %v11667_v36 = vpop.f32.mrb[171].mxu1  ;;  %v12358_v45 = vpop.permute.xlu1 %12357 }
 0xcb1   : > { %13090 = vst [vmem:[%s20131_s15 + $0x540] sm:$0xff] %v12834_v44  ;;  %v12838_v60 = vmax.f32 %v12582_v6, 0.0  ;;  %v12353_v6 = vpop.permute.xlu0 %12352 }
 0xcb3   : > { %13094 = vst [vmem:[%s20131_s15 + $0x560] sm:$0xff] %v12838_v60  ;;  %v20793_v60 = vld [vmem:[#allocation160_spill] sm:$0xff] }
 0xcb4   : > { %v11318_v0 = vpop.f32.mrb[172].mxu0 }
 0xcb5   : > { %v12586_v28 = vadd.f32 %v12313_v49, %v11318_v0  ;;  %v11671_v11 = vpop.f32.mrb[172].mxu1  ;;  %v11320_v56 = vpop.f32.mrb[173].mxu0 }
 0xcb6   : > { %v11673_v16 = vpop.f32.mrb[173].mxu1  ;;  %v11322_v18 = vpop.f32.mrb[174].mxu0 }
 0xcb7   : > { %v12842_v47 = vmax.f32 %v12586_v28, 0.0  ;;  %v12590_v3 = vadd.f32 %v12318_v41, %v11322_v18  ;;  %v11675_v5 = vpop.f32.mrb[174].mxu1  ;;  %v11324_v4 = vpop.f32.mrb[175].mxu0  ;;  %v20794_v16 = vld [vmem:[#allocation161_spill] sm:$0xff] }
 0xcb8   : > { %v11677_v12 = vpop.f32.mrb[175].mxu1 }
 0xcb9   : > { %13098 = vst [vmem:[%s20131_s15 + $0x580] sm:$0xff] %v12842_v47  ;;  %v12846_v32 = vmax.f32 %v12590_v3, 0.0 }
 0xcbb   : > { %13102 = vst [vmem:[%s20131_s15 + $0x5a0] sm:$0xff] %v12846_v32  ;;  %v12363_v32 = vpop.permute.xlu0 %12362 }
 0xcbc   : > { %v11328_v34 = vpop.f32.mrb[176].mxu0 }
 0xcbd   : > { %v12594_v39 = vadd.f32 %v12323_v62, %v11328_v34  ;;  %v11681_v25 = vpop.f32.mrb[176].mxu1  ;;  %v11330_v63 = vpop.f32.mrb[177].mxu0 }
 0xcbe   : > { %v11683_v59 = vpop.f32.mrb[177].mxu1  ;;  %v11332_v50 = vpop.f32.mrb[178].mxu0 }
 0xcbf   : > { %v12850_v14 = vmax.f32 %v12594_v39, 0.0  ;;  %v12598_v61 = vadd.f32 %v12328_v8, %v11332_v50  ;;  %v11685_v10 = vpop.f32.mrb[178].mxu1  ;;  %v11334_v21 = vpop.f32.mrb[179].mxu0  ;;  %v20795_v39 = vld [vmem:[#allocation162_spill] sm:$0xff] }
 0xcc0   : > { %v11687_v43 = vpop.f32.mrb[179].mxu1  ;;  %v12368_v8 = vpop.permute.xlu1 %12367  ;;  %v20796_v10 = vld [vmem:[#allocation163_spill] sm:$0xff] }
 0xcc1   : > { %13106 = vst [vmem:[%s20131_s15 + $0x5c0] sm:$0xff] %v12850_v14  ;;  %v12854_v42 = vmax.f32 %v12598_v61, 0.0 }
 0xcc3   : > { %13110 = vst [vmem:[%s20131_s15 + $0x5e0] sm:$0xff] %v12854_v42 }
 0xcc4   : > { %v11338_v35 = vpop.f32.mrb[180].mxu0 }
 0xcc5   : > { %v12602_v2 = vadd.f32 %v12333_v48, %v11338_v35  ;;  %v11691_v19 = vpop.f32.mrb[180].mxu1  ;;  %v11340_v22 = vpop.f32.mrb[181].mxu0 }
 0xcc6   : > { %v11693_v24 = vpop.f32.mrb[181].mxu1  ;;  %v11342_v7 = vpop.f32.mrb[182].mxu0 }
 0xcc7   : > { %v12858_v51 = vmax.f32 %v12602_v2, 0.0  ;;  %v12606_v55 = vadd.f32 %v12338_v20, %v11342_v7  ;;  %v11695_v9 = vpop.f32.mrb[182].mxu1  ;;  %v11344_v46 = vpop.f32.mrb[183].mxu0  ;;  %v20797_v7 = vld [vmem:[#allocation164_spill] sm:$0xff] }
 0xcc8   : > { %v11697_v37 = vpop.f32.mrb[183].mxu1  ;;  %v12373_v2 = vpop.permute.xlu0 %12372 }
 0xcc9   : > { %13114 = vst [vmem:[%s20131_s15 + $0x600] sm:$0xff] %v12858_v51  ;;  %v12862_v57 = vmax.f32 %v12606_v55, 0.0  ;;  %v12378_v22 = vpop.permute.xlu1 %12377 }
 0xccb   : > { %13118 = vst [vmem:[%s20131_s15 + $0x620] sm:$0xff] %v12862_v57 }
 0xccc   : > { %v11348_v17 = vpop.f32.mrb[80].mxu0 }
 0xccd   : > { %v14710_v1 = vadd.f32 %v11348_v17, %v20791_v31  ;;  %v11701_v13 = vpop.f32.mrb[80].mxu1  ;;  %v11350_v27 = vpop.f32.mrb[81].mxu0 }
 0xcce   : > { %v11703_v29 = vpop.f32.mrb[81].mxu1  ;;  %v11352_v40 = vpop.f32.mrb[82].mxu0 }
 0xccf   : > { %v12610_v54 = vadd.f32 %v14710_v1, %v12343_v26  ;;  %v14712_v58 = vadd.f32 %v11352_v40, %v20792_v15  ;;  %v11705_v53 = vpop.f32.mrb[82].mxu1  ;;  %v11354_v52 = vpop.f32.mrb[83].mxu0  ;;  %v20798_v26 = vld [vmem:[#allocation165_spill] sm:$0xff] }
 0xcd0   : > { %v11707_v38 = vpop.f32.mrb[83].mxu1  ;;  %v12383_v29 = vpop.permute.xlu0 %12382 }
 0xcd1   : > { %v12866_v30 = vmax.f32 %v12610_v54, 0.0  ;;  %v12614_v44 = vadd.f32 %v14712_v58, %v12348_v23  ;;  %v12388_v54 = vpop.permute.xlu1 %12387 }
 0xcd3   : > { %13122 = vst [vmem:[%s20131_s15 + $0x640] sm:$0xff] %v12866_v30  ;;  %v12870_v33 = vmax.f32 %v12614_v44, 0.0 }
 0xcd4   : > { %v11358_v36 = vpop.f32.mrb[84].mxu0 }
 0xcd5   : > { %13126 = vst [vmem:[%s20131_s15 + $0x660] sm:$0xff] %v12870_v33  ;;  %v14714_v49 = vadd.f32 %v11358_v36, %v20793_v60  ;;  %v11711_v41 = vpop.f32.mrb[84].mxu1  ;;  %v11360_v0 = vpop.f32.mrb[85].mxu0 }
 0xcd6   : > { %v11713_v28 = vpop.f32.mrb[85].mxu1  ;;  %v11362_v11 = vpop.f32.mrb[86].mxu0 }
 0xcd7   : > { %v12618_v56 = vadd.f32 %v14714_v49, %v12353_v6  ;;  %v14716_v18 = vadd.f32 %v11362_v11, %v20794_v16  ;;  %v11715_v47 = vpop.f32.mrb[86].mxu1  ;;  %v11364_v3 = vpop.f32.mrb[87].mxu0 }
 0xcd8   : > { %v11717_v5 = vpop.f32.mrb[87].mxu1  ;;  %v12393_v49 = vpop.permute.xlu0 %12392 }
 0xcd9   : > { %v12874_v4 = vmax.f32 %v12618_v56, 0.0  ;;  %v12622_v12 = vadd.f32 %v14716_v18, %v12358_v45  ;;  %v12398_v41 = vpop.permute.xlu1 %12397 }
 0xcdb   : > { %13130 = vst [vmem:[%s20131_s15 + $0x680] sm:$0xff] %v12874_v4  ;;  %v12878_v62 = vmax.f32 %v12622_v12, 0.0 }
 0xcdc   : > { %v11368_v34 = vpop.f32.mrb[88].mxu0 }
 0xcdd   : > { %13134 = vst [vmem:[%s20131_s15 + $0x6a0] sm:$0xff] %v12878_v62  ;;  %v14718_v25 = vadd.f32 %v11368_v34, %v20795_v39  ;;  %v11721_v63 = vpop.f32.mrb[88].mxu1  ;;  %v11370_v59 = vpop.f32.mrb[89].mxu0 }
 0xcde   : > { %v11723_v50 = vpop.f32.mrb[89].mxu1  ;;  %v11372_v14 = vpop.f32.mrb[90].mxu0 }
 0xcdf   : > { %v12626_v61 = vadd.f32 %v14718_v25, %v12363_v32  ;;  %v14720_v21 = vadd.f32 %v11372_v14, %v20796_v10  ;;  %v11725_v43 = vpop.f32.mrb[90].mxu1  ;;  %v11374_v42 = vpop.f32.mrb[91].mxu0 }
 0xce0   : > { %v11727_v48 = vpop.f32.mrb[91].mxu1  ;;  %v12403_v62 = vpop.permute.xlu0 %12402 }
 0xce1   : > { %v12882_v20 = vmax.f32 %v12626_v61, 0.0  ;;  %v12630_v35 = vadd.f32 %v14720_v21, %v12368_v8  ;;  %v12408_v8 = vpop.permute.xlu1 %12407 }
 0xce3   : > { %13138 = vst [vmem:[%s20131_s15 + $0x6c0] sm:$0xff] %v12882_v20  ;;  %v12886_v19 = vmax.f32 %v12630_v35, 0.0 }
 0xce4   : > { %v11378_v24 = vpop.f32.mrb[92].mxu0 }
 0xce5   : > { %13142 = vst [vmem:[%s20131_s15 + $0x6e0] sm:$0xff] %v12886_v19  ;;  %v14722_v51 = vadd.f32 %v11378_v24, %v20797_v7  ;;  %v11731_v55 = vpop.f32.mrb[92].mxu1  ;;  %v11380_v9 = vpop.f32.mrb[93].mxu0 }
 0xce6   : > { %v11733_v46 = vpop.f32.mrb[93].mxu1  ;;  %v11382_v37 = vpop.f32.mrb[94].mxu0 }
 0xce7   : > { %v12634_v57 = vadd.f32 %v14722_v51, %v12373_v2  ;;  %v14724_v23 = vadd.f32 %v11382_v37, %v20798_v26  ;;  %v11735_v17 = vpop.f32.mrb[94].mxu1  ;;  %v11384_v31 = vpop.f32.mrb[95].mxu0 }
 0xce8   : > { %v11737_v1 = vpop.f32.mrb[95].mxu1 }
 0xce9   : > { %v12890_v13 = vmax.f32 %v12634_v57, 0.0  ;;  %v12638_v27 = vadd.f32 %v14724_v23, %v12378_v22 }
 0xceb   : > { %13146 = vst [vmem:[%s20131_s15 + $0x700] sm:$0xff] %v12890_v13  ;;  %v12894_v40 = vmax.f32 %v12638_v27, 0.0 }
 0xcec   : > { %v11388_v15 = vpop.f32.mrb[200].mxu0 }
 0xced   : > { %13150 = vst [vmem:[%s20131_s15 + $0x720] sm:$0xff] %v12894_v40  ;;  %v12642_v58 = vadd.f32 %v12383_v29, %v11388_v15  ;;  %v11741_v53 = vpop.f32.mrb[200].mxu1  ;;  %v11390_v52 = vpop.f32.mrb[201].mxu0 }
 0xcee   : > { %v11743_v38 = vpop.f32.mrb[201].mxu1  ;;  %v11392_v30 = vpop.f32.mrb[202].mxu0 }
 0xcef   : > { %v12898_v44 = vmax.f32 %v12642_v58, 0.0  ;;  %v12646_v6 = vadd.f32 %v12388_v54, %v11392_v30  ;;  %v11745_v33 = vpop.f32.mrb[202].mxu1  ;;  %v11394_v45 = vpop.f32.mrb[203].mxu0 }
 0xcf0   : > { %v11747_v36 = vpop.f32.mrb[203].mxu1 }
 0xcf1   : > { %13154 = vst [vmem:[%s20131_s15 + $0x740] sm:$0xff] %v12898_v44  ;;  %v12902_v60 = vmax.f32 %v12646_v6, 0.0 }
 0xcf3   : > { %13158 = vst [vmem:[%s20131_s15 + $0x760] sm:$0xff] %v12902_v60 }
 0xcf4   : > { %v11398_v0 = vpop.f32.mrb[204].mxu0 }
 0xcf5   : > { %v12650_v28 = vadd.f32 %v12393_v49, %v11398_v0  ;;  %v11751_v11 = vpop.f32.mrb[204].mxu1  ;;  %v11400_v56 = vpop.f32.mrb[205].mxu0 }
 0xcf6   : > { %v11753_v16 = vpop.f32.mrb[205].mxu1  ;;  %v11402_v18 = vpop.f32.mrb[206].mxu0 }
 0xcf7   : > { %v12906_v47 = vmax.f32 %v12650_v28, 0.0  ;;  %v12654_v3 = vadd.f32 %v12398_v41, %v11402_v18  ;;  %v11755_v5 = vpop.f32.mrb[206].mxu1  ;;  %v11404_v4 = vpop.f32.mrb[207].mxu0 }
 0xcf8   : > { %v11757_v12 = vpop.f32.mrb[207].mxu1 }
 0xcf9   : > { %13162 = vst [vmem:[%s20131_s15 + $0x780] sm:$0xff] %v12906_v47  ;;  %v12910_v32 = vmax.f32 %v12654_v3, 0.0 }
 0xcfb   : > { %13166 = vst [vmem:[%s20131_s15 + $0x7a0] sm:$0xff] %v12910_v32 }
 0xcfc   : > { %v11408_v34 = vpop.f32.mrb[208].mxu0 }
 0xcfd   : > { %v12658_v39 = vadd.f32 %v12403_v62, %v11408_v34  ;;  %v11761_v25 = vpop.f32.mrb[208].mxu1  ;;  %v11410_v63 = vpop.f32.mrb[209].mxu0  ;;  %13184 = sbr.rel (!%p16729_p6) target bundleno = 3397 (0xd45), region = 136 }
 0xcfe   : > { %v11763_v59 = vpop.f32.mrb[209].mxu1  ;;  %v11412_v50 = vpop.f32.mrb[210].mxu0 }
 0xcff   : > { %v12914_v14 = vmax.f32 %v12658_v39, 0.0  ;;  %v12662_v61 = vadd.f32 %v12408_v8, %v11412_v50  ;;  %v11765_v10 = vpop.f32.mrb[210].mxu1  ;;  %v11414_v21 = vpop.f32.mrb[211].mxu0 }
 0xd00   : > { %v11767_v43 = vpop.f32.mrb[211].mxu1 }
 0xd01   : > { %13170 = vst [vmem:[%s20131_s15 + $0x7c0] sm:$0xff] %v12914_v14  ;;  %v12918_v42 = vmax.f32 %v12662_v61, 0.0 }
 0xd03   : > { %13174 = vst [vmem:[%s20131_s15 + $0x7e0] sm:$0xff] %v12918_v42 }
 0xd04 LB: >> { %v13358_v48 = vld [vmem:[%s20131_s15] sm:$0xff]  ;;  %s13352_s21 = sadd.s32 1, %s16611_s21   ;;  %s16611_s21 = sphi %s20257_s21, %s13352_s21  }
 0xd05   : >> { %v13360_v20 = vld [vmem:[%s20131_s15 + $0x20] sm:$0xff]  ;;  %13359 = vst [vmem:[%s20255_s26] sm:$0xff] %v13358_v48  ;;  %p13351_p12 = scmp.ge.s32.totalorder %s13352_s21, 1 }
 0xd06   : >> { %v13362_v35 = vld [vmem:[%s20131_s15 + $0x40] sm:$0xff]  ;;  %13361 = vst [vmem:[%s20255_s26 + $0x8] sm:$0xff] %v13360_v20 }
 0xd07   : >> { %13363 = vst [vmem:[%s20255_s26 + $0x10] sm:$0xff] %v13362_v35  ;;  %v13364_v2 = vld [vmem:[%s20131_s15 + $0x60] sm:$0xff] }
 0xd08   : >> { %v13366_v19 = vld [vmem:[%s20131_s15 + $0x80] sm:$0xff]  ;;  %13365 = vst [vmem:[%s20255_s26 + $0x18] sm:$0xff] %v13364_v2 }
 0xd09   : >> { %v13368_v22 = vld [vmem:[%s20131_s15 + $0xa0] sm:$0xff]  ;;  %13367 = vst [vmem:[%s20255_s26 + $0x20] sm:$0xff] %v13366_v19 }
 0xd0a   : >> { %13369 = vst [vmem:[%s20255_s26 + $0x28] sm:$0xff] %v13368_v22  ;;  %v13370_v24 = vld [vmem:[%s20131_s15 + $0xc0] sm:$0xff] }
 0xd0b   : >> { %v13372_v7 = vld [vmem:[%s20131_s15 + $0xe0] sm:$0xff]  ;;  %13371 = vst [vmem:[%s20255_s26 + $0x30] sm:$0xff] %v13370_v24 }
 0xd0c   : >> { %v13374_v51 = vld [vmem:[%s20131_s15 + $0x100] sm:$0xff]  ;;  %13373 = vst [vmem:[%s20255_s26 + $0x38] sm:$0xff] %v13372_v7 }
 0xd0d   : >> { %13375 = vst [vmem:[%s20255_s26 + $0x40] sm:$0xff] %v13374_v51  ;;  %v13376_v55 = vld [vmem:[%s20131_s15 + $0x120] sm:$0xff] }
 0xd0e   : >> { %v13378_v9 = vld [vmem:[%s20131_s15 + $0x140] sm:$0xff]  ;;  %13377 = vst [vmem:[%s20255_s26 + $0x48] sm:$0xff] %v13376_v55 }
 0xd0f   : >> { %v13380_v46 = vld [vmem:[%s20131_s15 + $0x160] sm:$0xff]  ;;  %13379 = vst [vmem:[%s20255_s26 + $0x50] sm:$0xff] %v13378_v9 }
 0xd10   : >> { %13381 = vst [vmem:[%s20255_s26 + $0x58] sm:$0xff] %v13380_v46  ;;  %v13382_v37 = vld [vmem:[%s20131_s15 + $0x180] sm:$0xff] }
 0xd11   : >> { %v13384_v57 = vld [vmem:[%s20131_s15 + $0x1a0] sm:$0xff]  ;;  %13383 = vst [vmem:[%s20255_s26 + $0x60] sm:$0xff] %v13382_v37 }
 0xd12   : >> { %v13386_v26 = vld [vmem:[%s20131_s15 + $0x1c0] sm:$0xff]  ;;  %13385 = vst [vmem:[%s20255_s26 + $0x68] sm:$0xff] %v13384_v57 }
 0xd13   : >> { %13387 = vst [vmem:[%s20255_s26 + $0x70] sm:$0xff] %v13386_v26  ;;  %v13388_v23 = vld [vmem:[%s20131_s15 + $0x1e0] sm:$0xff] }
 0xd14   : >> { %v13390_v17 = vld [vmem:[%s20131_s15 + $0x200] sm:$0xff]  ;;  %13389 = vst [vmem:[%s20255_s26 + $0x78] sm:$0xff] %v13388_v23 }
 0xd15   : >> { %v13392_v31 = vld [vmem:[%s20131_s15 + $0x220] sm:$0xff]  ;;  %13391 = vst [vmem:[%s20255_s26 + $0x80] sm:$0xff] %v13390_v17 }
 0xd16   : >> { %13393 = vst [vmem:[%s20255_s26 + $0x88] sm:$0xff] %v13392_v31  ;;  %v13394_v1 = vld [vmem:[%s20131_s15 + $0x240] sm:$0xff] }
 0xd17   : >> { %v13396_v13 = vld [vmem:[%s20131_s15 + $0x260] sm:$0xff]  ;;  %13395 = vst [vmem:[%s20255_s26 + $0x90] sm:$0xff] %v13394_v1 }
 0xd18   : >> { %v13398_v27 = vld [vmem:[%s20131_s15 + $0x280] sm:$0xff]  ;;  %13397 = vst [vmem:[%s20255_s26 + $0x98] sm:$0xff] %v13396_v13 }
 0xd19   : >> { %13399 = vst [vmem:[%s20255_s26 + $0xa0] sm:$0xff] %v13398_v27  ;;  %v13400_v29 = vld [vmem:[%s20131_s15 + $0x2a0] sm:$0xff] }
 0xd1a   : >> { %v13402_v40 = vld [vmem:[%s20131_s15 + $0x2c0] sm:$0xff]  ;;  %13401 = vst [vmem:[%s20255_s26 + $0xa8] sm:$0xff] %v13400_v29 }
 0xd1b   : >> { %v13404_v54 = vld [vmem:[%s20131_s15 + $0x2e0] sm:$0xff]  ;;  %13403 = vst [vmem:[%s20255_s26 + $0xb0] sm:$0xff] %v13402_v40 }
 0xd1c   : >> { %13405 = vst [vmem:[%s20255_s26 + $0xb8] sm:$0xff] %v13404_v54  ;;  %v13406_v15 = vld [vmem:[%s20131_s15 + $0x300] sm:$0xff] }
 0xd1d   : >> { %v13408_v58 = vld [vmem:[%s20131_s15 + $0x320] sm:$0xff]  ;;  %13407 = vst [vmem:[%s20255_s26 + $0xc0] sm:$0xff] %v13406_v15 }
 0xd1e   : >> { %v13410_v53 = vld [vmem:[%s20131_s15 + $0x340] sm:$0xff]  ;;  %13409 = vst [vmem:[%s20255_s26 + $0xc8] sm:$0xff] %v13408_v58 }
 0xd1f   : >> { %13411 = vst [vmem:[%s20255_s26 + $0xd0] sm:$0xff] %v13410_v53  ;;  %v13412_v52 = vld [vmem:[%s20131_s15 + $0x360] sm:$0xff] }
 0xd20   : >> { %v13414_v38 = vld [vmem:[%s20131_s15 + $0x380] sm:$0xff]  ;;  %13413 = vst [vmem:[%s20255_s26 + $0xd8] sm:$0xff] %v13412_v52 }
 0xd21   : >> { %v13416_v30 = vld [vmem:[%s20131_s15 + $0x3a0] sm:$0xff]  ;;  %13415 = vst [vmem:[%s20255_s26 + $0xe0] sm:$0xff] %v13414_v38 }
 0xd22   : >> { %13417 = vst [vmem:[%s20255_s26 + $0xe8] sm:$0xff] %v13416_v30  ;;  %v13418_v44 = vld [vmem:[%s20131_s15 + $0x3c0] sm:$0xff] }
 0xd23   : >> { %v13420_v6 = vld [vmem:[%s20131_s15 + $0x3e0] sm:$0xff]  ;;  %13419 = vst [vmem:[%s20255_s26 + $0xf0] sm:$0xff] %v13418_v44 }
 0xd24   : >> { %v13422_v33 = vld [vmem:[%s20131_s15 + $0x400] sm:$0xff]  ;;  %13421 = vst [vmem:[%s20255_s26 + $0xf8] sm:$0xff] %v13420_v6 }
 0xd25   : >> { %13423 = vst [vmem:[%s20255_s26 + $0x100] sm:$0xff] %v13422_v33  ;;  %v13424_v45 = vld [vmem:[%s20131_s15 + $0x420] sm:$0xff] }
 0xd26   : >> { %v13426_v36 = vld [vmem:[%s20131_s15 + $0x440] sm:$0xff]  ;;  %13425 = vst [vmem:[%s20255_s26 + $0x108] sm:$0xff] %v13424_v45 }
 0xd27   : >> { %v13428_v60 = vld [vmem:[%s20131_s15 + $0x460] sm:$0xff]  ;;  %13427 = vst [vmem:[%s20255_s26 + $0x110] sm:$0xff] %v13426_v36 }
 0xd28   : >> { %13429 = vst [vmem:[%s20255_s26 + $0x118] sm:$0xff] %v13428_v60  ;;  %v13430_v49 = vld [vmem:[%s20131_s15 + $0x480] sm:$0xff] }
 0xd29   : >> { %v13432_v41 = vld [vmem:[%s20131_s15 + $0x4a0] sm:$0xff]  ;;  %13431 = vst [vmem:[%s20255_s26 + $0x120] sm:$0xff] %v13430_v49 }
 0xd2a   : >> { %v13434_v0 = vld [vmem:[%s20131_s15 + $0x4c0] sm:$0xff]  ;;  %13433 = vst [vmem:[%s20255_s26 + $0x128] sm:$0xff] %v13432_v41 }
 0xd2b   : >> { %13435 = vst [vmem:[%s20255_s26 + $0x130] sm:$0xff] %v13434_v0  ;;  %v13436_v28 = vld [vmem:[%s20131_s15 + $0x4e0] sm:$0xff] }
 0xd2c   : >> { %v13438_v11 = vld [vmem:[%s20131_s15 + $0x500] sm:$0xff]  ;;  %13437 = vst [vmem:[%s20255_s26 + $0x138] sm:$0xff] %v13436_v28 }
 0xd2d   : >> { %v13440_v56 = vld [vmem:[%s20131_s15 + $0x520] sm:$0xff]  ;;  %13439 = vst [vmem:[%s20255_s26 + $0x140] sm:$0xff] %v13438_v11 }
 0xd2e   : >> { %13441 = vst [vmem:[%s20255_s26 + $0x148] sm:$0xff] %v13440_v56  ;;  %v13442_v16 = vld [vmem:[%s20131_s15 + $0x540] sm:$0xff] }
 0xd2f   : >> { %v13444_v18 = vld [vmem:[%s20131_s15 + $0x560] sm:$0xff]  ;;  %13443 = vst [vmem:[%s20255_s26 + $0x150] sm:$0xff] %v13442_v16 }
 0xd30   : >> { %v13446_v47 = vld [vmem:[%s20131_s15 + $0x580] sm:$0xff]  ;;  %13445 = vst [vmem:[%s20255_s26 + $0x158] sm:$0xff] %v13444_v18 }
 0xd31   : >> { %13447 = vst [vmem:[%s20255_s26 + $0x160] sm:$0xff] %v13446_v47  ;;  %v13448_v3 = vld [vmem:[%s20131_s15 + $0x5a0] sm:$0xff] }
 0xd32   : >> { %v13450_v5 = vld [vmem:[%s20131_s15 + $0x5c0] sm:$0xff]  ;;  %13449 = vst [vmem:[%s20255_s26 + $0x168] sm:$0xff] %v13448_v3 }
 0xd33   : >> { %v13452_v4 = vld [vmem:[%s20131_s15 + $0x5e0] sm:$0xff]  ;;  %13451 = vst [vmem:[%s20255_s26 + $0x170] sm:$0xff] %v13450_v5 }
 0xd34   : >> { %13453 = vst [vmem:[%s20255_s26 + $0x178] sm:$0xff] %v13452_v4  ;;  %v13454_v12 = vld [vmem:[%s20131_s15 + $0x600] sm:$0xff] }
 0xd35   : >> { %v13456_v32 = vld [vmem:[%s20131_s15 + $0x620] sm:$0xff]  ;;  %13455 = vst [vmem:[%s20255_s26 + $0x180] sm:$0xff] %v13454_v12 }
 0xd36   : >> { %v13458_v62 = vld [vmem:[%s20131_s15 + $0x640] sm:$0xff]  ;;  %13457 = vst [vmem:[%s20255_s26 + $0x188] sm:$0xff] %v13456_v32 }
 0xd37   : >> { %13459 = vst [vmem:[%s20255_s26 + $0x190] sm:$0xff] %v13458_v62  ;;  %v13460_v8 = vld [vmem:[%s20131_s15 + $0x660] sm:$0xff] }
 0xd38   : >> { %v13462_v34 = vld [vmem:[%s20131_s15 + $0x680] sm:$0xff]  ;;  %13461 = vst [vmem:[%s20255_s26 + $0x198] sm:$0xff] %v13460_v8 }
 0xd39   : >> { %v13464_v39 = vld [vmem:[%s20131_s15 + $0x6a0] sm:$0xff]  ;;  %13463 = vst [vmem:[%s20255_s26 + $0x1a0] sm:$0xff] %v13462_v34 }
 0xd3a   : >> { %13465 = vst [vmem:[%s20255_s26 + $0x1a8] sm:$0xff] %v13464_v39  ;;  %v13466_v25 = vld [vmem:[%s20131_s15 + $0x6c0] sm:$0xff] }
 0xd3b   : >> { %v13468_v63 = vld [vmem:[%s20131_s15 + $0x6e0] sm:$0xff]  ;;  %13467 = vst [vmem:[%s20255_s26 + $0x1b0] sm:$0xff] %v13466_v25 }
 0xd3c   : >> { %v13470_v59 = vld [vmem:[%s20131_s15 + $0x700] sm:$0xff]  ;;  %13469 = vst [vmem:[%s20255_s26 + $0x1b8] sm:$0xff] %v13468_v63 }
 0xd3d   : >> { %13471 = vst [vmem:[%s20255_s26 + $0x1c0] sm:$0xff] %v13470_v59  ;;  %v13472_v50 = vld [vmem:[%s20131_s15 + $0x720] sm:$0xff] }
 0xd3e   : >> { %v13474_v14 = vld [vmem:[%s20131_s15 + $0x740] sm:$0xff]  ;;  %13473 = vst [vmem:[%s20255_s26 + $0x1c8] sm:$0xff] %v13472_v50  ;;  %13354 = sbr.rel (!%p13351_p12) target bundleno = 3332 (0xd04), region = 261 }
 0xd3f   : >> { %v13476_v61 = vld [vmem:[%s20131_s15 + $0x760] sm:$0xff]  ;;  %13475 = vst [vmem:[%s20255_s26 + $0x1d0] sm:$0xff] %v13474_v14 }
 0xd40   : >> { %13477 = vst [vmem:[%s20255_s26 + $0x1d8] sm:$0xff] %v13476_v61  ;;  %v13478_v10 = vld [vmem:[%s20131_s15 + $0x780] sm:$0xff] }
 0xd41   : >> { %v13480_v21 = vld [vmem:[%s20131_s15 + $0x7a0] sm:$0xff]  ;;  %13479 = vst [vmem:[%s20255_s26 + $0x1e0] sm:$0xff] %v13478_v10 }
 0xd42   : >> { %v13482_v43 = vld [vmem:[%s20131_s15 + $0x7c0] sm:$0xff]  ;;  %13481 = vst [vmem:[%s20255_s26 + $0x1e8] sm:$0xff] %v13480_v21 }
 0xd43   : >> { %13483 = vst [vmem:[%s20255_s26 + $0x1f0] sm:$0xff] %v13482_v43  ;;  %v13484_v42 = vld [vmem:[%s20131_s15 + $0x7e0] sm:$0xff] }
 0xd44   : >> { %13485 = vst [vmem:[%s20255_s26 + $0x1f8] sm:$0xff] %v13484_v42 }
 0xd45 PF: > { %s25_s22 = sadd.s32 1, %s16603_s22   ;;  %s20800_s20 = sld [smem:[#allocation5_spill]] }
 0xd46   : > { %p22_p13 = scmp.ge.s32.totalorder %s25_s22, 4   ;;  %s20801_s21 = sld [smem:[#allocation6_spill]] }
 0xd47   : > { %s20802_s18 = smov %s16591_s19  ;;  %s20803_s19 = smov %s16734_s28 }
 0xd48   :  { %24 = sbr.rel (!%p22_p13) target bundleno = 6 (0x6), region = 283 }

</bundles_post_ra>
